<compile_context>
chip_gen: v7x
topology: tpu7x:2x2x1
jax: 0.10.0
libtpu: 0.0.40
codegen_flags: <defaults>
</compile_context>

<pallas_src>
import jax
import jax.numpy as jnp
from jax import lax
from jax.experimental import pallas as pl
from jax.experimental.pallas import tpu as pltpu

N_PARTICLES = 8
N_DIM = 3
HIDDEN = 32
N_LAYERS = 4


def _silu(x):
    return x * jax.nn.sigmoid(x)


def egnn_dynamics_kernel(
    t_ref,                      # SMEM (1,)          time scalar
    x_ref,                      # VMEM (BB, N, D)    coordinates for this batch block
    emb_w_ref, emb_b_ref,       # (1, H), (1, H)     nn.Linear(1, H)
    w_st_ref,                   # (L, H, 2H)         edge_mlp.0 rows for [h_src | h_tgt]
    w_re_ref,                   # (L, 2, H)          edge_mlp.0 rows for [radial, edge_attr]
    we1_ref,                    # (L, H, H)          edge_mlp.2
    w_n_ref,                    # (L, 2H, H)         node_mlp.0 acting on concat([h, agg])
    wn1_ref,                    # (L, H, H)          node_mlp.2
    wc0_ref,                    # (L, H, H)          coord_mlp.0
    wc1_ref,                    # (L, H, 1)          coord_mlp final Linear(H, 1, bias=False)
    bias_ref,                   # (L, 8, H)          rows: be0, be1, bn0, bn1, bc0, 0, 0, 0
    out_ref,                    # (BB, N, D)
):
    x = x_ref[...]                                               # (BB, N, D)
    BB, N, D = x.shape
    H = emb_w_ref.shape[1]
    L = w_st_ref.shape[0]
    rows_n = BB * N
    rows_e = BB * N * N

    # embedding of h0 = ones * t (condition_time=True): identical row for every node
    t = t_ref[0]
    h_row = t * emb_w_ref[...] + emb_b_ref[...]                  # (1, H)
    h = jnp.broadcast_to(h_row, (rows_n, H))                     # (BB*N, H)

    # edge_attr = ||x_i - x_j||^2 from the *initial* coordinates (fixed across layers)
    diff0 = x[:, :, None, :] - x[:, None, :, :]                  # (BB, N, N, D)
    edge_attr = jnp.sum(diff0 * diff0, axis=-1).reshape(rows_e, 1)

    coord = x
    for l in range(L):                                           # E_GCL layers (unrolled)
        biases = bias_ref[l]                                     # (8, H)
        be0, be1 = biases[0:1, :], biases[1:2, :]
        bn0, bn1 = biases[2:3, :], biases[3:4, :]
        bc0 = biases[4:5, :]

        # coord2radial (norm_diff=True); rsqrt goes to the EUP slot
        diff = coord[:, :, None, :] - coord[:, None, :, :]       # (BB, N, N, D)
        radial = jnp.sum(diff * diff, axis=-1, keepdims=True)    # (BB, N, N, 1)
        diff = diff * lax.rsqrt(radial + 1e-8)

        # ---- edge model: edge_mlp([h_i, h_j, radial, edge_attr]) ----
        a = jnp.dot(h, w_st_ref[l], preferred_element_type=jnp.float32)   # (BB*N, 2H)
        a = a.reshape(BB, N, 2 * H)
        a_src, a_tgt = a[:, :, :H], a[:, :, H:]                  # (BB, N, H) each
        re_feat = jnp.concatenate([radial.reshape(rows_e, 1), edge_attr], axis=1)
        re_pre = jnp.dot(re_feat, w_re_ref[l], preferred_element_type=jnp.float32)
        pre = (a_src[:, :, None, :] + a_tgt[:, None, :, :]
               + re_pre.reshape(BB, N, N, H) + be0)              # (BB, N, N, H)
        m1 = _silu(pre).reshape(rows_e, H)
        edge_feat = _silu(
            jnp.dot(m1, we1_ref[l], preferred_element_type=jnp.float32) + be1)  # (rows_e, H)

        # ---- coord model (tanh=False, agg='sum') ----
        # i == j diagonal has diff == 0 exactly, so no edge mask is needed here.
        c1 = _silu(jnp.dot(edge_feat, wc0_ref[l],
                           preferred_element_type=jnp.float32) + bc0)
        phi = jnp.dot(c1, wc1_ref[l], preferred_element_type=jnp.float32)  # (rows_e, 1)
        trans = diff * phi.reshape(BB, N, N, 1)                  # (BB, N, N, D)
        coord = coord + jnp.sum(trans, axis=2)                   # (BB, N, D)

        # ---- node model (recurrent=True): node_mlp([h, sum_{j!=i} edge_feat]) ----
        # Aggregate over all j, then subtract the diagonal term.  On the diagonal
        # radial == edge_attr == 0, so its edge feature follows from a cheap
        # per-node (BB*N, H) path instead of an (N, N, H) mask multiply.
        ef = edge_feat.reshape(BB, N, N, H)
        pre_d = a_src + a_tgt + be0                              # (BB, N, H)
        ef_d = _silu(jnp.dot(_silu(pre_d).reshape(rows_n, H), we1_ref[l],
                             preferred_element_type=jnp.float32) + be1)
        agg = jnp.sum(ef, axis=2).reshape(rows_n, H) - ef_d      # (BB*N, H)

        hn = jnp.concatenate([h, agg], axis=-1)                  # (BB*N, 2H)
        npre = jnp.dot(hn, w_n_ref[l], preferred_element_type=jnp.float32) + bn0
        h = h + (jnp.dot(_silu(npre), wn1_ref[l],
                         preferred_element_type=jnp.float32) + bn1)

    # EGNN.embedding_out only affects the returned h, which EGNN_dynamics discards;
    # the dynamics output depends on coordinates only, so it is omitted here.

    # vel = x_final - x, then remove_mean over particles (dim=1 of (B, N, D))
    vel = coord - x
    vel = vel - jnp.mean(vel, axis=1, keepdims=True)
    out_ref[...] = vel.astype(out_ref.dtype)


def make_params(key, hidden=HIDDEN, n_layers=N_LAYERS):
    """Deterministic synthetic parameters with the shapes implied by __init__."""
    H, L = hidden, n_layers
    ks = jax.random.split(key, 17)

    def w(k, shape, scale=0.1):
        return jax.random.normal(k, shape, jnp.float32) * scale

    return dict(
        emb_w=w(ks[0], (1, H)),              # nn.Linear(1, H)   (in_node_nf = 1)
        emb_b=w(ks[1], (1, H)),
        we_src=w(ks[2], (L, H, H)),          # edge_mlp layer 0, rows for h[row]
        we_tgt=w(ks[3], (L, H, H)),          # edge_mlp layer 0, rows for h[col]
        we_rad=w(ks[4], (L, 1, H)),          # edge_mlp layer 0, row for radial
        we_ea=w(ks[5], (L, 1, H)),           # edge_mlp layer 0, row for edge_attr
        be0=w(ks[6], (L, 1, H)),
        we1=w(ks[7], (L, H, H)),             # edge_mlp layer 1
        be1=w(ks[8], (L, 1, H)),
        wn_h=w(ks[9], (L, H, H)),            # node_mlp layer 0, rows for h
        wn_agg=w(ks[10], (L, H, H)),         # node_mlp layer 0, rows for aggregate
        bn0=w(ks[11], (L, 1, H)),
        wn1=w(ks[12], (L, H, H)),            # node_mlp layer 1
        bn1=w(ks[13], (L, 1, H)),
        wc0=w(ks[14], (L, H, H)),            # coord_mlp layer 0
        bc0=w(ks[15], (L, 1, H)),
        wc1=w(ks[16], (L, 1, H)) * 0.01,     # coord_mlp final Linear(H,1,bias=False)
    )


def _pack_weights(params):
    """Fuse / pack parameters for wider MXU lanes and fewer kernel inputs."""
    p = params
    w_st = jnp.concatenate([p["we_src"], p["we_tgt"]], axis=-1)          # (L, H, 2H)
    w_re = jnp.concatenate([p["we_rad"], p["we_ea"]], axis=1)            # (L, 2, H)
    w_n = jnp.concatenate([p["wn_h"], p["wn_agg"]], axis=1)              # (L, 2H, H)
    wc1 = jnp.transpose(p["wc1"], (0, 2, 1))                             # (L, H, 1)
    zero = jnp.zeros_like(p["be0"])
    bias = jnp.concatenate(
        [p["be0"], p["be1"], p["bn0"], p["bn1"], p["bc0"], zero, zero, zero],
        axis=1)                                                          # (L, 8, H)
    return (p["emb_w"], p["emb_b"], w_st, w_re, p["we1"], w_n, p["wn1"],
            p["wc0"], wc1, bias)


def egnn_dynamics_forward(t, xs, params, n_particles=N_PARTICLES, n_dim=N_DIM,
                          block_batch=64, vmem_limit_bytes=48 * 1024 * 1024):
    """xs: (B, n_particles*n_dim) -> vel: (B, n_particles*n_dim)."""
    B = xs.shape[0]
    BB = min(block_batch, B)                      # graphs per grid step
    B_pad = pl.cdiv(B, BB) * BB

    x = xs.reshape(B, n_particles, n_dim).astype(jnp.float32)
    if B_pad != B:
        x = jnp.concatenate(
            [x, jnp.zeros((B_pad - B, n_particles, n_dim), jnp.float32)], axis=0)
    t_arr = jnp.asarray(t, jnp.float32).reshape(1)

    weights = _pack_weights(params)

    def full_spec(a):
        return pl.BlockSpec(a.shape, lambda b, _nd=a.ndim: (0,) * _nd)

    in_specs = (
        [pl.BlockSpec(memory_space=pltpu.MemorySpace.SMEM),                # t scalar
         pl.BlockSpec((BB, n_particles, n_dim), lambda b: (b, 0, 0))]      # coords block
        + [full_spec(a) for a in weights]
    )

    out = pl.pallas_call(
        egnn_dynamics_kernel,
        out_shape=jax.ShapeDtypeStruct((B_pad, n_particles, n_dim), jnp.float32),
        grid=(B_pad // BB,),
        in_specs=in_specs,
        out_specs=pl.BlockSpec((BB, n_particles, n_dim), lambda b: (b, 0, 0)),
        compiler_params=pltpu.CompilerParams(
            dimension_semantics=("parallel",),
            vmem_limit_bytes=vmem_limit_bytes),
    )(t_arr, x, *weights)
    return out[:B].reshape(B, n_particles * n_dim)


def reference_forward(t, xs, params, n_particles=N_PARTICLES, n_dim=N_DIM):
    """Pure-JAX replica of the PyTorch forward (explicit batched edge lists)."""
    B = xs.shape[0]
    rows, cols = [], []
    for i in range(n_particles):
        for j in range(i + 1, n_particles):
            rows += [i, j]
            cols += [j, i]
    rows = jnp.array(rows, jnp.int32)
    cols = jnp.array(cols, jnp.int32)
    rows = jnp.concatenate([rows + b * n_particles for b in range(B)])
    cols = jnp.concatenate([cols + b * n_particles for b in range(B)])

    p = params
    x = xs.reshape(B * n_particles, n_dim).astype(jnp.float32)
    h = jnp.full((B * n_particles, 1), jnp.float32(t))
    edge_attr = jnp.sum((x[rows] - x[cols]) ** 2, axis=1, keepdims=True)

    h = h @ p["emb_w"] + p["emb_b"]
    coord = x
    nseg = B * n_particles
    for l in range(N_LAYERS):
        diff = coord[rows] - coord[cols]
        radial = jnp.sum(diff ** 2, axis=1, keepdims=True)
        diff = diff / jnp.sqrt(radial + 1e-8)
        pre = (h[rows] @ p["we_src"][l] + h[cols] @ p["we_tgt"][l]
               + radial * p["we_rad"][l] + edge_attr * p["we_ea"][l] + p["be0"][l])
        ef = jax.nn.silu(jax.nn.silu(pre) @ p["we1"][l] + p["be1"][l])
        c1 = jax.nn.silu(ef @ p["wc0"][l] + p["bc0"][l])
        phi = jnp.sum(c1 * p["wc1"][l], axis=-1, keepdims=True)
        coord = coord + jax.ops.segment_sum(diff * phi, rows, num_segments=nseg)
        agg = jax.ops.segment_sum(ef, rows, num_segments=nseg)
        npre = h @ p["wn_h"][l] + agg @ p["wn_agg"][l] + p["bn0"][l]
        h = h + (jax.nn.silu(npre) @ p["wn1"][l] + p["bn1"][l])
    vel = (coord - x).reshape(B, n_particles, n_dim)
    vel = vel - jnp.mean(vel, axis=1, keepdims=True)
    return vel.reshape(B, n_particles * n_dim)


if __name__ == "__main__":
    key = jax.random.PRNGKey(0)
    kp, kx = jax.random.split(key)
    params = make_params(kp)
    t = 0.5

    # Small-shape check (B=2, single grid step, no padding).
    B = 2
    xs = jax.random.normal(kx, (B, N_PARTICLES * N_DIM), jnp.float32)
    vel = jax.block_until_ready(egnn_dynamics_forward(t, xs, params))
    assert vel.shape == (B, N_PARTICLES * N_DIM)
    ref = reference_forward(t, xs, params)
    assert bool(jnp.allclose(vel, ref, rtol=1e-4, atol=1e-5)), "mismatch vs reference (B=2)"

    # Exercise batch-blocking, padding and a multi-step 'parallel' grid (B=5, BB=2).
    B2 = 5
    xs2 = jax.random.normal(jax.random.PRNGKey(7), (B2, N_PARTICLES * N_DIM), jnp.float32)
    vel2 = jax.block_until_ready(egnn_dynamics_forward(t, xs2, params, block_batch=2))
    ref2 = reference_forward(t, xs2, params)
    assert bool(jnp.allclose(vel2, ref2, rtol=1e-4, atol=1e-5)), \
        "mismatch vs reference (B=5, padded grid)"

    print("KERNEL_OK")
</pallas_src>

<mosaic_0001>
module attributes {stable_mosaic.version = 11 : i64} {
  func.func @egnn_dynamics_kernel(%arg0: i32, %arg1: memref<1xf32, #tpu.memory_space<smem>>, %arg2: memref<2x8x3xf32, #tpu.memory_space<vmem>>, %arg3: memref<1x32xf32, #tpu.memory_space<vmem>>, %arg4: memref<1x32xf32, #tpu.memory_space<vmem>>, %arg5: memref<4x32x64xf32, #tpu.memory_space<vmem>>, %arg6: memref<4x2x32xf32, #tpu.memory_space<vmem>>, %arg7: memref<4x32x32xf32, #tpu.memory_space<vmem>>, %arg8: memref<4x64x32xf32, #tpu.memory_space<vmem>>, %arg9: memref<4x32x32xf32, #tpu.memory_space<vmem>>, %arg10: memref<4x32x32xf32, #tpu.memory_space<vmem>>, %arg11: memref<4x32x1xf32, #tpu.memory_space<vmem>>, %arg12: memref<4x8x32xf32, #tpu.memory_space<vmem>>, %arg13: memref<2x8x3xf32, #tpu.memory_space<vmem>>) attributes {dimension_semantics = [#tpu.dimension_semantics<parallel>], iteration_bounds = array<i64: 1>, scalar_prefetch = 0 : i64, scratch_operands = 0 : i64, tpu.core_type = #tpu.core_type<tc>, window_params = [{transform_indices = @transform_0, window_bounds = array<i64: 1>}, {transform_indices = @transform_1, window_bounds = array<i64: 2, 8, 3>}, {pipeline_mode = #tpu.pipeline_mode<synchronous>, transform_indices = @transform_2, window_bounds = array<i64: 1, 32>}, {pipeline_mode = #tpu.pipeline_mode<synchronous>, transform_indices = @transform_3, window_bounds = array<i64: 1, 32>}, {pipeline_mode = #tpu.pipeline_mode<synchronous>, transform_indices = @transform_4, window_bounds = array<i64: 4, 32, 64>}, {pipeline_mode = #tpu.pipeline_mode<synchronous>, transform_indices = @transform_5, window_bounds = array<i64: 4, 2, 32>}, {pipeline_mode = #tpu.pipeline_mode<synchronous>, transform_indices = @transform_6, window_bounds = array<i64: 4, 32, 32>}, {pipeline_mode = #tpu.pipeline_mode<synchronous>, transform_indices = @transform_7, window_bounds = array<i64: 4, 64, 32>}, {pipeline_mode = #tpu.pipeline_mode<synchronous>, transform_indices = @transform_8, window_bounds = array<i64: 4, 32, 32>}, {pipeline_mode = #tpu.pipeline_mode<synchronous>, transform_indices = @transform_9, window_bounds = array<i64: 4, 32, 32>}, {pipeline_mode = #tpu.pipeline_mode<synchronous>, transform_indices = @transform_10, window_bounds = array<i64: 4, 32, 1>}, {pipeline_mode = #tpu.pipeline_mode<synchronous>, transform_indices = @transform_11, window_bounds = array<i64: 4, 8, 32>}, {transform_indices = @transform_12, window_bounds = array<i64: 2, 8, 3>}]} {
    %c0 = arith.constant 0 : index
    %c0_0 = arith.constant 0 : index
    %c0_1 = arith.constant 0 : index
    %0 = vector.load %arg2[%c0, %c0_0, %c0_1] : memref<2x8x3xf32, #tpu.memory_space<vmem>>, vector<2x8x3xf32>
    %c0_2 = arith.constant 0 : index
    %1 = memref.load %arg1[%c0_2] : memref<1xf32, #tpu.memory_space<smem>>
    %c0_3 = arith.constant 0 : index
    %c0_4 = arith.constant 0 : index
    %2 = vector.load %arg3[%c0_3, %c0_4] : memref<1x32xf32, #tpu.memory_space<vmem>>, vector<1x32xf32>
    %3 = vector.broadcast %1 : f32 to vector<1x32xf32>
    %4 = arith.mulf %3, %2 : vector<1x32xf32>
    %c0_5 = arith.constant 0 : index
    %c0_6 = arith.constant 0 : index
    %5 = vector.load %arg4[%c0_5, %c0_6] : memref<1x32xf32, #tpu.memory_space<vmem>>, vector<1x32xf32>
    %6 = arith.addf %4, %5 : vector<1x32xf32>
    %7 = vector.shape_cast %6 : vector<1x32xf32> to vector<1x32xf32>
    %8 = vector.broadcast %7 : vector<1x32xf32> to vector<16x32xf32>
    %9 = vector.shape_cast %0 : vector<2x8x3xf32> to vector<2x8x1x3xf32>
    %10 = vector.shape_cast %0 : vector<2x8x3xf32> to vector<2x1x8x3xf32>
    %11 = vector.broadcast %9 : vector<2x8x1x3xf32> to vector<2x8x8x3xf32>
    %12 = vector.broadcast %10 : vector<2x1x8x3xf32> to vector<2x8x8x3xf32>
    %13 = arith.subf %11, %12 : vector<2x8x8x3xf32>
    %14 = arith.mulf %13, %13 : vector<2x8x8x3xf32>
    %cst = arith.constant dense<0.000000e+00> : vector<2x8x8xf32>
    %15 = vector.multi_reduction <add>, %14, %cst [3] : vector<2x8x8x3xf32> to vector<2x8x8xf32>
    %16 = vector.shape_cast %15 : vector<2x8x8xf32> to vector<128x1xf32>
    %c0_7 = arith.constant 0 : index
    %c0_8 = arith.constant 0 : index
    %c0_9 = arith.constant 0 : index
    %17 = vector.load %arg12[%c0_7, %c0_8, %c0_9] : memref<4x8x32xf32, #tpu.memory_space<vmem>>, vector<1x8x32xf32>
    %18 = vector.shape_cast %17 : vector<1x8x32xf32> to vector<8x32xf32>
    %19 = vector.extract_strided_slice %18 {offsets = [0, 0], sizes = [1, 32], strides = [1, 1]} : vector<8x32xf32> to vector<1x32xf32>
    %20 = vector.extract_strided_slice %18 {offsets = [1, 0], sizes = [1, 32], strides = [1, 1]} : vector<8x32xf32> to vector<1x32xf32>
    %21 = vector.extract_strided_slice %18 {offsets = [2, 0], sizes = [1, 32], strides = [1, 1]} : vector<8x32xf32> to vector<1x32xf32>
    %22 = vector.extract_strided_slice %18 {offsets = [3, 0], sizes = [1, 32], strides = [1, 1]} : vector<8x32xf32> to vector<1x32xf32>
    %23 = vector.extract_strided_slice %18 {offsets = [4, 0], sizes = [1, 32], strides = [1, 1]} : vector<8x32xf32> to vector<1x32xf32>
    %24 = vector.shape_cast %0 : vector<2x8x3xf32> to vector<2x8x1x3xf32>
    %25 = vector.shape_cast %0 : vector<2x8x3xf32> to vector<2x1x8x3xf32>
    %26 = vector.broadcast %24 : vector<2x8x1x3xf32> to vector<2x8x8x3xf32>
    %27 = vector.broadcast %25 : vector<2x1x8x3xf32> to vector<2x8x8x3xf32>
    %28 = arith.subf %26, %27 : vector<2x8x8x3xf32>
    %29 = arith.mulf %28, %28 : vector<2x8x8x3xf32>
    %cst_10 = arith.constant dense<0.000000e+00> : vector<2x8x8xf32>
    %30 = vector.multi_reduction <add>, %29, %cst_10 [3] : vector<2x8x8x3xf32> to vector<2x8x8xf32>
    %31 = vector.shape_cast %30 : vector<2x8x8xf32> to vector<2x8x8x1xf32>
    %cst_11 = arith.constant 9.99999993E-9 : f32
    %32 = vector.broadcast %cst_11 : f32 to vector<2x8x8x1xf32>
    %33 = arith.addf %31, %32 : vector<2x8x8x1xf32>
    %34 = math.rsqrt %33 : vector<2x8x8x1xf32>
    %35 = vector.broadcast %34 : vector<2x8x8x1xf32> to vector<2x8x8x3xf32>
    %36 = arith.mulf %28, %35 : vector<2x8x8x3xf32>
    %c0_12 = arith.constant 0 : index
    %c0_13 = arith.constant 0 : index
    %c0_14 = arith.constant 0 : index
    %37 = vector.load %arg5[%c0_12, %c0_13, %c0_14] : memref<4x32x64xf32, #tpu.memory_space<vmem>>, vector<1x32x64xf32>
    %38 = vector.shape_cast %37 : vector<1x32x64xf32> to vector<32x64xf32>
    %cst_15 = arith.constant dense<0.000000e+00> : vector<16x64xf32>
    %39 = tpu.matmul %8, %38, %cst_15 {dimension_numbers = #tpu.dot_dimension_numbers<[1], [0], [0], [1], [0, 0, 1, 1], [], []>} : vector<16x32xf32>, vector<32x64xf32>, vector<16x64xf32> -> vector<16x64xf32>
    %40 = vector.shape_cast %39 : vector<16x64xf32> to vector<2x8x64xf32>
    %41 = vector.extract_strided_slice %40 {offsets = [0, 0, 0], sizes = [2, 8, 32], strides = [1, 1, 1]} : vector<2x8x64xf32> to vector<2x8x32xf32>
    %42 = vector.extract_strided_slice %40 {offsets = [0, 0, 32], sizes = [2, 8, 32], strides = [1, 1, 1]} : vector<2x8x64xf32> to vector<2x8x32xf32>
    %43 = vector.shape_cast %31 : vector<2x8x8x1xf32> to vector<128x1xf32>
    %44 = tpu.concatenate %43, %16 in 1 : vector<128x1xf32>, vector<128x1xf32> -> vector<128x2xf32>
    %c0_16 = arith.constant 0 : index
    %c0_17 = arith.constant 0 : index
    %c0_18 = arith.constant 0 : index
    %45 = vector.load %arg6[%c0_16, %c0_17, %c0_18] : memref<4x2x32xf32, #tpu.memory_space<vmem>>, vector<1x2x32xf32>
    %46 = vector.shape_cast %45 : vector<1x2x32xf32> to vector<2x32xf32>
    %cst_19 = arith.constant dense<0.000000e+00> : vector<128x32xf32>
    %47 = tpu.matmul %44, %46, %cst_19 {dimension_numbers = #tpu.dot_dimension_numbers<[1], [0], [0], [1], [0, 0, 1, 1], [], []>} : vector<128x2xf32>, vector<2x32xf32>, vector<128x32xf32> -> vector<128x32xf32>
    %48 = vector.shape_cast %41 : vector<2x8x32xf32> to vector<2x8x1x32xf32>
    %49 = vector.shape_cast %42 : vector<2x8x32xf32> to vector<2x1x8x32xf32>
    %50 = vector.broadcast %48 : vector<2x8x1x32xf32> to vector<2x8x8x32xf32>
    %51 = vector.broadcast %49 : vector<2x1x8x32xf32> to vector<2x8x8x32xf32>
    %52 = arith.addf %50, %51 : vector<2x8x8x32xf32>
    %53 = vector.shape_cast %47 : vector<128x32xf32> to vector<2x8x8x32xf32>
    %54 = arith.addf %52, %53 : vector<2x8x8x32xf32>
    %55 = vector.shape_cast %19 : vector<1x32xf32> to vector<1x1x1x32xf32>
    %56 = vector.broadcast %55 : vector<1x1x1x32xf32> to vector<2x8x8x32xf32>
    %57 = arith.addf %54, %56 : vector<2x8x8x32xf32>
    %58 = arith.negf %57 : vector<2x8x8x32xf32>
    %59 = math.exp %58 : vector<2x8x8x32xf32>
    %cst_20 = arith.constant 1.000000e+00 : f32
    %60 = vector.broadcast %cst_20 : f32 to vector<2x8x8x32xf32>
    %61 = arith.addf %60, %59 : vector<2x8x8x32xf32>
    %62 = arith.divf %60, %61 : vector<2x8x8x32xf32>
    %63 = arith.mulf %57, %62 : vector<2x8x8x32xf32>
    %64 = vector.shape_cast %63 : vector<2x8x8x32xf32> to vector<128x32xf32>
    %c0_21 = arith.constant 0 : index
    %c0_22 = arith.constant 0 : index
    %c0_23 = arith.constant 0 : index
    %65 = vector.load %arg7[%c0_21, %c0_22, %c0_23] : memref<4x32x32xf32, #tpu.memory_space<vmem>>, vector<1x32x32xf32>
    %66 = vector.shape_cast %65 : vector<1x32x32xf32> to vector<32x32xf32>
    %cst_24 = arith.constant dense<0.000000e+00> : vector<128x32xf32>
    %67 = tpu.matmul %64, %66, %cst_24 {dimension_numbers = #tpu.dot_dimension_numbers<[1], [0], [0], [1], [0, 0, 1, 1], [], []>} : vector<128x32xf32>, vector<32x32xf32>, vector<128x32xf32> -> vector<128x32xf32>
    %68 = vector.broadcast %20 : vector<1x32xf32> to vector<128x32xf32>
    %69 = arith.addf %67, %68 : vector<128x32xf32>
    %70 = arith.negf %69 : vector<128x32xf32>
    %71 = math.exp %70 : vector<128x32xf32>
    %cst_25 = arith.constant 1.000000e+00 : f32
    %72 = vector.broadcast %cst_25 : f32 to vector<128x32xf32>
    %73 = arith.addf %72, %71 : vector<128x32xf32>
    %74 = arith.divf %72, %73 : vector<128x32xf32>
    %75 = arith.mulf %69, %74 : vector<128x32xf32>
    %c0_26 = arith.constant 0 : index
    %c0_27 = arith.constant 0 : index
    %c0_28 = arith.constant 0 : index
    %76 = vector.load %arg10[%c0_26, %c0_27, %c0_28] : memref<4x32x32xf32, #tpu.memory_space<vmem>>, vector<1x32x32xf32>
    %77 = vector.shape_cast %76 : vector<1x32x32xf32> to vector<32x32xf32>
    %cst_29 = arith.constant dense<0.000000e+00> : vector<128x32xf32>
    %78 = tpu.matmul %75, %77, %cst_29 {dimension_numbers = #tpu.dot_dimension_numbers<[1], [0], [0], [1], [0, 0, 1, 1], [], []>} : vector<128x32xf32>, vector<32x32xf32>, vector<128x32xf32> -> vector<128x32xf32>
    %79 = vector.broadcast %23 : vector<1x32xf32> to vector<128x32xf32>
    %80 = arith.addf %78, %79 : vector<128x32xf32>
    %81 = arith.negf %80 : vector<128x32xf32>
    %82 = math.exp %81 : vector<128x32xf32>
    %cst_30 = arith.constant 1.000000e+00 : f32
    %83 = vector.broadcast %cst_30 : f32 to vector<128x32xf32>
    %84 = arith.addf %83, %82 : vector<128x32xf32>
    %85 = arith.divf %83, %84 : vector<128x32xf32>
    %86 = arith.mulf %80, %85 : vector<128x32xf32>
    %c0_31 = arith.constant 0 : index
    %c0_32 = arith.constant 0 : index
    %c0_33 = arith.constant 0 : index
    %87 = vector.load %arg11[%c0_31, %c0_32, %c0_33] : memref<4x32x1xf32, #tpu.memory_space<vmem>>, vector<1x32x1xf32>
    %88 = vector.shape_cast %87 : vector<1x32x1xf32> to vector<32x1xf32>
    %cst_34 = arith.constant dense<0.000000e+00> : vector<128x1xf32>
    %89 = tpu.matmul %86, %88, %cst_34 {dimension_numbers = #tpu.dot_dimension_numbers<[1], [0], [0], [1], [0, 0, 1, 1], [], []>} : vector<128x32xf32>, vector<32x1xf32>, vector<128x1xf32> -> vector<128x1xf32>
    %90 = vector.shape_cast %89 : vector<128x1xf32> to vector<2x8x8x1xf32>
    %91 = vector.broadcast %90 : vector<2x8x8x1xf32> to vector<2x8x8x3xf32>
    %92 = arith.mulf %36, %91 : vector<2x8x8x3xf32>
    %cst_35 = arith.constant dense<0.000000e+00> : vector<2x8x3xf32>
    %93 = vector.multi_reduction <add>, %92, %cst_35 [2] : vector<2x8x8x3xf32> to vector<2x8x3xf32>
    %94 = arith.addf %0, %93 : vector<2x8x3xf32>
    %95 = vector.shape_cast %75 : vector<128x32xf32> to vector<2x8x8x32xf32>
    %96 = arith.addf %41, %42 : vector<2x8x32xf32>
    %97 = vector.shape_cast %19 : vector<1x32xf32> to vector<1x1x32xf32>
    %98 = vector.broadcast %97 : vector<1x1x32xf32> to vector<2x8x32xf32>
    %99 = arith.addf %96, %98 : vector<2x8x32xf32>
    %100 = arith.negf %99 : vector<2x8x32xf32>
    %101 = math.exp %100 : vector<2x8x32xf32>
    %cst_36 = arith.constant 1.000000e+00 : f32
    %102 = vector.broadcast %cst_36 : f32 to vector<2x8x32xf32>
    %103 = arith.addf %102, %101 : vector<2x8x32xf32>
    %104 = arith.divf %102, %103 : vector<2x8x32xf32>
    %105 = arith.mulf %99, %104 : vector<2x8x32xf32>
    %106 = vector.shape_cast %105 : vector<2x8x32xf32> to vector<16x32xf32>
    %c0_37 = arith.constant 0 : index
    %c0_38 = arith.constant 0 : index
    %c0_39 = arith.constant 0 : index
    %107 = vector.load %arg7[%c0_37, %c0_38, %c0_39] : memref<4x32x32xf32, #tpu.memory_space<vmem>>, vector<1x32x32xf32>
    %108 = vector.shape_cast %107 : vector<1x32x32xf32> to vector<32x32xf32>
    %cst_40 = arith.constant dense<0.000000e+00> : vector<16x32xf32>
    %109 = tpu.matmul %106, %108, %cst_40 {dimension_numbers = #tpu.dot_dimension_numbers<[1], [0], [0], [1], [0, 0, 1, 1], [], []>} : vector<16x32xf32>, vector<32x32xf32>, vector<16x32xf32> -> vector<16x32xf32>
    %110 = vector.broadcast %20 : vector<1x32xf32> to vector<16x32xf32>
    %111 = arith.addf %109, %110 : vector<16x32xf32>
    %112 = arith.negf %111 : vector<16x32xf32>
    %113 = math.exp %112 : vector<16x32xf32>
    %cst_41 = arith.constant 1.000000e+00 : f32
    %114 = vector.broadcast %cst_41 : f32 to vector<16x32xf32>
    %115 = arith.addf %114, %113 : vector<16x32xf32>
    %116 = arith.divf %114, %115 : vector<16x32xf32>
    %117 = arith.mulf %111, %116 : vector<16x32xf32>
    %cst_42 = arith.constant dense<0.000000e+00> : vector<2x8x32xf32>
    %118 = vector.multi_reduction <add>, %95, %cst_42 [2] : vector<2x8x8x32xf32> to vector<2x8x32xf32>
    %119 = vector.shape_cast %118 : vector<2x8x32xf32> to vector<16x32xf32>
    %120 = arith.subf %119, %117 : vector<16x32xf32>
    %121 = tpu.concatenate %8, %120 in 1 : vector<16x32xf32>, vector<16x32xf32> -> vector<16x64xf32>
    %c0_43 = arith.constant 0 : index
    %c0_44 = arith.constant 0 : index
    %c0_45 = arith.constant 0 : index
    %122 = vector.load %arg8[%c0_43, %c0_44, %c0_45] : memref<4x64x32xf32, #tpu.memory_space<vmem>>, vector<1x64x32xf32>
    %123 = vector.shape_cast %122 : vector<1x64x32xf32> to vector<64x32xf32>
    %cst_46 = arith.constant dense<0.000000e+00> : vector<16x32xf32>
    %124 = tpu.matmul %121, %123, %cst_46 {dimension_numbers = #tpu.dot_dimension_numbers<[1], [0], [0], [1], [0, 0, 1, 1], [], []>} : vector<16x64xf32>, vector<64x32xf32>, vector<16x32xf32> -> vector<16x32xf32>
    %125 = vector.broadcast %21 : vector<1x32xf32> to vector<16x32xf32>
    %126 = arith.addf %124, %125 : vector<16x32xf32>
    %127 = arith.negf %126 : vector<16x32xf32>
    %128 = math.exp %127 : vector<16x32xf32>
    %cst_47 = arith.constant 1.000000e+00 : f32
    %129 = vector.broadcast %cst_47 : f32 to vector<16x32xf32>
    %130 = arith.addf %129, %128 : vector<16x32xf32>
    %131 = arith.divf %129, %130 : vector<16x32xf32>
    %132 = arith.mulf %126, %131 : vector<16x32xf32>
    %c0_48 = arith.constant 0 : index
    %c0_49 = arith.constant 0 : index
    %c0_50 = arith.constant 0 : index
    %133 = vector.load %arg9[%c0_48, %c0_49, %c0_50] : memref<4x32x32xf32, #tpu.memory_space<vmem>>, vector<1x32x32xf32>
    %134 = vector.shape_cast %133 : vector<1x32x32xf32> to vector<32x32xf32>
    %cst_51 = arith.constant dense<0.000000e+00> : vector<16x32xf32>
    %135 = tpu.matmul %132, %134, %cst_51 {dimension_numbers = #tpu.dot_dimension_numbers<[1], [0], [0], [1], [0, 0, 1, 1], [], []>} : vector<16x32xf32>, vector<32x32xf32>, vector<16x32xf32> -> vector<16x32xf32>
    %136 = vector.broadcast %22 : vector<1x32xf32> to vector<16x32xf32>
    %137 = arith.addf %135, %136 : vector<16x32xf32>
    %138 = arith.addf %8, %137 : vector<16x32xf32>
    %c1 = arith.constant 1 : index
    %c0_52 = arith.constant 0 : index
    %c0_53 = arith.constant 0 : index
    %139 = vector.load %arg12[%c1, %c0_52, %c0_53] : memref<4x8x32xf32, #tpu.memory_space<vmem>>, vector<1x8x32xf32>
    %140 = vector.shape_cast %139 : vector<1x8x32xf32> to vector<8x32xf32>
    %141 = vector.extract_strided_slice %140 {offsets = [0, 0], sizes = [1, 32], strides = [1, 1]} : vector<8x32xf32> to vector<1x32xf32>
    %142 = vector.extract_strided_slice %140 {offsets = [1, 0], sizes = [1, 32], strides = [1, 1]} : vector<8x32xf32> to vector<1x32xf32>
    %143 = vector.extract_strided_slice %140 {offsets = [2, 0], sizes = [1, 32], strides = [1, 1]} : vector<8x32xf32> to vector<1x32xf32>
    %144 = vector.extract_strided_slice %140 {offsets = [3, 0], sizes = [1, 32], strides = [1, 1]} : vector<8x32xf32> to vector<1x32xf32>
    %145 = vector.extract_strided_slice %140 {offsets = [4, 0], sizes = [1, 32], strides = [1, 1]} : vector<8x32xf32> to vector<1x32xf32>
    %146 = vector.shape_cast %94 : vector<2x8x3xf32> to vector<2x8x1x3xf32>
    %147 = vector.shape_cast %94 : vector<2x8x3xf32> to vector<2x1x8x3xf32>
    %148 = vector.broadcast %146 : vector<2x8x1x3xf32> to vector<2x8x8x3xf32>
    %149 = vector.broadcast %147 : vector<2x1x8x3xf32> to vector<2x8x8x3xf32>
    %150 = arith.subf %148, %149 : vector<2x8x8x3xf32>
    %151 = arith.mulf %150, %150 : vector<2x8x8x3xf32>
    %cst_54 = arith.constant dense<0.000000e+00> : vector<2x8x8xf32>
    %152 = vector.multi_reduction <add>, %151, %cst_54 [3] : vector<2x8x8x3xf32> to vector<2x8x8xf32>
    %153 = vector.shape_cast %152 : vector<2x8x8xf32> to vector<2x8x8x1xf32>
    %cst_55 = arith.constant 9.99999993E-9 : f32
    %154 = vector.broadcast %cst_55 : f32 to vector<2x8x8x1xf32>
    %155 = arith.addf %153, %154 : vector<2x8x8x1xf32>
    %156 = math.rsqrt %155 : vector<2x8x8x1xf32>
    %157 = vector.broadcast %156 : vector<2x8x8x1xf32> to vector<2x8x8x3xf32>
    %158 = arith.mulf %150, %157 : vector<2x8x8x3xf32>
    %c1_56 = arith.constant 1 : index
    %c0_57 = arith.constant 0 : index
    %c0_58 = arith.constant 0 : index
    %159 = vector.load %arg5[%c1_56, %c0_57, %c0_58] : memref<4x32x64xf32, #tpu.memory_space<vmem>>, vector<1x32x64xf32>
    %160 = vector.shape_cast %159 : vector<1x32x64xf32> to vector<32x64xf32>
    %cst_59 = arith.constant dense<0.000000e+00> : vector<16x64xf32>
    %161 = tpu.matmul %138, %160, %cst_59 {dimension_numbers = #tpu.dot_dimension_numbers<[1], [0], [0], [1], [0, 0, 1, 1], [], []>} : vector<16x32xf32>, vector<32x64xf32>, vector<16x64xf32> -> vector<16x64xf32>
    %162 = vector.shape_cast %161 : vector<16x64xf32> to vector<2x8x64xf32>
    %163 = vector.extract_strided_slice %162 {offsets = [0, 0, 0], sizes = [2, 8, 32], strides = [1, 1, 1]} : vector<2x8x64xf32> to vector<2x8x32xf32>
    %164 = vector.extract_strided_slice %162 {offsets = [0, 0, 32], sizes = [2, 8, 32], strides = [1, 1, 1]} : vector<2x8x64xf32> to vector<2x8x32xf32>
    %165 = vector.shape_cast %153 : vector<2x8x8x1xf32> to vector<128x1xf32>
    %166 = tpu.concatenate %165, %16 in 1 : vector<128x1xf32>, vector<128x1xf32> -> vector<128x2xf32>
    %c1_60 = arith.constant 1 : index
    %c0_61 = arith.constant 0 : index
    %c0_62 = arith.constant 0 : index
    %167 = vector.load %arg6[%c1_60, %c0_61, %c0_62] : memref<4x2x32xf32, #tpu.memory_space<vmem>>, vector<1x2x32xf32>
    %168 = vector.shape_cast %167 : vector<1x2x32xf32> to vector<2x32xf32>
    %cst_63 = arith.constant dense<0.000000e+00> : vector<128x32xf32>
    %169 = tpu.matmul %166, %168, %cst_63 {dimension_numbers = #tpu.dot_dimension_numbers<[1], [0], [0], [1], [0, 0, 1, 1], [], []>} : vector<128x2xf32>, vector<2x32xf32>, vector<128x32xf32> -> vector<128x32xf32>
    %170 = vector.shape_cast %163 : vector<2x8x32xf32> to vector<2x8x1x32xf32>
    %171 = vector.shape_cast %164 : vector<2x8x32xf32> to vector<2x1x8x32xf32>
    %172 = vector.broadcast %170 : vector<2x8x1x32xf32> to vector<2x8x8x32xf32>
    %173 = vector.broadcast %171 : vector<2x1x8x32xf32> to vector<2x8x8x32xf32>
    %174 = arith.addf %172, %173 : vector<2x8x8x32xf32>
    %175 = vector.shape_cast %169 : vector<128x32xf32> to vector<2x8x8x32xf32>
    %176 = arith.addf %174, %175 : vector<2x8x8x32xf32>
    %177 = vector.shape_cast %141 : vector<1x32xf32> to vector<1x1x1x32xf32>
    %178 = vector.broadcast %177 : vector<1x1x1x32xf32> to vector<2x8x8x32xf32>
    %179 = arith.addf %176, %178 : vector<2x8x8x32xf32>
    %180 = arith.negf %179 : vector<2x8x8x32xf32>
    %181 = math.exp %180 : vector<2x8x8x32xf32>
    %cst_64 = arith.constant 1.000000e+00 : f32
    %182 = vector.broadcast %cst_64 : f32 to vector<2x8x8x32xf32>
    %183 = arith.addf %182, %181 : vector<2x8x8x32xf32>
    %184 = arith.divf %182, %183 : vector<2x8x8x32xf32>
    %185 = arith.mulf %179, %184 : vector<2x8x8x32xf32>
    %186 = vector.shape_cast %185 : vector<2x8x8x32xf32> to vector<128x32xf32>
    %c1_65 = arith.constant 1 : index
    %c0_66 = arith.constant 0 : index
    %c0_67 = arith.constant 0 : index
    %187 = vector.load %arg7[%c1_65, %c0_66, %c0_67] : memref<4x32x32xf32, #tpu.memory_space<vmem>>, vector<1x32x32xf32>
    %188 = vector.shape_cast %187 : vector<1x32x32xf32> to vector<32x32xf32>
    %cst_68 = arith.constant dense<0.000000e+00> : vector<128x32xf32>
    %189 = tpu.matmul %186, %188, %cst_68 {dimension_numbers = #tpu.dot_dimension_numbers<[1], [0], [0], [1], [0, 0, 1, 1], [], []>} : vector<128x32xf32>, vector<32x32xf32>, vector<128x32xf32> -> vector<128x32xf32>
    %190 = vector.broadcast %142 : vector<1x32xf32> to vector<128x32xf32>
    %191 = arith.addf %189, %190 : vector<128x32xf32>
    %192 = arith.negf %191 : vector<128x32xf32>
    %193 = math.exp %192 : vector<128x32xf32>
    %cst_69 = arith.constant 1.000000e+00 : f32
    %194 = vector.broadcast %cst_69 : f32 to vector<128x32xf32>
    %195 = arith.addf %194, %193 : vector<128x32xf32>
    %196 = arith.divf %194, %195 : vector<128x32xf32>
    %197 = arith.mulf %191, %196 : vector<128x32xf32>
    %c1_70 = arith.constant 1 : index
    %c0_71 = arith.constant 0 : index
    %c0_72 = arith.constant 0 : index
    %198 = vector.load %arg10[%c1_70, %c0_71, %c0_72] : memref<4x32x32xf32, #tpu.memory_space<vmem>>, vector<1x32x32xf32>
    %199 = vector.shape_cast %198 : vector<1x32x32xf32> to vector<32x32xf32>
    %cst_73 = arith.constant dense<0.000000e+00> : vector<128x32xf32>
    %200 = tpu.matmul %197, %199, %cst_73 {dimension_numbers = #tpu.dot_dimension_numbers<[1], [0], [0], [1], [0, 0, 1, 1], [], []>} : vector<128x32xf32>, vector<32x32xf32>, vector<128x32xf32> -> vector<128x32xf32>
    %201 = vector.broadcast %145 : vector<1x32xf32> to vector<128x32xf32>
    %202 = arith.addf %200, %201 : vector<128x32xf32>
    %203 = arith.negf %202 : vector<128x32xf32>
    %204 = math.exp %203 : vector<128x32xf32>
    %cst_74 = arith.constant 1.000000e+00 : f32
    %205 = vector.broadcast %cst_74 : f32 to vector<128x32xf32>
    %206 = arith.addf %205, %204 : vector<128x32xf32>
    %207 = arith.divf %205, %206 : vector<128x32xf32>
    %208 = arith.mulf %202, %207 : vector<128x32xf32>
    %c1_75 = arith.constant 1 : index
    %c0_76 = arith.constant 0 : index
    %c0_77 = arith.constant 0 : index
    %209 = vector.load %arg11[%c1_75, %c0_76, %c0_77] : memref<4x32x1xf32, #tpu.memory_space<vmem>>, vector<1x32x1xf32>
    %210 = vector.shape_cast %209 : vector<1x32x1xf32> to vector<32x1xf32>
    %cst_78 = arith.constant dense<0.000000e+00> : vector<128x1xf32>
    %211 = tpu.matmul %208, %210, %cst_78 {dimension_numbers = #tpu.dot_dimension_numbers<[1], [0], [0], [1], [0, 0, 1, 1], [], []>} : vector<128x32xf32>, vector<32x1xf32>, vector<128x1xf32> -> vector<128x1xf32>
    %212 = vector.shape_cast %211 : vector<128x1xf32> to vector<2x8x8x1xf32>
    %213 = vector.broadcast %212 : vector<2x8x8x1xf32> to vector<2x8x8x3xf32>
    %214 = arith.mulf %158, %213 : vector<2x8x8x3xf32>
    %cst_79 = arith.constant dense<0.000000e+00> : vector<2x8x3xf32>
    %215 = vector.multi_reduction <add>, %214, %cst_79 [2] : vector<2x8x8x3xf32> to vector<2x8x3xf32>
    %216 = arith.addf %94, %215 : vector<2x8x3xf32>
    %217 = vector.shape_cast %197 : vector<128x32xf32> to vector<2x8x8x32xf32>
    %218 = arith.addf %163, %164 : vector<2x8x32xf32>
    %219 = vector.shape_cast %141 : vector<1x32xf32> to vector<1x1x32xf32>
    %220 = vector.broadcast %219 : vector<1x1x32xf32> to vector<2x8x32xf32>
    %221 = arith.addf %218, %220 : vector<2x8x32xf32>
    %222 = arith.negf %221 : vector<2x8x32xf32>
    %223 = math.exp %222 : vector<2x8x32xf32>
    %cst_80 = arith.constant 1.000000e+00 : f32
    %224 = vector.broadcast %cst_80 : f32 to vector<2x8x32xf32>
    %225 = arith.addf %224, %223 : vector<2x8x32xf32>
    %226 = arith.divf %224, %225 : vector<2x8x32xf32>
    %227 = arith.mulf %221, %226 : vector<2x8x32xf32>
    %228 = vector.shape_cast %227 : vector<2x8x32xf32> to vector<16x32xf32>
    %c1_81 = arith.constant 1 : index
    %c0_82 = arith.constant 0 : index
    %c0_83 = arith.constant 0 : index
    %229 = vector.load %arg7[%c1_81, %c0_82, %c0_83] : memref<4x32x32xf32, #tpu.memory_space<vmem>>, vector<1x32x32xf32>
    %230 = vector.shape_cast %229 : vector<1x32x32xf32> to vector<32x32xf32>
    %cst_84 = arith.constant dense<0.000000e+00> : vector<16x32xf32>
    %231 = tpu.matmul %228, %230, %cst_84 {dimension_numbers = #tpu.dot_dimension_numbers<[1], [0], [0], [1], [0, 0, 1, 1], [], []>} : vector<16x32xf32>, vector<32x32xf32>, vector<16x32xf32> -> vector<16x32xf32>
    %232 = vector.broadcast %142 : vector<1x32xf32> to vector<16x32xf32>
    %233 = arith.addf %231, %232 : vector<16x32xf32>
    %234 = arith.negf %233 : vector<16x32xf32>
    %235 = math.exp %234 : vector<16x32xf32>
    %cst_85 = arith.constant 1.000000e+00 : f32
    %236 = vector.broadcast %cst_85 : f32 to vector<16x32xf32>
    %237 = arith.addf %236, %235 : vector<16x32xf32>
    %238 = arith.divf %236, %237 : vector<16x32xf32>
    %239 = arith.mulf %233, %238 : vector<16x32xf32>
    %cst_86 = arith.constant dense<0.000000e+00> : vector<2x8x32xf32>
    %240 = vector.multi_reduction <add>, %217, %cst_86 [2] : vector<2x8x8x32xf32> to vector<2x8x32xf32>
    %241 = vector.shape_cast %240 : vector<2x8x32xf32> to vector<16x32xf32>
    %242 = arith.subf %241, %239 : vector<16x32xf32>
    %243 = tpu.concatenate %138, %242 in 1 : vector<16x32xf32>, vector<16x32xf32> -> vector<16x64xf32>
    %c1_87 = arith.constant 1 : index
    %c0_88 = arith.constant 0 : index
    %c0_89 = arith.constant 0 : index
    %244 = vector.load %arg8[%c1_87, %c0_88, %c0_89] : memref<4x64x32xf32, #tpu.memory_space<vmem>>, vector<1x64x32xf32>
    %245 = vector.shape_cast %244 : vector<1x64x32xf32> to vector<64x32xf32>
    %cst_90 = arith.constant dense<0.000000e+00> : vector<16x32xf32>
    %246 = tpu.matmul %243, %245, %cst_90 {dimension_numbers = #tpu.dot_dimension_numbers<[1], [0], [0], [1], [0, 0, 1, 1], [], []>} : vector<16x64xf32>, vector<64x32xf32>, vector<16x32xf32> -> vector<16x32xf32>
    %247 = vector.broadcast %143 : vector<1x32xf32> to vector<16x32xf32>
    %248 = arith.addf %246, %247 : vector<16x32xf32>
    %249 = arith.negf %248 : vector<16x32xf32>
    %250 = math.exp %249 : vector<16x32xf32>
    %cst_91 = arith.constant 1.000000e+00 : f32
    %251 = vector.broadcast %cst_91 : f32 to vector<16x32xf32>
    %252 = arith.addf %251, %250 : vector<16x32xf32>
    %253 = arith.divf %251, %252 : vector<16x32xf32>
    %254 = arith.mulf %248, %253 : vector<16x32xf32>
    %c1_92 = arith.constant 1 : index
    %c0_93 = arith.constant 0 : index
    %c0_94 = arith.constant 0 : index
    %255 = vector.load %arg9[%c1_92, %c0_93, %c0_94] : memref<4x32x32xf32, #tpu.memory_space<vmem>>, vector<1x32x32xf32>
    %256 = vector.shape_cast %255 : vector<1x32x32xf32> to vector<32x32xf32>
    %cst_95 = arith.constant dense<0.000000e+00> : vector<16x32xf32>
    %257 = tpu.matmul %254, %256, %cst_95 {dimension_numbers = #tpu.dot_dimension_numbers<[1], [0], [0], [1], [0, 0, 1, 1], [], []>} : vector<16x32xf32>, vector<32x32xf32>, vector<16x32xf32> -> vector<16x32xf32>
    %258 = vector.broadcast %144 : vector<1x32xf32> to vector<16x32xf32>
    %259 = arith.addf %257, %258 : vector<16x32xf32>
    %260 = arith.addf %138, %259 : vector<16x32xf32>
    %c2 = arith.constant 2 : index
    %c0_96 = arith.constant 0 : index
    %c0_97 = arith.constant 0 : index
    %261 = vector.load %arg12[%c2, %c0_96, %c0_97] : memref<4x8x32xf32, #tpu.memory_space<vmem>>, vector<1x8x32xf32>
    %262 = vector.shape_cast %261 : vector<1x8x32xf32> to vector<8x32xf32>
    %263 = vector.extract_strided_slice %262 {offsets = [0, 0], sizes = [1, 32], strides = [1, 1]} : vector<8x32xf32> to vector<1x32xf32>
    %264 = vector.extract_strided_slice %262 {offsets = [1, 0], sizes = [1, 32], strides = [1, 1]} : vector<8x32xf32> to vector<1x32xf32>
    %265 = vector.extract_strided_slice %262 {offsets = [2, 0], sizes = [1, 32], strides = [1, 1]} : vector<8x32xf32> to vector<1x32xf32>
    %266 = vector.extract_strided_slice %262 {offsets = [3, 0], sizes = [1, 32], strides = [1, 1]} : vector<8x32xf32> to vector<1x32xf32>
    %267 = vector.extract_strided_slice %262 {offsets = [4, 0], sizes = [1, 32], strides = [1, 1]} : vector<8x32xf32> to vector<1x32xf32>
    %268 = vector.shape_cast %216 : vector<2x8x3xf32> to vector<2x8x1x3xf32>
    %269 = vector.shape_cast %216 : vector<2x8x3xf32> to vector<2x1x8x3xf32>
    %270 = vector.broadcast %268 : vector<2x8x1x3xf32> to vector<2x8x8x3xf32>
    %271 = vector.broadcast %269 : vector<2x1x8x3xf32> to vector<2x8x8x3xf32>
    %272 = arith.subf %270, %271 : vector<2x8x8x3xf32>
    %273 = arith.mulf %272, %272 : vector<2x8x8x3xf32>
    %cst_98 = arith.constant dense<0.000000e+00> : vector<2x8x8xf32>
    %274 = vector.multi_reduction <add>, %273, %cst_98 [3] : vector<2x8x8x3xf32> to vector<2x8x8xf32>
    %275 = vector.shape_cast %274 : vector<2x8x8xf32> to vector<2x8x8x1xf32>
    %cst_99 = arith.constant 9.99999993E-9 : f32
    %276 = vector.broadcast %cst_99 : f32 to vector<2x8x8x1xf32>
    %277 = arith.addf %275, %276 : vector<2x8x8x1xf32>
    %278 = math.rsqrt %277 : vector<2x8x8x1xf32>
    %279 = vector.broadcast %278 : vector<2x8x8x1xf32> to vector<2x8x8x3xf32>
    %280 = arith.mulf %272, %279 : vector<2x8x8x3xf32>
    %c2_100 = arith.constant 2 : index
    %c0_101 = arith.constant 0 : index
    %c0_102 = arith.constant 0 : index
    %281 = vector.load %arg5[%c2_100, %c0_101, %c0_102] : memref<4x32x64xf32, #tpu.memory_space<vmem>>, vector<1x32x64xf32>
    %282 = vector.shape_cast %281 : vector<1x32x64xf32> to vector<32x64xf32>
    %cst_103 = arith.constant dense<0.000000e+00> : vector<16x64xf32>
    %283 = tpu.matmul %260, %282, %cst_103 {dimension_numbers = #tpu.dot_dimension_numbers<[1], [0], [0], [1], [0, 0, 1, 1], [], []>} : vector<16x32xf32>, vector<32x64xf32>, vector<16x64xf32> -> vector<16x64xf32>
    %284 = vector.shape_cast %283 : vector<16x64xf32> to vector<2x8x64xf32>
    %285 = vector.extract_strided_slice %284 {offsets = [0, 0, 0], sizes = [2, 8, 32], strides = [1, 1, 1]} : vector<2x8x64xf32> to vector<2x8x32xf32>
    %286 = vector.extract_strided_slice %284 {offsets = [0, 0, 32], sizes = [2, 8, 32], strides = [1, 1, 1]} : vector<2x8x64xf32> to vector<2x8x32xf32>
    %287 = vector.shape_cast %275 : vector<2x8x8x1xf32> to vector<128x1xf32>
    %288 = tpu.concatenate %287, %16 in 1 : vector<128x1xf32>, vector<128x1xf32> -> vector<128x2xf32>
    %c2_104 = arith.constant 2 : index
    %c0_105 = arith.constant 0 : index
    %c0_106 = arith.constant 0 : index
    %289 = vector.load %arg6[%c2_104, %c0_105, %c0_106] : memref<4x2x32xf32, #tpu.memory_space<vmem>>, vector<1x2x32xf32>
    %290 = vector.shape_cast %289 : vector<1x2x32xf32> to vector<2x32xf32>
    %cst_107 = arith.constant dense<0.000000e+00> : vector<128x32xf32>
    %291 = tpu.matmul %288, %290, %cst_107 {dimension_numbers = #tpu.dot_dimension_numbers<[1], [0], [0], [1], [0, 0, 1, 1], [], []>} : vector<128x2xf32>, vector<2x32xf32>, vector<128x32xf32> -> vector<128x32xf32>
    %292 = vector.shape_cast %285 : vector<2x8x32xf32> to vector<2x8x1x32xf32>
    %293 = vector.shape_cast %286 : vector<2x8x32xf32> to vector<2x1x8x32xf32>
    %294 = vector.broadcast %292 : vector<2x8x1x32xf32> to vector<2x8x8x32xf32>
    %295 = vector.broadcast %293 : vector<2x1x8x32xf32> to vector<2x8x8x32xf32>
    %296 = arith.addf %294, %295 : vector<2x8x8x32xf32>
    %297 = vector.shape_cast %291 : vector<128x32xf32> to vector<2x8x8x32xf32>
    %298 = arith.addf %296, %297 : vector<2x8x8x32xf32>
    %299 = vector.shape_cast %263 : vector<1x32xf32> to vector<1x1x1x32xf32>
    %300 = vector.broadcast %299 : vector<1x1x1x32xf32> to vector<2x8x8x32xf32>
    %301 = arith.addf %298, %300 : vector<2x8x8x32xf32>
    %302 = arith.negf %301 : vector<2x8x8x32xf32>
    %303 = math.exp %302 : vector<2x8x8x32xf32>
    %cst_108 = arith.constant 1.000000e+00 : f32
    %304 = vector.broadcast %cst_108 : f32 to vector<2x8x8x32xf32>
    %305 = arith.addf %304, %303 : vector<2x8x8x32xf32>
    %306 = arith.divf %304, %305 : vector<2x8x8x32xf32>
    %307 = arith.mulf %301, %306 : vector<2x8x8x32xf32>
    %308 = vector.shape_cast %307 : vector<2x8x8x32xf32> to vector<128x32xf32>
    %c2_109 = arith.constant 2 : index
    %c0_110 = arith.constant 0 : index
    %c0_111 = arith.constant 0 : index
    %309 = vector.load %arg7[%c2_109, %c0_110, %c0_111] : memref<4x32x32xf32, #tpu.memory_space<vmem>>, vector<1x32x32xf32>
    %310 = vector.shape_cast %309 : vector<1x32x32xf32> to vector<32x32xf32>
    %cst_112 = arith.constant dense<0.000000e+00> : vector<128x32xf32>
    %311 = tpu.matmul %308, %310, %cst_112 {dimension_numbers = #tpu.dot_dimension_numbers<[1], [0], [0], [1], [0, 0, 1, 1], [], []>} : vector<128x32xf32>, vector<32x32xf32>, vector<128x32xf32> -> vector<128x32xf32>
    %312 = vector.broadcast %264 : vector<1x32xf32> to vector<128x32xf32>
    %313 = arith.addf %311, %312 : vector<128x32xf32>
    %314 = arith.negf %313 : vector<128x32xf32>
    %315 = math.exp %314 : vector<128x32xf32>
    %cst_113 = arith.constant 1.000000e+00 : f32
    %316 = vector.broadcast %cst_113 : f32 to vector<128x32xf32>
    %317 = arith.addf %316, %315 : vector<128x32xf32>
    %318 = arith.divf %316, %317 : vector<128x32xf32>
    %319 = arith.mulf %313, %318 : vector<128x32xf32>
    %c2_114 = arith.constant 2 : index
    %c0_115 = arith.constant 0 : index
    %c0_116 = arith.constant 0 : index
    %320 = vector.load %arg10[%c2_114, %c0_115, %c0_116] : memref<4x32x32xf32, #tpu.memory_space<vmem>>, vector<1x32x32xf32>
    %321 = vector.shape_cast %320 : vector<1x32x32xf32> to vector<32x32xf32>
    %cst_117 = arith.constant dense<0.000000e+00> : vector<128x32xf32>
    %322 = tpu.matmul %319, %321, %cst_117 {dimension_numbers = #tpu.dot_dimension_numbers<[1], [0], [0], [1], [0, 0, 1, 1], [], []>} : vector<128x32xf32>, vector<32x32xf32>, vector<128x32xf32> -> vector<128x32xf32>
    %323 = vector.broadcast %267 : vector<1x32xf32> to vector<128x32xf32>
    %324 = arith.addf %322, %323 : vector<128x32xf32>
    %325 = arith.negf %324 : vector<128x32xf32>
    %326 = math.exp %325 : vector<128x32xf32>
    %cst_118 = arith.constant 1.000000e+00 : f32
    %327 = vector.broadcast %cst_118 : f32 to vector<128x32xf32>
    %328 = arith.addf %327, %326 : vector<128x32xf32>
    %329 = arith.divf %327, %328 : vector<128x32xf32>
    %330 = arith.mulf %324, %329 : vector<128x32xf32>
    %c2_119 = arith.constant 2 : index
    %c0_120 = arith.constant 0 : index
    %c0_121 = arith.constant 0 : index
    %331 = vector.load %arg11[%c2_119, %c0_120, %c0_121] : memref<4x32x1xf32, #tpu.memory_space<vmem>>, vector<1x32x1xf32>
    %332 = vector.shape_cast %331 : vector<1x32x1xf32> to vector<32x1xf32>
    %cst_122 = arith.constant dense<0.000000e+00> : vector<128x1xf32>
    %333 = tpu.matmul %330, %332, %cst_122 {dimension_numbers = #tpu.dot_dimension_numbers<[1], [0], [0], [1], [0, 0, 1, 1], [], []>} : vector<128x32xf32>, vector<32x1xf32>, vector<128x1xf32> -> vector<128x1xf32>
    %334 = vector.shape_cast %333 : vector<128x1xf32> to vector<2x8x8x1xf32>
    %335 = vector.broadcast %334 : vector<2x8x8x1xf32> to vector<2x8x8x3xf32>
    %336 = arith.mulf %280, %335 : vector<2x8x8x3xf32>
    %cst_123 = arith.constant dense<0.000000e+00> : vector<2x8x3xf32>
    %337 = vector.multi_reduction <add>, %336, %cst_123 [2] : vector<2x8x8x3xf32> to vector<2x8x3xf32>
    %338 = arith.addf %216, %337 : vector<2x8x3xf32>
    %339 = vector.shape_cast %319 : vector<128x32xf32> to vector<2x8x8x32xf32>
    %340 = arith.addf %285, %286 : vector<2x8x32xf32>
    %341 = vector.shape_cast %263 : vector<1x32xf32> to vector<1x1x32xf32>
    %342 = vector.broadcast %341 : vector<1x1x32xf32> to vector<2x8x32xf32>
    %343 = arith.addf %340, %342 : vector<2x8x32xf32>
    %344 = arith.negf %343 : vector<2x8x32xf32>
    %345 = math.exp %344 : vector<2x8x32xf32>
    %cst_124 = arith.constant 1.000000e+00 : f32
    %346 = vector.broadcast %cst_124 : f32 to vector<2x8x32xf32>
    %347 = arith.addf %346, %345 : vector<2x8x32xf32>
    %348 = arith.divf %346, %347 : vector<2x8x32xf32>
    %349 = arith.mulf %343, %348 : vector<2x8x32xf32>
    %350 = vector.shape_cast %349 : vector<2x8x32xf32> to vector<16x32xf32>
    %c2_125 = arith.constant 2 : index
    %c0_126 = arith.constant 0 : index
    %c0_127 = arith.constant 0 : index
    %351 = vector.load %arg7[%c2_125, %c0_126, %c0_127] : memref<4x32x32xf32, #tpu.memory_space<vmem>>, vector<1x32x32xf32>
    %352 = vector.shape_cast %351 : vector<1x32x32xf32> to vector<32x32xf32>
    %cst_128 = arith.constant dense<0.000000e+00> : vector<16x32xf32>
    %353 = tpu.matmul %350, %352, %cst_128 {dimension_numbers = #tpu.dot_dimension_numbers<[1], [0], [0], [1], [0, 0, 1, 1], [], []>} : vector<16x32xf32>, vector<32x32xf32>, vector<16x32xf32> -> vector<16x32xf32>
    %354 = vector.broadcast %264 : vector<1x32xf32> to vector<16x32xf32>
    %355 = arith.addf %353, %354 : vector<16x32xf32>
    %356 = arith.negf %355 : vector<16x32xf32>
    %357 = math.exp %356 : vector<16x32xf32>
    %cst_129 = arith.constant 1.000000e+00 : f32
    %358 = vector.broadcast %cst_129 : f32 to vector<16x32xf32>
    %359 = arith.addf %358, %357 : vector<16x32xf32>
    %360 = arith.divf %358, %359 : vector<16x32xf32>
    %361 = arith.mulf %355, %360 : vector<16x32xf32>
    %cst_130 = arith.constant dense<0.000000e+00> : vector<2x8x32xf32>
    %362 = vector.multi_reduction <add>, %339, %cst_130 [2] : vector<2x8x8x32xf32> to vector<2x8x32xf32>
    %363 = vector.shape_cast %362 : vector<2x8x32xf32> to vector<16x32xf32>
    %364 = arith.subf %363, %361 : vector<16x32xf32>
    %365 = tpu.concatenate %260, %364 in 1 : vector<16x32xf32>, vector<16x32xf32> -> vector<16x64xf32>
    %c2_131 = arith.constant 2 : index
    %c0_132 = arith.constant 0 : index
    %c0_133 = arith.constant 0 : index
    %366 = vector.load %arg8[%c2_131, %c0_132, %c0_133] : memref<4x64x32xf32, #tpu.memory_space<vmem>>, vector<1x64x32xf32>
    %367 = vector.shape_cast %366 : vector<1x64x32xf32> to vector<64x32xf32>
    %cst_134 = arith.constant dense<0.000000e+00> : vector<16x32xf32>
    %368 = tpu.matmul %365, %367, %cst_134 {dimension_numbers = #tpu.dot_dimension_numbers<[1], [0], [0], [1], [0, 0, 1, 1], [], []>} : vector<16x64xf32>, vector<64x32xf32>, vector<16x32xf32> -> vector<16x32xf32>
    %369 = vector.broadcast %265 : vector<1x32xf32> to vector<16x32xf32>
    %370 = arith.addf %368, %369 : vector<16x32xf32>
    %371 = arith.negf %370 : vector<16x32xf32>
    %372 = math.exp %371 : vector<16x32xf32>
    %cst_135 = arith.constant 1.000000e+00 : f32
    %373 = vector.broadcast %cst_135 : f32 to vector<16x32xf32>
    %374 = arith.addf %373, %372 : vector<16x32xf32>
    %375 = arith.divf %373, %374 : vector<16x32xf32>
    %376 = arith.mulf %370, %375 : vector<16x32xf32>
    %c2_136 = arith.constant 2 : index
    %c0_137 = arith.constant 0 : index
    %c0_138 = arith.constant 0 : index
    %377 = vector.load %arg9[%c2_136, %c0_137, %c0_138] : memref<4x32x32xf32, #tpu.memory_space<vmem>>, vector<1x32x32xf32>
    %378 = vector.shape_cast %377 : vector<1x32x32xf32> to vector<32x32xf32>
    %cst_139 = arith.constant dense<0.000000e+00> : vector<16x32xf32>
    %379 = tpu.matmul %376, %378, %cst_139 {dimension_numbers = #tpu.dot_dimension_numbers<[1], [0], [0], [1], [0, 0, 1, 1], [], []>} : vector<16x32xf32>, vector<32x32xf32>, vector<16x32xf32> -> vector<16x32xf32>
    %380 = vector.broadcast %266 : vector<1x32xf32> to vector<16x32xf32>
    %381 = arith.addf %379, %380 : vector<16x32xf32>
    %382 = arith.addf %260, %381 : vector<16x32xf32>
    %c3 = arith.constant 3 : index
    %c0_140 = arith.constant 0 : index
    %c0_141 = arith.constant 0 : index
    %383 = vector.load %arg12[%c3, %c0_140, %c0_141] : memref<4x8x32xf32, #tpu.memory_space<vmem>>, vector<1x8x32xf32>
    %384 = vector.shape_cast %383 : vector<1x8x32xf32> to vector<8x32xf32>
    %385 = vector.extract_strided_slice %384 {offsets = [0, 0], sizes = [1, 32], strides = [1, 1]} : vector<8x32xf32> to vector<1x32xf32>
    %386 = vector.extract_strided_slice %384 {offsets = [1, 0], sizes = [1, 32], strides = [1, 1]} : vector<8x32xf32> to vector<1x32xf32>
    %387 = vector.extract_strided_slice %384 {offsets = [4, 0], sizes = [1, 32], strides = [1, 1]} : vector<8x32xf32> to vector<1x32xf32>
    %388 = vector.shape_cast %338 : vector<2x8x3xf32> to vector<2x8x1x3xf32>
    %389 = vector.shape_cast %338 : vector<2x8x3xf32> to vector<2x1x8x3xf32>
    %390 = vector.broadcast %388 : vector<2x8x1x3xf32> to vector<2x8x8x3xf32>
    %391 = vector.broadcast %389 : vector<2x1x8x3xf32> to vector<2x8x8x3xf32>
    %392 = arith.subf %390, %391 : vector<2x8x8x3xf32>
    %393 = arith.mulf %392, %392 : vector<2x8x8x3xf32>
    %cst_142 = arith.constant dense<0.000000e+00> : vector<2x8x8xf32>
    %394 = vector.multi_reduction <add>, %393, %cst_142 [3] : vector<2x8x8x3xf32> to vector<2x8x8xf32>
    %395 = vector.shape_cast %394 : vector<2x8x8xf32> to vector<2x8x8x1xf32>
    %cst_143 = arith.constant 9.99999993E-9 : f32
    %396 = vector.broadcast %cst_143 : f32 to vector<2x8x8x1xf32>
    %397 = arith.addf %395, %396 : vector<2x8x8x1xf32>
    %398 = math.rsqrt %397 : vector<2x8x8x1xf32>
    %399 = vector.broadcast %398 : vector<2x8x8x1xf32> to vector<2x8x8x3xf32>
    %400 = arith.mulf %392, %399 : vector<2x8x8x3xf32>
    %c3_144 = arith.constant 3 : index
    %c0_145 = arith.constant 0 : index
    %c0_146 = arith.constant 0 : index
    %401 = vector.load %arg5[%c3_144, %c0_145, %c0_146] : memref<4x32x64xf32, #tpu.memory_space<vmem>>, vector<1x32x64xf32>
    %402 = vector.shape_cast %401 : vector<1x32x64xf32> to vector<32x64xf32>
    %cst_147 = arith.constant dense<0.000000e+00> : vector<16x64xf32>
    %403 = tpu.matmul %382, %402, %cst_147 {dimension_numbers = #tpu.dot_dimension_numbers<[1], [0], [0], [1], [0, 0, 1, 1], [], []>} : vector<16x32xf32>, vector<32x64xf32>, vector<16x64xf32> -> vector<16x64xf32>
    %404 = vector.shape_cast %403 : vector<16x64xf32> to vector<2x8x64xf32>
    %405 = vector.extract_strided_slice %404 {offsets = [0, 0, 0], sizes = [2, 8, 32], strides = [1, 1, 1]} : vector<2x8x64xf32> to vector<2x8x32xf32>
    %406 = vector.extract_strided_slice %404 {offsets = [0, 0, 32], sizes = [2, 8, 32], strides = [1, 1, 1]} : vector<2x8x64xf32> to vector<2x8x32xf32>
    %407 = vector.shape_cast %395 : vector<2x8x8x1xf32> to vector<128x1xf32>
    %408 = tpu.concatenate %407, %16 in 1 : vector<128x1xf32>, vector<128x1xf32> -> vector<128x2xf32>
    %c3_148 = arith.constant 3 : index
    %c0_149 = arith.constant 0 : index
    %c0_150 = arith.constant 0 : index
    %409 = vector.load %arg6[%c3_148, %c0_149, %c0_150] : memref<4x2x32xf32, #tpu.memory_space<vmem>>, vector<1x2x32xf32>
    %410 = vector.shape_cast %409 : vector<1x2x32xf32> to vector<2x32xf32>
    %cst_151 = arith.constant dense<0.000000e+00> : vector<128x32xf32>
    %411 = tpu.matmul %408, %410, %cst_151 {dimension_numbers = #tpu.dot_dimension_numbers<[1], [0], [0], [1], [0, 0, 1, 1], [], []>} : vector<128x2xf32>, vector<2x32xf32>, vector<128x32xf32> -> vector<128x32xf32>
    %412 = vector.shape_cast %405 : vector<2x8x32xf32> to vector<2x8x1x32xf32>
    %413 = vector.shape_cast %406 : vector<2x8x32xf32> to vector<2x1x8x32xf32>
    %414 = vector.broadcast %412 : vector<2x8x1x32xf32> to vector<2x8x8x32xf32>
    %415 = vector.broadcast %413 : vector<2x1x8x32xf32> to vector<2x8x8x32xf32>
    %416 = arith.addf %414, %415 : vector<2x8x8x32xf32>
    %417 = vector.shape_cast %411 : vector<128x32xf32> to vector<2x8x8x32xf32>
    %418 = arith.addf %416, %417 : vector<2x8x8x32xf32>
    %419 = vector.shape_cast %385 : vector<1x32xf32> to vector<1x1x1x32xf32>
    %420 = vector.broadcast %419 : vector<1x1x1x32xf32> to vector<2x8x8x32xf32>
    %421 = arith.addf %418, %420 : vector<2x8x8x32xf32>
    %422 = arith.negf %421 : vector<2x8x8x32xf32>
    %423 = math.exp %422 : vector<2x8x8x32xf32>
    %cst_152 = arith.constant 1.000000e+00 : f32
    %424 = vector.broadcast %cst_152 : f32 to vector<2x8x8x32xf32>
    %425 = arith.addf %424, %423 : vector<2x8x8x32xf32>
    %426 = arith.divf %424, %425 : vector<2x8x8x32xf32>
    %427 = arith.mulf %421, %426 : vector<2x8x8x32xf32>
    %428 = vector.shape_cast %427 : vector<2x8x8x32xf32> to vector<128x32xf32>
    %c3_153 = arith.constant 3 : index
    %c0_154 = arith.constant 0 : index
    %c0_155 = arith.constant 0 : index
    %429 = vector.load %arg7[%c3_153, %c0_154, %c0_155] : memref<4x32x32xf32, #tpu.memory_space<vmem>>, vector<1x32x32xf32>
    %430 = vector.shape_cast %429 : vector<1x32x32xf32> to vector<32x32xf32>
    %cst_156 = arith.constant dense<0.000000e+00> : vector<128x32xf32>
    %431 = tpu.matmul %428, %430, %cst_156 {dimension_numbers = #tpu.dot_dimension_numbers<[1], [0], [0], [1], [0, 0, 1, 1], [], []>} : vector<128x32xf32>, vector<32x32xf32>, vector<128x32xf32> -> vector<128x32xf32>
    %432 = vector.broadcast %386 : vector<1x32xf32> to vector<128x32xf32>
    %433 = arith.addf %431, %432 : vector<128x32xf32>
    %434 = arith.negf %433 : vector<128x32xf32>
    %435 = math.exp %434 : vector<128x32xf32>
    %cst_157 = arith.constant 1.000000e+00 : f32
    %436 = vector.broadcast %cst_157 : f32 to vector<128x32xf32>
    %437 = arith.addf %436, %435 : vector<128x32xf32>
    %438 = arith.divf %436, %437 : vector<128x32xf32>
    %439 = arith.mulf %433, %438 : vector<128x32xf32>
    %c3_158 = arith.constant 3 : index
    %c0_159 = arith.constant 0 : index
    %c0_160 = arith.constant 0 : index
    %440 = vector.load %arg10[%c3_158, %c0_159, %c0_160] : memref<4x32x32xf32, #tpu.memory_space<vmem>>, vector<1x32x32xf32>
    %441 = vector.shape_cast %440 : vector<1x32x32xf32> to vector<32x32xf32>
    %cst_161 = arith.constant dense<0.000000e+00> : vector<128x32xf32>
    %442 = tpu.matmul %439, %441, %cst_161 {dimension_numbers = #tpu.dot_dimension_numbers<[1], [0], [0], [1], [0, 0, 1, 1], [], []>} : vector<128x32xf32>, vector<32x32xf32>, vector<128x32xf32> -> vector<128x32xf32>
    %443 = vector.broadcast %387 : vector<1x32xf32> to vector<128x32xf32>
    %444 = arith.addf %442, %443 : vector<128x32xf32>
    %445 = arith.negf %444 : vector<128x32xf32>
    %446 = math.exp %445 : vector<128x32xf32>
    %cst_162 = arith.constant 1.000000e+00 : f32
    %447 = vector.broadcast %cst_162 : f32 to vector<128x32xf32>
    %448 = arith.addf %447, %446 : vector<128x32xf32>
    %449 = arith.divf %447, %448 : vector<128x32xf32>
    %450 = arith.mulf %444, %449 : vector<128x32xf32>
    %c3_163 = arith.constant 3 : index
    %c0_164 = arith.constant 0 : index
    %c0_165 = arith.constant 0 : index
    %451 = vector.load %arg11[%c3_163, %c0_164, %c0_165] : memref<4x32x1xf32, #tpu.memory_space<vmem>>, vector<1x32x1xf32>
    %452 = vector.shape_cast %451 : vector<1x32x1xf32> to vector<32x1xf32>
    %cst_166 = arith.constant dense<0.000000e+00> : vector<128x1xf32>
    %453 = tpu.matmul %450, %452, %cst_166 {dimension_numbers = #tpu.dot_dimension_numbers<[1], [0], [0], [1], [0, 0, 1, 1], [], []>} : vector<128x32xf32>, vector<32x1xf32>, vector<128x1xf32> -> vector<128x1xf32>
    %454 = vector.shape_cast %453 : vector<128x1xf32> to vector<2x8x8x1xf32>
    %455 = vector.broadcast %454 : vector<2x8x8x1xf32> to vector<2x8x8x3xf32>
    %456 = arith.mulf %400, %455 : vector<2x8x8x3xf32>
    %cst_167 = arith.constant dense<0.000000e+00> : vector<2x8x3xf32>
    %457 = vector.multi_reduction <add>, %456, %cst_167 [2] : vector<2x8x8x3xf32> to vector<2x8x3xf32>
    %458 = arith.addf %338, %457 : vector<2x8x3xf32>
    %459 = arith.subf %458, %0 : vector<2x8x3xf32>
    %cst_168 = arith.constant dense<0.000000e+00> : vector<2x3xf32>
    %460 = vector.multi_reduction <add>, %459, %cst_168 [1] : vector<2x8x3xf32> to vector<2x3xf32>
    %461 = vector.shape_cast %460 : vector<2x3xf32> to vector<2x1x3xf32>
    %cst_169 = arith.constant 8.000000e+00 : f32
    %462 = vector.broadcast %cst_169 : f32 to vector<2x1x3xf32>
    %463 = arith.divf %461, %462 : vector<2x1x3xf32>
    %464 = vector.broadcast %463 : vector<2x1x3xf32> to vector<2x8x3xf32>
    %465 = arith.subf %459, %464 : vector<2x8x3xf32>
    %c0_170 = arith.constant 0 : index
    %c0_171 = arith.constant 0 : index
    %c0_172 = arith.constant 0 : index
    %466 = vector.load %arg13[%c0_170, %c0_171, %c0_172] : memref<2x8x3xf32, #tpu.memory_space<vmem>>, vector<2x8x3xf32>
    tpu.vector_store %arg13[%c0_170, %c0_171, %c0_172], %465 {strides = array<i32>} : memref<2x8x3xf32, #tpu.memory_space<vmem>>, vector<2x8x3xf32>,
    return
  }
  func.func @transform_0(%arg0: i32) -> i32 {
    %c0_i32 = arith.constant 0 : i32
    %c0_i32_0 = arith.constant 0 : i32
    return %c0_i32 : i32
  }
  func.func @transform_1(%arg0: i32) -> (i32, i32, i32) {
    %c0_i32 = arith.constant 0 : i32
    %c0_i32_0 = arith.constant 0 : i32
    %c0_i32_1 = arith.constant 0 : i32
    return %arg0, %c0_i32, %c0_i32_0 : i32, i32, i32
  }
  func.func @transform_2(%arg0: i32) -> (i32, i32) {
    %c0_i32 = arith.constant 0 : i32
    %c0_i32_0 = arith.constant 0 : i32
    %c0_i32_1 = arith.constant 0 : i32
    return %c0_i32, %c0_i32_0 : i32, i32
  }
  func.func @transform_3(%arg0: i32) -> (i32, i32) {
    %c0_i32 = arith.constant 0 : i32
    %c0_i32_0 = arith.constant 0 : i32
    %c0_i32_1 = arith.constant 0 : i32
    return %c0_i32, %c0_i32_0 : i32, i32
  }
  func.func @transform_4(%arg0: i32) -> (i32, i32, i32) {
    %c0_i32 = arith.constant 0 : i32
    %c0_i32_0 = arith.constant 0 : i32
    %c0_i32_1 = arith.constant 0 : i32
    %c0_i32_2 = arith.constant 0 : i32
    return %c0_i32, %c0_i32_0, %c0_i32_1 : i32, i32, i32
  }
  func.func @transform_5(%arg0: i32) -> (i32, i32, i32) {
    %c0_i32 = arith.constant 0 : i32
    %c0_i32_0 = arith.constant 0 : i32
    %c0_i32_1 = arith.constant 0 : i32
    %c0_i32_2 = arith.constant 0 : i32
    return %c0_i32, %c0_i32_0, %c0_i32_1 : i32, i32, i32
  }
  func.func @transform_6(%arg0: i32) -> (i32, i32, i32) {
    %c0_i32 = arith.constant 0 : i32
    %c0_i32_0 = arith.constant 0 : i32
    %c0_i32_1 = arith.constant 0 : i32
    %c0_i32_2 = arith.constant 0 : i32
    return %c0_i32, %c0_i32_0, %c0_i32_1 : i32, i32, i32
  }
  func.func @transform_7(%arg0: i32) -> (i32, i32, i32) {
    %c0_i32 = arith.constant 0 : i32
    %c0_i32_0 = arith.constant 0 : i32
    %c0_i32_1 = arith.constant 0 : i32
    %c0_i32_2 = arith.constant 0 : i32
    return %c0_i32, %c0_i32_0, %c0_i32_1 : i32, i32, i32
  }
  func.func @transform_8(%arg0: i32) -> (i32, i32, i32) {
    %c0_i32 = arith.constant 0 : i32
    %c0_i32_0 = arith.constant 0 : i32
    %c0_i32_1 = arith.constant 0 : i32
    %c0_i32_2 = arith.constant 0 : i32
    return %c0_i32, %c0_i32_0, %c0_i32_1 : i32, i32, i32
  }
  func.func @transform_9(%arg0: i32) -> (i32, i32, i32) {
    %c0_i32 = arith.constant 0 : i32
    %c0_i32_0 = arith.constant 0 : i32
    %c0_i32_1 = arith.constant 0 : i32
    %c0_i32_2 = arith.constant 0 : i32
    return %c0_i32, %c0_i32_0, %c0_i32_1 : i32, i32, i32
  }
  func.func @transform_10(%arg0: i32) -> (i32, i32, i32) {
    %c0_i32 = arith.constant 0 : i32
    %c0_i32_0 = arith.constant 0 : i32
    %c0_i32_1 = arith.constant 0 : i32
    %c0_i32_2 = arith.constant 0 : i32
    return %c0_i32, %c0_i32_0, %c0_i32_1 : i32, i32, i32
  }
  func.func @transform_11(%arg0: i32) -> (i32, i32, i32) {
    %c0_i32 = arith.constant 0 : i32
    %c0_i32_0 = arith.constant 0 : i32
    %c0_i32_1 = arith.constant 0 : i32
    %c0_i32_2 = arith.constant 0 : i32
    return %c0_i32, %c0_i32_0, %c0_i32_1 : i32, i32, i32
  }
  func.func @transform_12(%arg0: i32) -> (i32, i32, i32) {
    %c0_i32 = arith.constant 0 : i32
    %c0_i32_0 = arith.constant 0 : i32
    %c0_i32_1 = arith.constant 0 : i32
    return %arg0, %c0_i32, %c0_i32_0 : i32, i32, i32
  }
}

</mosaic_0001>

<bundles_post_ra>
// kernel: tpu_custom_call.1
= control target key start
LH: loop header
LB: loop body
LE: loop exit
PB: predicated region body
PF: predicated region fallthrough
CT: control target
= control target key end

     0   :  { %18 = vsyncpa [#allocation4], 0  ;;  %s12623_s21 = smov [#allocation3]   ;;  %s16354_s0 = inlined_call_operand.<no memory space> [shape: f32[1], index: 0, kind: input, shape index: {}]   ;;  %s16355_s1 = inlined_call_operand.vmem [shape: f32[2,8,3], index: 1, kind: input, shape index: {}]   ;;  %s16356_s2 = inlined_call_operand.vmem [shape: f32[1,32], index: 2, kind: input, shape index: {}]   ;;  %s16357_s3 = inlined_call_operand.vmem [shape: f32[1,32], index: 3, kind: input, shape index: {}]   ;;  %s16358_s4 = inlined_call_operand.vmem [shape: f32[4,32,64], index: 4, kind: input, shape index: {}]   ;;  %s16359_s5 = inlined_call_operand.vmem [shape: f32[4,2,32], index: 5, kind: input, shape index: {}]   ;;  %s16360_s6 = inlined_call_operand.vmem [shape: f32[4,32,32], index: 6, kind: input, shape index: {}]   ;;  %s16361_s7 = inlined_call_operand.vmem [shape: f32[4,64,32], index: 7, kind: input, shape index: {}]   ;;  %s16362_s8 = inlined_call_operand.vmem [shape: f32[4,32,32], index: 8, kind: input, shape index: {}]   ;;  %s16363_s9 = inlined_call_operand.hbm [shape: f32[4,32,32], index: 9, kind: input, shape index: {}]   ;;  %s16364_s10 = inlined_call_operand.vmem [shape: f32[4,32,1], index: 10, kind: input, shape index: {}]   ;;  %s16365_s11 = inlined_call_operand.vmem [shape: f32[4,8,32], index: 11, kind: input, shape index: {}]   ;;  %s16366_s12 = inlined_call_operand.vmem [shape: f32[2,8,3], index: 12, kind: output, shape index: {}]  }
   0x1   :  { %s42_s22 = sshll.u32 %s12623_s21, 4  ;;  %s12599_s25 = scalar_lea.hbm %s16363_s9, 2048  ;;  %s43_s22 = int_to_ptr.vmem [resolvable:$true] %s42_s22 }
   0x2   :  { %p12600_p0 = scmp.ne.s32.totalorder %s16363_s9, %s12599_s25  ;;  %p12603_p1 = scmp.lt.u32.totalorder %s12599_s25, %s16363_s9 }
   0x4   :  { %p12605_p2 = pnand %p12603_p1, %p12600_p0 }
   0x6   :  { %12608 = shalt.err (!%p12605_p2)
}
   0x7   :  { %s12609_s30 = scalar_lea.vmem %s43_s22, 2048  ;;  %p12614_p4 = scmp.lt.s32.totalorder %s43_s22, %s43_s22 }
   0x8   :  { %p12610_p3 = scmp.ne.s32.totalorder %s43_s22, %s12609_s30  ;;  %p12615_p5 = scmp.lt.s32.totalorder %s12609_s30, %s12609_s30 }
   0xa   :  { %p12616_p6 = por %p12615_p5, %p12614_p4 }
   0xc   :  { %p12617_p7 = pnand %p12616_p6, %p12610_p3 }
   0xe   :  { %12620 = shalt.err (!%p12617_p7)
}
   0xf   :  { %s12624_s13 = smov 128   ;;  %s12625_s14 = smov 8  }
  0x10   :  { %48 = dma.hbm_to_vmem [thread:$0]  %s16363_s9, 2048, %s43_s22, [#allocation4], %s12624_s13, %s12624_s13, %s12625_s14  }
  0x11   :  { %12621 = dma.done.wait [#allocation4], 2048  }
  0x12   :  { %12622 = vsyncadd [#allocation4], 4294965248  ;;  %v65_v0 = vlaneseq  ;;  %v12626_v1 = vmov 1966171168   ;;  %v60_v5 = vstv %s16354_s0  ;;  %v380_v7 = vld [vmem:[%s16358_s4] sm:$0xff]  ;;  %v381_v8 = vld [vmem:[%s16358_s4 + $0x8] sm:$0xff] }
  0x13   :  { %v74_v2 = vunpack.c.l.s4 %v12626_v1  ;;  %v382_v9 = vld [vmem:[%s16358_s4 + $0x10] sm:$0xff]  ;;  %v11385_v10 = vpack.c.bf16 %v381_v8, %v380_v7  ;;  %v383_v11 = vld [vmem:[%s16358_s4 + $0x18] sm:$0xff]  ;;  %v59_v12 = vld [vmem:[%s16356_s2] sm:$0x1]  ;;  %vm384_vm0 = vcmask 261120   ;;  %vm282_vm1 = vcmask 23552  }
  0x14   :  { %v12707_v3 = vshrl.u32 %v65_v0, 7  ;;  %v62_v13 = vld [vmem:[%s16357_s3] sm:$0x1]  ;;  %v11389_v14 = vpack.c.bf16 %v383_v11, %v382_v9  ;;  %v61_v15 = vmul.f32 %v60_v5, %v59_v12  ;;  %v12739_v17 = vld [vmem:[%s16355_s1 + $0x8] sm:$0xff]  ;;  %vm512_vm2 = vcmask 1041408   ;;  %s12627_s15 = smov 96  }
  0x15   :  { %v75_v4 = vunpack.c.0.s8 %v74_v2  ;;  %v56_v16 = vld [vmem:[%s16355_s1] sm:$0xff]  ;;  %11386 = vmatprep.subr.bf16.mxu0 %v11385_v10  ;;  %v121_v23 = vcombine.high %v12739_v17, %v12739_v17  ;;  %vm463_vm3 = vcmask 15360   ;;  %vm2058_vm4 = vcmask 1041409   ;;  %s12628_s27 = smov 32  }
  0x16   :  { %16507 = vst [vmem:[#allocation6_spill] sm:$0xff] %v12707_v3  ;;  %v12742_v18 = vsub.s32 0, %v12707_v3  ;;  %v72_v20 = vcombine.high %v56_v16, %v56_v16  ;;  %11388 = vmatpush3.bf16.msra.mxu0 %v11385_v10  ;;  %v63_v22 = vadd.f32 %v62_v13, %v61_v15  ;;  %vm2060_vm5 = vcmask 1042434  }
  0x17   :  { %v12713_v6 = vsub.s32 %v75_v4, %v12707_v3  ;;  %11390 = vmatprep.subr.bf16.mxu0 %v11389_v14  ;;  %vm2062_vm6 = vcmask 1043459   ;;  %vm2064_vm7 = vcmask 1044484   ;;  %vm2066_vm8 = vcmask 1045509  }
  0x18   :  { %16509 = vst [vmem:[#allocation8_spill] sm:$0xff] %v12742_v18  ;;  %v12752_v27 = vrot.slane %v63_v22, %v12742_v18  ;;  %vm2068_vm9 = vcmask 1046534   ;;  %vm2070_vm10 = vcmask 1047559   ;;  %vm2420_vm11 = vcmask 523264  }
  0x19   :  { %16508 = vst [vmem:[#allocation7_spill] sm:$0xff] %v12713_v6  ;;  %v79_v19 = vrot.slane %v56_v16, %v12713_v6  ;;  %v128_v21 = vrot.slane %v12739_v17, %v12713_v6  ;;  %v86_v26 = vrot.slane %v72_v20, %v12713_v6  ;;  %v135_v35 = vrot.slane %v121_v23, %v12713_v6 }
  0x1a   :  { %11392 = vmatpush3.bf16.msra.mxu0 %v11389_v14  ;;  %10738 = vmatprep.mubr.msk.f32.mxu0 %vm384_vm0, %v12752_v27  ;;  %vm3003_vm12 = vcmask 7168  }
  0x1b   :  { %v95_v24 = vrot.slane %v79_v19, %v12713_v6  ;;  %v87_v25 = vcombine.high %v79_v19, %v79_v19  ;;  %v136_v28 = vcombine.high %v128_v21, %v128_v21  ;;  %v102_v32 = vrot.slane %v86_v26, %v12713_v6 }
  0x1c   :  { %v88_v33 = vcombine.high %v86_v26, %v86_v26  ;;  %v144_v34 = vrot.slane %v128_v21, %v12713_v6  ;;  %v151_v12 = vrot.slane %v135_v35, %v12713_v6  ;;  %v137_v13 = vcombine.high %v135_v35, %v135_v35 }
  0x1d   :  { %v173_v29 = vrot.slane %v95_v24, %v12742_v18  ;;  %v117_v30 = vcombine.high %v95_v24, %v95_v24  ;;  %v109_v31 = vrot.slane %v87_v25, %v12713_v6  ;;  %v189_v40 = vrot.slane %v102_v32, %v12742_v18  ;;  %10739 = vmatmul.mubr.msk.f32.vlgmr.msra.gmra.mrb[0].mxu0 %vm384_vm0, %v12752_v27 }
  0x1e   :  { %v116_v41 = vrot.slane %v88_v33, %v12713_v6  ;;  %v118_v42 = vcombine.high %v102_v32, %v102_v32  ;;  %v158_v43 = vrot.slane %v136_v28, %v12713_v6  ;;  %v205_v59 = vrot.slane %v144_v34, %v12742_v18 }
  0x1f   :  { %v12761_v36 = vsub.f32 %v173_v29, %v56_v16  ;;  %v181_v37 = vrot.slane %v117_v30, %v12742_v18  ;;  %v177_v38 = vrot.slane %v109_v31, %v12742_v18  ;;  %v119_v39 = vcombine.high %v109_v31, %v109_v31 }
  0x20   :  { %v12777_v48 = vsub.f32 %v189_v40, %v56_v16  ;;  %v193_v49 = vrot.slane %v116_v41, %v12742_v18  ;;  %v197_v50 = vrot.slane %v118_v42, %v12742_v18  ;;  %v120_v51 = vcombine.high %v116_v41, %v116_v41  ;;  %v462_v41 = vld [vmem:[%s16359_s5] sm:$0x3] }
  0x21   :  { %16510 = vst [vmem:[#allocation9_spill] sm:$0xff] %v12761_v36  ;;  %v266_v44 = vmul.f32 %v12761_v36, %v12761_v36  ;;  %v12772_v45 = vsub.f32 %v181_v37, %v56_v16  ;;  %v12774_v46 = vsub.f32 %v177_v38, %v56_v16  ;;  %v185_v47 = vrot.slane %v119_v39, %v12742_v18 }
  0x22   :  { %16512 = vst [vmem:[#allocation11_spill] sm:$0xff] %v12777_v48  ;;  %v270_v56 = vmul.f32 %v12777_v48, %v12777_v48  ;;  %v12790_v57 = vsub.f32 %v193_v49, %v56_v16  ;;  %v201_v58 = vrot.slane %v120_v51, %v12742_v18  ;;  %v12798_v63 = vsub.f32 %v197_v50, %v56_v16 }
  0x23   :  { %16511 = vst [vmem:[#allocation10_spill] sm:$0xff] %v12772_v45  ;;  %v283_v52 = vsel %vm282_vm1, %v266_v44, 0.0  ;;  %v268_v53 = vmul.f32 %v12772_v45, %v12772_v45  ;;  %v267_v54 = vmul.f32 %v12774_v46, %v12774_v46  ;;  %v12786_v55 = vsub.f32 %v185_v47, %v56_v16  ;;  %10741 = vmatprep.subr.msk.mxu1 %vm512_vm2, %v462_v41 }
  0x24   :  { %284 = vadd.xlane.f32.xlu0 %v283_v52  ;;  %16514 = vst [vmem:[#allocation13_spill] sm:$0xff] %v12790_v57  ;;  %16515 = vst [vmem:[#allocation14_spill] sm:$0xff] %v12798_v63  ;;  %v271_v0 = vmul.f32 %v12790_v57, %v12790_v57  ;;  %v12803_v2 = vsub.f32 %v201_v58, %v56_v16  ;;  %v209_v4 = vrot.slane %v158_v43, %v12742_v18 }
  0x25   :  { %16513 = vst [vmem:[#allocation12_spill] sm:$0xff] %v12786_v55  ;;  %v289_v60 = vsel %vm282_vm1, %v268_v53, 0.0  ;;  %v286_v61 = vsel %vm282_vm1, %v267_v54, 0.0  ;;  %v269_v62 = vmul.f32 %v12786_v55, %v12786_v55  ;;  %v166_v5 = vcombine.high %v144_v34, %v144_v34  ;;  %10742 = vmatpush3.msk.msra.mxu1 %vm512_vm2, %v462_v41 }
  0x26   :  { %290 = vadd.xlane.f32.xlu1 %v289_v60  ;;  %16516 = vst [vmem:[#allocation15_spill] sm:$0xff] %v12803_v2  ;;  %v295_v7 = vsel %vm282_vm1, %v270_v56, 0.0  ;;  %v12808_v8 = vsub.f32 %v205_v59, %v12739_v17  ;;  %v168_v9 = vcombine.high %v158_v43, %v158_v43  ;;  %v272_v10 = vmul.f32 %v12798_v63, %v12798_v63 }
  0x27   :  { %v292_v1 = vsel %vm282_vm1, %v269_v62, 0.0  ;;  %v213_v11 = vrot.slane %v166_v5, %v12742_v18  ;;  %v12815_v14 = vsub.f32 %v209_v4, %v12739_v17  ;;  %v298_v15 = vsel %vm282_vm1, %v271_v0, 0.0 }
  0x28   :  { %287 = vadd.xlane.f32.xlu0 %v286_v61  ;;  %16517 = vst [vmem:[#allocation16_spill] sm:$0xff] %v12808_v8  ;;  %v273_v16 = vmul.f32 %v12803_v2, %v12803_v2  ;;  %v217_v19 = vrot.slane %v168_v9, %v12742_v18  ;;  %v165_v20 = vrot.slane %v137_v13, %v12713_v6  ;;  %v301_v22 = vsel %vm282_vm1, %v272_v10, 0.0 }
  0x29   :  { %16518 = vst [vmem:[#allocation17_spill] sm:$0xff] %v12815_v14  ;;  %v274_v21 = vmul.f32 %v12808_v8, %v12808_v8  ;;  %v12826_v23 = vsub.f32 %v213_v11, %v12739_v17  ;;  %v221_v24 = vrot.slane %v151_v12, %v12742_v18  ;;  %v167_v25 = vcombine.high %v151_v12, %v151_v12 }
  0x2a   :  { %293 = vadd.xlane.f32.xlu1 %v292_v1  ;;  %v275_v26 = vmul.f32 %v12815_v14, %v12815_v14  ;;  %v304_v28 = vsel %vm282_vm1, %v273_v16, 0.0  ;;  %v12833_v29 = vsub.f32 %v217_v19, %v12739_v17  ;;  %v225_v30 = vrot.slane %v165_v20, %v12742_v18 }
  0x2b   :  { %16519 = vst [vmem:[#allocation18_spill] sm:$0xff] %v12826_v23  ;;  %v169_v31 = vcombine.high %v165_v20, %v165_v20  ;;  %v307_v32 = vsel %vm282_vm1, %v274_v21, 0.0  ;;  %v276_v33 = vmul.f32 %v12826_v23, %v12826_v23  ;;  %v12840_v34 = vsub.f32 %v221_v24, %v12739_v17  ;;  %v1011_v20 = vld [vmem:[%s16360_s6] sm:$0xff]  ;;  %v1012_v21 = vld [vmem:[%s16360_s6 + $0x8] sm:$0xff]  ;;  %v1013_v24 = vld [vmem:[%s16360_s6 + $0x10] sm:$0xff] }
  0x2c   :  { %296 = vadd.xlane.f32.xlu0 %v295_v7  ;;  %16520 = vst [vmem:[#allocation19_spill] sm:$0xff] %v12833_v29  ;;  %v229_v35 = vrot.slane %v167_v25, %v12742_v18  ;;  %v310_v37 = vsel %vm282_vm1, %v275_v26, 0.0  ;;  %v277_v38 = vmul.f32 %v12833_v29, %v12833_v29  ;;  %v12847_v39 = vsub.f32 %v225_v30, %v12739_v17  ;;  %v1014_v25 = vld [vmem:[%s16360_s6 + $0x18] sm:$0xff] }
  0x2d   :  { %16521 = vst [vmem:[#allocation20_spill] sm:$0xff] %v12840_v34  ;;  %v233_v40 = vrot.slane %v169_v31, %v12742_v18  ;;  %v313_v42 = vsel %vm282_vm1, %v276_v33, 0.0  ;;  %v278_v43 = vmul.f32 %v12840_v34, %v12840_v34  ;;  %v12957_v26 = vpack.c.bf16 %v1014_v25, %v1013_v24 }
  0x2e   :  { %299 = vadd.xlane.f32.xlu1 %v298_v15  ;;  %16522 = vst [vmem:[#allocation21_spill] sm:$0xff] %v12847_v39  ;;  %v12858_v44 = vsub.f32 %v229_v35, %v12739_v17  ;;  %v316_v47 = vsel %vm282_vm1, %v277_v38, 0.0  ;;  %v279_v49 = vmul.f32 %v12847_v39, %v12847_v39 }
  0x2f   :  { %v12865_v50 = vsub.f32 %v233_v40, %v12739_v17  ;;  %v319_v51 = vsel %vm282_vm1, %v278_v43, 0.0 }
  0x30   :  { %302 = vadd.xlane.f32.xlu0 %v301_v22  ;;  %16523 = vst [vmem:[#allocation22_spill] sm:$0xff] %v12858_v44  ;;  %v280_v52 = vmul.f32 %v12858_v44, %v12858_v44  ;;  %v322_v53 = vsel %vm282_vm1, %v279_v49, 0.0  ;;  %v12947_v22 = vpack.c.bf16 %v1012_v21, %v1011_v20 }
  0x31   :  { %16524 = vst [vmem:[#allocation23_spill] sm:$0xff] %v12865_v50  ;;  %v281_v54 = vmul.f32 %v12865_v50, %v12865_v50 }
  0x32   :  { %305 = vadd.xlane.f32.xlu1 %v304_v28  ;;  %v325_v56 = vsel %vm282_vm1, %v280_v52, 0.0  ;;  %11394 = vmatprep.subr.bf16.mxu0 %v12947_v22  ;;  %v12964_v28 = vld [vmem:[%s16365_s11] sm:$0xff] }
  0x33   :  { %v328_v58 = vsel %vm282_vm1, %v281_v54, 0.0  ;;  %11396 = vmatpush3.bf16.msra.mxu0 %v12947_v22 }
  0x34   :  { %308 = vadd.xlane.f32.xlu0 %v307_v32  ;;  %11398 = vmatprep.subr.bf16.mxu0 %v12957_v26  ;;  %v12972_v32 = vrot.slane %v12964_v28, %v12742_v18 }
  0x36   :  { %311 = vadd.xlane.f32.xlu1 %v310_v37 }
  0x37   :  { %11400 = vmatpush3.bf16.msra.mxu0 %v12957_v26 }
  0x38   :  { %314 = vadd.xlane.f32.xlu0 %v313_v42 }
  0x3a   :  { %317 = vadd.xlane.f32.xlu1 %v316_v47 }
  0x3c   :  { %320 = vadd.xlane.f32.xlu0 %v319_v51 }
  0x3e   :  { %323 = vadd.xlane.f32.xlu1 %v322_v53 }
  0x40   :  { %326 = vadd.xlane.f32.xlu0 %v325_v56 }
  0x42   :  { %329 = vadd.xlane.f32.xlu1 %v328_v58 }
  0xb1   :  { %v12875_v17 = vpop.xlane.xlu0 %284 }
  0xb2   :  { %16525 = vst [vmem:[#allocation24_spill] sm:$0xff] %v12875_v17  ;;  %10743 = vmatprep.mubr.msk.f32.mxu1 %vm463_vm3, %v12875_v17 }
  0xb3   :  { %v12879_v59 = vpop.xlane.xlu1 %290 }
  0xb4   :  { %16526 = vst [vmem:[#allocation25_spill] sm:$0xff] %v12879_v59 }
  0xb5   :  { %v12881_v60 = vpop.xlane.xlu0 %287 }
  0xb6   :  { %16527 = vst [vmem:[#allocation26_spill] sm:$0xff] %v12881_v60  ;;  %10744 = vmatmul.mubr.msk.f32.vlgmr.msra.gmra.mrb[0].mxu1 %vm463_vm3, %v12881_v60 }
  0xb7   :  { %10746 = vmatprep.mubr.msk.f32.mxu1 %vm463_vm3, %v12879_v59  ;;  %v12887_v61 = vpop.xlane.xlu1 %293 }
  0xb8   :  { %16528 = vst [vmem:[#allocation27_spill] sm:$0xff] %v12887_v61 }
  0xb9   :  { %v12889_v62 = vpop.xlane.xlu0 %296 }
  0xba   :  { %16529 = vst [vmem:[#allocation28_spill] sm:$0xff] %v12889_v62  ;;  %10747 = vmatmul.mubr.msk.f32.gmra.mrb[2].mxu1 %vm463_vm3, %v12887_v61 }
  0xbb   :  { %10749 = vmatprep.mubr.msk.f32.mxu1 %vm463_vm3, %v12889_v62  ;;  %v12895_v0 = vpop.xlane.xlu1 %299 }
  0xbc   :  { %16530 = vst [vmem:[#allocation29_spill] sm:$0xff] %v12895_v0 }
  0xbd   :  { %v12897_v1 = vpop.xlane.xlu0 %302 }
  0xbe   :  { %16531 = vst [vmem:[#allocation30_spill] sm:$0xff] %v12897_v1  ;;  %10750 = vmatmul.mubr.msk.f32.gmra.mrb[4].mxu1 %vm463_vm3, %v12895_v0 }
  0xbf   :  { %10752 = vmatprep.mubr.msk.f32.mxu1 %vm463_vm3, %v12897_v1  ;;  %v12903_v4 = vpop.xlane.xlu1 %305 }
  0xc0   :  { %16532 = vst [vmem:[#allocation31_spill] sm:$0xff] %v12903_v4 }
  0xc1   :  { %v12905_v5 = vpop.xlane.xlu0 %308 }
  0xc2   :  { %16533 = vst [vmem:[#allocation32_spill] sm:$0xff] %v12905_v5  ;;  %10753 = vmatmul.mubr.msk.f32.gmra.mrb[6].mxu1 %vm463_vm3, %v12903_v4 }
  0xc3   :  { %10755 = vmatprep.mubr.msk.f32.mxu1 %vm463_vm3, %v12905_v5  ;;  %v12911_v7 = vpop.xlane.xlu1 %311 }
  0xc4   :  { %16534 = vst [vmem:[#allocation33_spill] sm:$0xff] %v12911_v7 }
  0xc5   :  { %v12913_v9 = vpop.xlane.xlu0 %314 }
  0xc6   :  { %16535 = vst [vmem:[#allocation34_spill] sm:$0xff] %v12913_v9  ;;  %10756 = vmatmul.mubr.msk.f32.gmra.mrb[8].mxu1 %vm463_vm3, %v12911_v7 }
  0xc7   :  { %10758 = vmatprep.mubr.msk.f32.mxu1 %vm463_vm3, %v12913_v9  ;;  %v12919_v10 = vpop.xlane.xlu1 %317 }
  0xc8   :  { %16536 = vst [vmem:[#allocation35_spill] sm:$0xff] %v12919_v10 }
  0xc9   :  { %v12921_v11 = vpop.xlane.xlu0 %320 }
  0xca   :  { %16537 = vst [vmem:[#allocation36_spill] sm:$0xff] %v12921_v11  ;;  %10759 = vmatmul.mubr.msk.f32.gmra.mrb[10].mxu1 %vm463_vm3, %v12919_v10 }
  0xcb   :  { %10761 = vmatprep.mubr.msk.f32.mxu1 %vm463_vm3, %v12921_v11  ;;  %v12927_v12 = vpop.xlane.xlu1 %323 }
  0xcc   :  { %16538 = vst [vmem:[#allocation37_spill] sm:$0xff] %v12927_v12 }
  0xcd   :  { %v12929_v13 = vpop.xlane.xlu0 %326 }
  0xce   :  { %16539 = vst [vmem:[#allocation38_spill] sm:$0xff] %v12929_v13  ;;  %10762 = vmatmul.mubr.msk.f32.gmra.mrb[12].mxu1 %vm463_vm3, %v12927_v12 }
  0xcf   :  { %10764 = vmatprep.mubr.msk.f32.mxu1 %vm463_vm3, %v12929_v13  ;;  %v12935_v15 = vpop.xlane.xlu1 %329 }
  0xd0   :  { %16540 = vst [vmem:[#allocation39_spill] sm:$0xff] %v12935_v15 }
  0xd2   :  { %10765 = vmatmul.mubr.msk.f32.gmra.mrb[14].mxu1 %vm463_vm3, %v12935_v15 }
  0xf0   :  { %v10740_v16 = vpop.f32.mrb[0].mxu0 }
  0xf1   :  { %v453_v19 = vpop.f32.mrb[1].mxu0  ;;  %843 = vrot.lane.b32.xlu1 %v10740_v16, %s12627_s15  ;;  %v712_v20 = vcombine.high %v10740_v16, %v10740_v16  ;;  %v719_v21 = vrot.slane %v10740_v16, %v12713_v6 }
  0xf2   :  { %841 = vrot.lane.b32.xlu0 %v453_v19, %s12627_s15  ;;  %v670_v40 = vrot.slane %v453_v19, %v12713_v6  ;;  %v663_v41 = vcombine.high %v453_v19, %v453_v19 }
  0xf3   :  { %v727_v44 = vcombine.high %v719_v21, %v719_v21 }
  0xf4   :  { %v678_v42 = vcombine.high %v670_v40, %v670_v40  ;;  %v677_v43 = vrot.slane %v663_v41, %v12713_v6  ;;  %v686_v49 = vrot.slane %v670_v40, %v12713_v6 }
  0xf6   :  { %v700_v47 = vrot.slane %v678_v42, %v12713_v6  ;;  %v679_v53 = vcombine.high %v677_v43, %v677_v43  ;;  %v764_v54 = vrot.slane %v686_v49, %v12742_v18  ;;  %v708_v56 = vcombine.high %v686_v49, %v686_v49 }
  0xf8   :  { %v768_v51 = vrot.slane %v700_v47, %v12742_v18  ;;  %v710_v52 = vcombine.high %v700_v47, %v700_v47  ;;  %v707_v40 = vrot.slane %v679_v53, %v12713_v6  ;;  %v772_v42 = vrot.slane %v708_v56, %v12742_v18 }
  0xf9   :  { %v693_v47 = vrot.slane %v677_v43, %v12713_v6 }
  0xfa   :  { %v784_v43 = vrot.slane %v707_v40, %v12742_v18 }
 0x163   :  { %v12966_v30 = vpop.permute.xlu1 %843 }
 0x164   :  { %v12968_v31 = vpop.permute.xlu0 %841  ;;  %v2084_v35 = vadd.f32 %v10740_v16, %v12966_v30  ;;  %v726_v16 = vrot.slane %v712_v20, %v12713_v6  ;;  %v709_v20 = vcombine.high %v693_v47, %v693_v47 }
 0x165   :  { %v2083_v33 = vadd.f32 %v12968_v31, %v453_v19  ;;  %v848_v58 = vadd.f32 %v12968_v31, %v768_v51  ;;  %v847_v24 = vadd.f32 %v12968_v31, %v764_v54  ;;  %v852_v50 = vadd.f32 %v12968_v31, %v784_v43 }
 0x166   :  { %v12980_v38 = vadd.f32 %v2084_v35, %v12972_v32  ;;  %v776_v35 = vrot.slane %v710_v52, %v12742_v18  ;;  %v849_v52 = vadd.f32 %v12968_v31, %v772_v42  ;;  %v735_v42 = vrot.slane %v719_v21, %v12713_v6 }
 0x167   :  { %v12977_v37 = vadd.f32 %v2083_v33, %v12972_v32  ;;  %v728_v39 = vcombine.high %v726_v16, %v726_v16  ;;  %v788_v21 = vrot.slane %v709_v20, %v12742_v18 }
 0x168   :  { %v850_v51 = vadd.f32 %v12968_v31, %v776_v35  ;;  %v780_v35 = vrot.slane %v693_v47, %v12742_v18 }
 0x189   :  { %v10745_v19 = vpop.f32.mrb[0].mxu1 }
 0x18a   :  { %v864_v25 = vadd.f32 %v10745_v19, %v848_v58  ;;  %v582_v33 = vpop.f32.mrb[1].mxu1 }
 0x18b   :  { %v863_v41 = vadd.f32 %v847_v24, %v582_v33  ;;  %v711_v24 = vcombine.high %v707_v40, %v707_v40  ;;  %v851_v40 = vadd.f32 %v12968_v31, %v780_v35  ;;  %v757_v35 = vcombine.high %v735_v42, %v735_v42 }
 0x18c   :  { %v12996_v49 = vadd.f32 %v12972_v32, %v864_v25 }
 0x18d   :  { %v13001_v54 = vadd.f32 %v12972_v32, %v863_v41  ;;  %v10748_v58 = vpop.f32.mrb[2].mxu1 }
 0x18e   :  { %v9790_v53 = vmul.f32 -1.442695, %v12996_v49  ;;  %v866_v19 = vadd.f32 %v10748_v58, %v850_v51  ;;  %v592_v56 = vpop.f32.mrb[3].mxu1 }
 0x18f   :  { %v9789_v25 = vmul.f32 -1.442695, %v13001_v54  ;;  %v865_v33 = vadd.f32 %v849_v52, %v592_v56  ;;  %v749_v52 = vrot.slane %v727_v44, %v12713_v6 }
 0x190   :  { %11624 = vpow2.f32 %v9790_v53  ;;  %v13009_v41 = vadd.f32 %v12972_v32, %v866_v19  ;;  %v792_v19 = vrot.slane %v711_v24, %v12742_v18  ;;  %v853_v24 = vadd.f32 %v12968_v31, %v788_v21 }
 0x191   :  { %11626 = vpow2.f32 %v9789_v25  ;;  %v13014_v51 = vadd.f32 %v12972_v32, %v865_v33  ;;  %v10751_v58 = vpop.f32.mrb[4].mxu1  ;;  %v804_v21 = vrot.slane %v757_v35, %v12742_v18 }
 0x192   :  { %v9792_v56 = vmul.f32 -1.442695, %v13009_v41  ;;  %v868_v47 = vadd.f32 %v10751_v58, %v852_v50  ;;  %v602_v53 = vpop.f32.mrb[5].mxu1  ;;  %v854_v33 = vadd.f32 %v12968_v31, %v792_v19  ;;  %v800_v58 = vrot.slane %v749_v52, %v12742_v18 }
 0x193   :  { %v9791_v43 = vmul.f32 -1.442695, %v13014_v51  ;;  %v867_v34 = vadd.f32 %v851_v40, %v602_v53 }
 0x194   :  { %11628 = vpow2.f32 %v9792_v56  ;;  %v13023_v25 = vadd.f32 %v12972_v32, %v868_v47  ;;  %v759_v56 = vcombine.high %v749_v52, %v749_v52  ;;  %v756_v47 = vrot.slane %v728_v39, %v12713_v6 }
 0x195   :  { %11630 = vpow2.f32 %v9791_v43  ;;  %v13027_v44 = vadd.f32 %v12972_v32, %v867_v34  ;;  %v10754_v50 = vpop.f32.mrb[6].mxu1  ;;  %v796_v43 = vrot.slane %v735_v42, %v12742_v18  ;;  %v856_v31 = vadd.f32 %v12966_v30, %v800_v58 }
 0x196   :  { %v9794_v40 = vmul.f32 -1.442695, %v13023_v25  ;;  %v870_v53 = vadd.f32 %v10754_v50, %v854_v33  ;;  %v612_v20 = vpop.f32.mrb[7].mxu1  ;;  %v742_v50 = vrot.slane %v726_v16, %v12713_v6  ;;  %v816_v58 = vrot.slane %v756_v47, %v12742_v18 }
 0x197   :  { %v9793_v23 = vmul.f32 -1.442695, %v13027_v44  ;;  %v869_v19 = vadd.f32 %v853_v24, %v612_v20  ;;  %v855_v39 = vadd.f32 %v12966_v30, %v796_v43  ;;  %v760_v15 = vcombine.high %v756_v47, %v756_v47 }
 0x198   :  { %11632 = vpow2.f32 %v9794_v40  ;;  %v13036_v34 = vadd.f32 %v12972_v32, %v870_v53  ;;  %v808_v53 = vrot.slane %v759_v56, %v12742_v18 }
 0x199   :  { %11634 = vpow2.f32 %v9793_v23  ;;  %v13041_v33 = vadd.f32 %v12972_v32, %v869_v19  ;;  %v10757_v52 = vpop.f32.mrb[8].mxu1 }
 0x19a   :  { %v11625_v24 = vpop.eup %11624  ;;  %v9796_v42 = vmul.f32 -1.442695, %v13036_v34  ;;  %v872_v40 = vadd.f32 %v10757_v52, %v856_v31  ;;  %v622_v20 = vpop.f32.mrb[9].mxu1  ;;  %v858_v16 = vadd.f32 %v12966_v30, %v808_v53  ;;  %v857_v52 = vadd.f32 %v12966_v30, %v804_v21 }
 0x19b   :  { %v11627_v29 = vpop.eup %11626  ;;  %v948_v35 = vadd.f32 1.0, %v11625_v24  ;;  %v9795_v23 = vmul.f32 -1.442695, %v13041_v33  ;;  %v871_v19 = vadd.f32 %v855_v39, %v622_v20  ;;  %v812_v24 = vrot.slane %v742_v50, %v12742_v18 }
 0x19c   :  { %v947_v14 = vadd.f32 1.0, %v11627_v29  ;;  %11636 = vpow2.f32 %v9796_v42  ;;  %v13050_v43 = vadd.f32 %v12972_v32, %v872_v40  ;;  %v758_v42 = vcombine.high %v742_v50, %v742_v50 }
 0x19d   :  { %11638 = vrcp.f32 %v948_v35  ;;  %v13054_v31 = vadd.f32 %v12972_v32, %v871_v19  ;;  %v10760_v56 = vpop.f32.mrb[10].mxu1  ;;  %v860_v21 = vadd.f32 %v12966_v30, %v816_v58  ;;  %v859_v50 = vadd.f32 %v12966_v30, %v812_v24 }
 0x19e   :  { %v11629_v6 = vpop.eup %11628  ;;  %11640 = vrcp.f32 %v947_v14  ;;  %v9798_v47 = vmul.f32 -1.442695, %v13050_v43  ;;  %v874_v29 = vadd.f32 %v10760_v56, %v858_v16  ;;  %v632_v39 = vpop.f32.mrb[11].mxu1 }
 0x19f   :  { %v11631_v40 = vpop.eup %11630  ;;  %v950_v20 = vadd.f32 1.0, %v11629_v6  ;;  %11642 = vpow2.f32 %v9795_v23  ;;  %v9797_v53 = vmul.f32 -1.442695, %v13054_v31  ;;  %v873_v35 = vadd.f32 %v857_v52, %v632_v39 }
 0x1a0   :  { %v949_v19 = vadd.f32 1.0, %v11631_v40  ;;  %11644 = vpow2.f32 %v9798_v47  ;;  %v13061_v8 = vadd.f32 %v12972_v32, %v874_v29  ;;  %v824_v6 = vrot.slane %v760_v15, %v12742_v18 }
 0x1a1   :  { %11646 = vrcp.f32 %v950_v20  ;;  %v13065_v14 = vadd.f32 %v12972_v32, %v873_v35  ;;  %v10763_v16 = vpop.f32.mrb[12].mxu1  ;;  %v820_v29 = vrot.slane %v758_v42, %v12742_v18 }
 0x1a2   :  { %v11633_v23 = vpop.eup %11632  ;;  %11648 = vrcp.f32 %v949_v19  ;;  %v9800_v56 = vmul.f32 -1.442695, %v13061_v8  ;;  %v876_v52 = vadd.f32 %v10763_v16, %v860_v21  ;;  %v642_v47 = vpop.f32.mrb[13].mxu1  ;;  %v862_v15 = vadd.f32 %v12966_v30, %v824_v6 }
 0x1a3   :  { %v11635_v39 = vpop.eup %11634  ;;  %v952_v40 = vadd.f32 1.0, %v11633_v23  ;;  %11650 = vpow2.f32 %v9797_v53  ;;  %v9799_v58 = vmul.f32 -1.442695, %v13065_v14  ;;  %v875_v20 = vadd.f32 %v859_v50, %v642_v47 }
 0x1a4   :  { %v951_v35 = vadd.f32 1.0, %v11635_v39  ;;  %11652 = vpow2.f32 %v9800_v56  ;;  %v13073_v24 = vadd.f32 %v12972_v32, %v876_v52  ;;  %v861_v42 = vadd.f32 %v12966_v30, %v820_v29 }
 0x1a5   :  { %11654 = vrcp.f32 %v952_v40  ;;  %v13077_v19 = vadd.f32 %v12972_v32, %v875_v20  ;;  %v10766_v21 = vpop.f32.mrb[14].mxu1 }
 0x1a6   :  { %v11637_v16 = vpop.eup %11636  ;;  %11656 = vrcp.f32 %v951_v35  ;;  %v9802_v53 = vmul.f32 -1.442695, %v13073_v24  ;;  %v878_v23 = vadd.f32 %v10766_v21, %v862_v15  ;;  %v652_v50 = vpop.f32.mrb[15].mxu1 }
 0x1a7   :  { %v11639_v47 = vpop.eup %11638  ;;  %v954_v56 = vadd.f32 1.0, %v11637_v16  ;;  %11658 = vpow2.f32 %v9799_v58  ;;  %v9801_v52 = vmul.f32 -1.442695, %v13077_v19  ;;  %v877_v39 = vadd.f32 %v861_v42, %v652_v50 }
 0x1a8   :  { %v11641_v6 = vpop.eup %11640  ;;  %11660 = vpow2.f32 %v9802_v53  ;;  %v13083_v40 = vadd.f32 %v12972_v32, %v878_v23  ;;  %v996_v15 = vmul.f32 %v11639_v47, %v12996_v49 }
 0x1a9   :  { %v11643_v20 = vpop.eup %11642  ;;  %v995_v30 = vmul.f32 %v11641_v6, %v13001_v54  ;;  %v13087_v29 = vadd.f32 %v12972_v32, %v877_v39  ;;  %11662 = vpow2.f32 %v9801_v52 }
 0x1aa   :  { %v11645_v35 = vpop.eup %11644  ;;  %v953_v21 = vadd.f32 1.0, %v11643_v20  ;;  %v9804_v58 = vmul.f32 -1.442695, %v13083_v40  ;;  %11664 = vrcp.f32 %v954_v56 }
 0x1ab   :  { %v11647_v16 = vpop.eup %11646  ;;  %v956_v42 = vadd.f32 1.0, %v11645_v35  ;;  %v9803_v53 = vmul.f32 -1.442695, %v13087_v29  ;;  %10775 = vmatprep.mubr.msk.f32.mxu0 %vm384_vm0, %v995_v30 }
 0x1ac   :  { %v11649_v23 = vpop.eup %11648  ;;  %11666 = vrcp.f32 %v953_v21  ;;  %10776 = vmatmul.mubr.msk.f32.vlgmr.msra.gmra.mrb[2].mxu0 %vm384_vm0, %v996_v15  ;;  %v998_v50 = vmul.f32 %v11647_v16, %v13009_v41 }
 0x1ad   :  { %v11651_v32 = vpop.eup %11650  ;;  %v997_v54 = vmul.f32 %v11649_v23, %v13014_v51  ;;  %11668 = vrcp.f32 %v956_v42 }
 0x1ae   :  { %v11653_v49 = vpop.eup %11652  ;;  %v955_v47 = vadd.f32 1.0, %v11651_v32  ;;  %11670 = vpow2.f32 %v9804_v58 }
 0x1af   :  { %v11655_v52 = vpop.eup %11654  ;;  %v958_v56 = vadd.f32 1.0, %v11653_v49  ;;  %11672 = vpow2.f32 %v9803_v53  ;;  %10778 = vmatprep.mubr.msk.f32.mxu0 %vm384_vm0, %v997_v54 }
 0x1b0   :  { %v11657_v39 = vpop.eup %11656  ;;  %11674 = vrcp.f32 %v955_v47  ;;  %10779 = vmatmul.mubr.msk.f32.gmra.mrb[4].mxu0 %vm384_vm0, %v998_v50  ;;  %v1000_v51 = vmul.f32 %v11655_v52, %v13023_v25 }
 0x1b1   :  { %v11659_v6 = vpop.eup %11658  ;;  %v999_v20 = vmul.f32 %v11657_v39, %v13027_v44  ;;  %11676 = vrcp.f32 %v958_v56 }
 0x1b2   :  { %v11661_v30 = vpop.eup %11660  ;;  %v957_v35 = vadd.f32 1.0, %v11659_v6 }
 0x1b3   :  { %v960_v41 = vadd.f32 1.0, %v11661_v30  ;;  %10781 = vmatprep.mubr.msk.f32.mxu0 %vm384_vm0, %v999_v20  ;;  %v11663_v15 = vpop.eup %11662 }
 0x1b4   :  { %11678 = vrcp.f32 %v957_v35  ;;  %10782 = vmatmul.mubr.msk.f32.gmra.mrb[6].mxu0 %vm384_vm0, %v1000_v51  ;;  %v11665_v21 = vpop.eup %11664  ;;  %v959_v58 = vadd.f32 1.0, %v11663_v15 }
 0x1b5   :  { %11680 = vrcp.f32 %v960_v41  ;;  %v1002_v25 = vmul.f32 %v11665_v21, %v13036_v34  ;;  %v1327_v41 = vld [vmem:[#allocation3 + $0x18] sm:$0xff] }
 0x1b6   :  { %v11667_v16 = vpop.eup %11666  ;;  %11682 = vrcp.f32 %v959_v58 }
 0x1b7   :  { %v11669_v42 = vpop.eup %11668  ;;  %v1001_v53 = vmul.f32 %v11667_v16, %v13041_v33 }
 0x1b8   :  { %v11671_v44 = vpop.eup %11670  ;;  %v1004_v47 = vmul.f32 %v11669_v42, %v13050_v43 }
 0x1b9   :  { %v11673_v23 = vpop.eup %11672  ;;  %v962_v32 = vadd.f32 1.0, %v11671_v44  ;;  %10784 = vmatprep.mubr.msk.f32.mxu0 %vm384_vm0, %v1001_v53 }
 0x1ba   :  { %v11675_v54 = vpop.eup %11674  ;;  %v961_v49 = vadd.f32 1.0, %v11673_v23  ;;  %10785 = vmatmul.mubr.msk.f32.gmra.mrb[8].mxu0 %vm384_vm0, %v1002_v25 }
 0x1bb   :  { %v1003_v50 = vmul.f32 %v11675_v54, %v13054_v31  ;;  %11684 = vrcp.f32 %v962_v32  ;;  %v11677_v52 = vpop.eup %11676 }
 0x1bc   :  { %11686 = vrcp.f32 %v961_v49  ;;  %v1006_v39 = vmul.f32 %v11677_v52, %v13061_v8  ;;  %v1324_v8 = vld [vmem:[#allocation3] sm:$0xff] }
 0x1bd   :  { %10787 = vmatprep.mubr.msk.f32.mxu0 %vm384_vm0, %v1003_v50 }
 0x1be   :  { %v11679_v33 = vpop.eup %11678  ;;  %10788 = vmatmul.mubr.msk.f32.gmra.mrb[10].mxu0 %vm384_vm0, %v1004_v47 }
 0x1bf   :  { %v1005_v34 = vmul.f32 %v11679_v33, %v13065_v14  ;;  %v11681_v56 = vpop.eup %11680 }
 0x1c0   :  { %v11683_v6 = vpop.eup %11682  ;;  %v1008_v43 = vmul.f32 %v11681_v56, %v13073_v24  ;;  %v1326_v24 = vld [vmem:[#allocation3 + $0x10] sm:$0xff] }
 0x1c1   :  { %10790 = vmatprep.mubr.msk.f32.mxu0 %vm384_vm0, %v1005_v34  ;;  %v1007_v31 = vmul.f32 %v11683_v6, %v13077_v19  ;;  %v1325_v19 = vld [vmem:[#allocation3 + $0x8] sm:$0xff]  ;;  %v11405_v15 = vpack.c.bf16 %v1327_v41, %v1326_v24 }
 0x1c2   :  { %10791 = vmatmul.mubr.msk.f32.gmra.mrb[12].mxu0 %vm384_vm0, %v1006_v39  ;;  %v11401_v35 = vpack.c.bf16 %v1325_v19, %v1324_v8 }
 0x1c3   :  { %10793 = vmatprep.mubr.msk.f32.mxu0 %vm384_vm0, %v1007_v31 }
 0x1c4   :  { %11402 = vmatprep.subr.bf16.mxu1 %v11401_v35 }
 0x1c5   :  { %v11685_v20 = vpop.eup %11684  ;;  %11404 = vmatpush3.bf16.msra.mxu1 %v11401_v35 }
 0x1c6   :  { %v11687_v30 = vpop.eup %11686  ;;  %10794 = vmatmul.mubr.msk.f32.gmra.mrb[14].mxu0 %vm384_vm0, %v1008_v43  ;;  %v1010_v51 = vmul.f32 %v11685_v20, %v13083_v40  ;;  %11406 = vmatprep.subr.bf16.mxu1 %v11405_v15 }
 0x1c7   :  { %v1009_v14 = vmul.f32 %v11687_v30, %v13087_v29  ;;  %v13124_v29 = vsub.s32 1, %v12707_v3 }
 0x1c9   :  { %10796 = vmatprep.mubr.msk.f32.mxu0 %vm384_vm0, %v1009_v14  ;;  %11408 = vmatpush3.bf16.msra.mxu1 %v11405_v15  ;;  %16541 = vst [vmem:[#allocation40_spill] sm:$0xff] %v13124_v29  ;;  %v13128_v40 = vrot.slane %v12964_v28, %v13124_v29 }
 0x1ca   :  { %10797 = vmatmul.mubr.msk.f32.gmra.mrb[16].mxu0 %vm384_vm0, %v1010_v51  ;;  %11418 = vmatprep.subr.bf16.mxu1 %v12947_v22 }
 0x27f   :  { %v10777_v21 = vpop.f32.mrb[2].mxu0 }
 0x280   :  { %v13131_v58 = vadd.f32 %v10777_v21, %v13128_v40  ;;  %v1133_v16 = vpop.f32.mrb[3].mxu0 }
 0x281   :  { %v13134_v42 = vadd.f32 %v1133_v16, %v13128_v40 }
 0x282   :  { %v9822_v53 = vmul.f32 -1.442695, %v13131_v58 }
 0x283   :  { %v9821_v44 = vmul.f32 -1.442695, %v13134_v42  ;;  %v10780_v25 = vpop.f32.mrb[4].mxu0 }
 0x284   :  { %11688 = vpow2.f32 %v9822_v53  ;;  %v13139_v23 = vadd.f32 %v10780_v25, %v13128_v40  ;;  %v1143_v32 = vpop.f32.mrb[5].mxu0 }
 0x285   :  { %11690 = vpow2.f32 %v9821_v44  ;;  %v13142_v54 = vadd.f32 %v1143_v32, %v13128_v40 }
 0x286   :  { %v9824_v49 = vmul.f32 -1.442695, %v13139_v23 }
 0x287   :  { %v9823_v50 = vmul.f32 -1.442695, %v13142_v54  ;;  %v10783_v47 = vpop.f32.mrb[6].mxu0 }
 0x288   :  { %11692 = vpow2.f32 %v9824_v49  ;;  %v13147_v52 = vadd.f32 %v10783_v47, %v13128_v40  ;;  %v1153_v33 = vpop.f32.mrb[7].mxu0 }
 0x289   :  { %11694 = vpow2.f32 %v9823_v50  ;;  %v13150_v34 = vadd.f32 %v1153_v33, %v13128_v40 }
 0x28a   :  { %v9826_v56 = vmul.f32 -1.442695, %v13147_v52 }
 0x28b   :  { %v9825_v39 = vmul.f32 -1.442695, %v13150_v34 }
 0x28c   :  { %11696 = vpow2.f32 %v9826_v56 }
 0x28d   :  { %11698 = vpow2.f32 %v9825_v39  ;;  %v10786_v6 = vpop.f32.mrb[8].mxu0 }
 0x28e   :  { %v11689_v31 = vpop.eup %11688  ;;  %v13155_v43 = vadd.f32 %v10786_v6, %v13128_v40  ;;  %v1163_v20 = vpop.f32.mrb[9].mxu0 }
 0x28f   :  { %v11691_v30 = vpop.eup %11690  ;;  %v1261_v14 = vadd.f32 1.0, %v11689_v31  ;;  %v13158_v51 = vadd.f32 %v1163_v20, %v13128_v40 }
 0x290   :  { %v1260_v8 = vadd.f32 1.0, %v11691_v30  ;;  %v9828_v19 = vmul.f32 -1.442695, %v13155_v43 }
 0x291   :  { %11700 = vrcp.f32 %v1261_v14  ;;  %v9827_v35 = vmul.f32 -1.442695, %v13158_v51  ;;  %v10789_v24 = vpop.f32.mrb[10].mxu0 }
 0x292   :  { %v11693_v41 = vpop.eup %11692  ;;  %11702 = vrcp.f32 %v1260_v8  ;;  %v13163_v15 = vadd.f32 %v10789_v24, %v13128_v40  ;;  %v1173_v21 = vpop.f32.mrb[11].mxu0 }
 0x293   :  { %v11695_v16 = vpop.eup %11694  ;;  %v1263_v53 = vadd.f32 1.0, %v11693_v41  ;;  %11704 = vpow2.f32 %v9828_v19  ;;  %v13166_v44 = vadd.f32 %v1173_v21, %v13128_v40 }
 0x294   :  { %v1262_v25 = vadd.f32 1.0, %v11695_v16  ;;  %11706 = vpow2.f32 %v9827_v35  ;;  %v9830_v32 = vmul.f32 -1.442695, %v13163_v15 }
 0x295   :  { %11708 = vrcp.f32 %v1263_v53  ;;  %v9829_v49 = vmul.f32 -1.442695, %v13166_v44  ;;  %v10792_v50 = vpop.f32.mrb[12].mxu0 }
 0x296   :  { %v11697_v47 = vpop.eup %11696  ;;  %11710 = vrcp.f32 %v1262_v25  ;;  %v13171_v33 = vadd.f32 %v10792_v50, %v13128_v40  ;;  %v1183_v56 = vpop.f32.mrb[13].mxu0 }
 0x297   :  { %v11699_v39 = vpop.eup %11698  ;;  %v1265_v6 = vadd.f32 1.0, %v11697_v47  ;;  %11712 = vpow2.f32 %v9830_v32  ;;  %v13174_v31 = vadd.f32 %v1183_v56, %v13128_v40 }
 0x298   :  { %v1264_v20 = vadd.f32 1.0, %v11699_v39  ;;  %11714 = vpow2.f32 %v9829_v49  ;;  %v9832_v30 = vmul.f32 -1.442695, %v13171_v33 }
 0x299   :  { %11716 = vrcp.f32 %v1265_v6  ;;  %v9831_v14 = vmul.f32 -1.442695, %v13174_v31  ;;  %v10795_v8 = vpop.f32.mrb[14].mxu0 }
 0x29a   :  { %11718 = vrcp.f32 %v1264_v20  ;;  %v13179_v19 = vadd.f32 %v10795_v8, %v13128_v40  ;;  %v1193_v35 = vpop.f32.mrb[15].mxu0 }
 0x29b   :  { %v11701_v24 = vpop.eup %11700  ;;  %11720 = vpow2.f32 %v9832_v30  ;;  %v13182_v41 = vadd.f32 %v1193_v35, %v13128_v40 }
 0x29c   :  { %v11703_v21 = vpop.eup %11702  ;;  %11722 = vpow2.f32 %v9831_v14  ;;  %v9834_v16 = vmul.f32 -1.442695, %v13179_v19  ;;  %v13190_v47 = vmul.f32 %v11701_v24, %v13131_v58 }
 0x29d   :  { %v11705_v53 = vpop.eup %11704  ;;  %v13186_v25 = vmul.f32 %v11703_v21, %v13134_v42  ;;  %v9833_v32 = vmul.f32 -1.442695, %v13182_v41  ;;  %v10798_v49 = vpop.f32.mrb[16].mxu0 }
 0x29e   :  { %v11707_v50 = vpop.eup %11706  ;;  %v1267_v56 = vadd.f32 1.0, %v11705_v53  ;;  %11724 = vpow2.f32 %v9834_v16  ;;  %v1203_v39 = vpop.f32.mrb[17].mxu0 }
 0x29f   :  { %v11709_v6 = vpop.eup %11708  ;;  %v1266_v20 = vadd.f32 1.0, %v11707_v50  ;;  %11726 = vpow2.f32 %v9833_v32  ;;  %10807 = vmatprep.mubr.msk.f32.mxu1 %vm384_vm0, %v13186_v25 }
 0x2a0   :  { %v11711_v30 = vpop.eup %11710  ;;  %11728 = vrcp.f32 %v1267_v56  ;;  %10808 = vmatmul.mubr.msk.f32.vlgmr.msra.gmra.mrb[16].mxu1 %vm384_vm0, %v13190_v47  ;;  %v13201_v8 = vmul.f32 %v11709_v6, %v13139_v23  ;;  %v13212_v23 = vadd.f32 %v10798_v49, %v13128_v40 }
 0x2a1   :  { %v11713_v42 = vpop.eup %11712  ;;  %v13197_v14 = vmul.f32 %v11711_v30, %v13142_v54  ;;  %11730 = vrcp.f32 %v1266_v20  ;;  %11420 = vmatpush3.bf16.msra.mxu1 %v12947_v22 }
 0x2a2   :  { %v11715_v58 = vpop.eup %11714  ;;  %v1269_v35 = vadd.f32 1.0, %v11713_v42  ;;  %11422 = vmatprep.subr.bf16.mxu1 %v12957_v26  ;;  %v9836_v49 = vmul.f32 -1.442695, %v13212_v23 }
 0x2a3   :  { %v11717_v24 = vpop.eup %11716  ;;  %v1268_v21 = vadd.f32 1.0, %v11715_v58  ;;  %10810 = vmatprep.mubr.msk.f32.mxu1 %vm384_vm0, %v13197_v14 }
 0x2a4   :  { %v11719_v16 = vpop.eup %11718  ;;  %11732 = vrcp.f32 %v1269_v35  ;;  %10811 = vmatmul.mubr.msk.f32.gmra.mrb[18].mxu1 %vm384_vm0, %v13201_v8  ;;  %v13216_v32 = vmul.f32 %v11717_v24, %v13147_v52  ;;  %v1204_v24 = vadd.f32 %v1203_v39, %v13128_v40 }
 0x2a5   :  { %v11721_v54 = vpop.eup %11720  ;;  %v13209_v22 = vmul.f32 %v11719_v16, %v13150_v34  ;;  %11734 = vrcp.f32 %v1268_v21  ;;  %11424 = vmatpush3.bf16.msra.mxu1 %v12957_v26  ;;  %v9885_v34 = vmul.f32 -1.442695, %v12977_v37 }
 0x2a6   :  { %v11723_v53 = vpop.eup %11722  ;;  %v1271_v50 = vadd.f32 1.0, %v11721_v54 }
 0x2a7   :  { %10813 = vmatprep.mubr.msk.f32.mxu1 %vm384_vm0, %v13209_v22  ;;  %v1270_v20 = vadd.f32 1.0, %v11723_v53  ;;  %v9835_v53 = vmul.f32 -1.442695, %v1204_v24 }
 0x2a8   :  { %v11725_v56 = vpop.eup %11724  ;;  %10814 = vmatmul.mubr.msk.f32.gmra.mrb[20].mxu1 %vm384_vm0, %v13216_v32  ;;  %11736 = vrcp.f32 %v1271_v50 }
 0x2a9   :  { %v11727_v6 = vpop.eup %11726  ;;  %v1273_v26 = vadd.f32 1.0, %v11725_v56  ;;  %11738 = vrcp.f32 %v1270_v20 }
 0x2aa   :  { %v11729_v30 = vpop.eup %11728  ;;  %11740 = vpow2.f32 %v9885_v34  ;;  %v1272_v35 = vadd.f32 1.0, %v11727_v6 }
 0x2ab   :  { %v11731_v42 = vpop.eup %11730  ;;  %v13228_v58 = vmul.f32 %v11729_v30, %v13155_v43  ;;  %11742 = vpow2.f32 %v9836_v49 }
 0x2ac   :  { %v13225_v52 = vmul.f32 %v11731_v42, %v13158_v51  ;;  %11744 = vrcp.f32 %v1273_v26  ;;  %v9886_v51 = vmul.f32 -1.442695, %v12980_v38 }
 0x2ad   :  { %11746 = vrcp.f32 %v1272_v35 }
 0x2ae   :  { %v11733_v21 = vpop.eup %11732  ;;  %10816 = vmatprep.mubr.msk.f32.mxu1 %vm384_vm0, %v13225_v52  ;;  %11748 = vpow2.f32 %v9886_v51 }
 0x2af   :  { %v11735_v16 = vpop.eup %11734  ;;  %10817 = vmatmul.mubr.msk.f32.gmra.mrb[22].mxu1 %vm384_vm0, %v13228_v58  ;;  %v13240_v43 = vmul.f32 %v11733_v21, %v13163_v15  ;;  %11750 = vpow2.f32 %v9835_v53 }
 0x2b0   :  { %v13237_v54 = vmul.f32 %v11735_v16, %v13166_v44 }
 0x2b2   :  { %10819 = vmatprep.mubr.msk.f32.mxu1 %vm384_vm0, %v13237_v54  ;;  %v11737_v39 = vpop.eup %11736 }
 0x2b3   :  { %10820 = vmatmul.mubr.msk.f32.gmra.mrb[24].mxu1 %vm384_vm0, %v13240_v43  ;;  %v11739_v50 = vpop.eup %11738  ;;  %v13250_v6 = vmul.f32 %v11737_v39, %v13171_v33 }
 0x2b4   :  { %v11741_v56 = vpop.eup %11740  ;;  %v13247_v34 = vmul.f32 %v11739_v50, %v13174_v31 }
 0x2b5   :  { %v11743_v44 = vpop.eup %11742  ;;  %v2093_v31 = vadd.f32 1.0, %v11741_v56 }
 0x2b6   :  { %v11745_v15 = vpop.eup %11744  ;;  %10822 = vmatprep.mubr.msk.f32.mxu1 %vm384_vm0, %v13247_v34  ;;  %v1275_v26 = vadd.f32 1.0, %v11743_v44 }
 0x2b7   :  { %v11747_v20 = vpop.eup %11746  ;;  %10823 = vmatmul.mubr.msk.f32.gmra.mrb[26].mxu1 %vm384_vm0, %v13250_v6  ;;  %v13260_v30 = vmul.f32 %v11745_v15, %v13179_v19  ;;  %11752 = vrcp.f32 %v2093_v31  ;;  %v2409_v31 = vld [vmem:[%s16361_s7 + $0x8] sm:$0xff] }
 0x2b8   :  { %v13257_v49 = vmul.f32 %v11747_v20, %v13182_v41  ;;  %v11749_v33 = vpop.eup %11748  ;;  %11754 = vrcp.f32 %v1275_v26  ;;  %v2408_v20 = vld [vmem:[%s16361_s7] sm:$0xff] }
 0x2b9   :  { %v11751_v42 = vpop.eup %11750  ;;  %v2094_v21 = vadd.f32 1.0, %v11749_v33  ;;  %v13297_v26 = vpack.c.bf16 %v2409_v31, %v2408_v20  ;;  %v13301_v33 = vsub.s32 4, %v12707_v3 }
 0x2ba   :  { %10825 = vmatprep.mubr.msk.f32.mxu1 %vm384_vm0, %v13257_v49  ;;  %v1274_v35 = vadd.f32 1.0, %v11751_v42 }
 0x2bb   :  { %10826 = vmatmul.mubr.msk.f32.gmra.mrb[28].mxu1 %vm384_vm0, %v13260_v30  ;;  %16542 = vst [vmem:[#allocation41_spill] sm:$0xff] %v13301_v33  ;;  %v13305_v42 = vrot.slane %v12964_v28, %v13301_v33 }
 0x2bc   :  { %11756 = vrcp.f32 %v1274_v35 }
 0x2bd   :  { %11758 = vrcp.f32 %v2094_v21 }
 0x2c1   :  { %v11753_v41 = vpop.eup %11752 }
 0x2c2   :  { %v11755_v16 = vpop.eup %11754  ;;  %v2099_v50 = vmul.f32 %v11753_v41, %v12977_v37  ;;  %v1639_v37 = vld [vmem:[%s16364_s10 + $0x10] sm:$0xff] }
 0x2c3   :  { %v13269_v53 = vmul.f32 %v11755_v16, %v13212_v23  ;;  %v1637_v23 = vld [vmem:[%s16364_s10] sm:$0xff] }
 0x2c6   :  { %v11757_v19 = vpop.eup %11756 }
 0x2c7   :  { %v13266_v51 = vmul.f32 %v11757_v19, %v1204_v24  ;;  %v11759_v39 = vpop.eup %11758  ;;  %v1638_v24 = vld [vmem:[%s16364_s10 + $0x8] sm:$0xff] }
 0x2c8   :  { %v2100_v56 = vmul.f32 %v11759_v39, %v12980_v38  ;;  %v11409_v44 = vpack.c.bf16 %v1638_v24, %v1637_v23  ;;  %v1640_v38 = vld [vmem:[%s16364_s10 + $0x18] sm:$0xff] }
 0x2c9   :  { %10828 = vmatprep.mubr.msk.f32.mxu1 %vm384_vm0, %v13266_v51  ;;  %v11413_v15 = vpack.c.bf16 %v1640_v38, %v1639_v37 }
 0x2ca   :  { %10829 = vmatmul.mubr.msk.f32.gmra.mrb[30].mxu1 %vm384_vm0, %v13269_v53  ;;  %11410 = vmatprep.subr.bf16.mxu0 %v11409_v44 }
 0x2cb   :  { %10871 = vmatprep.mubr.msk.f32.mxu1 %vm384_vm0, %v2099_v50  ;;  %11412 = vmatpush3.bf16.msra.mxu0 %v11409_v44 }
 0x2cc   :  { %11414 = vmatprep.subr.bf16.mxu0 %v11413_v15 }
 0x2ce   :  { %10872 = vmatmul.mubr.msk.f32.vlgmr.msra.gmra.mrb[32].mxu1 %vm384_vm0, %v2100_v56 }
 0x2cf   :  { %11416 = vmatpush3.bf16.msra.mxu0 %v11413_v15 }
 0x2d0   :  { %11426 = vmatprep.subr.bf16.mxu0 %v13297_v26 }
 0x373   :  { %v10809_v35 = vpop.f32.mrb[16].mxu1 }
 0x374   :  { %v13308_v21 = vadd.f32 %v10809_v35, %v13305_v42  ;;  %v1446_v41 = vpop.f32.mrb[17].mxu1 }
 0x375   :  { %v13311_v16 = vadd.f32 %v1446_v41, %v13305_v42 }
 0x376   :  { %v9854_v19 = vmul.f32 -1.442695, %v13308_v21 }
 0x377   :  { %v9853_v39 = vmul.f32 -1.442695, %v13311_v16  ;;  %v10812_v50 = vpop.f32.mrb[18].mxu1 }
 0x378   :  { %11760 = vpow2.f32 %v9854_v19  ;;  %v13316_v56 = vadd.f32 %v10812_v50, %v13305_v42  ;;  %v1456_v23 = vpop.f32.mrb[19].mxu1 }
 0x379   :  { %11762 = vpow2.f32 %v9853_v39  ;;  %v13319_v28 = vadd.f32 %v1456_v23, %v13305_v42 }
 0x37a   :  { %v9856_v24 = vmul.f32 -1.442695, %v13316_v56 }
 0x37b   :  { %v9855_v44 = vmul.f32 -1.442695, %v13319_v28  ;;  %v10815_v37 = vpop.f32.mrb[20].mxu1 }
 0x37c   :  { %11764 = vpow2.f32 %v9856_v24  ;;  %v13324_v38 = vadd.f32 %v10815_v37, %v13305_v42  ;;  %v1466_v15 = vpop.f32.mrb[21].mxu1 }
 0x37d   :  { %11766 = vpow2.f32 %v9855_v44  ;;  %v13327_v20 = vadd.f32 %v1466_v15, %v13305_v42 }
 0x37e   :  { %v9858_v31 = vmul.f32 -1.442695, %v13324_v38 }
 0x37f   :  { %v9857_v35 = vmul.f32 -1.442695, %v13327_v20 }
 0x380   :  { %11768 = vpow2.f32 %v9858_v31 }
 0x381   :  { %11770 = vpow2.f32 %v9857_v35 }
 0x382   :  { %v11761_v41 = vpop.eup %11760  ;;  %v10818_v19 = vpop.f32.mrb[22].mxu1 }
 0x383   :  { %v11763_v39 = vpop.eup %11762  ;;  %v1574_v50 = vadd.f32 1.0, %v11761_v41  ;;  %v13332_v23 = vadd.f32 %v10818_v19, %v13305_v42  ;;  %v1476_v24 = vpop.f32.mrb[23].mxu1 }
 0x384   :  { %v1573_v37 = vadd.f32 1.0, %v11763_v39  ;;  %v13335_v44 = vadd.f32 %v1476_v24, %v13305_v42 }
 0x385   :  { %11772 = vrcp.f32 %v1574_v50  ;;  %v9860_v15 = vmul.f32 -1.442695, %v13332_v23 }
 0x386   :  { %v11765_v33 = vpop.eup %11764  ;;  %11774 = vrcp.f32 %v1573_v37  ;;  %v9859_v31 = vmul.f32 -1.442695, %v13335_v44  ;;  %v10821_v35 = vpop.f32.mrb[24].mxu1 }
 0x387   :  { %v11767_v29 = vpop.eup %11766  ;;  %v1576_v18 = vadd.f32 1.0, %v11765_v33  ;;  %11776 = vpow2.f32 %v9860_v15  ;;  %v13340_v41 = vadd.f32 %v10821_v35, %v13305_v42  ;;  %v1486_v19 = vpop.f32.mrb[25].mxu1  ;;  %v2411_v35 = vld [vmem:[%s16361_s7 + $0x18] sm:$0xff] }
 0x388   :  { %v1575_v3 = vadd.f32 1.0, %v11767_v29  ;;  %11778 = vpow2.f32 %v9859_v31  ;;  %v13343_v39 = vadd.f32 %v1486_v19, %v13305_v42 }
 0x389   :  { %11780 = vrcp.f32 %v1576_v18  ;;  %v9862_v50 = vmul.f32 -1.442695, %v13340_v41 }
 0x38a   :  { %v11769_v24 = vpop.eup %11768  ;;  %11782 = vrcp.f32 %v1575_v3  ;;  %v9861_v37 = vmul.f32 -1.442695, %v13343_v39  ;;  %v10824_v15 = vpop.f32.mrb[26].mxu1  ;;  %v2410_v3 = vld [vmem:[%s16361_s7 + $0x10] sm:$0xff] }
 0x38b   :  { %v11771_v13 = vpop.eup %11770  ;;  %v1578_v2 = vadd.f32 1.0, %v11769_v24  ;;  %11784 = vpow2.f32 %v9862_v50  ;;  %v13348_v29 = vadd.f32 %v10824_v15, %v13305_v42  ;;  %v1496_v31 = vpop.f32.mrb[27].mxu1  ;;  %v2203_v50 = vsel %vm384_vm0, %v13190_v47, 0.0 }
 0x38c   :  { %v1577_v33 = vadd.f32 1.0, %v11771_v13  ;;  %11786 = vpow2.f32 %v9861_v37  ;;  %v13351_v18 = vadd.f32 %v1496_v31, %v13305_v42  ;;  %v11429_v12 = vpack.c.bf16 %v2411_v35, %v2410_v3  ;;  %v2413_v3 = vld [vmem:[%s16361_s7 + $0x28] sm:$0xff] }
 0x38d   :  { %11788 = vrcp.f32 %v1578_v2  ;;  %v9864_v19 = vmul.f32 -1.442695, %v13348_v29 }
 0x38e   :  { %11790 = vrcp.f32 %v1577_v33  ;;  %v9863_v24 = vmul.f32 -1.442695, %v13351_v18  ;;  %v10827_v37 = vpop.f32.mrb[28].mxu1 }
 0x38f   :  { %v11773_v13 = vpop.eup %11772  ;;  %11792 = vpow2.f32 %v9864_v19  ;;  %v13365_v31 = vadd.f32 %v10827_v37, %v13305_v42  ;;  %v1506_v63 = vpop.f32.mrb[29].mxu1 }
 0x390   :  { %v11775_v2 = vpop.eup %11774  ;;  %v1622_v48 = vmul.f32 %v11773_v13, %v13308_v21  ;;  %11794 = vpow2.f32 %v9863_v24  ;;  %v13369_v9 = vadd.f32 %v1506_v63, %v13305_v42 }
 0x391   :  { %v11777_v33 = vpop.eup %11776  ;;  %v1621_v15 = vmul.f32 %v11775_v2, %v13311_v16  ;;  %v9866_v45 = vmul.f32 -1.442695, %v13365_v31  ;;  %v2412_v16 = vld [vmem:[%s16361_s7 + $0x20] sm:$0xff] }
 0x392   :  { %v11779_v11 = vpop.eup %11778  ;;  %v1580_v57 = vadd.f32 1.0, %v11777_v33  ;;  %v9865_v35 = vmul.f32 -1.442695, %v13369_v9  ;;  %v11433_v37 = vpack.c.bf16 %v2413_v3, %v2412_v16 }
 0x393   :  { %v11781_v47 = vpop.eup %11780  ;;  %v1579_v10 = vadd.f32 1.0, %v11779_v11  ;;  %10839 = vmatprep.mubr.msk.f32.mxu0 %vm384_vm0, %v1621_v15  ;;  %v2204_v11 = vrot.slane %v2203_v50, 4 }
 0x394   :  { %v11783_v21 = vpop.eup %11782  ;;  %11796 = vrcp.f32 %v1580_v57  ;;  %10840 = vmatmul.mubr.msk.f32.vlgmr.msra.gmra.mrb[18].mxu0 %vm384_vm0, %v1622_v48  ;;  %v1624_v2 = vmul.f32 %v11781_v47, %v13316_v56  ;;  %v2196_v57 = vsel %vm384_vm0, %v13186_v25, 0.0  ;;  %v2414_v48 = vld [vmem:[%s16361_s7 + $0x30] sm:$0xff] }
 0x395   :  { %v11785_v63 = vpop.eup %11784  ;;  %v1623_v13 = vmul.f32 %v11783_v21, %v13319_v28  ;;  %11798 = vrcp.f32 %v1579_v10  ;;  %11428 = vmatpush3.bf16.msra.mxu0 %v13297_v26  ;;  %v2415_v10 = vld [vmem:[%s16361_s7 + $0x38] sm:$0xff]  ;;  %v2205_v25 = vadd.f32 %v2204_v11, %v2203_v50  ;;  %v2197_v56 = vrot.slane %v2196_v57, 4 }
 0x396   :  { %v11787_v19 = vpop.eup %11786  ;;  %v1582_v24 = vadd.f32 1.0, %v11785_v63  ;;  %11800 = vpow2.f32 %v9866_v45  ;;  %11430 = vmatprep.subr.bf16.mxu0 %v11429_v12  ;;  %v11437_v47 = vpack.c.bf16 %v2415_v10, %v2414_v48  ;;  %v2217_v21 = vsel %vm384_vm0, %v13201_v8, 0.0 }
 0x397   :  { %v11789_v33 = vpop.eup %11788  ;;  %v1581_v15 = vadd.f32 1.0, %v11787_v19  ;;  %11802 = vpow2.f32 %v9865_v35  ;;  %10842 = vmatprep.mubr.msk.f32.mxu0 %vm384_vm0, %v1623_v13  ;;  %v2198_v50 = vadd.f32 %v2197_v56, %v2196_v57  ;;  %v2218_v11 = vrot.slane %v2217_v21, 4 }
 0x398   :  { %v11791_v26 = vpop.eup %11790  ;;  %11804 = vrcp.f32 %v1582_v24  ;;  %10843 = vmatmul.mubr.msk.f32.gmra.mrb[20].mxu0 %vm384_vm0, %v1624_v2  ;;  %v1626_v28 = vmul.f32 %v11789_v33, %v13324_v38  ;;  %v2210_v13 = vsel %vm384_vm0, %v13197_v14, 0.0 }
 0x399   :  { %v1625_v45 = vmul.f32 %v11791_v26, %v13327_v20  ;;  %11806 = vrcp.f32 %v1581_v15  ;;  %11432 = vmatpush3.bf16.msra.mxu0 %v11429_v12  ;;  %v11793_v16 = vpop.eup %11792  ;;  %v2206_v12 = vrot.slane %v2205_v25, 2  ;;  %v2199_v57 = vrot.slane %v2198_v50, 2 }
 0x39a   :  { %11434 = vmatprep.subr.bf16.mxu0 %v11433_v37  ;;  %v11795_v3 = vpop.eup %11794  ;;  %v1584_v35 = vadd.f32 1.0, %v11793_v16  ;;  %v2211_v48 = vrot.slane %v2210_v13, 4  ;;  %v13407_v14 = vadd.f32 %v2218_v11, %v2217_v21  ;;  %v2245_v16 = vsel %vm384_vm0, %v13228_v58, 0.0 }
 0x39b   :  { %10845 = vmatprep.mubr.msk.f32.mxu0 %vm384_vm0, %v1625_v45  ;;  %v1583_v63 = vadd.f32 1.0, %v11795_v3  ;;  %v13404_v15 = vadd.f32 %v2206_v12, %v2205_v25 }
 0x39c   :  { %10846 = vmatmul.mubr.msk.f32.gmra.mrb[22].mxu0 %vm384_vm0, %v1626_v28  ;;  %11808 = vrcp.f32 %v1584_v35 }
 0x39d   :  { %11436 = vmatpush3.bf16.msra.mxu0 %v11433_v37  ;;  %11810 = vrcp.f32 %v1583_v63  ;;  %v10830_v26 = vpop.f32.mrb[30].mxu1  ;;  %v13426_v63 = vadd.f32 %v2199_v57, %v2198_v50 }
 0x39e   :  { %v11797_v20 = vpop.eup %11796  ;;  %11438 = vmatprep.subr.bf16.mxu0 %v11437_v47  ;;  %v1516_v56 = vpop.f32.mrb[31].mxu1 }
 0x39f   :  { %v11799_v38 = vpop.eup %11798  ;;  %v1628_v24 = vmul.f32 %v11797_v20, %v13332_v23  ;;  %v2231_v23 = vsel %vm384_vm0, %v13216_v32, 0.0  ;;  %v13417_v28 = vadd.f32 %v1516_v56, %v13305_v42  ;;  %v13428_v32 = vadd.f32 %v2211_v48, %v2210_v13 }
 0x3a0   :  { %v11801_v19 = vpop.eup %11800  ;;  %v1627_v2 = vmul.f32 %v11799_v38, %v13335_v44  ;;  %v13410_v44 = vadd.f32 %v10830_v26, %v13305_v42  ;;  %v2232_v20 = vrot.slane %v2231_v23, 4  ;;  %v2246_v38 = vrot.slane %v2245_v16, 4 }
 0x3a1   :  { %v11803_v8 = vpop.eup %11802  ;;  %v1586_v33 = vadd.f32 1.0, %v11801_v19  ;;  %11440 = vmatpush3.bf16.msra.mxu0 %v11437_v47  ;;  %v2224_v47 = vsel %vm384_vm0, %v13209_v22, 0.0  ;;  %v10873_v42 = vpop.f32.mrb[32].mxu1  ;;  %v2220_v22 = vrot.slane %v13407_v14, 2  ;;  %v2238_v19 = vsel %vm384_vm0, %v13225_v52, 0.0 }
 0x3a2   :  { %v11805_v37 = vpop.eup %11804  ;;  %v1585_v10 = vadd.f32 1.0, %v11803_v8  ;;  %10848 = vmatprep.mubr.msk.f32.mxu0 %vm384_vm0, %v1627_v2  ;;  %v9868_v21 = vmul.f32 -1.442695, %v13410_v44  ;;  %v13434_v58 = vadd.f32 %v10873_v42, %v13128_v40  ;;  %v2225_v50 = vrot.slane %v2224_v47, 4 }
 0x3a3   :  { %v11807_v45 = vpop.eup %11806  ;;  %11812 = vrcp.f32 %v1586_v33  ;;  %10849 = vmatmul.mubr.msk.f32.gmra.mrb[24].mxu0 %vm384_vm0, %v1628_v24  ;;  %v1630_v3 = vmul.f32 %v11805_v37, %v13340_v41  ;;  %v2173_v41 = vpop.f32.mrb[33].mxu1  ;;  %v2259_v2 = vsel %vm384_vm0, %v13240_v43, 0.0  ;;  %v2252_v8 = vsel %vm384_vm0, %v13237_v54, 0.0 }
 0x3a4   :  { %v1629_v25 = vmul.f32 %v11807_v45, %v13343_v39  ;;  %11814 = vrcp.f32 %v1585_v10  ;;  %v9867_v39 = vmul.f32 -1.442695, %v13417_v28  ;;  %v13438_v11 = vadd.f32 %v2173_v41, %v13128_v40 }
 0x3a5   :  { %11816 = vpow2.f32 %v9868_v21  ;;  %v9890_v24 = vmul.f32 -1.442695, %v13434_v58  ;;  %v2273_v33 = vsel %vm384_vm0, %v13250_v6, 0.0  ;;  %v2266_v37 = vsel %vm384_vm0, %v13247_v34, 0.0 }
 0x3a6   :  { %10851 = vmatprep.mubr.msk.f32.mxu0 %vm384_vm0, %v1629_v25  ;;  %v11809_v12 = vpop.eup %11808  ;;  %11818 = vpow2.f32 %v9867_v39  ;;  %v9889_v57 = vmul.f32 -1.442695, %v13438_v11  ;;  %v2287_v52 = vsel %vm384_vm0, %v13260_v30, 0.0  ;;  %v2280_v43 = vsel %vm384_vm0, %v13257_v49, 0.0 }
 0x3a7   :  { %10852 = vmatmul.mubr.msk.f32.gmra.mrb[26].mxu0 %vm384_vm0, %v1630_v3  ;;  %v11811_v13 = vpop.eup %11810  ;;  %v1632_v54 = vmul.f32 %v11809_v12, %v13348_v29  ;;  %11820 = vpow2.f32 %v9890_v24  ;;  %v2239_v48 = vrot.slane %v2238_v19, 4  ;;  %v2301_v6 = vsel %vm384_vm0, %v13269_v53, 0.0 }
 0x3a8   :  { %v1631_v40 = vmul.f32 %v11811_v13, %v13351_v18  ;;  %v2294_v34 = vsel %vm384_vm0, %v13266_v51, 0.0  ;;  %11822 = vpow2.f32 %v9889_v57  ;;  %v2260_v30 = vrot.slane %v2259_v2, 4 }
 0x3a9   :  { %v2253_v26 = vrot.slane %v2252_v8, 4  ;;  %v2274_v45 = vrot.slane %v2273_v33, 4  ;;  %v2213_v29 = vrot.slane %v13428_v32, 2  ;;  %v2267_v56 = vrot.slane %v2266_v37, 4 }
 0x3aa   :  { %10854 = vmatprep.mubr.msk.f32.mxu0 %vm384_vm0, %v1631_v40  ;;  %v2288_v25 = vrot.slane %v2287_v52, 4  ;;  %v2281_v53 = vrot.slane %v2280_v43, 4  ;;  %v2233_v3 = vadd.f32 %v2232_v20, %v2231_v23  ;;  %v2302_v21 = vrot.slane %v2301_v6, 4 }
 0x3ab   :  { %10855 = vmatmul.mubr.msk.f32.gmra.mrb[28].mxu0 %vm384_vm0, %v1632_v54  ;;  %v2295_v51 = vrot.slane %v2294_v34, 4  ;;  %v2226_v42 = vadd.f32 %v2225_v50, %v2224_v47  ;;  %v2247_v41 = vadd.f32 %v2246_v38, %v2245_v16  ;;  %v2240_v12 = vadd.f32 %v2239_v48, %v2238_v19 }
 0x3ac   :  { %v13469_v40 = vadd.f32 %v2220_v22, %v13407_v14  ;;  %v2261_v57 = vadd.f32 %v2260_v30, %v2259_v2  ;;  %v2254_v54 = vadd.f32 %v2253_v26, %v2252_v8  ;;  %v2275_v10 = vadd.f32 %v2274_v45, %v2273_v33 }
 0x3ad   :  { %v11813_v18 = vpop.eup %11812  ;;  %v2268_v23 = vadd.f32 %v2267_v56, %v2266_v37  ;;  %v2289_v20 = vadd.f32 %v2288_v25, %v2287_v52  ;;  %v2282_v55 = vadd.f32 %v2281_v53, %v2280_v43  ;;  %v2303_v47 = vadd.f32 %v2302_v21, %v2301_v6 }
 0x3ae   :  { %v11815_v49 = vpop.eup %11814  ;;  %v1634_v13 = vmul.f32 %v11813_v18, %v13365_v31  ;;  %v2296_v16 = vadd.f32 %v2295_v51, %v2294_v34  ;;  %v2227_v50 = vrot.slane %v2226_v42, 2  ;;  %v2248_v38 = vrot.slane %v2247_v41, 2 }
 0x3af   :  { %v1633_v39 = vmul.f32 %v11815_v49, %v13369_v9  ;;  %v11817_v24 = vpop.eup %11816  ;;  %v2234_v9 = vrot.slane %v2233_v3, 2  ;;  %v2241_v14 = vrot.slane %v2240_v12, 2  ;;  %v2262_v19 = vrot.slane %v2261_v57, 2 }
 0x3b0   :  { %v11819_v35 = vpop.eup %11818  ;;  %v1588_v36 = vadd.f32 1.0, %v11817_v24  ;;  %v2255_v2 = vrot.slane %v2254_v54, 2  ;;  %v2276_v8 = vrot.slane %v2275_v10, 2  ;;  %v2269_v37 = vrot.slane %v2268_v23, 2 }
 0x3b1   :  { %10857 = vmatprep.mubr.msk.f32.mxu0 %vm384_vm0, %v1633_v39  ;;  %v1587_v31 = vadd.f32 1.0, %v11819_v35  ;;  %v11821_v22 = vpop.eup %11820  ;;  %v2290_v52 = vrot.slane %v2289_v20, 2  ;;  %v2283_v43 = vrot.slane %v2282_v55, 2  ;;  %v2214_v18 = vadd.f32 %v2213_v29, %v13428_v32 }
 0x3b2   :  { %10858 = vmatmul.mubr.msk.f32.gmra.mrb[30].mxu0 %vm384_vm0, %v1634_v13  ;;  %11824 = vrcp.f32 %v1588_v36  ;;  %v11823_v33 = vpop.eup %11822  ;;  %v2189_v48 = vadd.f32 1.0, %v11821_v22  ;;  %v2304_v30 = vrot.slane %v2303_v47, 2  ;;  %v2297_v6 = vrot.slane %v2296_v16, 2 }
 0x3b3   :  { %11826 = vrcp.f32 %v1587_v31  ;;  %v2188_v34 = vadd.f32 1.0, %v11823_v33  ;;  %v2235_v35 = vadd.f32 %v2234_v9, %v2233_v3  ;;  %v2228_v26 = vadd.f32 %v2227_v50, %v2226_v42 }
 0x3b4   :  { %v2249_v45 = vadd.f32 %v2248_v38, %v2247_v41  ;;  %11828 = vrcp.f32 %v2189_v48  ;;  %v2242_v36 = vadd.f32 %v2241_v14, %v2240_v12  ;;  %v2263_v49 = vadd.f32 %v2262_v19, %v2261_v57 }
 0x3b5   :  { %v2256_v56 = vadd.f32 %v2255_v2, %v2254_v54  ;;  %11830 = vrcp.f32 %v2188_v34  ;;  %v2277_v25 = vadd.f32 %v2276_v8, %v2275_v10  ;;  %v2270_v53 = vadd.f32 %v2269_v37, %v2268_v23 }
 0x3b6   :  { %v2291_v21 = vadd.f32 %v2290_v52, %v2289_v20  ;;  %v2284_v51 = vadd.f32 %v2283_v43, %v2282_v55  ;;  %v2222_v39 = vrot.slane %v13469_v40, 1  ;;  %v2215_v13 = vrot.slane %v2214_v18, 1 }
 0x3b7   :  { %v2305_v24 = vadd.f32 %v2304_v30, %v2303_v47  ;;  %v2298_v32 = vadd.f32 %v2297_v6, %v2296_v16  ;;  %v16543_v29 = vrot.slane %v13404_v15, 1  ;;  %v2236_v42 = vrot.slane %v2235_v35, 1 }
 0x3b8   :  { %v2229_v41 = vrot.slane %v2228_v26, 1  ;;  %v2250_v9 = vrot.slane %v2249_v45, 1  ;;  %v16544_v12 = vrot.slane %v13426_v63, 1  ;;  %v2243_v10 = vrot.slane %v2242_v36, 1 }
 0x3b9   :  { %v2209_v3 = vadd.f32 %v16543_v29, %v13404_v15  ;;  %v2264_v54 = vrot.slane %v2263_v49, 1  ;;  %v2257_v55 = vrot.slane %v2256_v56, 1  ;;  %v2278_v20 = vrot.slane %v2277_v25, 1 }
 0x3ba   :  { %v13481_v57 = vadd.f32 %v16544_v12, %v13426_v63  ;;  %v2271_v31 = vrot.slane %v2270_v53, 1  ;;  %v2292_v47 = vrot.slane %v2291_v21, 1  ;;  %v2285_v16 = vrot.slane %v2284_v51, 1 }
 0x3bb   :  { %v2223_v38 = vadd.f32 %v2222_v39, %v13469_v40  ;;  %v2216_v15 = vadd.f32 %v2215_v13, %v2214_v18  ;;  %v2306_v14 = vrot.slane %v2305_v24, 1  ;;  %v2299_v22 = vrot.slane %v2298_v32, 1 }
 0x3bc   :  { %v11825_v23 = vpop.eup %11824  ;;  %v2237_v19 = vadd.f32 %v2236_v42, %v2235_v35  ;;  %v2230_v2 = vadd.f32 %v2229_v41, %v2228_v26  ;;  %v2251_v63 = vadd.f32 %v2250_v9, %v2249_v45  ;;  %v2244_v33 = vadd.f32 %v2243_v10, %v2242_v36 }
 0x3bd   :  { %v11827_v50 = vpop.eup %11826  ;;  %v2265_v37 = vadd.f32 %v2264_v54, %v2263_v49  ;;  %v13485_v52 = vadd.f32 %v2257_v55, %v2256_v56  ;;  %v1636_v43 = vmul.f32 %v11825_v23, %v13410_v44  ;;  %v2279_v30 = vadd.f32 %v2278_v20, %v2277_v25 }
 0x3be   :  { %v1635_v8 = vmul.f32 %v11827_v50, %v13417_v28  ;;  %v11829_v48 = vpop.eup %11828  ;;  %v2272_v6 = vadd.f32 %v2271_v31, %v2270_v53  ;;  %v2293_v34 = vadd.f32 %v2292_v47, %v2291_v21  ;;  %v2286_v29 = vadd.f32 %v2285_v16, %v2284_v51 }
 0x3bf   :  { %v11831_v40 = vpop.eup %11830  ;;  %v2300_v18 = vadd.f32 %v2299_v22, %v2298_v32  ;;  %v2195_v35 = vmul.f32 %v11829_v48, %v13434_v58  ;;  %v2307_v28 = vadd.f32 %v2306_v14, %v2305_v24 }
 0x3c0   :  { %10860 = vmatprep.mubr.msk.f32.mxu0 %vm384_vm0, %v1635_v8  ;;  %v2194_v26 = vmul.f32 %v11831_v40, %v13438_v11 }
 0x3c1   :  { %10861 = vmatmul.mubr.msk.f32.gmra.mrb[32].mxu0 %vm384_vm0, %v1636_v43  ;;  %v2317_v44 = vrot.slane %v2195_v35, 1  ;;  %v2318_v45 = vrot.slane %v2195_v35, 2  ;;  %v2319_v36 = vrot.slane %v2195_v35, 3  ;;  %v2320_v12 = vrot.slane %v2195_v35, 4 }
 0x3c2   :  { %v2310_v49 = vrot.slane %v2194_v26, 1  ;;  %v2311_v56 = vrot.slane %v2194_v26, 2  ;;  %v2312_v25 = vrot.slane %v2194_v26, 3  ;;  %v2313_v53 = vrot.slane %v2194_v26, 4 }
 0x3c3   :  { %v2314_v21 = vrot.slane %v2194_v26, 5  ;;  %v2315_v58 = vrot.slane %v2194_v26, 6  ;;  %v2316_v51 = vrot.slane %v2194_v26, 7  ;;  %v2340_v39 = vsub.f32 %v13481_v57, %v2194_v26 }
 0x3c4   :  { %v2341_v13 = vsub.f32 %v2209_v3, %v2310_v49  ;;  %v2342_v24 = vsub.f32 %v2216_v15, %v2311_v56  ;;  %v2343_v11 = vsub.f32 %v2223_v38, %v2312_v25  ;;  %v2344_v32 = vsub.f32 %v2230_v2, %v2313_v53 }
 0x3c5   :  { %v2345_v42 = vsub.f32 %v2237_v19, %v2314_v21  ;;  %v2346_v41 = vsub.f32 %v2244_v33, %v2315_v58  ;;  %v2347_v9 = vsub.f32 %v2251_v63, %v2316_v51  ;;  %v2321_v55 = vrot.slane %v2195_v35, 5 }
 0x3c6   :  { %v2372_v10 = vrot.slane %v2341_v13, 7  ;;  %v2374_v54 = vrot.slane %v2342_v24, 6  ;;  %v2376_v23 = vrot.slane %v2343_v11, 5  ;;  %v2378_v20 = vrot.slane %v2344_v32, 4 }
 0x3c7   :  { %v2380_v31 = vrot.slane %v2345_v42, 3  ;;  %v2322_v47 = vrot.slane %v2195_v35, 6  ;;  %v2323_v50 = vrot.slane %v2195_v35, 7  ;;  %v2348_v3 = vsub.f32 %v13485_v52, %v2195_v35 }
 0x3c8   :  { %v2373_v16 = vsel %vm2058_vm4, %v2372_v10, %v2340_v39  ;;  %v2349_v57 = vsub.f32 %v2265_v37, %v2317_v44  ;;  %v2350_v15 = vsub.f32 %v2272_v6, %v2318_v45  ;;  %v2351_v14 = vsub.f32 %v2279_v30, %v2319_v36 }
 0x3c9   :  { %v2375_v38 = vsel %vm2060_vm5, %v2374_v54, %v2373_v16  ;;  %v2352_v22 = vsub.f32 %v2286_v29, %v2320_v12  ;;  %v2353_v2 = vsub.f32 %v2293_v34, %v2321_v55  ;;  %v2354_v8 = vsub.f32 %v2300_v18, %v2322_v47 }
 0x3ca   :  { %v2377_v19 = vsel %vm2062_vm6, %v2376_v23, %v2375_v38  ;;  %v2355_v63 = vsub.f32 %v2307_v28, %v2323_v50  ;;  %v2382_v43 = vrot.slane %v2346_v41, 2  ;;  %v2386_v48 = vrot.slane %v2349_v57, 7  ;;  %v2516_v50 = vld [vmem:[%s16362_s8] sm:$0xff]  ;;  %v2518_v38 = vld [vmem:[%s16362_s8 + $0x10] sm:$0xff] }
 0x3cb   :  { %v2379_v33 = vsel %vm2064_vm7, %v2378_v20, %v2377_v19  ;;  %v2388_v40 = vrot.slane %v2350_v15, 6  ;;  %v2384_v49 = vrot.slane %v2347_v9, 1  ;;  %v2390_v6 = vrot.slane %v2351_v14, 5  ;;  %v2519_v15 = vld [vmem:[%s16362_s8 + $0x18] sm:$0xff] }
 0x3cc   :  { %v2381_v26 = vsel %vm2066_vm8, %v2380_v31, %v2379_v33  ;;  %v2387_v52 = vsel %vm2058_vm4, %v2386_v48, %v2348_v3  ;;  %v2392_v34 = vrot.slane %v2352_v22, 4  ;;  %v2394_v35 = vrot.slane %v2353_v2, 3  ;;  %v2517_v3 = vld [vmem:[%s16362_s8 + $0x8] sm:$0xff] }
 0x3cd   :  { %v2383_v37 = vsel %vm2068_vm9, %v2382_v43, %v2381_v26  ;;  %v2389_v29 = vsel %vm2060_vm5, %v2388_v40, %v2387_v52  ;;  %v12629_v28 = vmov 0   ;;  %v2396_v45 = vrot.slane %v2354_v8, 2 }
 0x3ce   :  { %v2385_v30 = vsel %vm2070_vm10, %v2384_v49, %v2383_v37  ;;  %v2391_v18 = vsel %vm2062_vm6, %v2390_v6, %v2389_v29  ;;  %11621 = vset.pattern.permute.xlu0 %v12629_v28  ;;  %11620 = vset.pattern.permute.xlu1 %v12629_v28  ;;  %v2398_v56 = vrot.slane %v2355_v63, 1  ;;  %v11441_v57 = vpack.c.bf16 %v2517_v3, %v2516_v50 }
 0x3cf   :  { %2400 = vrot.lane.b32.xlu1 %v2385_v30, %s12628_s27  ;;  %v2393_v44 = vsel %vm2064_vm7, %v2392_v34, %v2391_v18  ;;  %v11445_v14 = vpack.c.bf16 %v2519_v15, %v2518_v38  ;;  %v333_v22 = vadd.f32 1e-08, %v12881_v60  ;;  %v332_v19 = vadd.f32 1e-08, %v12875_v17  ;;  %v16545_v34 = vld [vmem:[#allocation9_spill] sm:$0xff] }
 0x3d0   :  { %v2395_v36 = vsel %vm2066_vm8, %v2394_v35, %v2393_v44  ;;  %11442 = vmatprep.subr.bf16.mxu1 %v11441_v57  ;;  %v334_v2 = vadd.f32 1e-08, %v12879_v59  ;;  %v335_v8 = vadd.f32 1e-08, %v12887_v61  ;;  %v336_v63 = vadd.f32 1e-08, %v12889_v62 }
 0x3d1   :  { %v2397_v25 = vsel %vm2068_vm9, %v2396_v45, %v2395_v36  ;;  %11444 = vmatpush3.bf16.msra.mxu1 %v11441_v57  ;;  %11832 = vrsqrt.f32 %v333_v22  ;;  %v337_v33 = vadd.f32 1e-08, %v12895_v0  ;;  %v338_v43 = vadd.f32 1e-08, %v12897_v1 }
 0x3d2   :  { %v2399_v53 = vsel %vm2070_vm10, %v2398_v56, %v2397_v25  ;;  %11446 = vmatprep.subr.bf16.mxu1 %v11445_v14  ;;  %11834 = vrsqrt.f32 %v332_v19  ;;  %v339_v26 = vadd.f32 1e-08, %v12903_v4  ;;  %v340_v37 = vadd.f32 1e-08, %v12905_v5  ;;  %v16546_v56 = vld [vmem:[#allocation12_spill] sm:$0xff] }
 0x3d3   :  { %2402 = vrot.lane.b32.xlu1 %v2399_v53, %s12628_s27  ;;  %11836 = vrsqrt.f32 %v334_v2  ;;  %v341_v30 = vadd.f32 1e-08, %v12911_v7  ;;  %v16547_v53 = vld [vmem:[#allocation10_spill] sm:$0xff]  ;;  %v16552_v19 = vld [vmem:[#allocation36_spill] sm:$0xff] }
 0x3d4   :  { %11838 = vrsqrt.f32 %v335_v8  ;;  %v344_v2 = vadd.f32 1e-08, %v16552_v19 }
 0x3d5   :  { %11448 = vmatpush3.bf16.msra.mxu1 %v11445_v14  ;;  %11840 = vrsqrt.f32 %v336_v63 }
 0x3d6   :  { %11842 = vrsqrt.f32 %v337_v33 }
 0x3d7   :  { %11844 = vrsqrt.f32 %v338_v43 }
 0x3d8   :  { %11846 = vrsqrt.f32 %v339_v26 }
 0x3d9   :  { %11848 = vrsqrt.f32 %v340_v37 }
 0x3da   :  { %11850 = vrsqrt.f32 %v341_v30  ;;  %v16554_v30 = vld [vmem:[#allocation14_spill] sm:$0xff] }
 0x3db   :  { %v11833_v48 = vpop.eup %11832 }
 0x3dc   :  { %v11835_v40 = vpop.eup %11834  ;;  %v365_v52 = vmul.f32 %v11833_v48, %v12774_v46  ;;  %v16548_v46 = vld [vmem:[#allocation35_spill] sm:$0xff] }
 0x3dd   :  { %v11837_v49 = vpop.eup %11836  ;;  %v364_v18 = vmul.f32 %v11835_v40, %v16545_v34 }
 0x3de   :  { %v11839_v6 = vpop.eup %11838 }
 0x3df   :  { %v11841_v45 = vpop.eup %11840  ;;  %v367_v25 = vmul.f32 %v11839_v6, %v16546_v56 }
 0x441   :  { %v2401_v21 = vpop.permute.xlu1 %2400 }
 0x442   :  { %v2406_v58 = vsel %vm384_vm0, %v12752_v27, %v2401_v21  ;;  %v366_v21 = vmul.f32 %v11837_v49, %v16547_v53  ;;  %v16553_v49 = vld [vmem:[#allocation37_spill] sm:$0xff] }
 0x443   :  { %10890 = vmatprep.mubr.msk.f32.mxu0 %vm2420_vm11, %v2406_v58  ;;  %v11843_v58 = vpop.eup %11842  ;;  %v345_v37 = vadd.f32 1e-08, %v16553_v49 }
 0x444   :  { %v11845_v3 = vpop.eup %11844 }
 0x445   :  { %v2403_v51 = vpop.permute.xlu1 %2402  ;;  %v11847_v43 = vpop.eup %11846 }
 0x446   :  { %v2407_v39 = vsel %vm384_vm0, %v12752_v27, %v2403_v51  ;;  %v343_v51 = vadd.f32 1e-08, %v16548_v46  ;;  %v11849_v34 = vpop.eup %11848 }
 0x447   :  { %10891 = vmatmul.mubr.msk.f32.vlgmr.msra.gmra.mrb[34].mxu0 %vm2420_vm11, %v2407_v39 }
 0x448   :  { %11852 = vrsqrt.f32 %v343_v51 }
 0x467   :  { %v10841_v13 = vpop.f32.mrb[18].mxu0 }
 0x468   :  { %v1755_v24 = vpop.f32.mrb[19].mxu0  ;;  %1841 = vperm.xlu1 %11620, %v10841_v13  }
 0x469   :  { %1836 = vperm.xlu0 %11621, %v1755_v24  }
 0x46b   :  { %v10844_v11 = vpop.f32.mrb[20].mxu0 }
 0x46c   :  { %v1765_v32 = vpop.f32.mrb[21].mxu0 }
 0x46d   :  { %1851 = vperm.xlu0 %11621, %v10844_v11   ;;  %1846 = vperm.xlu1 %11620, %v1765_v32  }
 0x46f   :  { %v10847_v42 = vpop.f32.mrb[22].mxu0 }
 0x470   :  { %v1775_v41 = vpop.f32.mrb[23].mxu0 }
 0x471   :  { %1861 = vperm.xlu0 %11621, %v10847_v42   ;;  %1856 = vperm.xlu1 %11620, %v1775_v41  }
 0x476   :  { %v10850_v9 = vpop.f32.mrb[24].mxu0 }
 0x477   :  { %v1785_v12 = vpop.f32.mrb[25].mxu0  ;;  %1871 = vperm.xlu0 %11621, %v10850_v9  }
 0x478   :  { %1866 = vperm.xlu1 %11620, %v1785_v12   ;;  %v16549_v12 = vld [vmem:[#allocation34_spill] sm:$0xff] }
 0x47a   :  { %v10853_v10 = vpop.f32.mrb[26].mxu0 }
 0x47b   :  { %v1795_v54 = vpop.f32.mrb[27].mxu0  ;;  %1881 = vperm.xlu0 %11621, %v10853_v10   ;;  %v342_v10 = vadd.f32 1e-08, %v16549_v12 }
 0x47c   :  { %1876 = vperm.xlu1 %11620, %v1795_v54  }
 0x47d   :  { %11854 = vrsqrt.f32 %v342_v10 }
 0x47e   :  { %v10856_v55 = vpop.f32.mrb[28].mxu0  ;;  %11856 = vrsqrt.f32 %v344_v2 }
 0x47f   :  { %v1805_v23 = vpop.f32.mrb[29].mxu0  ;;  %1891 = vperm.xlu0 %11621, %v10856_v55   ;;  %v16550_v55 = vld [vmem:[#allocation13_spill] sm:$0xff]  ;;  %11858 = vrsqrt.f32 %v345_v37 }
 0x480   :  { %1886 = vperm.xlu1 %11620, %v1805_v23   ;;  %v369_v23 = vmul.f32 %v11843_v58, %v16550_v55 }
 0x485   :  { %v10859_v20 = vpop.f32.mrb[30].mxu0 }
 0x486   :  { %v1815_v31 = vpop.f32.mrb[31].mxu0  ;;  %1901 = vperm.xlu0 %11621, %v10859_v20   ;;  %v16551_v20 = vld [vmem:[#allocation11_spill] sm:$0xff] }
 0x487   :  { %1896 = vperm.xlu1 %11620, %v1815_v31   ;;  %v368_v31 = vmul.f32 %v11841_v45, %v16551_v20  ;;  %v11851_v45 = vpop.eup %11850 }
 0x494   :  { %v10862_v47 = vpop.f32.mrb[32].mxu0 }
 0x495   :  { %v1825_v16 = vpop.f32.mrb[33].mxu0  ;;  %1911 = vperm.xlu0 %11621, %v10862_v47  }
 0x496   :  { %1906 = vperm.xlu1 %11620, %v1825_v16  }
 0x4e7   :  { %v1842_v29 = vpop.permute.xlu1 %1841 }
 0x4e8   :  { %v1915_v35 = vmul.f32 %v1842_v29, %v365_v52  ;;  %v1837_v28 = vpop.permute.xlu0 %1836  ;;  %v370_v29 = vmul.f32 %v11845_v3, %v16554_v30 }
 0x4e9   :  { %v1914_v44 = vmul.f32 %v1837_v28, %v364_v18 }
 0x4ea   :  { %v1937_v36 = vsel %vm282_vm1, %v1915_v35, 0.0 }
 0x4eb   :  { %v1938_v39 = vrot.slane %v1937_v36, 4  ;;  %v1930_v13 = vsel %vm282_vm1, %v1914_v44, 0.0 }
 0x4ec   :  { %v1931_v24 = vrot.slane %v1930_v13, 4  ;;  %v1852_v11 = vpop.permute.xlu0 %1851  ;;  %v1847_v32 = vpop.permute.xlu1 %1846 }
 0x4ed   :  { %v1939_v42 = vadd.f32 %v1938_v39, %v1937_v36  ;;  %v1917_v41 = vmul.f32 %v1852_v11, %v367_v25  ;;  %v1916_v9 = vmul.f32 %v1847_v32, %v366_v21  ;;  %v16555_v25 = vld [vmem:[#allocation15_spill] sm:$0xff]  ;;  %v16556_v21 = vld [vmem:[#allocation38_spill] sm:$0xff] }
 0x4ee   :  { %v1932_v54 = vadd.f32 %v1931_v24, %v1930_v13  ;;  %v371_v53 = vmul.f32 %v11847_v43, %v16555_v25  ;;  %v346_v58 = vadd.f32 1e-08, %v16556_v21 }
 0x4ef   :  { %v1940_v47 = vrot.slane %v1939_v42, 2  ;;  %v1951_v16 = vsel %vm282_vm1, %v1917_v41, 0.0  ;;  %v1944_v50 = vsel %vm282_vm1, %v1916_v9, 0.0  ;;  %v16557_v41 = vld [vmem:[#allocation16_spill] sm:$0xff] }
 0x4f0   :  { %v1933_v57 = vrot.slane %v1932_v54, 2  ;;  %v1952_v38 = vrot.slane %v1951_v16, 4  ;;  %v1945_v15 = vrot.slane %v1944_v50, 4  ;;  %v1862_v14 = vpop.permute.xlu0 %1861  ;;  %v1857_v22 = vpop.permute.xlu1 %1856  ;;  %v372_v9 = vmul.f32 %v11849_v34, %v16557_v41 }
 0x4f1   :  { %v1941_v8 = vadd.f32 %v1940_v47, %v1939_v42  ;;  %v1919_v63 = vmul.f32 %v1862_v14, %v369_v23  ;;  %v1918_v33 = vmul.f32 %v1857_v22, %v368_v31  ;;  %v16558_v23 = vld [vmem:[#allocation17_spill] sm:$0xff]  ;;  %v11853_v31 = vpop.eup %11852  ;;  %11860 = vrsqrt.f32 %v346_v58 }
 0x4f2   :  { %v1934_v48 = vadd.f32 %v1933_v57, %v1932_v54  ;;  %v1953_v40 = vadd.f32 %v1952_v38, %v1951_v16  ;;  %v1946_v26 = vadd.f32 %v1945_v15, %v1944_v50  ;;  %v373_v20 = vmul.f32 %v11851_v45, %v16558_v23  ;;  %v11855_v43 = vpop.eup %11854 }
 0x4f3   :  { %v1965_v52 = vsel %vm282_vm1, %v1919_v63, 0.0  ;;  %v1958_v6 = vsel %vm282_vm1, %v1918_v33, 0.0  ;;  %v1942_v18 = vrot.slane %v1941_v8, 1 }
 0x4f4   :  { %v1954_v35 = vrot.slane %v1953_v40, 2  ;;  %v1947_v28 = vrot.slane %v1946_v26, 2  ;;  %v1966_v44 = vrot.slane %v1965_v52, 4  ;;  %v1935_v36 = vrot.slane %v1934_v48, 1 }
 0x4f5   :  { %v1959_v56 = vrot.slane %v1958_v6, 4  ;;  %v1943_v10 = vadd.f32 %v1942_v18, %v1941_v8 }
 0x4f6   :  { %v1955_v51 = vadd.f32 %v1954_v35, %v1953_v40  ;;  %v1948_v39 = vadd.f32 %v1947_v28, %v1946_v26  ;;  %v1967_v13 = vadd.f32 %v1966_v44, %v1965_v52  ;;  %v1872_v24 = vpop.permute.xlu0 %1871  ;;  %v1936_v47 = vadd.f32 %v1935_v36, %v1934_v48  ;;  %v16559_v40 = vld [vmem:[#allocation39_spill] sm:$0xff]  ;;  %v11857_v36 = vpop.eup %11856 }
 0x4f7   :  { %v1960_v11 = vadd.f32 %v1959_v56, %v1958_v6  ;;  %v1921_v32 = vmul.f32 %v1872_v24, %v371_v53  ;;  %v1867_v42 = vpop.permute.xlu1 %1866  ;;  %v347_v26 = vadd.f32 1e-08, %v16559_v40  ;;  %v16560_v52 = vld [vmem:[#allocation19_spill] sm:$0xff] }
 0x4f8   :  { %v1949_v54 = vrot.slane %v1948_v39, 1  ;;  %v1968_v55 = vrot.slane %v1967_v13, 2  ;;  %v1920_v3 = vmul.f32 %v1867_v42, %v370_v29  ;;  %v1956_v57 = vrot.slane %v1955_v51, 1  ;;  %v11859_v42 = vpop.eup %11858 }
 0x4f9   :  { %v1961_v16 = vrot.slane %v1960_v11, 2  ;;  %v1979_v50 = vsel %vm282_vm1, %v1921_v32, 0.0  ;;  %v375_v6 = vmul.f32 %v11853_v31, %v16560_v52  ;;  %v2059_v30 = vsel %vm2058_vm4, %v1943_v10, %v1936_v47 }
 0x4fa   :  { %v1950_v38 = vadd.f32 %v1949_v54, %v1948_v39  ;;  %v1980_v15 = vrot.slane %v1979_v50, 4  ;;  %v1882_v14 = vpop.permute.xlu0 %1881  ;;  %v1969_v22 = vadd.f32 %v1968_v55, %v1967_v13  ;;  %v1972_v63 = vsel %vm282_vm1, %v1920_v3, 0.0 }
 0x4fb   :  { %v1962_v2 = vadd.f32 %v1961_v16, %v1960_v11  ;;  %v1923_v8 = vmul.f32 %v1882_v14, %v373_v20  ;;  %v1877_v33 = vpop.permute.xlu1 %1876  ;;  %v1973_v48 = vrot.slane %v1972_v63, 4  ;;  %v1957_v35 = vadd.f32 %v1956_v57, %v1955_v51 }
 0x4fc   :  { %v1981_v37 = vadd.f32 %v1980_v15, %v1979_v50  ;;  %v1922_v18 = vmul.f32 %v1877_v33, %v372_v9  ;;  %v2061_v56 = vsel %vm2060_vm5, %v1950_v38, %v2059_v30  ;;  %v1970_v25 = vrot.slane %v1969_v22, 1  ;;  %v16561_v9 = vld [vmem:[#allocation18_spill] sm:$0xff]  ;;  %v11861_v50 = vpop.eup %11860  ;;  %v16562_v15 = vld [vmem:[#allocation20_spill] sm:$0xff]  ;;  %v16563_v33 = vld [vmem:[#allocation21_spill] sm:$0xff] }
 0x4fd   :  { %v1963_v29 = vrot.slane %v1962_v2, 1  ;;  %v1993_v34 = vsel %vm282_vm1, %v1923_v8, 0.0  ;;  %v1974_v44 = vadd.f32 %v1973_v48, %v1972_v63  ;;  %11862 = vrsqrt.f32 %v347_v26 }
 0x4fe   :  { %v1982_v28 = vrot.slane %v1981_v37, 2  ;;  %v1994_v45 = vrot.slane %v1993_v34, 4  ;;  %v1986_v58 = vsel %vm282_vm1, %v1922_v18, 0.0  ;;  %v1892_v32 = vpop.permute.xlu0 %1891  ;;  %v374_v51 = vmul.f32 %v11855_v43, %v16561_v9 }
 0x4ff   :  { %v1964_v53 = vadd.f32 %v1963_v29, %v1962_v2  ;;  %v1975_v13 = vrot.slane %v1974_v44, 2  ;;  %v1987_v11 = vrot.slane %v1986_v58, 4  ;;  %v1925_v41 = vmul.f32 %v1892_v32, %v375_v6  ;;  %v1887_v10 = vpop.permute.xlu1 %1886 }
 0x500   :  { %v1983_v39 = vadd.f32 %v1982_v28, %v1981_v37  ;;  %v1995_v24 = vadd.f32 %v1994_v45, %v1993_v34  ;;  %v2063_v54 = vsel %vm2062_vm6, %v1957_v35, %v2061_v56  ;;  %v1971_v20 = vadd.f32 %v1970_v25, %v1969_v22  ;;  %v12592_v56 = vld [vmem:[%s16355_s1] sm:$0xff] }
 0x501   :  { %v1976_v23 = vadd.f32 %v1975_v13, %v1974_v44  ;;  %v1988_v31 = vadd.f32 %v1987_v11, %v1986_v58  ;;  %v2007_v47 = vsel %vm282_vm1, %v1925_v41, 0.0  ;;  %v1924_v16 = vmul.f32 %v1887_v10, %v374_v51  ;;  %v16566_v10 = vld [vmem:[#allocation23_spill] sm:$0xff] }
 0x502   :  { %v1984_v55 = vrot.slane %v1983_v39, 1  ;;  %v2065_v3 = vsel %vm2064_vm7, %v1964_v53, %v2063_v54  ;;  %v1996_v38 = vrot.slane %v1995_v24, 2  ;;  %v376_v14 = vmul.f32 %v11857_v36, %v16562_v15 }
 0x503   :  { %v1977_v57 = vrot.slane %v1976_v23, 1  ;;  %v2008_v63 = vrot.slane %v2007_v47, 4  ;;  %v2000_v8 = vsel %vm282_vm1, %v1924_v16, 0.0  ;;  %v377_v43 = vmul.f32 %v11859_v42, %v16563_v33 }
 0x504   :  { %v1985_v2 = vadd.f32 %v1984_v55, %v1983_v39  ;;  %v2001_v22 = vrot.slane %v2000_v8, 4  ;;  %v2067_v52 = vsel %vm2066_vm8, %v1971_v20, %v2065_v3  ;;  %v1989_v6 = vrot.slane %v1988_v31, 2  ;;  %v16567_v55 = vld [vmem:[#allocation22_spill] sm:$0xff] }
 0x505   :  { %v1902_v26 = vpop.permute.xlu0 %1901  ;;  %v1978_v37 = vadd.f32 %v1977_v57, %v1976_v23  ;;  %v1997_v18 = vadd.f32 %v1996_v38, %v1995_v24  ;;  %v2009_v44 = vadd.f32 %v2008_v63, %v2007_v47  ;;  %v16565_v24 = vld [vmem:[#allocation7_spill] sm:$0xff]  ;;  %v378_v23 = vmul.f32 %v11861_v50, %v16567_v55  ;;  %v16568_v38 = vld [vmem:[#allocation6_spill] sm:$0xff] }
 0x506   :  { %v1897_v48 = vpop.permute.xlu1 %1896  ;;  %v1927_v30 = vmul.f32 %v1902_v26, %v377_v43  ;;  %v2002_v35 = vadd.f32 %v2001_v22, %v2000_v8  ;;  %v1990_v39 = vadd.f32 %v1989_v6, %v1988_v31  ;;  %v13593_v15 = vsub.s32 2, %v16568_v38 }
 0x507   :  { %v1926_v29 = vmul.f32 %v1897_v48, %v376_v14  ;;  %v2069_v34 = vsel %vm2068_vm9, %v1978_v37, %v2067_v52  ;;  %v11863_v58 = vpop.eup %11862  ;;  %v1998_v42 = vrot.slane %v1997_v18, 1  ;;  %v2010_v41 = vrot.slane %v2009_v44, 2  ;;  %v16570_v14 = vld [vmem:[#allocation8_spill] sm:$0xff] }
 0x508   :  { %v2071_v28 = vsel %vm2070_vm10, %v1985_v2, %v2069_v34  ;;  %v2021_v45 = vsel %vm282_vm1, %v1927_v30, 0.0  ;;  %v2003_v53 = vrot.slane %v2002_v35, 2  ;;  %v379_v54 = vmul.f32 %v11863_v58, %v16566_v10  ;;  %16569 = vst [vmem:[#allocation12_spill] sm:$0xff] %v13593_v15 }
 0x509   :  { %v2014_v36 = vsel %vm282_vm1, %v1926_v29, 0.0  ;;  %v13582_v25 = vadd.f32 %v12592_v56, %v2071_v28  ;;  %v2022_v11 = vrot.slane %v2021_v45, 4  ;;  %v1991_v47 = vrot.slane %v1990_v39, 1 }
 0x50a   :  { %v2015_v13 = vrot.slane %v2014_v36, 4  ;;  %v2004_v51 = vadd.f32 %v2003_v53, %v2002_v35  ;;  %v1999_v8 = vadd.f32 %v1998_v42, %v1997_v18  ;;  %v2011_v33 = vadd.f32 %v2010_v41, %v2009_v44 }
 0x50b   :  { %16564 = vst [vmem:[#allocation9_spill] sm:$0xff] %v13582_v25  ;;  %v2618_v32 = vrot.slane %v13582_v25, %v16565_v24  ;;  %v2611_v9 = vcombine.high %v13582_v25, %v13582_v25  ;;  %v2023_v57 = vadd.f32 %v2022_v11, %v2021_v45  ;;  %v1992_v52 = vadd.f32 %v1991_v47, %v1990_v39 }
 0x50c   :  { %v2016_v16 = vadd.f32 %v2015_v13, %v2014_v36  ;;  %v2005_v26 = vrot.slane %v2004_v51, 1  ;;  %v2012_v44 = vrot.slane %v2011_v33, 1 }
 0x50d   :  { %v2634_v20 = vrot.slane %v2618_v32, %v16565_v24  ;;  %v2626_v31 = vcombine.high %v2618_v32, %v2618_v32  ;;  %v2625_v3 = vrot.slane %v2611_v9, %v16565_v24  ;;  %v2024_v34 = vrot.slane %v2023_v57, 2 }
 0x50e   :  { %v2017_v6 = vrot.slane %v2016_v16, 2  ;;  %v2006_v53 = vadd.f32 %v2005_v26, %v2004_v51 }
 0x50f   :  { %v2712_v2 = vrot.slane %v2634_v20, %v16570_v14  ;;  %v2656_v63 = vcombine.high %v2634_v20, %v2634_v20  ;;  %v2648_v43 = vrot.slane %v2626_v31, %v16565_v24  ;;  %v2641_v50 = vrot.slane %v2625_v3, %v16565_v24 }
 0x510   :  { %v2627_v48 = vcombine.high %v2625_v3, %v2625_v3  ;;  %v2018_v32 = vadd.f32 %v2017_v6, %v2016_v16  ;;  %v2025_v55 = vadd.f32 %v2024_v34, %v2023_v57 }
 0x511   :  { %v13599_v37 = vsub.f32 %v2712_v2, %v13582_v25  ;;  %v2720_v22 = vrot.slane %v2656_v63, %v16570_v14  ;;  %v2716_v30 = vrot.slane %v2648_v43, %v16570_v14  ;;  %v2728_v29 = vrot.slane %v2641_v50, %v16570_v14 }
 0x512   :  { %v2657_v28 = vcombine.high %v2641_v50, %v2641_v50  ;;  %v2658_v56 = vcombine.high %v2648_v43, %v2648_v43  ;;  %v2655_v11 = vrot.slane %v2627_v48, %v16565_v24  ;;  %v2019_v43 = vrot.slane %v2018_v32, 1 }
 0x513   :  { %16571 = vst [vmem:[#allocation10_spill] sm:$0xff] %v13599_v37  ;;  %v2805_v18 = vmul.f32 %v13599_v37, %v13599_v37  ;;  %v13607_v35 = vsub.f32 %v2720_v22, %v13582_v25  ;;  %v13610_v45 = vsub.f32 %v2716_v30, %v13582_v25  ;;  %v13613_v36 = vsub.f32 %v2728_v29, %v13582_v25  ;;  %v13642_v30 = vld [vmem:[%s16365_s11] sm:$0xff] }
 0x514   :  { %v1912_v58 = vpop.permute.xlu0 %1911  ;;  %v2736_v13 = vrot.slane %v2657_v28, %v16570_v14  ;;  %v2724_v3 = vrot.slane %v2658_v56, %v16570_v14  ;;  %v2732_v57 = vrot.slane %v2655_v11, %v16570_v14  ;;  %v2659_v22 = vcombine.high %v2655_v11, %v2655_v11 }
 0x515   :  { %16572 = vst [vmem:[#allocation13_spill] sm:$0xff] %v13607_v35  ;;  %16573 = vst [vmem:[#allocation11_spill] sm:$0xff] %v13613_v36  ;;  %v2821_v39 = vsel %vm282_vm1, %v2805_v18, 0.0  ;;  %v1929_v42 = vmul.f32 %v1912_v58, %v379_v54  ;;  %v1907_v41 = vpop.permute.xlu1 %1906  ;;  %v2806_v9 = vmul.f32 %v13610_v45, %v13610_v45  ;;  %v2809_v10 = vmul.f32 %v13613_v36, %v13613_v36 }
 0x516   :  { %2822 = vadd.xlane.f32.xlu1 %v2821_v39  ;;  %v1928_v20 = vmul.f32 %v1907_v41, %v378_v23  ;;  %v2807_v51 = vmul.f32 %v13607_v35, %v13607_v35  ;;  %v13625_v47 = vsub.f32 %v2736_v13, %v13582_v25  ;;  %v13636_v26 = vsub.f32 %v2724_v3, %v13582_v25 }
 0x517   :  { %v2035_v31 = vsel %vm282_vm1, %v1929_v42, 0.0  ;;  %v2824_v54 = vsel %vm282_vm1, %v2806_v9, 0.0  ;;  %v2833_v16 = vsel %vm282_vm1, %v2809_v10, 0.0  ;;  %v2072_v48 = vsel %vm2058_vm4, %v1999_v8, %v1992_v52 }
 0x518   :  { %16574 = vst [vmem:[#allocation14_spill] sm:$0xff] %v13625_v47  ;;  %v2036_v2 = vrot.slane %v2035_v31, 4  ;;  %v2028_v63 = vsel %vm282_vm1, %v1928_v20, 0.0  ;;  %2825 = vadd.xlane.f32.xlu0 %v2824_v54  ;;  %v2811_v23 = vmul.f32 %v13625_v47, %v13625_v47  ;;  %16575 = vst [vmem:[#allocation15_spill] sm:$0xff] %v13636_v26  ;;  %v2419_v29 = vrot.slane %v13642_v30, %v13593_v15 }
 0x519   :  { %v2029_v50 = vrot.slane %v2028_v63, 4  ;;  %v13647_v34 = vsub.f32 %v2732_v57, %v13582_v25  ;;  %v2827_v28 = vsel %vm282_vm1, %v2807_v51, 0.0  ;;  %v2808_v56 = vmul.f32 %v13636_v26, %v13636_v26 }
 0x51a   :  { %2834 = vadd.xlane.f32.xlu1 %v2833_v16  ;;  %v2037_v6 = vadd.f32 %v2036_v2, %v2035_v31  ;;  %v2740_v8 = vrot.slane %v2659_v22, %v16570_v14  ;;  %v2013_v52 = vadd.f32 %v2012_v44, %v2011_v33  ;;  %v2026_v58 = vrot.slane %v2025_v55, 1  ;;  %v10892_v9 = vpop.f32.mrb[34].mxu0 }
 0x51b   :  { %16576 = vst [vmem:[#allocation16_spill] sm:$0xff] %v13647_v34  ;;  %v2030_v18 = vadd.f32 %v2029_v50, %v2028_v63  ;;  %v2839_v13 = vsel %vm282_vm1, %v2811_v23, 0.0  ;;  %v2073_v11 = vsel %vm2060_vm5, %v2006_v53, %v2072_v48  ;;  %v2020_v42 = vadd.f32 %v2019_v43, %v2018_v32  ;;  %v2493_v51 = vpop.f32.mrb[35].mxu0 }
 0x51c   :  { %v2038_v39 = vrot.slane %v2037_v6, 2  ;;  %2828 = vadd.xlane.f32.xlu0 %v2827_v28  ;;  %v13655_v20 = vadd.f32 %v10892_v9, %v2419_v29  ;;  %v2810_v31 = vmul.f32 %v13647_v34, %v13647_v34  ;;  %v13659_v33 = vadd.f32 %v2493_v51, %v2419_v29  ;;  %v9904_v29 = vld [vmem:[%s16359_s5 + $0x2] sm:$0x3]  ;;  %v12594_v28 = vld [vmem:[%s16355_s1 + $0x8] sm:$0xff] }
 0x51d   :  { %v2031_v41 = vrot.slane %v2030_v18, 2  ;;  %v2830_v44 = vsel %vm282_vm1, %v2808_v56, 0.0  ;;  %v13663_v16 = vsub.f32 %v2740_v8, %v13582_v25  ;;  %v2027_v53 = vadd.f32 %v2026_v58, %v2025_v55  ;;  %10915 = vmatprep.subr.msk.mxu0 %vm512_vm2, %v9904_v29 }
 0x51e   :  { %2840 = vadd.xlane.f32.xlu1 %v2839_v13  ;;  %v2039_v10 = vadd.f32 %v2038_v39, %v2037_v6  ;;  %v2074_v32 = vsel %vm2062_vm6, %v2013_v52, %v2073_v11  ;;  %v9894_v2 = vmul.f32 -1.442695, %v13655_v20  ;;  %v9893_v57 = vmul.f32 -1.442695, %v13659_v33  ;;  %10916 = vmatpush3.msk.msra.mxu0 %vm512_vm2, %v9904_v29 }
 0x51f   :  { %v2032_v54 = vadd.f32 %v2031_v41, %v2030_v18  ;;  %16577 = vst [vmem:[#allocation17_spill] sm:$0xff] %v13663_v16  ;;  %v2075_v63 = vsel %vm2064_vm7, %v2020_v42, %v2074_v32  ;;  %v2836_v22 = vsel %vm282_vm1, %v2810_v31, 0.0  ;;  %v2812_v55 = vmul.f32 %v13663_v16, %v13663_v16 }
 0x520   :  { %v2040_v3 = vrot.slane %v2039_v10, 1  ;;  %2831 = vadd.xlane.f32.xlu0 %v2830_v44  ;;  %11864 = vpow2.f32 %v9894_v2  ;;  %v2076_v48 = vsel %vm2066_vm8, %v2027_v53, %v2075_v63 }
 0x521   :  { %v2033_v23 = vrot.slane %v2032_v54, 1  ;;  %11866 = vpow2.f32 %v9893_v57  ;;  %v2842_v8 = vsel %vm282_vm1, %v2812_v55, 0.0 }
 0x522   :  { %v2041_v43 = vadd.f32 %v2040_v3, %v2039_v10 }
 0x523   :  { %v2034_v50 = vadd.f32 %v2033_v23, %v2032_v54 }
 0x524   :  { %2837 = vadd.xlane.f32.xlu0 %v2836_v22 }
 0x525   :  { %v2077_v6 = vsel %vm2068_vm9, %v2034_v50, %v2076_v48 }
 0x526   :  { %v2078_v18 = vsel %vm2070_vm10, %v2041_v43, %v2077_v6 }
 0x527   :  { %v13682_v56 = vadd.f32 %v12594_v28, %v2078_v18 }
 0x528   :  { %2843 = vadd.xlane.f32.xlu0 %v2842_v8 }
 0x529   :  { %16578 = vst [vmem:[#allocation19_spill] sm:$0xff] %v13682_v56  ;;  %v2667_v52 = vrot.slane %v13682_v56, %v16565_v24  ;;  %v2660_v58 = vcombine.high %v13682_v56, %v13682_v56 }
 0x52a   :  { %v11865_v42 = vpop.eup %11864 }
 0x52b   :  { %v2683_v39 = vrot.slane %v2667_v52, %v16565_v24  ;;  %v2675_v13 = vcombine.high %v2667_v52, %v2667_v52  ;;  %v2674_v11 = vrot.slane %v2660_v58, %v16565_v24  ;;  %v11867_v41 = vpop.eup %11866  ;;  %v2509_v9 = vadd.f32 1.0, %v11865_v42 }
 0x52c   :  { %v2508_v54 = vadd.f32 1.0, %v11867_v41 }
 0x52d   :  { %v2744_v10 = vrot.slane %v2683_v39, %v16570_v14  ;;  %v2705_v51 = vcombine.high %v2683_v39, %v2683_v39  ;;  %v2697_v31 = vrot.slane %v2675_v13, %v16565_v24  ;;  %v2690_v44 = vrot.slane %v2674_v11, %v16565_v24 }
 0x52e   :  { %v2676_v53 = vcombine.high %v2674_v11, %v2674_v11  ;;  %11868 = vrcp.f32 %v2509_v9 }
 0x52f   :  { %v13696_v32 = vsub.f32 %v2744_v10, %v13682_v56  ;;  %v2752_v3 = vrot.slane %v2705_v51, %v16570_v14  ;;  %v2748_v2 = vrot.slane %v2697_v31, %v16570_v14  ;;  %11870 = vrcp.f32 %v2508_v54 }
 0x530   :  { %v2760_v63 = vrot.slane %v2690_v44, %v16570_v14  ;;  %v2707_v23 = vcombine.high %v2697_v31, %v2697_v31  ;;  %v2706_v57 = vcombine.high %v2690_v44, %v2690_v44  ;;  %v2704_v55 = vrot.slane %v2676_v53, %v16565_v24 }
 0x531   :  { %16579 = vst [vmem:[#allocation18_spill] sm:$0xff] %v13696_v32  ;;  %v2813_v43 = vmul.f32 %v13696_v32, %v13696_v32  ;;  %v13704_v50 = vsub.f32 %v2752_v3, %v13682_v56  ;;  %v13707_v22 = vsub.f32 %v2748_v2, %v13682_v56  ;;  %v13960_v32 = vld [vmem:[%s16365_s11 + $0x8] sm:$0xff] }
 0x532   :  { %v13711_v48 = vsub.f32 %v2760_v63, %v13682_v56  ;;  %v2756_v6 = vrot.slane %v2707_v23, %v16570_v14  ;;  %v2768_v29 = vrot.slane %v2706_v57, %v16570_v14  ;;  %v2764_v52 = vrot.slane %v2704_v55, %v16570_v14 }
 0x533   :  { %16580 = vst [vmem:[#allocation20_spill] sm:$0xff] %v13704_v50  ;;  %16581 = vst [vmem:[#allocation21_spill] sm:$0xff] %v13707_v22  ;;  %v2845_v18 = vsel %vm282_vm1, %v2813_v43, 0.0  ;;  %v2815_v28 = vmul.f32 %v13704_v50, %v13704_v50  ;;  %v2814_v8 = vmul.f32 %v13707_v22, %v13707_v22  ;;  %v2708_v39 = vcombine.high %v2704_v55, %v2704_v55 }
 0x534   :  { %16582 = vst [vmem:[#allocation23_spill] sm:$0xff] %v13711_v48  ;;  %2846 = vadd.xlane.f32.xlu1 %v2845_v18  ;;  %v13722_v58 = vsub.f32 %v2756_v6, %v13682_v56  ;;  %v13726_v11 = vsub.f32 %v2764_v52, %v13682_v56  ;;  %v2817_v10 = vmul.f32 %v13711_v48, %v13711_v48 }
 0x535   :  { %v2848_v13 = vsel %vm282_vm1, %v2814_v8, 0.0  ;;  %v2772_v41 = vrot.slane %v2708_v39, %v16570_v14  ;;  %v2851_v9 = vsel %vm282_vm1, %v2815_v28, 0.0  ;;  %v13735_v51 = vsub.f32 %v2768_v29, %v13682_v56  ;;  %v9899_v29 = vld [vmem:[%s16358_s4 + $0x28] sm:$0xff]  ;;  %v9900_v28 = vld [vmem:[%s16358_s4 + $0x30] sm:$0xff]  ;;  %v9901_v8 = vld [vmem:[%s16358_s4 + $0x38] sm:$0xff] }
 0x536   :  { %16583 = vst [vmem:[#allocation22_spill] sm:$0xff] %v13722_v58  ;;  %16584 = vst [vmem:[#allocation6_spill] sm:$0xff] %v13726_v11  ;;  %2849 = vadd.xlane.f32.xlu0 %v2848_v13  ;;  %v2816_v42 = vmul.f32 %v13722_v58, %v13722_v58  ;;  %v2818_v44 = vmul.f32 %v13726_v11, %v13726_v11  ;;  %v2857_v63 = vsel %vm282_vm1, %v2817_v10, 0.0 }
 0x537   :  { %16585 = vst [vmem:[#allocation42_spill] sm:$0xff] %v13735_v51  ;;  %v13741_v53 = vsub.f32 %v2772_v41, %v13682_v56  ;;  %v2819_v23 = vmul.f32 %v13735_v51, %v13735_v51  ;;  %v11453_v52 = vpack.c.bf16 %v9901_v8, %v9900_v28 }
 0x538   :  { %2852 = vadd.xlane.f32.xlu1 %v2851_v9  ;;  %v11869_v31 = vpop.eup %11868  ;;  %v2854_v54 = vsel %vm282_vm1, %v2816_v42, 0.0  ;;  %v2860_v43 = vsel %vm282_vm1, %v2818_v44, 0.0 }
 0x539   :  { %16586 = vst [vmem:[#allocation43_spill] sm:$0xff] %v13741_v53  ;;  %v11871_v3 = vpop.eup %11870  ;;  %v2515_v57 = vmul.f32 %v11869_v31, %v13655_v20  ;;  %v2820_v55 = vmul.f32 %v13741_v53, %v13741_v53  ;;  %v9898_v20 = vld [vmem:[%s16358_s4 + $0x20] sm:$0xff] }
 0x53a   :  { %2855 = vadd.xlane.f32.xlu0 %v2854_v54  ;;  %v2514_v2 = vmul.f32 %v11871_v3, %v13659_v33  ;;  %v2863_v33 = vsel %vm282_vm1, %v2819_v23, 0.0  ;;  %v11449_v18 = vpack.c.bf16 %v9899_v29, %v9898_v20 }
 0x53b   :  { %v2866_v6 = vsel %vm282_vm1, %v2820_v55, 0.0 }
 0x53c   :  { %2858 = vadd.xlane.f32.xlu1 %v2857_v63  ;;  %10901 = vmatprep.mubr.msk.f32.mxu1 %vm384_vm0, %v2514_v2 }
 0x53d   :  { %10902 = vmatmul.mubr.msk.f32.vlgmr.msra.gmra.mrb[34].mxu1 %vm384_vm0, %v2515_v57  ;;  %11450 = vmatprep.subr.bf16.mxu1 %v11449_v18 }
 0x53e   :  { %2861 = vadd.xlane.f32.xlu0 %v2860_v43  ;;  %11452 = vmatpush3.bf16.msra.mxu1 %v11449_v18 }
 0x53f   :  { %11454 = vmatprep.subr.bf16.mxu1 %v11453_v52 }
 0x540   :  { %2864 = vadd.xlane.f32.xlu1 %v2863_v33 }
 0x542   :  { %2867 = vadd.xlane.f32.xlu0 %v2866_v6  ;;  %11456 = vmatpush3.bf16.msra.mxu1 %v11453_v52 }
 0x5a3   :  { %v13767_v39 = vpop.xlane.xlu1 %2822 }
 0x5a4   :  { %v3004_v13 = vsel %vm3003_vm12, %v13767_v39, %v12875_v17 }
 0x5a5   :  { %10917 = vmatprep.mubr.msk.f32.mxu0 %vm463_vm3, %v3004_v13  ;;  %v13773_v42 = vpop.xlane.xlu0 %2825 }
 0x5a6   :  { %v3005_v41 = vsel %vm3003_vm12, %v13773_v42, %v12881_v60 }
 0x5a7   :  { %10918 = vmatmul.mubr.msk.f32.vlgmr.msra.gmra.mrb[36].mxu0 %vm463_vm3, %v3005_v41  ;;  %v13781_v10 = vpop.xlane.xlu1 %2834 }
 0x5a8   :  { %v3008_v3 = vsel %vm3003_vm12, %v13781_v10, %v12889_v62  ;;  %v9941_v62 = vld [vmem:[%s16360_s6 + $0x38] sm:$0xff] }
 0x5a9   :  { %v13779_v9 = vpop.xlane.xlu0 %2828 }
 0x5aa   :  { %v3006_v31 = vsel %vm3003_vm12, %v13779_v9, %v12879_v59 }
 0x5ab   :  { %10920 = vmatprep.mubr.msk.f32.mxu0 %vm463_vm3, %v3006_v31  ;;  %v13796_v2 = vpop.xlane.xlu1 %2840 }
 0x5ac   :  { %v3010_v57 = vsel %vm3003_vm12, %v13796_v2, %v12897_v1  ;;  %v9940_v1 = vld [vmem:[%s16360_s6 + $0x30] sm:$0xff] }
 0x5ad   :  { %v13787_v54 = vpop.xlane.xlu0 %2831 }
 0x5ae   :  { %v3007_v44 = vsel %vm3003_vm12, %v13787_v54, %v12887_v61  ;;  %v13924_v61 = vpack.c.bf16 %v9941_v62, %v9940_v1 }
 0x5af   :  { %10921 = vmatmul.mubr.msk.f32.gmra.mrb[38].mxu0 %vm463_vm3, %v3007_v44 }
 0x5b0   :  { %10923 = vmatprep.mubr.msk.f32.mxu0 %vm463_vm3, %v3008_v3 }
 0x5b1   :  { %v13799_v63 = vpop.xlane.xlu0 %2837 }
 0x5b2   :  { %v3009_v23 = vsel %vm3003_vm12, %v13799_v63, %v12895_v0 }
 0x5b3   :  { %10924 = vmatmul.mubr.msk.f32.gmra.mrb[40].mxu0 %vm463_vm3, %v3009_v23 }
 0x5b4   :  { %10926 = vmatprep.mubr.msk.f32.mxu0 %vm463_vm3, %v3010_v57 }
 0x5b5   :  { %v13809_v43 = vpop.xlane.xlu0 %2843 }
 0x5b6   :  { %v3011_v55 = vsel %vm3003_vm12, %v13809_v43, %v12903_v4  ;;  %v9939_v4 = vld [vmem:[%s16360_s6 + $0x28] sm:$0xff] }
 0x5b7   :  { %10927 = vmatmul.mubr.msk.f32.gmra.mrb[42].mxu0 %vm463_vm3, %v3011_v55 }
 0x5c1   :  { %v13815_v33 = vpop.xlane.xlu1 %2846 }
 0x5c2   :  { %v3012_v6 = vsel %vm3003_vm12, %v13815_v33, %v12905_v5  ;;  %v9938_v5 = vld [vmem:[%s16360_s6 + $0x20] sm:$0xff] }
 0x5c3   :  { %10929 = vmatprep.mubr.msk.f32.mxu0 %vm463_vm3, %v3012_v6  ;;  %v13821_v20 = vpop.xlane.xlu0 %2849  ;;  %v13864_v6 = vsub.s32 3, %v16568_v38  ;;  %v13919_v0 = vpack.c.bf16 %v9939_v4, %v9938_v5 }
 0x5c4   :  { %v3013_v29 = vsel %vm3003_vm12, %v13821_v20, %v12911_v7 }
 0x5c5   :  { %v13826_v18 = vpop.xlane.xlu1 %2852  ;;  %10930 = vmatmul.mubr.msk.f32.gmra.mrb[44].mxu0 %vm463_vm3, %v3013_v29  ;;  %16593 = vst [vmem:[#allocation50_spill] sm:$0xff] %v13864_v6  ;;  %v2523_v29 = vrot.slane %v13642_v30, %v13864_v6  ;;  %11458 = vmatprep.subr.bf16.mxu1 %v13919_v0 }
 0x5c6   :  { %16587 = vst [vmem:[#allocation44_spill] sm:$0xff] %v13826_v18  ;;  %v3014_v28 = vsel %vm3003_vm12, %v13826_v18, %v16549_v12 }
 0x5c7   :  { %10932 = vmatprep.mubr.msk.f32.mxu0 %vm463_vm3, %v3014_v28  ;;  %v13833_v8 = vpop.xlane.xlu0 %2855 }
 0x5c8   :  { %16588 = vst [vmem:[#allocation45_spill] sm:$0xff] %v13833_v8  ;;  %v3015_v52 = vsel %vm3003_vm12, %v13833_v8, %v16548_v46 }
 0x5c9   :  { %v13838_v13 = vpop.xlane.xlu1 %2858  ;;  %10933 = vmatmul.mubr.msk.f32.gmra.mrb[46].mxu0 %vm463_vm3, %v3015_v52 }
 0x5ca   :  { %16589 = vst [vmem:[#allocation46_spill] sm:$0xff] %v13838_v13  ;;  %v3016_v41 = vsel %vm3003_vm12, %v13838_v13, %v16552_v19 }
 0x5cb   :  { %10935 = vmatprep.mubr.msk.f32.mxu0 %vm463_vm3, %v3016_v41  ;;  %v13845_v31 = vpop.xlane.xlu0 %2861 }
 0x5cc   :  { %16590 = vst [vmem:[#allocation47_spill] sm:$0xff] %v13845_v31  ;;  %v3017_v44 = vsel %vm3003_vm12, %v13845_v31, %v16553_v49 }
 0x5cd   :  { %v13850_v3 = vpop.xlane.xlu1 %2864  ;;  %10936 = vmatmul.mubr.msk.f32.gmra.mrb[48].mxu0 %vm463_vm3, %v3017_v44 }
 0x5ce   :  { %16591 = vst [vmem:[#allocation48_spill] sm:$0xff] %v13850_v3  ;;  %v3018_v23 = vsel %vm3003_vm12, %v13850_v3, %v16556_v21 }
 0x5cf   :  { %10938 = vmatprep.mubr.msk.f32.mxu0 %vm463_vm3, %v3018_v23  ;;  %v13857_v57 = vpop.xlane.xlu0 %2867 }
 0x5d0   :  { %16592 = vst [vmem:[#allocation49_spill] sm:$0xff] %v13857_v57  ;;  %v3019_v55 = vsel %vm3003_vm12, %v13857_v57, %v16559_v40 }
 0x5d1   :  { %10939 = vmatmul.mubr.msk.f32.gmra.mrb[50].mxu0 %vm463_vm3, %v3019_v55 }
 0x610   :  { %v10903_v28 = vpop.f32.mrb[34].mxu1 }
 0x611   :  { %v2602_v52 = vadd.f32 %v10903_v28, %v2523_v29  ;;  %v2596_v41 = vpop.f32.mrb[35].mxu1 }
 0x612   :  { %v2597_v44 = vadd.f32 %v2596_v41, %v2523_v29 }
 0x613   :  { %v13872_v21 = vadd.f32 %v2602_v52, %v12752_v27 }
 0x614   :  { %v13869_v23 = vadd.f32 %v2597_v44, %v12752_v27 }
 0x616   :  { %10912 = vmatprep.mubr.msk.f32.mxu1 %vm384_vm0, %v13869_v23 }
 0x617   :  { %10913 = vmatmul.mubr.msk.f32.vlgmr.msra.gmra.mrb[36].mxu1 %vm384_vm0, %v13872_v21 }
 0x618   :  { %11460 = vmatpush3.bf16.msra.mxu1 %v13919_v0 }
 0x619   :  { %11462 = vmatprep.subr.bf16.mxu1 %v13924_v61 }
 0x61c   :  { %11464 = vmatpush3.bf16.msra.mxu1 %v13924_v61 }
 0x67a   :  { %v13878_v38 = vpop.f32.mrb[36].mxu0 }
 0x67b   :  { %v13880_v55 = vpop.f32.mrb[37].mxu0 }
 0x682   :  { %v13882_v30 = vpop.f32.mrb[38].mxu0 }
 0x683   :  { %v13884_v28 = vpop.f32.mrb[39].mxu0 }
 0x686   :  { %v13886_v29 = vpop.f32.mrb[40].mxu0 }
 0x687   :  { %v13888_v41 = vpop.f32.mrb[41].mxu0 }
 0x68a   :  { %v13890_v27 = vpop.f32.mrb[42].mxu0 }
 0x68b   :  { %v13892_v52 = vpop.f32.mrb[43].mxu0 }
 0x698   :  { %v13894_v44 = vpop.f32.mrb[44].mxu0 }
 0x699   :  { %v13896_v6 = vpop.f32.mrb[45].mxu0 }
 0x69c   :  { %v13898_v40 = vpop.f32.mrb[46].mxu0 }
 0x69d   :  { %v13900_v49 = vpop.f32.mrb[47].mxu0 }
 0x6a0   :  { %v13902_v19 = vpop.f32.mrb[48].mxu0 }
 0x6a1   :  { %v13904_v46 = vpop.f32.mrb[49].mxu0 }
 0x6a4   :  { %v13906_v12 = vpop.f32.mrb[50].mxu0 }
 0x6a5   :  { %v13908_v7 = vpop.f32.mrb[51].mxu0 }
 0x6ea   :  { %v13930_v59 = vpop.f32.mrb[36].mxu1 }
 0x6eb   :  { %3400 = vrot.lane.b32.xlu0 %v13930_v59, %s12627_s15  ;;  %v13934_v4 = vpop.f32.mrb[37].mxu1  ;;  %v3269_v1 = vcombine.high %v13930_v59, %v13930_v59  ;;  %v3276_v5 = vrot.slane %v13930_v59, %v16565_v24 }
 0x6ec   :  { %3398 = vrot.lane.b32.xlu1 %v13934_v4, %s12627_s15  ;;  %v3220_v62 = vcombine.high %v13934_v4, %v13934_v4  ;;  %v3227_v60 = vrot.slane %v13934_v4, %v16565_v24 }
 0x6ed   :  { %v3283_v56 = vrot.slane %v3269_v1, %v16565_v24  ;;  %v3284_v15 = vcombine.high %v3276_v5, %v3276_v5  ;;  %v3292_v48 = vrot.slane %v3276_v5, %v16565_v24 }
 0x6ee   :  { %v3234_v17 = vrot.slane %v3220_v62, %v16565_v24  ;;  %v3235_v51 = vcombine.high %v3227_v60, %v3227_v60  ;;  %v3243_v3 = vrot.slane %v3227_v60, %v16565_v24 }
 0x6ef   :  { %v3285_v11 = vcombine.high %v3283_v56, %v3283_v56  ;;  %v13950_v25 = vrot.slane %v3283_v56, %v16565_v24  ;;  %v3306_v57 = vrot.slane %v3284_v15, %v16565_v24  ;;  %v3314_v1 = vcombine.high %v3292_v48, %v3292_v48 }
 0x6f0   :  { %v3236_v53 = vcombine.high %v3234_v17, %v3234_v17  ;;  %v3250_v50 = vrot.slane %v3234_v17, %v16565_v24  ;;  %v3257_v58 = vrot.slane %v3235_v51, %v16565_v24  ;;  %v3265_v60 = vcombine.high %v3243_v3, %v3243_v3 }
 0x6f1   :  { %v13963_v5 = vrot.slane %v3285_v11, %v16565_v24  ;;  %v3315_v15 = vcombine.high %v13950_v25, %v13950_v25  ;;  %v3316_v56 = vcombine.high %v3306_v57, %v3306_v57  ;;  %v13969_v51 = vrot.slane %v13960_v32, %v16570_v14 }
 0x6f2   :  { %v3264_v62 = vrot.slane %v3236_v53, %v16565_v24  ;;  %v3266_v22 = vcombine.high %v3250_v50, %v3250_v50  ;;  %v3267_v17 = vcombine.high %v3257_v58, %v3257_v58  ;;  %v3353_v53 = vrot.slane %v3292_v48, %v16570_v14 }
 0x6f3   :  { %v3357_v16 = vrot.slane %v3306_v57, %v16570_v14  ;;  %v3361_v31 = vrot.slane %v3314_v1, %v16570_v14  ;;  %v3369_v11 = vrot.slane %v13950_v25, %v16570_v14  ;;  %v3317_v24 = vcombine.high %v13963_v5, %v13963_v5 }
 0x6f4   :  { %v3268_v47 = vcombine.high %v3264_v62, %v3264_v62  ;;  %v3365_v13 = vrot.slane %v3316_v56, %v16570_v14  ;;  %v3373_v36 = vrot.slane %v13963_v5, %v16570_v14  ;;  %v13982_v34 = vrot.slane %v3315_v15, %v16570_v14 }
 0x6f5   :  { %v3321_v48 = vrot.slane %v3243_v3, %v16570_v14  ;;  %v3325_v57 = vrot.slane %v3257_v58, %v16570_v14  ;;  %v3329_v1 = vrot.slane %v3265_v60, %v16570_v14  ;;  %v3337_v35 = vrot.slane %v3250_v50, %v16570_v14 }
 0x6f6   :  { %v3333_v25 = vrot.slane %v3267_v17, %v16570_v14  ;;  %v3341_v26 = vrot.slane %v3264_v62, %v16570_v14  ;;  %v3345_v56 = vrot.slane %v3266_v22, %v16570_v14  ;;  %v3349_v5 = vrot.slane %v3268_v47, %v16570_v14 }
 0x75d   :  { %v13991_v8 = vpop.permute.xlu0 %3400 }
 0x75e   :  { %v13994_v15 = vpop.permute.xlu1 %3398  ;;  %v3412_v3 = vadd.f32 %v13991_v8, %v3353_v53  ;;  %v3413_v58 = vadd.f32 %v13991_v8, %v3357_v16  ;;  %v3414_v60 = vadd.f32 %v13991_v8, %v3361_v31  ;;  %v3415_v50 = vadd.f32 %v13991_v8, %v3365_v13 }
 0x75f   :  { %v3404_v17 = vadd.f32 %v13994_v15, %v3321_v48  ;;  %v3405_v62 = vadd.f32 %v13994_v15, %v3325_v57  ;;  %v3406_v22 = vadd.f32 %v13994_v15, %v3329_v1  ;;  %v3407_v18 = vadd.f32 %v13994_v15, %v3333_v25 }
 0x760   :  { %v3408_v47 = vadd.f32 %v13994_v15, %v3337_v35  ;;  %v3409_v37 = vadd.f32 %v13994_v15, %v3341_v26  ;;  %v3410_v53 = vadd.f32 %v13994_v15, %v3345_v56  ;;  %v3411_v16 = vadd.f32 %v13994_v15, %v3349_v5 }
 0x761   :  { %v3420_v31 = vadd.f32 %v3404_v17, %v13880_v55  ;;  %v3421_v13 = vadd.f32 %v13878_v38, %v3405_v62  ;;  %v3422_v48 = vadd.f32 %v3406_v22, %v13884_v28  ;;  %v3423_v57 = vadd.f32 %v13882_v30, %v3407_v18 }
 0x762   :  { %v3424_v1 = vadd.f32 %v3408_v47, %v13888_v41  ;;  %v3425_v25 = vadd.f32 %v13886_v29, %v3409_v37  ;;  %v3426_v35 = vadd.f32 %v3410_v53, %v13892_v52  ;;  %v3427_v26 = vadd.f32 %v13890_v27, %v3411_v16 }
 0x763   :  { %v14017_v56 = vadd.f32 %v13969_v51, %v3420_v31  ;;  %v14020_v5 = vadd.f32 %v13969_v51, %v3421_v13  ;;  %v14023_v38 = vadd.f32 %v13969_v51, %v3422_v48  ;;  %v14026_v55 = vadd.f32 %v13969_v51, %v3423_v57 }
 0x764   :  { %v14029_v18 = vadd.f32 %v13969_v51, %v3424_v1  ;;  %v14032_v37 = vadd.f32 %v13969_v51, %v3425_v25  ;;  %v14035_v30 = vadd.f32 %v13969_v51, %v3426_v35  ;;  %v14038_v28 = vadd.f32 %v13969_v51, %v3427_v26 }
 0x765   :  { %v9922_v29 = vmul.f32 -1.442695, %v14017_v56  ;;  %v9923_v41 = vmul.f32 -1.442695, %v14020_v5  ;;  %v9924_v27 = vmul.f32 -1.442695, %v14023_v38  ;;  %v3428_v52 = vadd.f32 %v3412_v3, %v13896_v6 }
 0x766   :  { %v9925_v17 = vmul.f32 -1.442695, %v14026_v55  ;;  %v9926_v62 = vmul.f32 -1.442695, %v14029_v18  ;;  %v3429_v22 = vadd.f32 %v13894_v44, %v3413_v58  ;;  %v3381_v47 = vrot.slane %v3317_v24, %v16570_v14 }
 0x767   :  { %11872 = vpow2.f32 %v9922_v29  ;;  %v9927_v53 = vmul.f32 -1.442695, %v14032_v37  ;;  %v9928_v16 = vmul.f32 -1.442695, %v14035_v30  ;;  %v14051_v31 = vadd.f32 %v13969_v51, %v3428_v52 }
 0x768   :  { %11874 = vpow2.f32 %v9923_v41  ;;  %v14054_v13 = vadd.f32 %v13969_v51, %v3429_v22  ;;  %v3430_v6 = vadd.f32 %v3414_v60, %v13900_v49  ;;  %v3431_v3 = vadd.f32 %v13898_v40, %v3415_v50 }
 0x769   :  { %11876 = vpow2.f32 %v9924_v27  ;;  %v9929_v44 = vmul.f32 -1.442695, %v14038_v28  ;;  %v3416_v24 = vadd.f32 %v13991_v8, %v3369_v11  ;;  %v3417_v58 = vadd.f32 %v13991_v8, %v3373_v36 }
 0x76a   :  { %11878 = vpow2.f32 %v9925_v17  ;;  %v9930_v48 = vmul.f32 -1.442695, %v14051_v31  ;;  %v14063_v57 = vadd.f32 %v13969_v51, %v3430_v6  ;;  %v14066_v1 = vadd.f32 %v13969_v51, %v3431_v3 }
 0x76b   :  { %11880 = vpow2.f32 %v9926_v62  ;;  %v3432_v49 = vadd.f32 %v3416_v24, %v13904_v46  ;;  %v3433_v40 = vadd.f32 %v13902_v19, %v3417_v58  ;;  %v3418_v60 = vadd.f32 %v13991_v8, %v13982_v34 }
 0x76c   :  { %11882 = vpow2.f32 %v9927_v53  ;;  %v9931_v36 = vmul.f32 -1.442695, %v14054_v13  ;;  %v9932_v11 = vmul.f32 -1.442695, %v14063_v57  ;;  %v3419_v50 = vadd.f32 %v13991_v8, %v3381_v47 }
 0x76d   :  { %11884 = vpow2.f32 %v9928_v16  ;;  %v9933_v25 = vmul.f32 -1.442695, %v14066_v1  ;;  %v14077_v35 = vadd.f32 %v13969_v51, %v3432_v49  ;;  %v3434_v46 = vadd.f32 %v3418_v60, %v13908_v7 }
 0x76e   :  { %11886 = vpow2.f32 %v9929_v44  ;;  %v3435_v19 = vadd.f32 %v13906_v12, %v3419_v50  ;;  %v4636_v34 = vadd.f32 %v13994_v15, %v13934_v4  ;;  %v4637_v26 = vadd.f32 %v13930_v59, %v13991_v8 }
 0x76f   :  { %11888 = vpow2.f32 %v9930_v48  ;;  %v9934_v29 = vmul.f32 -1.442695, %v14077_v35  ;;  %v14093_v24 = vadd.f32 %v13969_v51, %v3433_v40  ;;  %v14096_v49 = vadd.f32 %v13969_v51, %v3434_v46 }
 0x770   :  { %11890 = vpow2.f32 %v9931_v36  ;;  %v14087_v41 = vadd.f32 %v4636_v34, %v13969_v51  ;;  %v14090_v27 = vadd.f32 %v4637_v26, %v13969_v51 }
 0x771   :  { %v11873_v7 = vpop.eup %11872  ;;  %11892 = vpow2.f32 %v9932_v11  ;;  %v14099_v11 = vadd.f32 %v13969_v51, %v3435_v19  ;;  %v9935_v26 = vmul.f32 -1.442695, %v14093_v24  ;;  %v9936_v40 = vmul.f32 -1.442695, %v14096_v49 }
 0x772   :  { %v11875_v52 = vpop.eup %11874  ;;  %v3504_v12 = vadd.f32 1.0, %v11873_v7  ;;  %11894 = vpow2.f32 %v9933_v25 }
 0x773   :  { %v11877_v17 = vpop.eup %11876  ;;  %v3505_v4 = vadd.f32 1.0, %v11875_v52  ;;  %11896 = vpow2.f32 %v9934_v29  ;;  %v9937_v52 = vmul.f32 -1.442695, %v14099_v11 }
 0x774   :  { %v11879_v15 = vpop.eup %11878  ;;  %11898 = vrcp.f32 %v3504_v12  ;;  %v3506_v59 = vadd.f32 1.0, %v11877_v17 }
 0x775   :  { %v11881_v8 = vpop.eup %11880  ;;  %11900 = vrcp.f32 %v3505_v4  ;;  %v3507_v62 = vadd.f32 1.0, %v11879_v15 }
 0x776   :  { %v11883_v22 = vpop.eup %11882  ;;  %11902 = vrcp.f32 %v3506_v59  ;;  %v3508_v47 = vadd.f32 1.0, %v11881_v8 }
 0x777   :  { %v11885_v53 = vpop.eup %11884  ;;  %11904 = vrcp.f32 %v3507_v62  ;;  %v3509_v16 = vadd.f32 1.0, %v11883_v22 }
 0x778   :  { %v11887_v6 = vpop.eup %11886  ;;  %11906 = vrcp.f32 %v3508_v47  ;;  %v3510_v3 = vadd.f32 1.0, %v11885_v53 }
 0x779   :  { %v11889_v44 = vpop.eup %11888  ;;  %v3511_v48 = vadd.f32 1.0, %v11887_v6  ;;  %11908 = vrcp.f32 %v3509_v16 }
 0x77a   :  { %v11891_v58 = vpop.eup %11890  ;;  %v3512_v36 = vadd.f32 1.0, %v11889_v44  ;;  %11910 = vrcp.f32 %v3510_v3 }
 0x77b   :  { %v11893_v60 = vpop.eup %11892  ;;  %v3513_v25 = vadd.f32 1.0, %v11891_v58  ;;  %11912 = vrcp.f32 %v3511_v48 }
 0x77c   :  { %v11895_v50 = vpop.eup %11894  ;;  %11914 = vrcp.f32 %v3512_v36  ;;  %v3514_v19 = vadd.f32 1.0, %v11893_v60 }
 0x77d   :  { %v11897_v34 = vpop.eup %11896  ;;  %11916 = vrcp.f32 %v3513_v25 }
 0x77e   :  { %v11899_v29 = vpop.eup %11898  ;;  %11918 = vpow2.f32 %v9935_v26 }
 0x77f   :  { %v11901_v7 = vpop.eup %11900  ;;  %v3552_v46 = vmul.f32 %v11899_v29, %v14017_v56  ;;  %11920 = vpow2.f32 %v9936_v40  ;;  %v3515_v56 = vadd.f32 1.0, %v11895_v50 }
 0x780   :  { %v11903_v12 = vpop.eup %11902  ;;  %v3553_v51 = vmul.f32 %v11901_v7, %v14020_v5  ;;  %11922 = vpow2.f32 %v9937_v52  ;;  %v3516_v5 = vadd.f32 1.0, %v11897_v34  ;;  %v3885_v52 = vld [vmem:[#allocation3 + $0x30] sm:$0xff] }
 0x781   :  { %v11905_v17 = vpop.eup %11904  ;;  %10949 = vmatprep.mubr.msk.f32.mxu1 %vm384_vm0, %v3552_v46  ;;  %v3554_v4 = vmul.f32 %v11903_v12, %v14023_v38  ;;  %11924 = vrcp.f32 %v3514_v19  ;;  %v3886_v12 = vld [vmem:[#allocation3 + $0x38] sm:$0xff] }
 0x782   :  { %v11907_v15 = vpop.eup %11906  ;;  %10950 = vmatmul.mubr.msk.f32.vlgmr.msra.gmra.mrb[38].mxu1 %vm384_vm0, %v3553_v51  ;;  %v3555_v59 = vmul.f32 %v11905_v17, %v14026_v55  ;;  %11926 = vrcp.f32 %v3515_v56  ;;  %v11469_v51 = vpack.c.bf16 %v3886_v12, %v3885_v52 }
 0x783   :  { %10952 = vmatprep.mubr.msk.f32.mxu1 %vm384_vm0, %v3554_v4  ;;  %v11909_v8 = vpop.eup %11908  ;;  %v3556_v62 = vmul.f32 %v11907_v15, %v14029_v18  ;;  %11928 = vrcp.f32 %v3516_v5 }
 0x784   :  { %v11911_v22 = vpop.eup %11910  ;;  %v3557_v47 = vmul.f32 %v11909_v8, %v14032_v37 }
 0x785   :  { %v11913_v38 = vpop.eup %11912  ;;  %v3558_v16 = vmul.f32 %v11911_v22, %v14035_v30 }
 0x786   :  { %10953 = vmatmul.mubr.msk.f32.gmra.mrb[40].mxu1 %vm384_vm0, %v3555_v59  ;;  %v11915_v53 = vpop.eup %11914  ;;  %v3559_v3 = vmul.f32 %v11913_v38, %v14038_v28 }
 0x787   :  { %10955 = vmatprep.mubr.msk.f32.mxu1 %vm384_vm0, %v3556_v62  ;;  %v11917_v6 = vpop.eup %11916  ;;  %v3560_v48 = vmul.f32 %v11915_v53, %v14051_v31 }
 0x788   :  { %v11919_v55 = vpop.eup %11918  ;;  %v3561_v30 = vmul.f32 %v11917_v6, %v14054_v13 }
 0x789   :  { %v11921_v18 = vpop.eup %11920  ;;  %v3517_v44 = vadd.f32 1.0, %v11919_v55 }
 0x78a   :  { %10956 = vmatmul.mubr.msk.f32.gmra.mrb[42].mxu1 %vm384_vm0, %v3557_v47  ;;  %v11923_v58 = vpop.eup %11922  ;;  %v3518_v60 = vadd.f32 1.0, %v11921_v18 }
 0x78b   :  { %10958 = vmatprep.mubr.msk.f32.mxu1 %vm384_vm0, %v3558_v16  ;;  %v11925_v36 = vpop.eup %11924  ;;  %11930 = vrcp.f32 %v3517_v44  ;;  %v3519_v37 = vadd.f32 1.0, %v11923_v58 }
 0x78c   :  { %11932 = vrcp.f32 %v3518_v60  ;;  %v11927_v50 = vpop.eup %11926  ;;  %v3562_v25 = vmul.f32 %v11925_v36, %v14063_v57 }
 0x78d   :  { %11934 = vrcp.f32 %v3519_v37  ;;  %v11929_v28 = vpop.eup %11928  ;;  %v3563_v31 = vmul.f32 %v11927_v50, %v14066_v1  ;;  %v3883_v1 = vld [vmem:[#allocation3 + $0x20] sm:$0xff] }
 0x78e   :  { %10959 = vmatmul.mubr.msk.f32.gmra.mrb[44].mxu1 %vm384_vm0, %v3559_v3  ;;  %v3564_v34 = vmul.f32 %v11929_v28, %v14077_v35  ;;  %v3884_v35 = vld [vmem:[#allocation3 + $0x28] sm:$0xff] }
 0x78f   :  { %10961 = vmatprep.mubr.msk.f32.mxu1 %vm384_vm0, %v3560_v48  ;;  %v11465_v46 = vpack.c.bf16 %v3884_v35, %v3883_v1 }
 0x791   :  { %11466 = vmatprep.subr.bf16.mxu0 %v11465_v46 }
 0x792   :  { %10962 = vmatmul.mubr.msk.f32.gmra.mrb[46].mxu1 %vm384_vm0, %v3561_v30  ;;  %11468 = vmatpush3.bf16.msra.mxu0 %v11465_v46 }
 0x793   :  { %10964 = vmatprep.mubr.msk.f32.mxu1 %vm384_vm0, %v3562_v25  ;;  %11470 = vmatprep.subr.bf16.mxu0 %v11469_v51 }
 0x795   :  { %v11931_v26 = vpop.eup %11930 }
 0x796   :  { %10965 = vmatmul.mubr.msk.f32.gmra.mrb[48].mxu1 %vm384_vm0, %v3563_v31  ;;  %v11933_v29 = vpop.eup %11932  ;;  %v3565_v13 = vmul.f32 %v11931_v26, %v14093_v24  ;;  %11472 = vmatpush3.bf16.msra.mxu0 %v11469_v51  ;;  %v16594_v24 = vld [vmem:[#allocation40_spill] sm:$0xff] }
 0x797   :  { %10967 = vmatprep.mubr.msk.f32.mxu1 %vm384_vm0, %v3564_v34  ;;  %v11935_v40 = vpop.eup %11934  ;;  %v3566_v57 = vmul.f32 %v11933_v29, %v14096_v49  ;;  %11482 = vmatprep.subr.bf16.mxu0 %v13919_v0  ;;  %v14139_v49 = vrot.slane %v13960_v32, %v16594_v24 }
 0x798   :  { %v3567_v7 = vmul.f32 %v11935_v40, %v14099_v11 }
 0x79a   :  { %10968 = vmatmul.mubr.msk.f32.gmra.mrb[50].mxu1 %vm384_vm0, %v3565_v13 }
 0x79b   :  { %10970 = vmatprep.mubr.msk.f32.mxu1 %vm384_vm0, %v3566_v57 }
 0x79e   :  { %10971 = vmatmul.mubr.msk.f32.gmra.mrb[52].mxu1 %vm384_vm0, %v3567_v7 }
 0x855   :  { %v10951_v19 = vpop.f32.mrb[38].mxu1 }
 0x856   :  { %v14142_v11 = vadd.f32 %v10951_v19, %v14139_v49  ;;  %v3691_v17 = vpop.f32.mrb[39].mxu1 }
 0x857   :  { %v14145_v4 = vadd.f32 %v3691_v17, %v14139_v49 }
 0x858   :  { %v9959_v15 = vmul.f32 -1.442695, %v14142_v11 }
 0x859   :  { %v9958_v56 = vmul.f32 -1.442695, %v14145_v4  ;;  %v10954_v59 = vpop.f32.mrb[40].mxu1 }
 0x85a   :  { %11936 = vpow2.f32 %v9959_v15  ;;  %v14150_v5 = vadd.f32 %v10954_v59, %v14139_v49  ;;  %v3701_v8 = vpop.f32.mrb[41].mxu1 }
 0x85b   :  { %11938 = vpow2.f32 %v9958_v56  ;;  %v14153_v62 = vadd.f32 %v3701_v8, %v14139_v49 }
 0x85c   :  { %v9961_v22 = vmul.f32 -1.442695, %v14150_v5 }
 0x85d   :  { %v9960_v38 = vmul.f32 -1.442695, %v14153_v62  ;;  %v10957_v47 = vpop.f32.mrb[42].mxu1 }
 0x85e   :  { %11940 = vpow2.f32 %v9961_v22  ;;  %v14158_v53 = vadd.f32 %v10957_v47, %v14139_v49  ;;  %v3711_v16 = vpop.f32.mrb[43].mxu1 }
 0x85f   :  { %11942 = vpow2.f32 %v9960_v38  ;;  %v14161_v6 = vadd.f32 %v3711_v16, %v14139_v49 }
 0x860   :  { %v9963_v55 = vmul.f32 -1.442695, %v14158_v53 }
 0x861   :  { %v9962_v18 = vmul.f32 -1.442695, %v14161_v6  ;;  %v10960_v3 = vpop.f32.mrb[44].mxu1 }
 0x862   :  { %11944 = vpow2.f32 %v9963_v55  ;;  %v14166_v44 = vadd.f32 %v10960_v3, %v14139_v49  ;;  %v3721_v58 = vpop.f32.mrb[45].mxu1 }
 0x863   :  { %11946 = vpow2.f32 %v9962_v18  ;;  %v14169_v48 = vadd.f32 %v3721_v58, %v14139_v49 }
 0x864   :  { %v11937_v60 = vpop.eup %11936  ;;  %v9965_v36 = vmul.f32 -1.442695, %v14166_v44 }
 0x865   :  { %v11939_v37 = vpop.eup %11938  ;;  %v3819_v30 = vadd.f32 1.0, %v11937_v60  ;;  %v9964_v50 = vmul.f32 -1.442695, %v14169_v48  ;;  %v10963_v25 = vpop.f32.mrb[46].mxu1 }
 0x866   :  { %v3818_v28 = vadd.f32 1.0, %v11939_v37  ;;  %11948 = vpow2.f32 %v9965_v36  ;;  %v14174_v31 = vadd.f32 %v10963_v25, %v14139_v49  ;;  %v3731_v34 = vpop.f32.mrb[47].mxu1 }
 0x867   :  { %11950 = vrcp.f32 %v3819_v30  ;;  %v14177_v26 = vadd.f32 %v3731_v34, %v14139_v49 }
 0x868   :  { %v11941_v29 = vpop.eup %11940  ;;  %11952 = vrcp.f32 %v3818_v28  ;;  %v9967_v13 = vmul.f32 -1.442695, %v14174_v31 }
 0x869   :  { %v11943_v40 = vpop.eup %11942  ;;  %v3821_v57 = vadd.f32 1.0, %v11941_v29  ;;  %11954 = vpow2.f32 %v9964_v50  ;;  %v9966_v7 = vmul.f32 -1.442695, %v14177_v26  ;;  %v10966_v1 = vpop.f32.mrb[48].mxu1 }
 0x86a   :  { %v3820_v35 = vadd.f32 1.0, %v11943_v40  ;;  %11956 = vpow2.f32 %v9967_v13  ;;  %v14182_v46 = vadd.f32 %v10966_v1, %v14139_v49  ;;  %v3741_v52 = vpop.f32.mrb[49].mxu1 }
 0x86b   :  { %11958 = vrcp.f32 %v3821_v57  ;;  %v14185_v12 = vadd.f32 %v3741_v52, %v14139_v49 }
 0x86c   :  { %v11945_v51 = vpop.eup %11944  ;;  %11960 = vrcp.f32 %v3820_v35  ;;  %v9969_v19 = vmul.f32 -1.442695, %v14182_v46 }
 0x86d   :  { %v11947_v17 = vpop.eup %11946  ;;  %v3823_v15 = vadd.f32 1.0, %v11945_v51  ;;  %11962 = vpow2.f32 %v9966_v7  ;;  %v9968_v56 = vmul.f32 -1.442695, %v14185_v12  ;;  %v10969_v8 = vpop.f32.mrb[50].mxu1 }
 0x86e   :  { %v3822_v59 = vadd.f32 1.0, %v11947_v17  ;;  %11964 = vpow2.f32 %v9969_v19  ;;  %v3751_v22 = vpop.f32.mrb[51].mxu1  ;;  %v14190_v47 = vadd.f32 %v10969_v8, %v14139_v49  ;;  %v10026_v8 = vmul.f32 -1.442695, %v14087_v41 }
 0x86f   :  { %11966 = vrcp.f32 %v3823_v15  ;;  %v14200_v28 = vadd.f32 %v3751_v22, %v14139_v49 }
 0x870   :  { %v11949_v38 = vpop.eup %11948  ;;  %11968 = vrcp.f32 %v3822_v59  ;;  %v9971_v25 = vmul.f32 -1.442695, %v14190_v47 }
 0x871   :  { %v11951_v16 = vpop.eup %11950  ;;  %v3825_v55 = vadd.f32 1.0, %v11949_v38  ;;  %11970 = vpow2.f32 %v9968_v56  ;;  %v10972_v3 = vpop.f32.mrb[52].mxu1  ;;  %v9970_v1 = vmul.f32 -1.442695, %v14200_v28 }
 0x872   :  { %v11953_v18 = vpop.eup %11952  ;;  %v3761_v36 = vpop.f32.mrb[53].mxu1  ;;  %v14196_v30 = vmul.f32 %v11951_v16, %v14142_v11 }
 0x873   :  { %v11955_v58 = vpop.eup %11954  ;;  %v14193_v60 = vmul.f32 %v11953_v18, %v14145_v4  ;;  %11972 = vrcp.f32 %v3825_v55 }
 0x874   :  { %v11957_v37 = vpop.eup %11956  ;;  %v3824_v50 = vadd.f32 1.0, %v11955_v58  ;;  %v10027_v58 = vmul.f32 -1.442695, %v14090_v27 }
 0x875   :  { %v11959_v34 = vpop.eup %11958  ;;  %v3827_v29 = vadd.f32 1.0, %v11957_v37  ;;  %10981 = vmatprep.mubr.msk.f32.mxu0 %vm384_vm0, %v14193_v60 }
 0x876   :  { %v11961_v13 = vpop.eup %11960  ;;  %11974 = vrcp.f32 %v3824_v50  ;;  %10982 = vmatmul.mubr.msk.f32.vlgmr.msra.gmra.mrb[52].mxu0 %vm384_vm0, %v14196_v30  ;;  %v14211_v57 = vmul.f32 %v11959_v34, %v14150_v5 }
 0x877   :  { %v11963_v4 = vpop.eup %11962  ;;  %v14207_v11 = vmul.f32 %v11961_v13, %v14153_v62  ;;  %11484 = vmatpush3.bf16.msra.mxu0 %v13919_v0  ;;  %11976 = vpow2.f32 %v9971_v25 }
 0x878   :  { %v11965_v40 = vpop.eup %11964  ;;  %v3826_v7 = vadd.f32 1.0, %v11963_v4  ;;  %11486 = vmatprep.subr.bf16.mxu0 %v13924_v61  ;;  %11978 = vrcp.f32 %v3827_v29 }
 0x879   :  { %v11967_v35 = vpop.eup %11966  ;;  %10984 = vmatprep.mubr.msk.f32.mxu0 %vm384_vm0, %v14207_v11  ;;  %v3829_v62 = vadd.f32 1.0, %v11965_v40 }
 0x87a   :  { %v11969_v52 = vpop.eup %11968  ;;  %11980 = vrcp.f32 %v3826_v7  ;;  %10985 = vmatmul.mubr.msk.f32.gmra.mrb[54].mxu0 %vm384_vm0, %v14211_v57  ;;  %v14224_v51 = vmul.f32 %v11967_v35, %v14158_v53 }
 0x87b   :  { %v11971_v0 = vpop.eup %11970  ;;  %v14220_v5 = vmul.f32 %v11969_v52, %v14161_v6  ;;  %11488 = vmatpush3.bf16.msra.mxu0 %v13924_v61  ;;  %11982 = vpow2.f32 %v9970_v1  ;;  %v3767_v6 = vadd.f32 %v10972_v3, %v14139_v49 }
 0x87c   :  { %v3828_v19 = vadd.f32 1.0, %v11971_v0  ;;  %11984 = vrcp.f32 %v3829_v62 }
 0x87d   :  { %10987 = vmatprep.mubr.msk.f32.mxu0 %vm384_vm0, %v14220_v5  ;;  %v11973_v17 = vpop.eup %11972  ;;  %v9973_v38 = vmul.f32 -1.442695, %v3767_v6 }
 0x87e   :  { %10988 = vmatmul.mubr.msk.f32.gmra.mrb[56].mxu0 %vm384_vm0, %v14224_v51  ;;  %11986 = vrcp.f32 %v3828_v19  ;;  %v14235_v53 = vmul.f32 %v11973_v17, %v14166_v44 }
 0x87f   :  { %11988 = vpow2.f32 %v10026_v8 }
 0x880   :  { %v11975_v15 = vpop.eup %11974  ;;  %11990 = vpow2.f32 %v9973_v38  ;;  %v10032_v38 = vld [vmem:[%s16361_s7 + $0x40] sm:$0xff] }
 0x881   :  { %v14232_v56 = vmul.f32 %v11975_v15, %v14169_v48  ;;  %v11977_v61 = vpop.eup %11976  ;;  %v3762_v48 = vadd.f32 %v3761_v36, %v14139_v49 }
 0x882   :  { %v11979_v59 = vpop.eup %11978  ;;  %v3831_v18 = vadd.f32 1.0, %v11977_v61 }
 0x883   :  { %10990 = vmatprep.mubr.msk.f32.mxu0 %vm384_vm0, %v14232_v56  ;;  %v14247_v44 = vmul.f32 %v11979_v59, %v14174_v31  ;;  %v9972_v50 = vmul.f32 -1.442695, %v3762_v48  ;;  %v10007_v59 = vld [vmem:[%s16364_s10 + $0x28] sm:$0xff] }
 0x884   :  { %v11981_v22 = vpop.eup %11980  ;;  %10991 = vmatmul.mubr.msk.f32.gmra.mrb[58].mxu0 %vm384_vm0, %v14235_v53  ;;  %11992 = vrcp.f32 %v3831_v18  ;;  %v16595_v18 = vld [vmem:[#allocation41_spill] sm:$0xff] }
 0x885   :  { %v14243_v16 = vmul.f32 %v11981_v22, %v14177_v26  ;;  %v11983_v55 = vpop.eup %11982 }
 0x886   :  { %v11985_v3 = vpop.eup %11984  ;;  %v3830_v37 = vadd.f32 1.0, %v11983_v55 }
 0x887   :  { %10993 = vmatprep.mubr.msk.f32.mxu0 %vm384_vm0, %v14243_v16  ;;  %v14258_v31 = vmul.f32 %v11985_v3, %v14182_v46  ;;  %v14309_v3 = vrot.slane %v13960_v32, %v16595_v18 }
 0x888   :  { %10994 = vmatmul.mubr.msk.f32.gmra.mrb[60].mxu0 %vm384_vm0, %v14247_v44  ;;  %v11987_v26 = vpop.eup %11986  ;;  %11994 = vrcp.f32 %v3830_v37 }
 0x889   :  { %v14255_v36 = vmul.f32 %v11987_v26, %v14185_v12  ;;  %11996 = vpow2.f32 %v10027_v58  ;;  %v11989_v25 = vpop.eup %11988 }
 0x88a   :  { %11998 = vpow2.f32 %v9972_v50  ;;  %v11991_v34 = vpop.eup %11990  ;;  %v4646_v13 = vadd.f32 1.0, %v11989_v25 }
 0x88b   :  { %10996 = vmatprep.mubr.msk.f32.mxu0 %vm384_vm0, %v14255_v36  ;;  %v3833_v12 = vadd.f32 1.0, %v11991_v34 }
 0x88c   :  { %10997 = vmatmul.mubr.msk.f32.gmra.mrb[62].mxu0 %vm384_vm0, %v14258_v31  ;;  %12000 = vrcp.f32 %v4646_v13 }
 0x88d   :  { %12002 = vrcp.f32 %v3833_v12 }
 0x88e   :  { %v11993_v29 = vpop.eup %11992 }
 0x88f   :  { %v14268_v1 = vmul.f32 %v11993_v29, %v14190_v47 }
 0x892   :  { %v11995_v4 = vpop.eup %11994 }
 0x893   :  { %v11997_v40 = vpop.eup %11996  ;;  %v14265_v7 = vmul.f32 %v11995_v4, %v14200_v28 }
 0x894   :  { %v11999_v46 = vpop.eup %11998  ;;  %v4647_v52 = vadd.f32 1.0, %v11997_v40 }
 0x895   :  { %v3832_v35 = vadd.f32 1.0, %v11999_v46  ;;  %10999 = vmatprep.mubr.msk.f32.mxu0 %vm384_vm0, %v14265_v7 }
 0x896   :  { %11000 = vmatmul.mubr.msk.f32.gmra.mrb[64].mxu0 %vm384_vm0, %v14268_v1  ;;  %v12001_v62 = vpop.eup %12000 }
 0x897   :  { %12004 = vrcp.f32 %v3832_v35  ;;  %v12003_v0 = vpop.eup %12002  ;;  %v4652_v15 = vmul.f32 %v12001_v62, %v14087_v41  ;;  %v10008_v41 = vld [vmem:[%s16364_s10 + $0x30] sm:$0xff] }
 0x898   :  { %12006 = vrcp.f32 %v4647_v52  ;;  %v14276_v17 = vmul.f32 %v12003_v0, %v3767_v6  ;;  %v10006_v6 = vld [vmem:[%s16364_s10 + $0x20] sm:$0xff] }
 0x899   :  { %v11473_v8 = vpack.c.bf16 %v10007_v59, %v10006_v6 }
 0x89b   :  { %11474 = vmatprep.subr.bf16.mxu1 %v11473_v8 }
 0x89c   :  { %11476 = vmatpush3.bf16.msra.mxu1 %v11473_v8 }
 0x8a1   :  { %v12005_v28 = vpop.eup %12004 }
 0x8a2   :  { %v14274_v19 = vmul.f32 %v12005_v28, %v3762_v48  ;;  %v12007_v47 = vpop.eup %12006  ;;  %v10033_v48 = vld [vmem:[%s16361_s7 + $0x48] sm:$0xff] }
 0x8a3   :  { %v4653_v61 = vmul.f32 %v12007_v47, %v14090_v27  ;;  %v10009_v27 = vld [vmem:[%s16364_s10 + $0x38] sm:$0xff]  ;;  %v14304_v55 = vpack.c.bf16 %v10033_v48, %v10032_v38 }
 0x8a4   :  { %11002 = vmatprep.mubr.msk.f32.mxu0 %vm384_vm0, %v14274_v19  ;;  %v11477_v22 = vpack.c.bf16 %v10009_v27, %v10008_v41 }
 0x8a5   :  { %11003 = vmatmul.mubr.msk.f32.gmra.mrb[66].mxu0 %vm384_vm0, %v14276_v17 }
 0x8a6   :  { %11045 = vmatprep.mubr.msk.f32.mxu0 %vm384_vm0, %v4652_v15  ;;  %11478 = vmatprep.subr.bf16.mxu1 %v11477_v22 }
 0x8a7   :  { %11480 = vmatpush3.bf16.msra.mxu1 %v11477_v22 }
 0x8a8   :  { %11490 = vmatprep.subr.bf16.mxu1 %v14304_v55 }
 0x8a9   :  { %11046 = vmatmul.mubr.msk.f32.vlgmr.msra.gmra.mrb[68].mxu0 %vm384_vm0, %v4653_v61 }
 0x949   :  { %v10983_v58 = vpop.f32.mrb[52].mxu0 }
 0x94a   :  { %v14312_v26 = vadd.f32 %v10983_v58, %v14309_v3  ;;  %v4005_v37 = vpop.f32.mrb[53].mxu0 }
 0x94b   :  { %v14315_v50 = vadd.f32 %v4005_v37, %v14309_v3 }
 0x94c   :  { %v9991_v25 = vmul.f32 -1.442695, %v14312_v26 }
 0x94d   :  { %v9990_v34 = vmul.f32 -1.442695, %v14315_v50  ;;  %v10986_v29 = vpop.f32.mrb[54].mxu0 }
 0x94e   :  { %12008 = vpow2.f32 %v9991_v25  ;;  %v14320_v13 = vadd.f32 %v10986_v29, %v14309_v3  ;;  %v4015_v4 = vpop.f32.mrb[55].mxu0 }
 0x94f   :  { %12010 = vpow2.f32 %v9990_v34  ;;  %v14323_v32 = vadd.f32 %v4015_v4, %v14309_v3 }
 0x950   :  { %v9993_v12 = vmul.f32 -1.442695, %v14320_v13 }
 0x951   :  { %v9992_v40 = vmul.f32 -1.442695, %v14323_v32  ;;  %v10989_v46 = vpop.f32.mrb[56].mxu0 }
 0x952   :  { %12012 = vpow2.f32 %v9993_v12  ;;  %v14328_v35 = vadd.f32 %v10989_v46, %v14309_v3  ;;  %v4025_v52 = vpop.f32.mrb[57].mxu0 }
 0x953   :  { %12014 = vpow2.f32 %v9992_v40  ;;  %v14331_v62 = vadd.f32 %v4025_v52, %v14309_v3 }
 0x954   :  { %v9995_v0 = vmul.f32 -1.442695, %v14328_v35 }
 0x955   :  { %v9994_v28 = vmul.f32 -1.442695, %v14331_v62 }
 0x956   :  { %12016 = vpow2.f32 %v9995_v0 }
 0x957   :  { %12018 = vpow2.f32 %v9994_v28  ;;  %v10992_v47 = vpop.f32.mrb[58].mxu0 }
 0x958   :  { %v12009_v15 = vpop.eup %12008  ;;  %v14336_v61 = vadd.f32 %v10992_v47, %v14309_v3  ;;  %v4035_v6 = vpop.f32.mrb[59].mxu0 }
 0x959   :  { %v12011_v59 = vpop.eup %12010  ;;  %v4133_v8 = vadd.f32 1.0, %v12009_v15  ;;  %v14339_v41 = vadd.f32 %v4035_v6, %v14309_v3 }
 0x95a   :  { %v4132_v27 = vadd.f32 1.0, %v12011_v59  ;;  %v9997_v22 = vmul.f32 -1.442695, %v14336_v61 }
 0x95b   :  { %12020 = vrcp.f32 %v4133_v8  ;;  %v9996_v38 = vmul.f32 -1.442695, %v14339_v41  ;;  %v10995_v48 = vpop.f32.mrb[60].mxu0 }
 0x95c   :  { %v12013_v58 = vpop.eup %12012  ;;  %12022 = vrcp.f32 %v4132_v27  ;;  %v14344_v37 = vadd.f32 %v10995_v48, %v14309_v3  ;;  %v4045_v25 = vpop.f32.mrb[61].mxu0  ;;  %v10034_v48 = vld [vmem:[%s16361_s7 + $0x50] sm:$0xff] }
 0x95d   :  { %v12015_v34 = vpop.eup %12014  ;;  %v4135_v29 = vadd.f32 1.0, %v12013_v58  ;;  %12024 = vpow2.f32 %v9997_v22  ;;  %v14347_v4 = vadd.f32 %v4045_v25, %v14309_v3  ;;  %v10035_v58 = vld [vmem:[%s16361_s7 + $0x58] sm:$0xff] }
 0x95e   :  { %v4134_v12 = vadd.f32 1.0, %v12015_v34  ;;  %12026 = vpow2.f32 %v9996_v38  ;;  %v9999_v40 = vmul.f32 -1.442695, %v14344_v37 }
 0x95f   :  { %12028 = vrcp.f32 %v4135_v29  ;;  %v9998_v46 = vmul.f32 -1.442695, %v14347_v4  ;;  %v10998_v0 = vpop.f32.mrb[62].mxu0 }
 0x960   :  { %v12017_v52 = vpop.eup %12016  ;;  %12030 = vrcp.f32 %v4134_v12  ;;  %v14352_v15 = vadd.f32 %v10998_v0, %v14309_v3  ;;  %v4055_v6 = vpop.f32.mrb[63].mxu0 }
 0x961   :  { %v12019_v28 = vpop.eup %12018  ;;  %v4137_v47 = vadd.f32 1.0, %v12017_v52  ;;  %12032 = vpow2.f32 %v9999_v40  ;;  %v14355_v8 = vadd.f32 %v4055_v6, %v14309_v3  ;;  %v11493_v52 = vpack.c.bf16 %v10035_v58, %v10034_v48  ;;  %v10037_v6 = vld [vmem:[%s16361_s7 + $0x68] sm:$0xff] }
 0x962   :  { %v4136_v59 = vadd.f32 1.0, %v12019_v28  ;;  %12034 = vpow2.f32 %v9998_v46  ;;  %v10001_v27 = vmul.f32 -1.442695, %v14352_v15 }
 0x963   :  { %12036 = vrcp.f32 %v4137_v47  ;;  %v10000_v22 = vmul.f32 -1.442695, %v14355_v8  ;;  %v10036_v47 = vld [vmem:[%s16361_s7 + $0x60] sm:$0xff] }
 0x964   :  { %12038 = vrcp.f32 %v4136_v59  ;;  %v11497_v58 = vpack.c.bf16 %v10037_v6, %v10036_v47 }
 0x965   :  { %v12021_v38 = vpop.eup %12020  ;;  %12040 = vpow2.f32 %v10001_v27 }
 0x966   :  { %v12023_v25 = vpop.eup %12022  ;;  %12042 = vpow2.f32 %v10000_v22  ;;  %v4181_v40 = vmul.f32 %v12021_v38, %v14312_v26 }
 0x967   :  { %v12025_v34 = vpop.eup %12024  ;;  %v4180_v29 = vmul.f32 %v12023_v25, %v14315_v50 }
 0x968   :  { %v12027_v12 = vpop.eup %12026  ;;  %v4139_v46 = vadd.f32 1.0, %v12025_v34 }
 0x969   :  { %v12029_v0 = vpop.eup %12028  ;;  %v4138_v28 = vadd.f32 1.0, %v12027_v12  ;;  %11013 = vmatprep.mubr.msk.f32.mxu1 %vm384_vm0, %v4180_v29  ;;  %v11001_v48 = vpop.f32.mrb[64].mxu0 }
 0x96a   :  { %v12031_v59 = vpop.eup %12030  ;;  %12044 = vrcp.f32 %v4139_v46  ;;  %11014 = vmatmul.mubr.msk.f32.vlgmr.msra.gmra.mrb[54].mxu1 %vm384_vm0, %v4181_v40  ;;  %v4183_v22 = vmul.f32 %v12029_v0, %v14320_v13  ;;  %v14379_v29 = vadd.f32 %v11001_v48, %v14309_v3  ;;  %v4065_v12 = vpop.f32.mrb[65].mxu0 }
 0x96b   :  { %v12033_v50 = vpop.eup %12032  ;;  %v4182_v26 = vmul.f32 %v12031_v59, %v14323_v32  ;;  %12046 = vrcp.f32 %v4138_v28  ;;  %11492 = vmatpush3.bf16.msra.mxu1 %v14304_v55  ;;  %v10038_v32 = vld [vmem:[%s16361_s7 + $0x70] sm:$0xff]  ;;  %v10039_v55 = vld [vmem:[%s16361_s7 + $0x78] sm:$0xff]  ;;  %v14389_v40 = vadd.f32 %v4065_v12, %v14309_v3 }
 0x96c   :  { %v12035_v27 = vpop.eup %12034  ;;  %v4141_v38 = vadd.f32 1.0, %v12033_v50  ;;  %11494 = vmatprep.subr.bf16.mxu1 %v11493_v52  ;;  %v10003_v28 = vmul.f32 -1.442695, %v14379_v29 }
 0x96d   :  { %v12037_v25 = vpop.eup %12036  ;;  %v4140_v34 = vadd.f32 1.0, %v12035_v27  ;;  %11016 = vmatprep.mubr.msk.f32.mxu1 %vm384_vm0, %v4182_v26  ;;  %v10002_v50 = vmul.f32 -1.442695, %v14389_v40  ;;  %v11501_v26 = vpack.c.bf16 %v10039_v55, %v10038_v32 }
 0x96e   :  { %v12039_v13 = vpop.eup %12038  ;;  %12048 = vrcp.f32 %v4141_v38  ;;  %11017 = vmatmul.mubr.msk.f32.gmra.mrb[56].mxu1 %vm384_vm0, %v4183_v22  ;;  %v4185_v6 = vmul.f32 %v12037_v25, %v14328_v35  ;;  %v4756_v22 = vsel %vm384_vm0, %v14196_v30, 0.0  ;;  %v4749_v38 = vsel %vm384_vm0, %v14193_v60, 0.0 }
 0x96f   :  { %v12041_v46 = vpop.eup %12040  ;;  %v4184_v0 = vmul.f32 %v12039_v13, %v14331_v62  ;;  %12050 = vrcp.f32 %v4140_v34  ;;  %11496 = vmatpush3.bf16.msra.mxu1 %v11493_v52  ;;  %v4757_v52 = vrot.slane %v4756_v22, 4  ;;  %v4770_v25 = vsel %vm384_vm0, %v14211_v57, 0.0 }
 0x970   :  { %v12043_v47 = vpop.eup %12042  ;;  %v4143_v59 = vadd.f32 1.0, %v12041_v46  ;;  %11498 = vmatprep.subr.bf16.mxu1 %v11497_v58  ;;  %12052 = vpow2.f32 %v10003_v28  ;;  %v4763_v30 = vsel %vm384_vm0, %v14207_v11, 0.0  ;;  %v4750_v55 = vrot.slane %v4749_v38, 4 }
 0x971   :  { %v4142_v27 = vadd.f32 1.0, %v12043_v47  ;;  %11019 = vmatprep.mubr.msk.f32.mxu1 %vm384_vm0, %v4184_v0  ;;  %v4758_v32 = vadd.f32 %v4757_v52, %v4756_v22  ;;  %v4771_v60 = vrot.slane %v4770_v25, 4  ;;  %v4764_v13 = vrot.slane %v4763_v30, 4 }
 0x972   :  { %12054 = vrcp.f32 %v4143_v59  ;;  %11020 = vmatmul.mubr.msk.f32.gmra.mrb[58].mxu1 %vm384_vm0, %v4185_v6 }
 0x973   :  { %12056 = vrcp.f32 %v4142_v27  ;;  %11500 = vmatpush3.bf16.msra.mxu1 %v11497_v58  ;;  %v4759_v59 = vrot.slane %v4758_v32, 2  ;;  %v4772_v27 = vadd.f32 %v4771_v60, %v4770_v25  ;;  %v4765_v22 = vadd.f32 %v4764_v13, %v4763_v30 }
 0x974   :  { %v12045_v62 = vpop.eup %12044  ;;  %12058 = vpow2.f32 %v10002_v50  ;;  %11502 = vmatprep.subr.bf16.mxu1 %v11501_v26  ;;  %v4751_v50 = vadd.f32 %v4750_v55, %v4749_v38  ;;  %v4798_v13 = vsel %vm384_vm0, %v14235_v53, 0.0  ;;  %v4819_v53 = vsel %vm384_vm0, %v14255_v36, 0.0 }
 0x975   :  { %v12047_v35 = vpop.eup %12046  ;;  %v4187_v34 = vmul.f32 %v12045_v62, %v14336_v61  ;;  %v4766_v55 = vrot.slane %v4765_v22, 2  ;;  %v4820_v36 = vrot.slane %v4819_v53, 4 }
 0x976   :  { %v4186_v48 = vmul.f32 %v12047_v35, %v14339_v41  ;;  %v4752_v30 = vrot.slane %v4751_v50, 2 }
 0x977   :  { %11504 = vmatpush3.bf16.msra.mxu1 %v11501_v26  ;;  %v4784_v26 = vsel %vm384_vm0, %v14224_v51, 0.0 }
 0x978   :  { %v12049_v58 = vpop.eup %12048  ;;  %11022 = vmatprep.mubr.msk.f32.mxu1 %vm384_vm0, %v4186_v48  ;;  %v11004_v0 = vpop.f32.mrb[66].mxu0  ;;  %v4785_v51 = vrot.slane %v4784_v26, 4 }
 0x979   :  { %v12051_v12 = vpop.eup %12050  ;;  %11023 = vmatmul.mubr.msk.f32.gmra.mrb[60].mxu1 %vm384_vm0, %v4187_v34  ;;  %v4189_v57 = vmul.f32 %v12049_v58, %v14344_v37  ;;  %v14413_v61 = vadd.f32 %v11004_v0, %v14309_v3  ;;  %v4075_v47 = vpop.f32.mrb[67].mxu0  ;;  %v4826_v0 = vsel %vm384_vm0, %v14258_v31, 0.0 }
 0x97a   :  { %v4188_v41 = vmul.f32 %v12051_v12, %v14347_v4  ;;  %v12053_v46 = vpop.eup %12052  ;;  %v14419_v4 = vadd.f32 %v4075_v47, %v14309_v3  ;;  %v4777_v3 = vsel %vm384_vm0, %v14220_v5, 0.0  ;;  %v4773_v12 = vrot.slane %v4772_v27, 2 }
 0x97b   :  { %v4145_v28 = vadd.f32 1.0, %v12053_v46  ;;  %v10005_v35 = vmul.f32 -1.442695, %v14413_v61  ;;  %v4778_v60 = vrot.slane %v4777_v3, 4  ;;  %v14444_v46 = vadd.f32 %v4785_v51, %v4784_v26 }
 0x97c   :  { %v12055_v11 = vpop.eup %12054  ;;  %11025 = vmatprep.mubr.msk.f32.mxu1 %vm384_vm0, %v4188_v41  ;;  %v10004_v38 = vmul.f32 -1.442695, %v14419_v4  ;;  %v11047_v34 = vpop.f32.mrb[68].mxu0  ;;  %v4833_v47 = vsel %vm384_vm0, %v14265_v7, 0.0  ;;  %v4827_v26 = vrot.slane %v4826_v0, 4 }
 0x97d   :  { %v12057_v6 = vpop.eup %12056  ;;  %11026 = vmatmul.mubr.msk.f32.gmra.mrb[62].mxu1 %vm384_vm0, %v4189_v57  ;;  %v4191_v52 = vmul.f32 %v12055_v11, %v14352_v15  ;;  %12060 = vrcp.f32 %v4145_v28  ;;  %v14429_v58 = vadd.f32 %v11047_v34, %v14139_v49  ;;  %v4726_v25 = vpop.f32.mrb[69].mxu0  ;;  %v4805_v57 = vsel %vm384_vm0, %v14243_v16, 0.0 }
 0x97e   :  { %v12059_v37 = vpop.eup %12058  ;;  %v4190_v62 = vmul.f32 %v12057_v6, %v14355_v8  ;;  %12062 = vpow2.f32 %v10005_v35  ;;  %v14432_v8 = vadd.f32 %v4759_v59, %v4758_v32  ;;  %v14435_v15 = vadd.f32 %v4726_v25, %v14139_v49 }
 0x97f   :  { %v4144_v48 = vadd.f32 1.0, %v12059_v37  ;;  %v10031_v5 = vmul.f32 -1.442695, %v14429_v58  ;;  %v4791_v32 = vsel %vm384_vm0, %v14232_v56, 0.0  ;;  %v4812_v49 = vsel %vm384_vm0, %v14247_v44, 0.0 }
 0x980   :  { %11028 = vmatprep.mubr.msk.f32.mxu1 %vm384_vm0, %v4190_v62  ;;  %v10030_v41 = vmul.f32 -1.442695, %v14435_v15  ;;  %v4840_v56 = vsel %vm384_vm0, %v14268_v1, 0.0  ;;  %v4799_v11 = vrot.slane %v4798_v13, 4  ;;  %v4792_v28 = vrot.slane %v4791_v32, 4 }
 0x981   :  { %12064 = vrcp.f32 %v4144_v48  ;;  %11029 = vmatmul.mubr.msk.f32.gmra.mrb[64].mxu1 %vm384_vm0, %v4191_v52  ;;  %v4854_v44 = vsel %vm384_vm0, %v14276_v17, 0.0  ;;  %v14460_v16 = vadd.f32 %v4752_v30, %v4751_v50  ;;  %v4813_v6 = vrot.slane %v4812_v49, 4 }
 0x982   :  { %12066 = vpow2.f32 %v10004_v38  ;;  %v4806_v59 = vrot.slane %v4805_v57, 4  ;;  %v4841_v37 = vrot.slane %v4840_v56, 4  ;;  %v14463_v1 = vadd.f32 %v4773_v12, %v4772_v27 }
 0x983   :  { %12068 = vpow2.f32 %v10031_v5  ;;  %v14465_v35 = vadd.f32 %v4766_v55, %v4765_v22  ;;  %v4834_v52 = vrot.slane %v4833_v47, 4  ;;  %v4855_v48 = vrot.slane %v4854_v44, 4 }
 0x984   :  { %12070 = vpow2.f32 %v10030_v41  ;;  %v4787_v38 = vrot.slane %v14444_v46, 2  ;;  %v4779_v17 = vadd.f32 %v4778_v60, %v4777_v3  ;;  %v4800_v50 = vadd.f32 %v4799_v11, %v4798_v13 }
 0x985   :  { %v4793_v34 = vadd.f32 %v4792_v28, %v4791_v32  ;;  %v4814_v25 = vadd.f32 %v4813_v6, %v4812_v49  ;;  %v4807_v30 = vadd.f32 %v4806_v59, %v4805_v57  ;;  %v4847_v5 = vsel %vm384_vm0, %v14274_v19, 0.0 }
 0x986   :  { %v4828_v27 = vadd.f32 %v4827_v26, %v4826_v0  ;;  %v4821_v12 = vadd.f32 %v4820_v36, %v4819_v53  ;;  %v4842_v22 = vadd.f32 %v4841_v37, %v4840_v56  ;;  %v4835_v18 = vadd.f32 %v4834_v52, %v4833_v47 }
 0x987   :  { %v12061_v62 = vpop.eup %12060  ;;  %v4856_v24 = vadd.f32 %v4855_v48, %v4854_v44  ;;  %v4780_v13 = vrot.slane %v4779_v17, 2  ;;  %v4801_v32 = vrot.slane %v4800_v50, 2  ;;  %v4848_v49 = vrot.slane %v4847_v5, 4 }
 0x988   :  { %v12063_v7 = vpop.eup %12062  ;;  %v4193_v14 = vmul.f32 %v12061_v62, %v14379_v29  ;;  %v4794_v57 = vrot.slane %v4793_v34, 2  ;;  %v4815_v11 = vrot.slane %v4814_v25, 2  ;;  %v4829_v53 = vrot.slane %v4828_v27, 2 }
 0x989   :  { %v4147_v41 = vadd.f32 1.0, %v12063_v7  ;;  %v4822_v56 = vrot.slane %v4821_v12, 2  ;;  %v4843_v29 = vrot.slane %v4842_v22, 2  ;;  %v4836_v47 = vrot.slane %v4835_v18, 2 }
 0x98a   :  { %v4857_v44 = vrot.slane %v4856_v24, 2  ;;  %v4788_v6 = vadd.f32 %v4787_v38, %v14444_v46  ;;  %v4781_v59 = vadd.f32 %v4780_v13, %v4779_v17  ;;  %v4754_v26 = vrot.slane %v14460_v16, 1 }
 0x98b   :  { %v12065_v51 = vpop.eup %12064  ;;  %12072 = vrcp.f32 %v4147_v41  ;;  %v4802_v36 = vadd.f32 %v4801_v32, %v4800_v50  ;;  %v4795_v37 = vadd.f32 %v4794_v57, %v4793_v34  ;;  %v4816_v62 = vadd.f32 %v4815_v11, %v4814_v25 }
 0x98c   :  { %v12067_v31 = vpop.eup %12066  ;;  %v4192_v55 = vmul.f32 %v12065_v51, %v14389_v40  ;;  %v4808_v40 = vrot.slane %v4807_v30, 2  ;;  %v4830_v48 = vadd.f32 %v4829_v53, %v4828_v27  ;;  %v4823_v7 = vadd.f32 %v4822_v56, %v4821_v12 }
 0x98d   :  { %v4146_v3 = vadd.f32 1.0, %v12067_v31  ;;  %v12069_v60 = vpop.eup %12068  ;;  %v4849_v31 = vadd.f32 %v4848_v49, %v4847_v5  ;;  %v4768_v51 = vrot.slane %v14465_v35, 1  ;;  %v4844_v41 = vadd.f32 %v4843_v29, %v4842_v22 }
 0x98e   :  { %11031 = vmatprep.mubr.msk.f32.mxu1 %vm384_vm0, %v4192_v55  ;;  %v12071_v19 = vpop.eup %12070  ;;  %v4742_v0 = vadd.f32 1.0, %v12069_v60  ;;  %v4809_v52 = vadd.f32 %v4808_v40, %v4807_v30  ;;  %v4837_v55 = vadd.f32 %v4836_v47, %v4835_v18  ;;  %v16596_v46 = vrot.slane %v14432_v8, 1 }
 0x98f   :  { %12074 = vrcp.f32 %v4146_v3  ;;  %11032 = vmatmul.mubr.msk.f32.gmra.mrb[66].mxu1 %vm384_vm0, %v4193_v14  ;;  %v4741_v28 = vadd.f32 1.0, %v12071_v19  ;;  %v4775_v14 = vrot.slane %v14463_v1, 1  ;;  %v4858_v3 = vadd.f32 %v4857_v44, %v4856_v24 }
 0x990   :  { %12076 = vrcp.f32 %v4742_v0  ;;  %v4762_v38 = vadd.f32 %v16596_v46, %v14432_v8  ;;  %v4789_v17 = vrot.slane %v4788_v6, 1  ;;  %v4782_v5 = vrot.slane %v4781_v59, 1 }
 0x991   :  { %12078 = vrcp.f32 %v4741_v28  ;;  %v4850_v60 = vrot.slane %v4849_v31, 2  ;;  %v14482_v50 = vadd.f32 %v4754_v26, %v14460_v16  ;;  %v4803_v34 = vrot.slane %v4802_v36, 1 }
 0x992   :  { %v4796_v25 = vrot.slane %v4795_v37, 1  ;;  %v4817_v30 = vrot.slane %v4816_v62, 1  ;;  %v4776_v12 = vadd.f32 %v4775_v14, %v14463_v1  ;;  %v4810_v13 = vrot.slane %v4809_v52, 1 }
 0x993   :  { %v4831_v22 = vrot.slane %v4830_v48, 1  ;;  %v4824_v18 = vrot.slane %v4823_v7, 1  ;;  %v4769_v32 = vadd.f32 %v4768_v51, %v14465_v35  ;;  %v4845_v49 = vrot.slane %v4844_v41, 1 }
 0x994   :  { %v4838_v8 = vrot.slane %v4837_v55, 1  ;;  %v4859_v19 = vrot.slane %v4858_v3, 1  ;;  %v4790_v57 = vadd.f32 %v4789_v17, %v4788_v6  ;;  %v4783_v11 = vadd.f32 %v4782_v5, %v4781_v59 }
 0x995   :  { %v12073_v27 = vpop.eup %12072  ;;  %v4851_v0 = vadd.f32 %v4850_v60, %v4849_v31  ;;  %v4797_v53 = vadd.f32 %v4796_v25, %v4795_v37  ;;  %v4818_v56 = vadd.f32 %v4817_v30, %v4816_v62  ;;  %v4804_v1 = vadd.f32 %v4803_v34, %v4802_v36 }
 0x996   :  { %v4195_v28 = vmul.f32 %v12073_v27, %v14413_v61  ;;  %v4811_v47 = vadd.f32 %v4810_v13, %v4809_v52  ;;  %v4832_v44 = vadd.f32 %v4831_v22, %v4830_v48  ;;  %v4825_v26 = vadd.f32 %v4824_v18, %v4823_v7 }
 0x997   :  { %v4846_v14 = vadd.f32 %v4845_v49, %v4844_v41  ;;  %v4839_v6 = vadd.f32 %v4838_v8, %v4837_v55  ;;  %v4852_v31 = vrot.slane %v4851_v0, 1 }
 0x999   :  { %v12075_v24 = vpop.eup %12074  ;;  %v4853_v30 = vadd.f32 %v4852_v31, %v4851_v0 }
 0x99a   :  { %v4194_v16 = vmul.f32 %v12075_v24, %v14419_v4  ;;  %v12077_v40 = vpop.eup %12076  ;;  %v4860_v4 = vadd.f32 %v4859_v19, %v4858_v3 }
 0x99b   :  { %v12079_v29 = vpop.eup %12078  ;;  %v4748_v35 = vmul.f32 %v12077_v40, %v14429_v58 }
 0x99c   :  { %11034 = vmatprep.mubr.msk.f32.mxu1 %vm384_vm0, %v4194_v16  ;;  %v4747_v59 = vmul.f32 %v12079_v29, %v14435_v15 }
 0x99d   :  { %11035 = vmatmul.mubr.msk.f32.gmra.mrb[68].mxu1 %vm384_vm0, %v4195_v28  ;;  %v4870_v37 = vrot.slane %v4748_v35, 1  ;;  %v4871_v62 = vrot.slane %v4748_v35, 2  ;;  %v4872_v61 = vrot.slane %v4748_v35, 3  ;;  %v4873_v25 = vrot.slane %v4748_v35, 4 }
 0x99e   :  { %v4863_v36 = vrot.slane %v4747_v59, 1  ;;  %v4864_v51 = vrot.slane %v4747_v59, 2  ;;  %v4865_v52 = vrot.slane %v4747_v59, 3  ;;  %v4866_v48 = vrot.slane %v4747_v59, 4 }
 0x99f   :  { %v4867_v7 = vrot.slane %v4747_v59, 5  ;;  %v4868_v46 = vrot.slane %v4747_v59, 6  ;;  %v4869_v58 = vrot.slane %v4747_v59, 7  ;;  %v4893_v17 = vsub.f32 %v14482_v50, %v4747_v59 }
 0x9a0   :  { %v4894_v41 = vsub.f32 %v4762_v38, %v4863_v36  ;;  %v4895_v55 = vsub.f32 %v4769_v32, %v4864_v51  ;;  %v4896_v5 = vsub.f32 %v4776_v12, %v4865_v52  ;;  %v4897_v15 = vsub.f32 %v4783_v11, %v4866_v48 }
 0x9a1   :  { %v4898_v60 = vsub.f32 %v4790_v57, %v4867_v7  ;;  %v4899_v34 = vsub.f32 %v4797_v53, %v4868_v46  ;;  %v4900_v3 = vsub.f32 %v4804_v1, %v4869_v58  ;;  %v4874_v22 = vrot.slane %v4748_v35, 5 }
 0x9a2   :  { %v4925_v27 = vrot.slane %v4894_v41, 7  ;;  %v4927_v13 = vrot.slane %v4895_v55, 6  ;;  %v4929_v18 = vrot.slane %v4896_v5, 5  ;;  %v4931_v24 = vrot.slane %v4897_v15, 4 }
 0x9a3   :  { %v4933_v49 = vrot.slane %v4898_v60, 3  ;;  %v4875_v8 = vrot.slane %v4748_v35, 6  ;;  %v4876_v16 = vrot.slane %v4748_v35, 7  ;;  %v4901_v50 = vsub.f32 %v4811_v47, %v4748_v35 }
 0x9a4   :  { %v4926_v19 = vsel %vm2058_vm4, %v4925_v27, %v4893_v17  ;;  %v4902_v38 = vsub.f32 %v4818_v56, %v4870_v37  ;;  %v4903_v32 = vsub.f32 %v4825_v26, %v4871_v62  ;;  %v4904_v57 = vsub.f32 %v4832_v44, %v4872_v61 }
 0x9a5   :  { %v4928_v12 = vsel %vm2060_vm5, %v4927_v13, %v4926_v19  ;;  %v4905_v11 = vsub.f32 %v4839_v6, %v4873_v25  ;;  %v4906_v0 = vsub.f32 %v4846_v14, %v4874_v22  ;;  %v4907_v53 = vsub.f32 %v4853_v30, %v4875_v8 }
 0x9a6   :  { %v4930_v40 = vsel %vm2062_vm6, %v4929_v18, %v4928_v12  ;;  %v4908_v28 = vsub.f32 %v4860_v4, %v4876_v16  ;;  %v4935_v29 = vrot.slane %v4899_v34, 2  ;;  %v4939_v59 = vrot.slane %v4902_v38, 7  ;;  %v10044_v16 = vld [vmem:[%s16362_s8 + $0x20] sm:$0xff]  ;;  %v10046_v38 = vld [vmem:[%s16362_s8 + $0x30] sm:$0xff] }
 0x9a7   :  { %v4932_v1 = vsel %vm2064_vm7, %v4931_v24, %v4930_v40  ;;  %v4941_v31 = vrot.slane %v4903_v32, 6  ;;  %v4937_v51 = vrot.slane %v4900_v3, 1  ;;  %v4943_v26 = vrot.slane %v4904_v57, 5  ;;  %v10047_v32 = vld [vmem:[%s16362_s8 + $0x38] sm:$0xff] }
 0x9a8   :  { %v4934_v36 = vsel %vm2066_vm8, %v4933_v49, %v4932_v1  ;;  %v4940_v47 = vsel %vm2058_vm4, %v4939_v59, %v4901_v50  ;;  %v4945_v14 = vrot.slane %v4905_v11, 4  ;;  %v4947_v4 = vrot.slane %v4906_v0, 3  ;;  %v10045_v50 = vld [vmem:[%s16362_s8 + $0x28] sm:$0xff] }
 0x9a9   :  { %v4936_v56 = vsel %vm2068_vm9, %v4935_v29, %v4934_v36  ;;  %v4942_v35 = vsel %vm2060_vm5, %v4941_v31, %v4940_v47  ;;  %v4949_v62 = vrot.slane %v4907_v53, 2  ;;  %v4951_v52 = vrot.slane %v4908_v28, 1 }
 0x9aa   :  { %v4938_v44 = vsel %vm2070_vm10, %v4937_v51, %v4936_v56  ;;  %v4944_v6 = vsel %vm2062_vm6, %v4943_v26, %v4942_v35  ;;  %v11505_v12 = vpack.c.bf16 %v10045_v50, %v10044_v16  ;;  %v11509_v57 = vpack.c.bf16 %v10047_v32, %v10046_v38  ;;  %v16597_v51 = vld [vmem:[#allocation10_spill] sm:$0xff] }
 0x9ab   :  { %4953 = vrot.lane.b32.xlu1 %v4938_v44, %s12628_s27  ;;  %v4946_v37 = vsel %vm2064_vm7, %v4945_v14, %v4944_v6  ;;  %v2870_v11 = vadd.f32 1e-08, %v13773_v42  ;;  %v2869_v40 = vadd.f32 1e-08, %v13767_v39  ;;  %v2872_v0 = vadd.f32 1e-08, %v13787_v54 }
 0x9ac   :  { %v4948_v61 = vsel %vm2066_vm8, %v4947_v4, %v4946_v37  ;;  %11506 = vmatprep.subr.bf16.mxu0 %v11505_v12  ;;  %v2871_v53 = vadd.f32 1e-08, %v13779_v9  ;;  %v2874_v28 = vadd.f32 1e-08, %v13799_v63  ;;  %v2873_v1 = vadd.f32 1e-08, %v13781_v10 }
 0x9ad   :  { %v4950_v48 = vsel %vm2068_vm9, %v4949_v62, %v4948_v61  ;;  %11508 = vmatpush3.bf16.msra.mxu0 %v11505_v12  ;;  %12080 = vrsqrt.f32 %v2870_v11  ;;  %v2876_v59 = vadd.f32 1e-08, %v13809_v43  ;;  %v2875_v39 = vadd.f32 1e-08, %v13796_v2  ;;  %v16598_v43 = vld [vmem:[#allocation44_spill] sm:$0xff]  ;;  %v16599_v2 = vld [vmem:[#allocation45_spill] sm:$0xff] }
 0x9ae   :  { %v4952_v7 = vsel %vm2070_vm10, %v4951_v52, %v4950_v48  ;;  %11510 = vmatprep.subr.bf16.mxu0 %v11509_v57  ;;  %12082 = vrsqrt.f32 %v2869_v40  ;;  %v2877_v31 = vadd.f32 1e-08, %v13815_v33  ;;  %v2878_v54 = vadd.f32 1e-08, %v13821_v20  ;;  %v16600_v14 = vld [vmem:[#allocation15_spill] sm:$0xff]  ;;  %v16601_v61 = vld [vmem:[#allocation13_spill] sm:$0xff] }
 0x9af   :  { %4955 = vrot.lane.b32.xlu1 %v4952_v7, %s12628_s27  ;;  %12084 = vrsqrt.f32 %v2872_v0  ;;  %v2879_v44 = vadd.f32 1e-08, %v16598_v43  ;;  %v2880_v33 = vadd.f32 1e-08, %v16599_v2  ;;  %v16604_v12 = vld [vmem:[#allocation46_spill] sm:$0xff] }
 0x9b0   :  { %12086 = vrsqrt.f32 %v2871_v53  ;;  %v2881_v32 = vadd.f32 1e-08, %v16604_v12  ;;  %v16605_v53 = vld [vmem:[#allocation47_spill] sm:$0xff]  ;;  %v16607_v43 = vld [vmem:[#allocation14_spill] sm:$0xff] }
 0x9b1   :  { %11512 = vmatpush3.bf16.msra.mxu0 %v11509_v57  ;;  %12088 = vrsqrt.f32 %v2874_v28  ;;  %v2882_v28 = vadd.f32 1e-08, %v16605_v53 }
 0x9b2   :  { %12090 = vrsqrt.f32 %v2873_v1 }
 0x9b3   :  { %12092 = vrsqrt.f32 %v2876_v59 }
 0x9b4   :  { %12094 = vrsqrt.f32 %v2875_v39 }
 0x9b5   :  { %12096 = vrsqrt.f32 %v2877_v31 }
 0x9b6   :  { %12098 = vrsqrt.f32 %v2878_v54  ;;  %v16606_v54 = vld [vmem:[#allocation17_spill] sm:$0xff] }
 0x9b7   :  { %v12081_v29 = vpop.eup %12080  ;;  %12100 = vrsqrt.f32 %v2879_v44 }
 0x9b8   :  { %v12083_v42 = vpop.eup %12082  ;;  %v2902_v9 = vmul.f32 %v12081_v29, %v13610_v45  ;;  %12102 = vrsqrt.f32 %v2880_v33 }
 0x9b9   :  { %v12085_v36 = vpop.eup %12084  ;;  %v2901_v10 = vmul.f32 %v12083_v42, %v16597_v51  ;;  %12104 = vrsqrt.f32 %v2881_v32 }
 0x9ba   :  { %v12087_v56 = vpop.eup %12086  ;;  %v2904_v45 = vmul.f32 %v12085_v36, %v16600_v14  ;;  %12106 = vrsqrt.f32 %v2882_v28 }
 0x9bb   :  { %v12089_v6 = vpop.eup %12088  ;;  %v2903_v52 = vmul.f32 %v12087_v56, %v16601_v61 }
 0x9bc   :  { %v12091_v48 = vpop.eup %12090 }
 0xa1d   :  { %v4954_v46 = vpop.permute.xlu1 %4953 }
 0xa1e   :  { %v4959_v58 = vsel %vm384_vm0, %v13869_v23, %v4954_v46 }
 0xa1f   :  { %11064 = vmatprep.mubr.msk.f32.mxu1 %vm2420_vm11, %v4959_v58 }
 0xa21   :  { %v4956_v17 = vpop.permute.xlu1 %4955 }
 0xa22   :  { %v4960_v41 = vsel %vm384_vm0, %v13872_v21, %v4956_v17 }
 0xa23   :  { %11065 = vmatmul.mubr.msk.f32.vlgmr.msra.gmra.mrb[70].mxu1 %vm2420_vm11, %v4960_v41 }
 0xa3d   :  { %v11015_v55 = vpop.f32.mrb[54].mxu1 }
 0xa3e   :  { %4401 = vperm.xlu0 %11621, %v11015_v55   ;;  %v4315_v5 = vpop.f32.mrb[55].mxu1 }
 0xa3f   :  { %4396 = vperm.xlu1 %11620, %v4315_v5  }
 0xa41   :  { %v11018_v15 = vpop.f32.mrb[56].mxu1 }
 0xa42   :  { %4411 = vperm.xlu0 %11621, %v11018_v15   ;;  %v4325_v60 = vpop.f32.mrb[57].mxu1  ;;  %v16602_v15 = vld [vmem:[#allocation16_spill] sm:$0xff] }
 0xa43   :  { %4406 = vperm.xlu1 %11620, %v4325_v60   ;;  %v2906_v60 = vmul.f32 %v12089_v6, %v16602_v15 }
 0xa45   :  { %v11021_v34 = vpop.f32.mrb[58].mxu1 }
 0xa46   :  { %4421 = vperm.xlu0 %11621, %v11021_v34   ;;  %v4335_v3 = vpop.f32.mrb[59].mxu1 }
 0xa47   :  { %4416 = vperm.xlu1 %11620, %v4335_v3  }
 0xa4c   :  { %v11024_v25 = vpop.f32.mrb[60].mxu1 }
 0xa4d   :  { %4431 = vperm.xlu0 %11621, %v11024_v25   ;;  %v4345_v30 = vpop.f32.mrb[61].mxu1 }
 0xa4e   :  { %4426 = vperm.xlu1 %11620, %v4345_v30  }
 0xa50   :  { %v11027_v27 = vpop.f32.mrb[62].mxu1 }
 0xa51   :  { %4441 = vperm.xlu0 %11621, %v11027_v27   ;;  %v4355_v13 = vpop.f32.mrb[63].mxu1  ;;  %v16603_v27 = vld [vmem:[#allocation11_spill] sm:$0xff] }
 0xa52   :  { %4436 = vperm.xlu1 %11620, %v4355_v13   ;;  %v2905_v13 = vmul.f32 %v12091_v48, %v16603_v27  ;;  %v16611_v27 = vld [vmem:[#allocation20_spill] sm:$0xff] }
 0xa54   :  { %v11030_v22 = vpop.f32.mrb[64].mxu1 }
 0xa55   :  { %4451 = vperm.xlu0 %11621, %v11030_v22   ;;  %v4365_v18 = vpop.f32.mrb[65].mxu1 }
 0xa56   :  { %4446 = vperm.xlu1 %11620, %v4365_v18  }
 0xa62   :  { %v11033_v24 = vpop.f32.mrb[66].mxu1 }
 0xa63   :  { %4461 = vperm.xlu0 %11621, %v11033_v24   ;;  %v4375_v49 = vpop.f32.mrb[67].mxu1 }
 0xa64   :  { %4456 = vperm.xlu1 %11620, %v4375_v49  }
 0xa70   :  { %v11036_v8 = vpop.f32.mrb[68].mxu1 }
 0xa71   :  { %4471 = vperm.xlu0 %11621, %v11036_v8   ;;  %v4385_v19 = vpop.f32.mrb[69].mxu1  ;;  %v12093_v8 = vpop.eup %12092 }
 0xa72   :  { %4466 = vperm.xlu1 %11620, %v4385_v19   ;;  %v12095_v38 = vpop.eup %12094 }
 0xa73   :  { %v12097_v0 = vpop.eup %12096  ;;  %v2907_v44 = vmul.f32 %v12095_v38, %v16607_v43 }
 0xa74   :  { %v12099_v42 = vpop.eup %12098 }
 0xabd   :  { %v4402_v63 = vpop.permute.xlu0 %4401 }
 0xabe   :  { %v4475_v47 = vmul.f32 %v4402_v63, %v2902_v9  ;;  %v4397_v26 = vpop.permute.xlu1 %4396  ;;  %v2908_v9 = vmul.f32 %v12093_v8, %v16606_v54 }
 0xabf   :  { %v4474_v35 = vmul.f32 %v4397_v26, %v2901_v10 }
 0xac0   :  { %v4497_v20 = vsel %vm282_vm1, %v4475_v47, 0.0 }
 0xac1   :  { %v4498_v4 = vrot.slane %v4497_v20, 4  ;;  %v4490_v37 = vsel %vm282_vm1, %v4474_v35, 0.0  ;;  %v4412_v62 = vpop.permute.xlu0 %4411  ;;  %v12101_v35 = vpop.eup %12100 }
 0xac2   :  { %v4491_v7 = vrot.slane %v4490_v37, 4  ;;  %v4477_v46 = vmul.f32 %v4412_v62, %v2904_v45  ;;  %v4407_v58 = vpop.permute.xlu1 %4406  ;;  %v16609_v45 = vld [vmem:[#allocation18_spill] sm:$0xff] }
 0xac3   :  { %v4499_v17 = vadd.f32 %v4498_v4, %v4497_v20  ;;  %v4476_v41 = vmul.f32 %v4407_v58, %v2903_v52  ;;  %v16608_v20 = vld [vmem:[#allocation21_spill] sm:$0xff]  ;;  %v2909_v6 = vmul.f32 %v12097_v0, %v16609_v45  ;;  %v12103_v4 = vpop.eup %12102  ;;  %v16612_v45 = vld [vmem:[#allocation48_spill] sm:$0xff] }
 0xac4   :  { %v4492_v55 = vadd.f32 %v4491_v7, %v4490_v37  ;;  %v4511_v5 = vsel %vm282_vm1, %v4477_v46, 0.0  ;;  %v2910_v14 = vmul.f32 %v12099_v42, %v16608_v20 }
 0xac5   :  { %v4500_v34 = vrot.slane %v4499_v17, 2  ;;  %v4512_v3 = vrot.slane %v4511_v5, 4  ;;  %v4504_v25 = vsel %vm282_vm1, %v4476_v41, 0.0  ;;  %v4422_v30 = vpop.permute.xlu0 %4421 }
 0xac6   :  { %v4493_v22 = vrot.slane %v4492_v55, 2  ;;  %v4505_v18 = vrot.slane %v4504_v25, 4  ;;  %v4479_v24 = vmul.f32 %v4422_v30, %v2906_v60  ;;  %v4417_v49 = vpop.permute.xlu1 %4416 }
 0xac7   :  { %v4501_v19 = vadd.f32 %v4500_v34, %v4499_v17  ;;  %v4513_v16 = vadd.f32 %v4512_v3, %v4511_v5  ;;  %v4478_v50 = vmul.f32 %v4417_v49, %v2905_v13  ;;  %v2911_v13 = vmul.f32 %v12101_v35, %v16611_v27 }
 0xac8   :  { %v4494_v57 = vadd.f32 %v4493_v22, %v4492_v55  ;;  %v4506_v11 = vadd.f32 %v4505_v18, %v4504_v25  ;;  %v4525_v40 = vsel %vm282_vm1, %v4479_v24, 0.0  ;;  %v16610_v25 = vld [vmem:[#allocation22_spill] sm:$0xff] }
 0xac9   :  { %v4514_v1 = vrot.slane %v4513_v16, 2  ;;  %v4526_v29 = vrot.slane %v4525_v40, 4  ;;  %v4518_v59 = vsel %vm282_vm1, %v4478_v50, 0.0  ;;  %v4502_v36 = vrot.slane %v4501_v19, 1 }
 0xaca   :  { %v4507_v39 = vrot.slane %v4506_v11, 2  ;;  %v4519_v31 = vrot.slane %v4518_v59, 4  ;;  %v4495_v63 = vrot.slane %v4494_v57, 1  ;;  %v2912_v30 = vmul.f32 %v12103_v4, %v16610_v25 }
 0xacb   :  { %v4515_v51 = vadd.f32 %v4514_v1, %v4513_v16  ;;  %v4527_v10 = vadd.f32 %v4526_v29, %v4525_v40  ;;  %v4503_v48 = vadd.f32 %v4502_v36, %v4501_v19  ;;  %v12105_v29 = vpop.eup %12104 }
 0xacc   :  { %v4508_v56 = vadd.f32 %v4507_v39, %v4506_v11  ;;  %v4520_v47 = vadd.f32 %v4519_v31, %v4518_v59  ;;  %v4432_v26 = vpop.permute.xlu0 %4431  ;;  %v4496_v7 = vadd.f32 %v4495_v63, %v4494_v57  ;;  %v12107_v54 = vpop.eup %12106 }
 0xacd   :  { %v4481_v2 = vmul.f32 %v4432_v26, %v2908_v9  ;;  %v4427_v33 = vpop.permute.xlu1 %4426  ;;  %v4528_v62 = vrot.slane %v4527_v10, 2  ;;  %v4516_v46 = vrot.slane %v4515_v51, 1 }
 0xace   :  { %v4509_v37 = vrot.slane %v4508_v56, 1  ;;  %v4521_v61 = vrot.slane %v4520_v47, 2  ;;  %v4480_v52 = vmul.f32 %v4427_v33, %v2907_v44  ;;  %v4618_v8 = vsel %vm2058_vm4, %v4503_v48, %v4496_v7 }
 0xacf   :  { %v4539_v58 = vsel %vm282_vm1, %v4481_v2, 0.0  ;;  %v4529_v22 = vadd.f32 %v4528_v62, %v4527_v10  ;;  %v4517_v19 = vadd.f32 %v4516_v46, %v4515_v51 }
 0xad0   :  { %v4510_v17 = vadd.f32 %v4509_v37, %v4508_v56  ;;  %v4522_v41 = vadd.f32 %v4521_v61, %v4520_v47  ;;  %v4540_v55 = vrot.slane %v4539_v58, 4  ;;  %v4532_v5 = vsel %vm282_vm1, %v4480_v52, 0.0  ;;  %v4442_v15 = vpop.permute.xlu0 %4441 }
 0xad1   :  { %v4533_v60 = vrot.slane %v4532_v5, 4  ;;  %v4483_v34 = vmul.f32 %v4442_v15, %v2910_v14  ;;  %v4437_v3 = vpop.permute.xlu1 %4436  ;;  %v4530_v59 = vrot.slane %v4529_v22, 1 }
 0xad2   :  { %v4523_v18 = vrot.slane %v4522_v41, 1  ;;  %v4541_v24 = vadd.f32 %v4540_v55, %v4539_v58  ;;  %v4482_v49 = vmul.f32 %v4437_v3, %v2909_v6  ;;  %v4619_v38 = vsel %vm2060_vm5, %v4510_v17, %v4618_v8 }
 0xad3   :  { %v4534_v16 = vadd.f32 %v4533_v60, %v4532_v5  ;;  %v4553_v50 = vsel %vm282_vm1, %v4483_v34, 0.0  ;;  %v4620_v9 = vsel %vm2062_vm6, %v4517_v19, %v4619_v38  ;;  %v4531_v33 = vadd.f32 %v4530_v59, %v4529_v22  ;;  %v16614_v60 = vld [vmem:[#allocation9_spill] sm:$0xff]  ;;  %v16616_v22 = vld [vmem:[#allocation6_spill] sm:$0xff] }
 0xad4   :  { %v4542_v12 = vrot.slane %v4541_v24, 2  ;;  %v4554_v32 = vrot.slane %v4553_v50, 4  ;;  %v4546_v57 = vsel %vm282_vm1, %v4482_v49, 0.0  ;;  %v4452_v11 = vpop.permute.xlu0 %4451  ;;  %v4524_v40 = vadd.f32 %v4523_v18, %v4522_v41  ;;  %v16613_v41 = vld [vmem:[#allocation49_spill] sm:$0xff] }
 0xad5   :  { %v4535_v0 = vrot.slane %v4534_v16, 2  ;;  %v4547_v53 = vrot.slane %v4546_v57, 4  ;;  %v4485_v28 = vmul.f32 %v4452_v11, %v2912_v30  ;;  %v4447_v1 = vpop.permute.xlu1 %4446  ;;  %v2883_v6 = vadd.f32 1e-08, %v16612_v45 }
 0xad6   :  { %v4543_v42 = vadd.f32 %v4542_v12, %v4541_v24  ;;  %v4555_v39 = vadd.f32 %v4554_v32, %v4553_v50  ;;  %v4484_v31 = vmul.f32 %v4447_v1, %v2911_v13  ;;  %v4621_v43 = vsel %vm2064_vm7, %v4524_v40, %v4620_v9  ;;  %v16617_v24 = vld [vmem:[#allocation7_spill] sm:$0xff] }
 0xad7   :  { %v4536_v36 = vadd.f32 %v4535_v0, %v4534_v16  ;;  %v4548_v63 = vadd.f32 %v4547_v53, %v4546_v57  ;;  %v4567_v51 = vsel %vm282_vm1, %v4485_v28, 0.0  ;;  %v4622_v52 = vsel %vm2066_vm8, %v4531_v33, %v4621_v43  ;;  %v16618_v16 = vld [vmem:[#allocation23_spill] sm:$0xff] }
 0xad8   :  { %v4544_v10 = vrot.slane %v4543_v42, 1  ;;  %v4556_v56 = vrot.slane %v4555_v39, 2  ;;  %v4568_v47 = vrot.slane %v4567_v51, 4  ;;  %v4560_v26 = vsel %vm282_vm1, %v4484_v31, 0.0 }
 0xad9   :  { %v4537_v44 = vrot.slane %v4536_v36, 1  ;;  %v4549_v35 = vrot.slane %v4548_v63, 2  ;;  %v4561_v2 = vrot.slane %v4560_v26, 4  ;;  %v2884_v55 = vadd.f32 1e-08, %v16613_v41 }
 0xada   :  { %v4557_v20 = vadd.f32 %v4556_v56, %v4555_v39  ;;  %v4569_v14 = vadd.f32 %v4568_v47, %v4567_v51  ;;  %v4545_v61 = vadd.f32 %v4544_v10, %v4543_v42  ;;  %12108 = vrsqrt.f32 %v2883_v6  ;;  %v16619_v42 = vld [vmem:[#allocation8_spill] sm:$0xff] }
 0xadb   :  { %v4538_v4 = vadd.f32 %v4537_v44, %v4536_v36  ;;  %v4550_v37 = vadd.f32 %v4549_v35, %v4548_v63  ;;  %v4562_v62 = vadd.f32 %v4561_v2, %v4560_v26  ;;  %v2914_v18 = vmul.f32 %v12107_v54, %v16616_v22 }
 0xadc   :  { %v4558_v48 = vrot.slane %v4557_v20, 1  ;;  %v4570_v7 = vrot.slane %v4569_v14, 2  ;;  %12110 = vrsqrt.f32 %v2884_v55  ;;  %v2913_v50 = vmul.f32 %v12105_v29, %v16618_v16 }
 0xadd   :  { %v4623_v46 = vsel %vm2068_vm9, %v4538_v4, %v4622_v52  ;;  %v4551_v58 = vrot.slane %v4550_v37, 1  ;;  %v4563_v17 = vrot.slane %v4562_v62, 2 }
 0xade   :  { %v4624_v5 = vsel %vm2070_vm10, %v4545_v61, %v4623_v46  ;;  %v4571_v15 = vadd.f32 %v4570_v7, %v4569_v14  ;;  %v4559_v25 = vadd.f32 %v4558_v48, %v4557_v20 }
 0xadf   :  { %v14575_v34 = vadd.f32 %v4624_v5, %v16614_v60  ;;  %v4564_v3 = vadd.f32 %v4563_v17, %v4562_v62  ;;  %v4552_v30 = vadd.f32 %v4551_v58, %v4550_v37 }
 0xae0   :  { %v4572_v27 = vrot.slane %v4571_v15, 1 }
 0xae1   :  { %16615 = vst [vmem:[#allocation10_spill] sm:$0xff] %v14575_v34  ;;  %v4565_v13 = vrot.slane %v4564_v3, 1  ;;  %v5172_v49 = vrot.slane %v14575_v34, %v16617_v24  ;;  %v5165_v8 = vcombine.high %v14575_v34, %v14575_v34  ;;  %v4625_v40 = vsel %vm2058_vm4, %v4559_v25, %v4552_v30 }
 0xae2   :  { %v4462_v19 = vpop.permute.xlu0 %4461  ;;  %v4573_v0 = vadd.f32 %v4572_v27, %v4571_v15  ;;  %v16625_v27 = vld [vmem:[#allocation43_spill] sm:$0xff] }
 0xae3   :  { %v4566_v38 = vadd.f32 %v4565_v13, %v4564_v3  ;;  %v4487_v12 = vmul.f32 %v4462_v19, %v2914_v18  ;;  %v4457_v32 = vpop.permute.xlu1 %4456  ;;  %v5188_v57 = vrot.slane %v5172_v49, %v16617_v24  ;;  %v5180_v11 = vcombine.high %v5172_v49, %v5172_v49 }
 0xae4   :  { %v4486_v53 = vmul.f32 %v4457_v32, %v2913_v50  ;;  %v5179_v28 = vrot.slane %v5165_v8, %v16617_v24  ;;  %v12109_v14 = vpop.eup %12108  ;;  %v16626_v8 = vld [vmem:[#allocation42_spill] sm:$0xff] }
 0xae5   :  { %v4626_v1 = vsel %vm2060_vm5, %v4566_v38, %v4625_v40  ;;  %v4581_v59 = vsel %vm282_vm1, %v4487_v12, 0.0  ;;  %v5266_v39 = vrot.slane %v5188_v57, %v16619_v42  ;;  %v5202_v29 = vrot.slane %v5180_v11, %v16617_v24 }
 0xae6   :  { %v4582_v31 = vrot.slane %v4581_v59, 4  ;;  %v4627_v54 = vsel %vm2062_vm6, %v4573_v0, %v4626_v1  ;;  %v4574_v9 = vsel %vm282_vm1, %v4486_v53, 0.0  ;;  %v5195_v36 = vrot.slane %v5179_v28, %v16617_v24  ;;  %v12111_v7 = vpop.eup %12110 }
 0xae7   :  { %v4575_v63 = vrot.slane %v4574_v9, 4  ;;  %v14594_v51 = vsub.f32 %v5266_v39, %v14575_v34  ;;  %v5270_v10 = vrot.slane %v5202_v29, %v16619_v42  ;;  %v5210_v56 = vcombine.high %v5188_v57, %v5188_v57 }
 0xae8   :  { %v4583_v47 = vadd.f32 %v4582_v31, %v4581_v59  ;;  %v5282_v26 = vrot.slane %v5195_v36, %v16619_v42  ;;  %v5211_v43 = vcombine.high %v5195_v36, %v5195_v36  ;;  %v5212_v44 = vcombine.high %v5202_v29, %v5202_v29  ;;  %v14648_v36 = vld [vmem:[%s16365_s11 + $0x8] sm:$0xff] }
 0xae9   :  { %16620 = vst [vmem:[#allocation44_spill] sm:$0xff] %v14594_v51  ;;  %v4576_v35 = vadd.f32 %v4575_v63, %v4574_v9  ;;  %v5359_v2 = vmul.f32 %v14594_v51, %v14594_v51  ;;  %v14601_v33 = vsub.f32 %v5270_v10, %v14575_v34  ;;  %v5274_v20 = vrot.slane %v5210_v56, %v16619_v42  ;;  %v16628_v63 = vld [vmem:[#allocation12_spill] sm:$0xff] }
 0xaea   :  { %v4584_v45 = vrot.slane %v4583_v47, 2  ;;  %v14605_v6 = vsub.f32 %v5282_v26, %v14575_v34  ;;  %v5290_v4 = vrot.slane %v5211_v43, %v16619_v42  ;;  %v5278_v37 = vrot.slane %v5212_v44, %v16619_v42 }
 0xaeb   :  { %v4577_v62 = vrot.slane %v4576_v35, 2  ;;  %v5375_v61 = vsel %vm282_vm1, %v5359_v2, 0.0  ;;  %v5360_v52 = vmul.f32 %v14601_v33, %v14601_v33  ;;  %v14613_v48 = vsub.f32 %v5274_v20, %v14575_v34 }
 0xaec   :  { %16621 = vst [vmem:[#allocation45_spill] sm:$0xff] %v14605_v6  ;;  %v4585_v46 = vadd.f32 %v4584_v45, %v4583_v47  ;;  %5376 = vadd.xlane.f32.xlu1 %v5375_v61  ;;  %v5363_v58 = vmul.f32 %v14605_v6, %v14605_v6  ;;  %v14618_v17 = vsub.f32 %v5290_v4, %v14575_v34 }
 0xaed   :  { %16622 = vst [vmem:[#allocation15_spill] sm:$0xff] %v14613_v48  ;;  %v14621_v41 = vsub.f32 %v5278_v37, %v14575_v34  ;;  %v4578_v55 = vadd.f32 %v4577_v62, %v4576_v35  ;;  %v5378_v5 = vsel %vm282_vm1, %v5360_v52, 0.0  ;;  %v5361_v15 = vmul.f32 %v14613_v48, %v14613_v48 }
 0xaee   :  { %16623 = vst [vmem:[#allocation13_spill] sm:$0xff] %v14618_v17  ;;  %v5181_v60 = vcombine.high %v5179_v28, %v5179_v28  ;;  %v4586_v3 = vrot.slane %v4585_v46, 1  ;;  %5379 = vadd.xlane.f32.xlu0 %v5378_v5  ;;  %v5365_v25 = vmul.f32 %v14618_v17, %v14618_v17  ;;  %v2916_v13 = vmul.f32 %v12111_v7, %v16625_v27  ;;  %v16630_v27 = vld [vmem:[#allocation19_spill] sm:$0xff] }
 0xaef   :  { %16624 = vst [vmem:[#allocation16_spill] sm:$0xff] %v14621_v41  ;;  %v4579_v30 = vrot.slane %v4578_v55, 1  ;;  %v5387_v22 = vsel %vm282_vm1, %v5363_v58, 0.0  ;;  %v2915_v19 = vmul.f32 %v12109_v14, %v16626_v8  ;;  %v5381_v16 = vsel %vm282_vm1, %v5361_v15, 0.0 }
 0xaf0   :  { %v5209_v18 = vrot.slane %v5181_v60, %v16617_v24  ;;  %v4472_v49 = vpop.permute.xlu0 %4471  ;;  %5388 = vadd.xlane.f32.xlu1 %v5387_v22  ;;  %v5362_v50 = vmul.f32 %v14621_v41, %v14621_v41  ;;  %v4587_v40 = vadd.f32 %v4586_v3, %v4585_v46  ;;  %v5393_v53 = vsel %vm282_vm1, %v5365_v25, 0.0 }
 0xaf1   :  { %v4580_v38 = vadd.f32 %v4579_v30, %v4578_v55  ;;  %v4489_v12 = vmul.f32 %v4472_v49, %v2916_v13  ;;  %v4467_v32 = vpop.permute.xlu1 %4466  ;;  %v14670_v55 = vld [vmem:[%s16359_s5 + $0x4] sm:$0x3] }
 0xaf2   :  { %v5286_v57 = vrot.slane %v5209_v18, %v16619_v42  ;;  %v5213_v11 = vcombine.high %v5209_v18, %v5209_v18  ;;  %v4488_v0 = vmul.f32 %v4467_v32, %v2915_v19  ;;  %5382 = vadd.xlane.f32.xlu0 %v5381_v16  ;;  %v5384_v56 = vsel %vm282_vm1, %v5362_v50, 0.0  ;;  %11089 = vmatprep.subr.msk.mxu0 %vm512_vm2, %v14670_v55 }
 0xaf3   :  { %v4628_v28 = vsel %vm2064_vm7, %v4580_v38, %v4627_v54  ;;  %v4595_v1 = vsel %vm282_vm1, %v4489_v12, 0.0  ;;  %v4973_v54 = vrot.slane %v14648_v36, %v16628_v63 }
 0xaf4   :  { %v14640_v59 = vsub.f32 %v5286_v57, %v14575_v34  ;;  %v5294_v39 = vrot.slane %v5213_v11, %v16619_v42  ;;  %v4596_v29 = vrot.slane %v4595_v1, 4  ;;  %v4629_v31 = vsel %vm2066_vm8, %v4587_v40, %v4628_v28  ;;  %5394 = vadd.xlane.f32.xlu1 %v5393_v53 }
 0xaf5   :  { %v4588_v9 = vsel %vm282_vm1, %v4488_v0, 0.0 }
 0xaf6   :  { %16627 = vst [vmem:[#allocation11_spill] sm:$0xff] %v14640_v59  ;;  %v4589_v10 = vrot.slane %v4588_v9, 4  ;;  %v5364_v47 = vmul.f32 %v14640_v59, %v14640_v59  ;;  %v14656_v26 = vsub.f32 %v5294_v39, %v14575_v34  ;;  %v4597_v43 = vadd.f32 %v4596_v29, %v4595_v1  ;;  %5385 = vadd.xlane.f32.xlu0 %v5384_v56  ;;  %v11066_v2 = vpop.f32.mrb[70].mxu1 }
 0xaf7   :  { %v14658_v14 = vadd.f32 %v11066_v2, %v4973_v54  ;;  %v5046_v45 = vpop.f32.mrb[71].mxu1 }
 0xaf8   :  { %16629 = vst [vmem:[#allocation46_spill] sm:$0xff] %v14656_v26  ;;  %v4590_v44 = vadd.f32 %v4589_v10, %v4588_v9  ;;  %v4598_v35 = vrot.slane %v4597_v43, 2  ;;  %v5390_v4 = vsel %vm282_vm1, %v5364_v47, 0.0  ;;  %v5366_v37 = vmul.f32 %v14656_v26, %v14656_v26 }
 0xaf9   :  { %v14663_v61 = vadd.f32 %v5046_v45, %v4973_v54  ;;  %v10043_v7 = vmul.f32 -1.442695, %v14658_v14 }
 0xafa   :  { %v4591_v20 = vrot.slane %v4590_v44, 2  ;;  %v4599_v62 = vadd.f32 %v4598_v35, %v4597_v43  ;;  %5391 = vadd.xlane.f32.xlu0 %v5390_v4  ;;  %v5396_v15 = vsel %vm282_vm1, %v5366_v37, 0.0 }
 0xafb   :  { %v10042_v58 = vmul.f32 -1.442695, %v14663_v61  ;;  %12112 = vpow2.f32 %v10043_v7 }
 0xafc   :  { %v4592_v52 = vadd.f32 %v4591_v20, %v4590_v44  ;;  %v4600_v46 = vrot.slane %v4599_v62, 1 }
 0xafd   :  { %12114 = vpow2.f32 %v10042_v58 }
 0xafe   :  { %v4593_v5 = vrot.slane %v4592_v52, 1  ;;  %5397 = vadd.xlane.f32.xlu0 %v5396_v15  ;;  %v4601_v3 = vadd.f32 %v4600_v46, %v4599_v62 }
 0xb00   :  { %v4594_v60 = vadd.f32 %v4593_v5, %v4592_v52 }
 0xb02   :  { %v4630_v25 = vsel %vm2068_vm9, %v4594_v60, %v4629_v31 }
 0xb03   :  { %v4631_v30 = vsel %vm2070_vm10, %v4601_v3, %v4630_v25 }
 0xb04   :  { %v14678_v13 = vadd.f32 %v4631_v30, %v16630_v27 }
 0xb05   :  { %v12113_v49 = vpop.eup %12112 }
 0xb06   :  { %16631 = vst [vmem:[#allocation47_spill] sm:$0xff] %v14678_v13  ;;  %v5221_v22 = vrot.slane %v14678_v13, %v16617_v24  ;;  %v5214_v18 = vcombine.high %v14678_v13, %v14678_v13  ;;  %v5062_v38 = vadd.f32 1.0, %v12113_v49 }
 0xb07   :  { %v12115_v50 = vpop.eup %12114 }
 0xb08   :  { %v5237_v8 = vrot.slane %v5221_v22, %v16617_v24  ;;  %v5229_v19 = vcombine.high %v5221_v22, %v5221_v22  ;;  %v5228_v16 = vrot.slane %v5214_v18, %v16617_v24  ;;  %v5061_v12 = vadd.f32 1.0, %v12115_v50  ;;  %v10051_v50 = vld [vmem:[%s16358_s4 + $0x40] sm:$0xff] }
 0xb09   :  { %12116 = vrcp.f32 %v5062_v38  ;;  %v10052_v38 = vld [vmem:[%s16358_s4 + $0x48] sm:$0xff] }
 0xb0a   :  { %v5298_v32 = vrot.slane %v5237_v8, %v16619_v42  ;;  %v5259_v57 = vcombine.high %v5237_v8, %v5237_v8  ;;  %v5251_v11 = vrot.slane %v5229_v19, %v16617_v24  ;;  %v5244_v40 = vrot.slane %v5228_v16, %v16617_v24 }
 0xb0b   :  { %v5230_v0 = vcombine.high %v5228_v16, %v5228_v16  ;;  %12118 = vrcp.f32 %v5061_v12  ;;  %v11513_v12 = vpack.c.bf16 %v10052_v38, %v10051_v50  ;;  %v16653_v50 = vld [vmem:[#allocation35_spill] sm:$0xff] }
 0xb0c   :  { %v14690_v53 = vsub.f32 %v5298_v32, %v14678_v13  ;;  %v5306_v28 = vrot.slane %v5259_v57, %v16619_v42  ;;  %v5302_v1 = vrot.slane %v5251_v11, %v16619_v42  ;;  %v5314_v39 = vrot.slane %v5244_v40, %v16619_v42  ;;  %v10054_v32 = vld [vmem:[%s16358_s4 + $0x58] sm:$0xff] }
 0xb0d   :  { %v5261_v29 = vcombine.high %v5251_v11, %v5251_v11  ;;  %v5260_v31 = vcombine.high %v5244_v40, %v5244_v40  ;;  %v5258_v9 = vrot.slane %v5230_v0, %v16617_v24  ;;  %11514 = vmatprep.subr.bf16.mxu1 %v11513_v12  ;;  %v16640_v40 = vld [vmem:[#allocation24_spill] sm:$0xff] }
 0xb0e   :  { %16632 = vst [vmem:[#allocation17_spill] sm:$0xff] %v14690_v53  ;;  %v5367_v54 = vmul.f32 %v14690_v53, %v14690_v53  ;;  %v14699_v10 = vsub.f32 %v5306_v28, %v14678_v13  ;;  %v14702_v56 = vsub.f32 %v5302_v1, %v14678_v13  ;;  %v14705_v47 = vsub.f32 %v5314_v39, %v14678_v13  ;;  %v16641_v1 = vld [vmem:[#allocation26_spill] sm:$0xff] }
 0xb0f   :  { %v5310_v43 = vrot.slane %v5261_v29, %v16619_v42  ;;  %v5322_v44 = vrot.slane %v5260_v31, %v16619_v42  ;;  %v5318_v35 = vrot.slane %v5258_v9, %v16619_v42  ;;  %v5262_v4 = vcombine.high %v5258_v9, %v5258_v9  ;;  %11516 = vmatpush3.bf16.msra.mxu1 %v11513_v12  ;;  %v16642_v9 = vld [vmem:[#allocation25_spill] sm:$0xff] }
 0xb10   :  { %16633 = vst [vmem:[#allocation14_spill] sm:$0xff] %v14699_v10  ;;  %16634 = vst [vmem:[#allocation21_spill] sm:$0xff] %v14702_v56  ;;  %v5399_v2 = vsel %vm282_vm1, %v5367_v54, 0.0  ;;  %v5369_v20 = vmul.f32 %v14699_v10, %v14699_v10  ;;  %v5368_v45 = vmul.f32 %v14702_v56, %v14702_v56  ;;  %v5371_v5 = vmul.f32 %v14705_v47, %v14705_v47  ;;  %v14953_v56 = vld [vmem:[%s16365_s11 + $0x10] sm:$0xff] }
 0xb11   :  { %16635 = vst [vmem:[#allocation18_spill] sm:$0xff] %v14705_v47  ;;  %5400 = vadd.xlane.f32.xlu1 %v5399_v2  ;;  %v14716_v37 = vsub.f32 %v5310_v43, %v14678_v13  ;;  %v14720_v52 = vsub.f32 %v5318_v35, %v14678_v13  ;;  %v5326_v7 = vrot.slane %v5262_v4, %v16619_v42  ;;  %v16644_v2 = vld [vmem:[#allocation28_spill] sm:$0xff] }
 0xb12   :  { %v5402_v62 = vsel %vm282_vm1, %v5368_v45, 0.0  ;;  %v5405_v58 = vsel %vm282_vm1, %v5369_v20, 0.0  ;;  %v14729_v15 = vsub.f32 %v5322_v44, %v14678_v13  ;;  %v5411_v49 = vsel %vm282_vm1, %v5371_v5, 0.0  ;;  %v16643_v44 = vld [vmem:[#allocation27_spill] sm:$0xff] }
 0xb13   :  { %16636 = vst [vmem:[#allocation22_spill] sm:$0xff] %v14716_v37  ;;  %16637 = vst [vmem:[#allocation20_spill] sm:$0xff] %v14720_v52  ;;  %5403 = vadd.xlane.f32.xlu0 %v5402_v62  ;;  %v5370_v46 = vmul.f32 %v14716_v37, %v14716_v37  ;;  %v12117_v60 = vpop.eup %12116  ;;  %v5372_v30 = vmul.f32 %v14720_v52, %v14720_v52  ;;  %v14735_v27 = vsub.f32 %v5326_v7, %v14678_v13  ;;  %v16645_v62 = vld [vmem:[#allocation29_spill] sm:$0xff] }
 0xb14   :  { %16638 = vst [vmem:[#allocation48_spill] sm:$0xff] %v14729_v15  ;;  %v5068_v18 = vmul.f32 %v12117_v60, %v14658_v14  ;;  %v5373_v8 = vmul.f32 %v14729_v15, %v14729_v15  ;;  %v16647_v60 = vld [vmem:[#allocation31_spill] sm:$0xff] }
 0xb15   :  { %5406 = vadd.xlane.f32.xlu1 %v5405_v58  ;;  %v12119_v3 = vpop.eup %12118  ;;  %v5408_v25 = vsel %vm282_vm1, %v5370_v46, 0.0  ;;  %16639 = vst [vmem:[#allocation49_spill] sm:$0xff] %v14735_v27  ;;  %v5414_v19 = vsel %vm282_vm1, %v5372_v30, 0.0  ;;  %v5374_v16 = vmul.f32 %v14735_v27, %v14735_v27  ;;  %v16646_v46 = vld [vmem:[#allocation30_spill] sm:$0xff]  ;;  %v16648_v30 = vld [vmem:[#allocation32_spill] sm:$0xff] }
 0xb16   :  { %v5067_v22 = vmul.f32 %v12119_v3, %v14663_v61  ;;  %v5417_v14 = vsel %vm282_vm1, %v5373_v8, 0.0 }
 0xb17   :  { %5409 = vadd.xlane.f32.xlu0 %v5408_v25  ;;  %v5420_v61 = vsel %vm282_vm1, %v5374_v16, 0.0  ;;  %v16651_v16 = vld [vmem:[#allocation34_spill] sm:$0xff] }
 0xb18   :  { %11075 = vmatprep.mubr.msk.f32.mxu0 %vm384_vm0, %v5067_v22 }
 0xb19   :  { %5412 = vadd.xlane.f32.xlu1 %v5411_v49  ;;  %11076 = vmatmul.mubr.msk.f32.vlgmr.msra.gmra.mrb[70].mxu0 %vm384_vm0, %v5068_v18  ;;  %v16649_v49 = vld [vmem:[#allocation33_spill] sm:$0xff] }
 0xb1a   :  { %11090 = vmatpush3.msk.msra.mxu0 %vm512_vm2, %v14670_v55  ;;  %v10053_v55 = vld [vmem:[%s16358_s4 + $0x50] sm:$0xff] }
 0xb1b   :  { %5415 = vadd.xlane.f32.xlu0 %v5414_v19  ;;  %v11517_v57 = vpack.c.bf16 %v10054_v32, %v10053_v55  ;;  %v16655_v55 = vld [vmem:[#allocation36_spill] sm:$0xff] }
 0xb1d   :  { %5418 = vadd.xlane.f32.xlu1 %v5417_v14  ;;  %11518 = vmatprep.subr.bf16.mxu1 %v11517_v57 }
 0xb1e   :  { %11520 = vmatpush3.bf16.msra.mxu1 %v11517_v57 }
 0xb1f   :  { %5421 = vadd.xlane.f32.xlu0 %v5420_v61 }
 0xb79   :  { %v14763_v11 = vpop.xlane.xlu1 %5376 }
 0xb7a   :  { %v5557_v0 = vsel %vm3003_vm12, %v14763_v11, %v16640_v40 }
 0xb7b   :  { %v14768_v28 = vpop.xlane.xlu0 %5379  ;;  %11091 = vmatprep.mubr.msk.f32.mxu0 %vm463_vm3, %v5557_v0  ;;  %v16657_v0 = vld [vmem:[#allocation37_spill] sm:$0xff] }
 0xb7c   :  { %v5558_v39 = vsel %vm3003_vm12, %v14768_v28, %v16641_v1 }
 0xb7d   :  { %11092 = vmatmul.mubr.msk.f32.vlgmr.msra.gmra.mrb[72].mxu0 %vm463_vm3, %v5558_v39  ;;  %v14777_v31 = vpop.xlane.xlu1 %5388 }
 0xb7e   :  { %v5561_v20 = vsel %vm3003_vm12, %v14777_v31, %v16644_v2  ;;  %v10094_v2 = vld [vmem:[%s16360_s6 + $0x58] sm:$0xff] }
 0xb7f   :  { %v14775_v29 = vpop.xlane.xlu0 %5382 }
 0xb80   :  { %v5559_v54 = vsel %vm3003_vm12, %v14775_v29, %v16642_v9 }
 0xb81   :  { %11094 = vmatprep.mubr.msk.f32.mxu0 %vm463_vm3, %v5559_v54  ;;  %v14792_v45 = vpop.xlane.xlu1 %5394 }
 0xb82   :  { %v5563_v58 = vsel %vm3003_vm12, %v14792_v45, %v16646_v46  ;;  %v10093_v46 = vld [vmem:[%s16360_s6 + $0x50] sm:$0xff] }
 0xb83   :  { %v14783_v43 = vpop.xlane.xlu0 %5385 }
 0xb84   :  { %v5560_v35 = vsel %vm3003_vm12, %v14783_v43, %v16643_v44  ;;  %v14917_v44 = vpack.c.bf16 %v10094_v2, %v10093_v46 }
 0xb85   :  { %11095 = vmatmul.mubr.msk.f32.gmra.mrb[74].mxu0 %vm463_vm3, %v5560_v35  ;;  %v16659_v35 = vld [vmem:[#allocation38_spill] sm:$0xff] }
 0xb86   :  { %11097 = vmatprep.mubr.msk.f32.mxu0 %vm463_vm3, %v5561_v20 }
 0xb87   :  { %v14795_v4 = vpop.xlane.xlu0 %5391 }
 0xb88   :  { %v5562_v7 = vsel %vm3003_vm12, %v14795_v4, %v16645_v62 }
 0xb89   :  { %11098 = vmatmul.mubr.msk.f32.gmra.mrb[76].mxu0 %vm463_vm3, %v5562_v7 }
 0xb8a   :  { %11100 = vmatprep.mubr.msk.f32.mxu0 %vm463_vm3, %v5563_v58  ;;  %v16661_v58 = vld [vmem:[#allocation39_spill] sm:$0xff] }
 0xb8b   :  { %v14805_v5 = vpop.xlane.xlu0 %5397 }
 0xb8c   :  { %v5564_v3 = vsel %vm3003_vm12, %v14805_v5, %v16647_v60  ;;  %v10092_v60 = vld [vmem:[%s16360_s6 + $0x48] sm:$0xff] }
 0xb8d   :  { %11101 = vmatmul.mubr.msk.f32.gmra.mrb[78].mxu0 %vm463_vm3, %v5564_v3 }
 0xb9e   :  { %v14811_v25 = vpop.xlane.xlu1 %5400 }
 0xb9f   :  { %v5565_v22 = vsel %vm3003_vm12, %v14811_v25, %v16648_v30  ;;  %v10091_v30 = vld [vmem:[%s16360_s6 + $0x40] sm:$0xff] }
 0xba0   :  { %11103 = vmatprep.mubr.msk.f32.mxu0 %vm463_vm3, %v5565_v22  ;;  %v14817_v18 = vpop.xlane.xlu0 %5403  ;;  %v16662_v22 = vld [vmem:[#allocation50_spill] sm:$0xff]  ;;  %v14912_v62 = vpack.c.bf16 %v10092_v60, %v10091_v30 }
 0xba1   :  { %v5566_v8 = vsel %vm3003_vm12, %v14817_v18, %v16649_v49 }
 0xba2   :  { %v14822_v19 = vpop.xlane.xlu1 %5406  ;;  %11104 = vmatmul.mubr.msk.f32.gmra.mrb[80].mxu0 %vm463_vm3, %v5566_v8  ;;  %v5077_v8 = vrot.slane %v14648_v36, %v16662_v22  ;;  %11522 = vmatprep.subr.bf16.mxu1 %v14912_v62 }
 0xba3   :  { %16650 = vst [vmem:[#allocation9_spill] sm:$0xff] %v14822_v19  ;;  %v5567_v14 = vsel %vm3003_vm12, %v14822_v19, %v16651_v16 }
 0xba4   :  { %11106 = vmatprep.mubr.msk.f32.mxu0 %vm463_vm3, %v5567_v14  ;;  %v14829_v61 = vpop.xlane.xlu0 %5409 }
 0xba5   :  { %16652 = vst [vmem:[#allocation6_spill] sm:$0xff] %v14829_v61  ;;  %v5568_v38 = vsel %vm3003_vm12, %v14829_v61, %v16653_v50 }
 0xba6   :  { %v14834_v12 = vpop.xlane.xlu1 %5412  ;;  %11107 = vmatmul.mubr.msk.f32.gmra.mrb[82].mxu0 %vm463_vm3, %v5568_v38 }
 0xba7   :  { %16654 = vst [vmem:[#allocation23_spill] sm:$0xff] %v14834_v12  ;;  %v5569_v32 = vsel %vm3003_vm12, %v14834_v12, %v16655_v55 }
 0xba8   :  { %11109 = vmatprep.mubr.msk.f32.mxu0 %vm463_vm3, %v5569_v32  ;;  %v14841_v57 = vpop.xlane.xlu0 %5415 }
 0xba9   :  { %16656 = vst [vmem:[#allocation43_spill] sm:$0xff] %v14841_v57  ;;  %v5570_v39 = vsel %vm3003_vm12, %v14841_v57, %v16657_v0 }
 0xbaa   :  { %v14846_v54 = vpop.xlane.xlu1 %5418  ;;  %11110 = vmatmul.mubr.msk.f32.gmra.mrb[84].mxu0 %vm463_vm3, %v5570_v39 }
 0xbab   :  { %16658 = vst [vmem:[#allocation42_spill] sm:$0xff] %v14846_v54  ;;  %v5571_v20 = vsel %vm3003_vm12, %v14846_v54, %v16659_v35 }
 0xbac   :  { %11112 = vmatprep.mubr.msk.f32.mxu0 %vm463_vm3, %v5571_v20  ;;  %v14853_v7 = vpop.xlane.xlu0 %5421 }
 0xbad   :  { %16660 = vst [vmem:[#allocation19_spill] sm:$0xff] %v14853_v7  ;;  %v5572_v3 = vsel %vm3003_vm12, %v14853_v7, %v16661_v58 }
 0xbae   :  { %11113 = vmatmul.mubr.msk.f32.gmra.mrb[86].mxu0 %vm463_vm3, %v5572_v3 }
 0xbec   :  { %v11077_v14 = vpop.f32.mrb[70].mxu0 }
 0xbed   :  { %v5156_v38 = vadd.f32 %v11077_v14, %v5077_v8  ;;  %v5150_v32 = vpop.f32.mrb[71].mxu0 }
 0xbee   :  { %v5151_v39 = vadd.f32 %v5150_v32, %v5077_v8 }
 0xbef   :  { %v14865_v20 = vadd.f32 %v5156_v38, %v13872_v21 }
 0xbf0   :  { %v14862_v0 = vadd.f32 %v5151_v39, %v13869_v23 }
 0xbf2   :  { %11086 = vmatprep.mubr.msk.f32.mxu1 %vm384_vm0, %v14862_v0 }
 0xbf3   :  { %11087 = vmatmul.mubr.msk.f32.vlgmr.msra.gmra.mrb[72].mxu1 %vm384_vm0, %v14865_v20 }
 0xbf4   :  { %11524 = vmatpush3.bf16.msra.mxu1 %v14912_v62 }
 0xbf5   :  { %11526 = vmatprep.subr.bf16.mxu1 %v14917_v44 }
 0xbf8   :  { %11528 = vmatpush3.bf16.msra.mxu1 %v14917_v44 }
 0xc50   :  { %v14871_v3 = vpop.f32.mrb[72].mxu0 }
 0xc51   :  { %v14873_v58 = vpop.f32.mrb[73].mxu0 }
 0xc58   :  { %v14875_v36 = vpop.f32.mrb[74].mxu0 }
 0xc59   :  { %v14877_v14 = vpop.f32.mrb[75].mxu0 }
 0xc5c   :  { %v14879_v8 = vpop.f32.mrb[76].mxu0 }
 0xc5d   :  { %v14881_v23 = vpop.f32.mrb[77].mxu0 }
 0xc60   :  { %v14883_v21 = vpop.f32.mrb[78].mxu0 }
 0xc61   :  { %v14885_v38 = vpop.f32.mrb[79].mxu0 }
 0xc75   :  { %v14887_v32 = vpop.f32.mrb[80].mxu0 }
 0xc76   :  { %v14889_v39 = vpop.f32.mrb[81].mxu0 }
 0xc79   :  { %v14891_v22 = vpop.f32.mrb[82].mxu0 }
 0xc7a   :  { %v14893_v35 = vpop.f32.mrb[83].mxu0 }
 0xc7d   :  { %v14895_v55 = vpop.f32.mrb[84].mxu0 }
 0xc7e   :  { %v14897_v50 = vpop.f32.mrb[85].mxu0 }
 0xc81   :  { %v14899_v16 = vpop.f32.mrb[86].mxu0 }
 0xc82   :  { %v14901_v49 = vpop.f32.mrb[87].mxu0 }
 0xcc6   :  { %v14923_v9 = vpop.f32.mrb[72].mxu1 }
 0xcc7   :  { %5953 = vrot.lane.b32.xlu0 %v14923_v9, %s12627_s15  ;;  %v14927_v60 = vpop.f32.mrb[73].mxu1  ;;  %v5822_v46 = vcombine.high %v14923_v9, %v14923_v9  ;;  %v5829_v30 = vrot.slane %v14923_v9, %v16617_v24 }
 0xcc8   :  { %5951 = vrot.lane.b32.xlu1 %v14927_v60, %s12627_s15  ;;  %v5773_v2 = vcombine.high %v14927_v60, %v14927_v60  ;;  %v5780_v1 = vrot.slane %v14927_v60, %v16617_v24 }
 0xcc9   :  { %v5836_v13 = vrot.slane %v5822_v46, %v16617_v24  ;;  %v5837_v63 = vcombine.high %v5829_v30, %v5829_v30  ;;  %v5845_v47 = vrot.slane %v5829_v30, %v16617_v24 }
 0xcca   :  { %v5787_v40 = vrot.slane %v5773_v2, %v16617_v24  ;;  %v5788_v15 = vcombine.high %v5780_v1, %v5780_v1  ;;  %v5796_v54 = vrot.slane %v5780_v1, %v16617_v24 }
 0xccb   :  { %v5838_v52 = vcombine.high %v5836_v13, %v5836_v13  ;;  %v14943_v34 = vrot.slane %v5836_v13, %v16617_v24  ;;  %v5859_v7 = vrot.slane %v5837_v63, %v16617_v24  ;;  %v5867_v46 = vcombine.high %v5845_v47, %v5845_v47 }
 0xccc   :  { %v5789_v27 = vcombine.high %v5787_v40, %v5787_v40  ;;  %v5803_v37 = vrot.slane %v5787_v40, %v16617_v24  ;;  %v5810_v10 = vrot.slane %v5788_v15, %v16617_v24  ;;  %v5818_v1 = vcombine.high %v5796_v54, %v5796_v54 }
 0xccd   :  { %v14956_v30 = vrot.slane %v5838_v52, %v16617_v24  ;;  %v5868_v63 = vcombine.high %v14943_v34, %v14943_v34  ;;  %v5869_v13 = vcombine.high %v5859_v7, %v5859_v7  ;;  %v14962_v15 = vrot.slane %v14953_v56, %v16619_v42 }
 0xcce   :  { %v5817_v2 = vrot.slane %v5789_v27, %v16617_v24  ;;  %v5819_v53 = vcombine.high %v5803_v37, %v5803_v37  ;;  %v5820_v40 = vcombine.high %v5810_v10, %v5810_v10  ;;  %v5906_v27 = vrot.slane %v5845_v47, %v16619_v42 }
 0xccf   :  { %v5910_v57 = vrot.slane %v5859_v7, %v16619_v42  ;;  %v5914_v12 = vrot.slane %v5867_v46, %v16619_v42  ;;  %v5922_v52 = vrot.slane %v14943_v34, %v16619_v42  ;;  %v5870_v24 = vcombine.high %v14956_v30, %v14956_v30 }
 0xcd0   :  { %v5821_v26 = vcombine.high %v5817_v2, %v5817_v2  ;;  %v5918_v17 = vrot.slane %v5869_v13, %v16619_v42  ;;  %v5926_v6 = vrot.slane %v14956_v30, %v16619_v42  ;;  %v14975_v59 = vrot.slane %v5868_v63, %v16619_v42 }
 0xcd1   :  { %v5874_v47 = vrot.slane %v5796_v54, %v16619_v42  ;;  %v5878_v7 = vrot.slane %v5810_v10, %v16619_v42  ;;  %v5882_v46 = vrot.slane %v5818_v1, %v16619_v42  ;;  %v5890_v61 = vrot.slane %v5803_v37, %v16619_v42 }
 0xcd2   :  { %v5886_v34 = vrot.slane %v5820_v40, %v16619_v42  ;;  %v5894_v48 = vrot.slane %v5817_v2, %v16619_v42  ;;  %v5898_v13 = vrot.slane %v5819_v53, %v16619_v42  ;;  %v5902_v30 = vrot.slane %v5821_v26, %v16619_v42 }
 0xd39   :  { %v14984_v41 = vpop.permute.xlu0 %5953 }
 0xd3a   :  { %v14987_v63 = vpop.permute.xlu1 %5951  ;;  %v5965_v54 = vadd.f32 %v14984_v41, %v5906_v27  ;;  %v5966_v10 = vadd.f32 %v14984_v41, %v5910_v57  ;;  %v5967_v1 = vadd.f32 %v14984_v41, %v5914_v12  ;;  %v5968_v37 = vadd.f32 %v14984_v41, %v5918_v17 }
 0xd3b   :  { %v5957_v40 = vadd.f32 %v14987_v63, %v5874_v47  ;;  %v5958_v2 = vadd.f32 %v14987_v63, %v5878_v7  ;;  %v5959_v53 = vadd.f32 %v14987_v63, %v5882_v46  ;;  %v5960_v19 = vadd.f32 %v14987_v63, %v5886_v34 }
 0xd3c   :  { %v5961_v26 = vadd.f32 %v14987_v63, %v5890_v61  ;;  %v5962_v51 = vadd.f32 %v14987_v63, %v5894_v48  ;;  %v5963_v27 = vadd.f32 %v14987_v63, %v5898_v13  ;;  %v5964_v57 = vadd.f32 %v14987_v63, %v5902_v30 }
 0xd3d   :  { %v5973_v12 = vadd.f32 %v5957_v40, %v14873_v58  ;;  %v5974_v17 = vadd.f32 %v14871_v3, %v5958_v2  ;;  %v5975_v47 = vadd.f32 %v5959_v53, %v14877_v14  ;;  %v5976_v7 = vadd.f32 %v14875_v36, %v5960_v19 }
 0xd3e   :  { %v5977_v46 = vadd.f32 %v5961_v26, %v14881_v23  ;;  %v5978_v34 = vadd.f32 %v14879_v8, %v5962_v51  ;;  %v5979_v61 = vadd.f32 %v5963_v27, %v14885_v38  ;;  %v5980_v48 = vadd.f32 %v14883_v21, %v5964_v57 }
 0xd3f   :  { %v15010_v13 = vadd.f32 %v14962_v15, %v5973_v12  ;;  %v15013_v30 = vadd.f32 %v14962_v15, %v5974_v17  ;;  %v15016_v58 = vadd.f32 %v14962_v15, %v5975_v47  ;;  %v15019_v3 = vadd.f32 %v14962_v15, %v5976_v7 }
 0xd40   :  { %v15022_v19 = vadd.f32 %v14962_v15, %v5977_v46  ;;  %v15025_v51 = vadd.f32 %v14962_v15, %v5978_v34  ;;  %v15028_v36 = vadd.f32 %v14962_v15, %v5979_v61  ;;  %v15031_v14 = vadd.f32 %v14962_v15, %v5980_v48 }
 0xd41   :  { %v10075_v8 = vmul.f32 -1.442695, %v15010_v13  ;;  %v10076_v23 = vmul.f32 -1.442695, %v15013_v30  ;;  %v10077_v21 = vmul.f32 -1.442695, %v15016_v58  ;;  %v5981_v38 = vadd.f32 %v5965_v54, %v14889_v39 }
 0xd42   :  { %v10078_v40 = vmul.f32 -1.442695, %v15019_v3  ;;  %v10079_v2 = vmul.f32 -1.442695, %v15022_v19  ;;  %v5982_v53 = vadd.f32 %v14887_v32, %v5966_v10  ;;  %v5934_v26 = vrot.slane %v5870_v24, %v16619_v42 }
 0xd43   :  { %12120 = vpow2.f32 %v10075_v8  ;;  %v10080_v27 = vmul.f32 -1.442695, %v15025_v51  ;;  %v10081_v57 = vmul.f32 -1.442695, %v15028_v36  ;;  %v15044_v12 = vadd.f32 %v14962_v15, %v5981_v38 }
 0xd44   :  { %12122 = vpow2.f32 %v10076_v23  ;;  %v15047_v17 = vadd.f32 %v14962_v15, %v5982_v53  ;;  %v5983_v39 = vadd.f32 %v5967_v1, %v14893_v35  ;;  %v5984_v54 = vadd.f32 %v14891_v22, %v5968_v37 }
 0xd45   :  { %12124 = vpow2.f32 %v10077_v21  ;;  %v10082_v32 = vmul.f32 -1.442695, %v15031_v14  ;;  %v5969_v24 = vadd.f32 %v14984_v41, %v5922_v52  ;;  %v5970_v10 = vadd.f32 %v14984_v41, %v5926_v6 }
 0xd46   :  { %12126 = vpow2.f32 %v10078_v40  ;;  %v10083_v47 = vmul.f32 -1.442695, %v15044_v12  ;;  %v15056_v7 = vadd.f32 %v14962_v15, %v5983_v39  ;;  %v15059_v46 = vadd.f32 %v14962_v15, %v5984_v54 }
 0xd47   :  { %12128 = vpow2.f32 %v10079_v2  ;;  %v5985_v35 = vadd.f32 %v5969_v24, %v14897_v50  ;;  %v5986_v22 = vadd.f32 %v14895_v55, %v5970_v10  ;;  %v5971_v1 = vadd.f32 %v14984_v41, %v14975_v59 }
 0xd48   :  { %12130 = vpow2.f32 %v10080_v27  ;;  %v10084_v6 = vmul.f32 -1.442695, %v15047_v17  ;;  %v10085_v52 = vmul.f32 -1.442695, %v15056_v7  ;;  %v5972_v37 = vadd.f32 %v14984_v41, %v5934_v26 }
 0xd49   :  { %12132 = vpow2.f32 %v10081_v57  ;;  %v10086_v34 = vmul.f32 -1.442695, %v15059_v46  ;;  %v15070_v61 = vadd.f32 %v14962_v15, %v5985_v35  ;;  %v5987_v50 = vadd.f32 %v5971_v1, %v14901_v49 }
 0xd4a   :  { %12134 = vpow2.f32 %v10082_v32  ;;  %v5988_v55 = vadd.f32 %v14899_v16, %v5972_v37  ;;  %v7189_v59 = vadd.f32 %v14987_v63, %v14927_v60  ;;  %v7190_v48 = vadd.f32 %v14923_v9, %v14984_v41 }
 0xd4b   :  { %12136 = vpow2.f32 %v10083_v47  ;;  %v10087_v8 = vmul.f32 -1.442695, %v15070_v61  ;;  %v15086_v24 = vadd.f32 %v14962_v15, %v5986_v22  ;;  %v15089_v35 = vadd.f32 %v14962_v15, %v5987_v50 }
 0xd4c   :  { %12138 = vpow2.f32 %v10084_v6  ;;  %v15080_v23 = vadd.f32 %v7189_v59, %v14962_v15  ;;  %v15083_v21 = vadd.f32 %v7190_v48, %v14962_v15 }
 0xd4d   :  { %v12121_v49 = vpop.eup %12120  ;;  %12140 = vpow2.f32 %v10085_v52  ;;  %v15092_v52 = vadd.f32 %v14962_v15, %v5988_v55  ;;  %v10088_v48 = vmul.f32 -1.442695, %v15086_v24  ;;  %v10089_v22 = vmul.f32 -1.442695, %v15089_v35 }
 0xd4e   :  { %v12123_v38 = vpop.eup %12122  ;;  %v6057_v16 = vadd.f32 1.0, %v12121_v49  ;;  %12142 = vpow2.f32 %v10086_v34 }
 0xd4f   :  { %v12125_v40 = vpop.eup %12124  ;;  %v6058_v60 = vadd.f32 1.0, %v12123_v38  ;;  %12144 = vpow2.f32 %v10087_v8  ;;  %v10090_v38 = vmul.f32 -1.442695, %v15092_v52 }
 0xd50   :  { %v12127_v63 = vpop.eup %12126  ;;  %12146 = vrcp.f32 %v6057_v16  ;;  %v6059_v41 = vadd.f32 1.0, %v12125_v40 }
 0xd51   :  { %v12129_v9 = vpop.eup %12128  ;;  %12148 = vrcp.f32 %v6058_v60  ;;  %v6060_v2 = vadd.f32 1.0, %v12127_v63 }
 0xd52   :  { %v12131_v53 = vpop.eup %12130  ;;  %12150 = vrcp.f32 %v6059_v41  ;;  %v6061_v26 = vadd.f32 1.0, %v12129_v9 }
 0xd53   :  { %v12133_v27 = vpop.eup %12132  ;;  %12152 = vrcp.f32 %v6060_v2  ;;  %v6062_v57 = vadd.f32 1.0, %v12131_v53 }
 0xd54   :  { %v12135_v39 = vpop.eup %12134  ;;  %12154 = vrcp.f32 %v6061_v26  ;;  %v6063_v54 = vadd.f32 1.0, %v12133_v27 }
 0xd55   :  { %v12137_v32 = vpop.eup %12136  ;;  %v6064_v47 = vadd.f32 1.0, %v12135_v39  ;;  %12156 = vrcp.f32 %v6062_v57 }
 0xd56   :  { %v12139_v10 = vpop.eup %12138  ;;  %v6065_v6 = vadd.f32 1.0, %v12137_v32  ;;  %12158 = vrcp.f32 %v6063_v54 }
 0xd57   :  { %v12141_v1 = vpop.eup %12140  ;;  %v6066_v34 = vadd.f32 1.0, %v12139_v10  ;;  %12160 = vrcp.f32 %v6064_v47 }
 0xd58   :  { %v12143_v37 = vpop.eup %12142  ;;  %12162 = vrcp.f32 %v6065_v6  ;;  %v6067_v55 = vadd.f32 1.0, %v12141_v1 }
 0xd59   :  { %v12145_v59 = vpop.eup %12144  ;;  %12164 = vrcp.f32 %v6066_v34 }
 0xd5a   :  { %v12147_v8 = vpop.eup %12146  ;;  %12166 = vpow2.f32 %v10088_v48 }
 0xd5b   :  { %v12149_v49 = vpop.eup %12148  ;;  %v6105_v50 = vmul.f32 %v12147_v8, %v15010_v13  ;;  %12168 = vpow2.f32 %v10089_v22  ;;  %v6068_v13 = vadd.f32 1.0, %v12143_v37 }
 0xd5c   :  { %v12151_v16 = vpop.eup %12150  ;;  %v6106_v15 = vmul.f32 %v12149_v49, %v15013_v30  ;;  %12170 = vpow2.f32 %v10090_v38  ;;  %v6069_v30 = vadd.f32 1.0, %v12145_v59  ;;  %v6438_v38 = vld [vmem:[#allocation3 + $0x50] sm:$0xff] }
 0xd5d   :  { %v12153_v40 = vpop.eup %12152  ;;  %11123 = vmatprep.mubr.msk.f32.mxu1 %vm384_vm0, %v6105_v50  ;;  %v6107_v60 = vmul.f32 %v12151_v16, %v15016_v58  ;;  %12172 = vrcp.f32 %v6067_v55  ;;  %v6439_v16 = vld [vmem:[#allocation3 + $0x58] sm:$0xff] }
 0xd5e   :  { %v12155_v63 = vpop.eup %12154  ;;  %11124 = vmatmul.mubr.msk.f32.vlgmr.msra.gmra.mrb[74].mxu1 %vm384_vm0, %v6106_v15  ;;  %v6108_v41 = vmul.f32 %v12153_v40, %v15019_v3  ;;  %12174 = vrcp.f32 %v6068_v13  ;;  %v11533_v15 = vpack.c.bf16 %v6439_v16, %v6438_v38 }
 0xd5f   :  { %11126 = vmatprep.mubr.msk.f32.mxu1 %vm384_vm0, %v6107_v60  ;;  %v12157_v9 = vpop.eup %12156  ;;  %v6109_v2 = vmul.f32 %v12155_v63, %v15022_v19  ;;  %12176 = vrcp.f32 %v6069_v30 }
 0xd60   :  { %v12159_v53 = vpop.eup %12158  ;;  %v6110_v26 = vmul.f32 %v12157_v9, %v15025_v51 }
 0xd61   :  { %v12161_v58 = vpop.eup %12160  ;;  %v6111_v57 = vmul.f32 %v12159_v53, %v15028_v36 }
 0xd62   :  { %11127 = vmatmul.mubr.msk.f32.gmra.mrb[76].mxu1 %vm384_vm0, %v6108_v41  ;;  %v12163_v27 = vpop.eup %12162  ;;  %v6112_v54 = vmul.f32 %v12161_v58, %v15031_v14 }
 0xd63   :  { %11129 = vmatprep.mubr.msk.f32.mxu1 %vm384_vm0, %v6109_v2  ;;  %v12165_v39 = vpop.eup %12164  ;;  %v6113_v47 = vmul.f32 %v12163_v27, %v15044_v12 }
 0xd64   :  { %v12167_v3 = vpop.eup %12166  ;;  %v6114_v36 = vmul.f32 %v12165_v39, %v15047_v17 }
 0xd65   :  { %v12169_v19 = vpop.eup %12168  ;;  %v6070_v32 = vadd.f32 1.0, %v12167_v3 }
 0xd66   :  { %11130 = vmatmul.mubr.msk.f32.gmra.mrb[78].mxu1 %vm384_vm0, %v6110_v26  ;;  %v12171_v10 = vpop.eup %12170  ;;  %v6071_v1 = vadd.f32 1.0, %v12169_v19 }
 0xd67   :  { %11132 = vmatprep.mubr.msk.f32.mxu1 %vm384_vm0, %v6111_v57  ;;  %v12173_v6 = vpop.eup %12172  ;;  %12178 = vrcp.f32 %v6070_v32  ;;  %v6072_v51 = vadd.f32 1.0, %v12171_v10 }
 0xd68   :  { %12180 = vrcp.f32 %v6071_v1  ;;  %v12175_v37 = vpop.eup %12174  ;;  %v6115_v34 = vmul.f32 %v12173_v6, %v15056_v7 }
 0xd69   :  { %12182 = vrcp.f32 %v6072_v51  ;;  %v12177_v14 = vpop.eup %12176  ;;  %v6116_v12 = vmul.f32 %v12175_v37, %v15059_v46  ;;  %v6436_v46 = vld [vmem:[#allocation3 + $0x40] sm:$0xff] }
 0xd6a   :  { %11133 = vmatmul.mubr.msk.f32.gmra.mrb[80].mxu1 %vm384_vm0, %v6112_v54  ;;  %v6117_v59 = vmul.f32 %v12177_v14, %v15070_v61  ;;  %v6437_v61 = vld [vmem:[#allocation3 + $0x48] sm:$0xff] }
 0xd6b   :  { %11135 = vmatprep.mubr.msk.f32.mxu1 %vm384_vm0, %v6113_v47  ;;  %v11529_v50 = vpack.c.bf16 %v6437_v61, %v6436_v46 }
 0xd6d   :  { %11530 = vmatprep.subr.bf16.mxu0 %v11529_v50 }
 0xd6e   :  { %11136 = vmatmul.mubr.msk.f32.gmra.mrb[82].mxu1 %vm384_vm0, %v6114_v36  ;;  %11532 = vmatpush3.bf16.msra.mxu0 %v11529_v50 }
 0xd6f   :  { %11138 = vmatprep.mubr.msk.f32.mxu1 %vm384_vm0, %v6115_v34  ;;  %11534 = vmatprep.subr.bf16.mxu0 %v11533_v15 }
 0xd71   :  { %v12179_v48 = vpop.eup %12178 }
 0xd72   :  { %11139 = vmatmul.mubr.msk.f32.gmra.mrb[84].mxu1 %vm384_vm0, %v6116_v12  ;;  %v12181_v8 = vpop.eup %12180  ;;  %v6118_v17 = vmul.f32 %v12179_v48, %v15086_v24  ;;  %11536 = vmatpush3.bf16.msra.mxu0 %v11533_v15  ;;  %v16663_v24 = vld [vmem:[#allocation40_spill] sm:$0xff] }
 0xd73   :  { %11141 = vmatprep.mubr.msk.f32.mxu1 %vm384_vm0, %v6117_v59  ;;  %v12183_v22 = vpop.eup %12182  ;;  %v6119_v7 = vmul.f32 %v12181_v8, %v15089_v35  ;;  %11546 = vmatprep.subr.bf16.mxu0 %v14912_v62  ;;  %v15132_v35 = vrot.slane %v14953_v56, %v16663_v24 }
 0xd74   :  { %v6120_v49 = vmul.f32 %v12183_v22, %v15092_v52 }
 0xd76   :  { %11142 = vmatmul.mubr.msk.f32.gmra.mrb[86].mxu1 %vm384_vm0, %v6118_v17 }
 0xd77   :  { %11144 = vmatprep.mubr.msk.f32.mxu1 %vm384_vm0, %v6119_v7 }
 0xd7a   :  { %11145 = vmatmul.mubr.msk.f32.gmra.mrb[88].mxu1 %vm384_vm0, %v6120_v49 }
 0xe31   :  { %v11125_v55 = vpop.f32.mrb[74].mxu1 }
 0xe32   :  { %v15135_v52 = vadd.f32 %v11125_v55, %v15132_v35  ;;  %v6244_v40 = vpop.f32.mrb[75].mxu1 }
 0xe33   :  { %v15138_v60 = vadd.f32 %v6244_v40, %v15132_v35 }
 0xe34   :  { %v10112_v63 = vmul.f32 -1.442695, %v15135_v52 }
 0xe35   :  { %v10111_v13 = vmul.f32 -1.442695, %v15138_v60  ;;  %v11128_v41 = vpop.f32.mrb[76].mxu1 }
 0xe36   :  { %12184 = vpow2.f32 %v10112_v63  ;;  %v15143_v30 = vadd.f32 %v11128_v41, %v15132_v35  ;;  %v6254_v9 = vpop.f32.mrb[77].mxu1 }
 0xe37   :  { %12186 = vpow2.f32 %v10111_v13  ;;  %v15146_v2 = vadd.f32 %v6254_v9, %v15132_v35 }
 0xe38   :  { %v10114_v53 = vmul.f32 -1.442695, %v15143_v30 }
 0xe39   :  { %v10113_v58 = vmul.f32 -1.442695, %v15146_v2  ;;  %v11131_v26 = vpop.f32.mrb[78].mxu1 }
 0xe3a   :  { %12188 = vpow2.f32 %v10114_v53  ;;  %v15151_v27 = vadd.f32 %v11131_v26, %v15132_v35  ;;  %v6264_v57 = vpop.f32.mrb[79].mxu1 }
 0xe3b   :  { %12190 = vpow2.f32 %v10113_v58  ;;  %v15154_v39 = vadd.f32 %v6264_v57, %v15132_v35 }
 0xe3c   :  { %v10116_v3 = vmul.f32 -1.442695, %v15151_v27 }
 0xe3d   :  { %v10115_v19 = vmul.f32 -1.442695, %v15154_v39  ;;  %v11134_v54 = vpop.f32.mrb[80].mxu1 }
 0xe3e   :  { %12192 = vpow2.f32 %v10116_v3  ;;  %v15159_v32 = vadd.f32 %v11134_v54, %v15132_v35  ;;  %v6274_v10 = vpop.f32.mrb[81].mxu1 }
 0xe3f   :  { %12194 = vpow2.f32 %v10115_v19  ;;  %v15162_v47 = vadd.f32 %v6274_v10, %v15132_v35 }
 0xe40   :  { %v12185_v1 = vpop.eup %12184  ;;  %v10118_v6 = vmul.f32 -1.442695, %v15159_v32 }
 0xe41   :  { %v12187_v51 = vpop.eup %12186  ;;  %v6372_v36 = vadd.f32 1.0, %v12185_v1  ;;  %v10117_v37 = vmul.f32 -1.442695, %v15162_v47  ;;  %v11137_v34 = vpop.f32.mrb[82].mxu1 }
 0xe42   :  { %v6371_v14 = vadd.f32 1.0, %v12187_v51  ;;  %12196 = vpow2.f32 %v10118_v6  ;;  %v15167_v12 = vadd.f32 %v11137_v34, %v15132_v35  ;;  %v6284_v59 = vpop.f32.mrb[83].mxu1 }
 0xe43   :  { %12198 = vrcp.f32 %v6372_v36  ;;  %v15170_v48 = vadd.f32 %v6284_v59, %v15132_v35 }
 0xe44   :  { %v12189_v8 = vpop.eup %12188  ;;  %12200 = vrcp.f32 %v6371_v14  ;;  %v10120_v17 = vmul.f32 -1.442695, %v15167_v12 }
 0xe45   :  { %v12191_v22 = vpop.eup %12190  ;;  %v6374_v7 = vadd.f32 1.0, %v12189_v8  ;;  %12202 = vpow2.f32 %v10117_v37  ;;  %v10119_v49 = vmul.f32 -1.442695, %v15170_v48  ;;  %v11140_v46 = vpop.f32.mrb[84].mxu1 }
 0xe46   :  { %v6373_v61 = vadd.f32 1.0, %v12191_v22  ;;  %12204 = vpow2.f32 %v10120_v17  ;;  %v15175_v50 = vadd.f32 %v11140_v46, %v15132_v35  ;;  %v6294_v38 = vpop.f32.mrb[85].mxu1 }
 0xe47   :  { %12206 = vrcp.f32 %v6374_v7  ;;  %v15178_v16 = vadd.f32 %v6294_v38, %v15132_v35 }
 0xe48   :  { %v12193_v15 = vpop.eup %12192  ;;  %12208 = vrcp.f32 %v6373_v61  ;;  %v10122_v55 = vmul.f32 -1.442695, %v15175_v50 }
 0xe49   :  { %v12195_v40 = vpop.eup %12194  ;;  %v6376_v63 = vadd.f32 1.0, %v12193_v15  ;;  %12210 = vpow2.f32 %v10119_v49  ;;  %v10121_v13 = vmul.f32 -1.442695, %v15178_v16  ;;  %v11143_v9 = vpop.f32.mrb[86].mxu1 }
 0xe4a   :  { %v6375_v41 = vadd.f32 1.0, %v12195_v40  ;;  %12212 = vpow2.f32 %v10122_v55  ;;  %v6304_v53 = vpop.f32.mrb[87].mxu1  ;;  %v15183_v26 = vadd.f32 %v11143_v9, %v15132_v35  ;;  %v10179_v9 = vmul.f32 -1.442695, %v15080_v23 }
 0xe4b   :  { %12214 = vrcp.f32 %v6376_v63  ;;  %v15193_v14 = vadd.f32 %v6304_v53, %v15132_v35 }
 0xe4c   :  { %v12197_v58 = vpop.eup %12196  ;;  %12216 = vrcp.f32 %v6375_v41  ;;  %v10124_v34 = vmul.f32 -1.442695, %v15183_v26 }
 0xe4d   :  { %v12199_v57 = vpop.eup %12198  ;;  %v6378_v3 = vadd.f32 1.0, %v12197_v58  ;;  %12218 = vpow2.f32 %v10121_v13  ;;  %v11146_v54 = vpop.f32.mrb[88].mxu1  ;;  %v10123_v46 = vmul.f32 -1.442695, %v15193_v14 }
 0xe4e   :  { %v12201_v19 = vpop.eup %12200  ;;  %v6314_v6 = vpop.f32.mrb[89].mxu1  ;;  %v15189_v36 = vmul.f32 %v12199_v57, %v15135_v52 }
 0xe4f   :  { %v12203_v10 = vpop.eup %12202  ;;  %v15186_v1 = vmul.f32 %v12201_v19, %v15138_v60  ;;  %12220 = vrcp.f32 %v6378_v3 }
 0xe50   :  { %v12205_v51 = vpop.eup %12204  ;;  %v6377_v37 = vadd.f32 1.0, %v12203_v10  ;;  %v10180_v10 = vmul.f32 -1.442695, %v15083_v21 }
 0xe51   :  { %v12207_v59 = vpop.eup %12206  ;;  %v6380_v8 = vadd.f32 1.0, %v12205_v51  ;;  %11155 = vmatprep.mubr.msk.f32.mxu0 %vm384_vm0, %v15186_v1 }
 0xe52   :  { %v12209_v17 = vpop.eup %12208  ;;  %12222 = vrcp.f32 %v6377_v37  ;;  %11156 = vmatmul.mubr.msk.f32.vlgmr.msra.gmra.mrb[88].mxu0 %vm384_vm0, %v15189_v36  ;;  %v15204_v7 = vmul.f32 %v12207_v59, %v15143_v30 }
 0xe53   :  { %v12211_v60 = vpop.eup %12210  ;;  %v15200_v52 = vmul.f32 %v12209_v17, %v15146_v2  ;;  %11548 = vmatpush3.bf16.msra.mxu0 %v14912_v62  ;;  %12224 = vpow2.f32 %v10124_v34 }
 0xe54   :  { %v12213_v22 = vpop.eup %12212  ;;  %v6379_v49 = vadd.f32 1.0, %v12211_v60  ;;  %11550 = vmatprep.subr.bf16.mxu0 %v14917_v44  ;;  %12226 = vrcp.f32 %v6380_v8 }
 0xe55   :  { %v12215_v61 = vpop.eup %12214  ;;  %11158 = vmatprep.mubr.msk.f32.mxu0 %vm384_vm0, %v15200_v52  ;;  %v6382_v2 = vadd.f32 1.0, %v12213_v22 }
 0xe56   :  { %v12217_v38 = vpop.eup %12216  ;;  %12228 = vrcp.f32 %v6379_v49  ;;  %11159 = vmatmul.mubr.msk.f32.gmra.mrb[90].mxu0 %vm384_vm0, %v15204_v7  ;;  %v15217_v15 = vmul.f32 %v12215_v61, %v15151_v27 }
 0xe57   :  { %v12219_v62 = vpop.eup %12218  ;;  %v15213_v30 = vmul.f32 %v12217_v38, %v15154_v39  ;;  %11552 = vmatpush3.bf16.msra.mxu0 %v14917_v44  ;;  %12230 = vpow2.f32 %v10123_v46  ;;  %v6320_v39 = vadd.f32 %v11146_v54, %v15132_v35 }
 0xe58   :  { %v6381_v55 = vadd.f32 1.0, %v12219_v62  ;;  %12232 = vrcp.f32 %v6382_v2 }
 0xe59   :  { %11161 = vmatprep.mubr.msk.f32.mxu0 %vm384_vm0, %v15213_v30  ;;  %v12221_v40 = vpop.eup %12220  ;;  %v10126_v58 = vmul.f32 -1.442695, %v6320_v39 }
 0xe5a   :  { %11162 = vmatmul.mubr.msk.f32.gmra.mrb[92].mxu0 %vm384_vm0, %v15217_v15  ;;  %12234 = vrcp.f32 %v6381_v55  ;;  %v15228_v27 = vmul.f32 %v12221_v40, %v15159_v32 }
 0xe5b   :  { %12236 = vpow2.f32 %v10179_v9 }
 0xe5c   :  { %v12223_v63 = vpop.eup %12222  ;;  %12238 = vpow2.f32 %v10126_v58  ;;  %v10185_v58 = vld [vmem:[%s16361_s7 + $0x80] sm:$0xff] }
 0xe5d   :  { %v15225_v13 = vmul.f32 %v12223_v63, %v15162_v47  ;;  %v12225_v44 = vpop.eup %12224  ;;  %v6315_v47 = vadd.f32 %v6314_v6, %v15132_v35 }
 0xe5e   :  { %v12227_v41 = vpop.eup %12226  ;;  %v6384_v19 = vadd.f32 1.0, %v12225_v44 }
 0xe5f   :  { %11164 = vmatprep.mubr.msk.f32.mxu0 %vm384_vm0, %v15225_v13  ;;  %v15240_v32 = vmul.f32 %v12227_v41, %v15167_v12  ;;  %v10125_v37 = vmul.f32 -1.442695, %v6315_v47  ;;  %v10160_v41 = vld [vmem:[%s16364_s10 + $0x48] sm:$0xff] }
 0xe60   :  { %v12229_v53 = vpop.eup %12228  ;;  %11165 = vmatmul.mubr.msk.f32.gmra.mrb[94].mxu0 %vm384_vm0, %v15228_v27  ;;  %12240 = vrcp.f32 %v6384_v19  ;;  %v16664_v19 = vld [vmem:[#allocation41_spill] sm:$0xff] }
 0xe61   :  { %v15236_v57 = vmul.f32 %v12229_v53, %v15170_v48  ;;  %v12231_v3 = vpop.eup %12230 }
 0xe62   :  { %v12233_v54 = vpop.eup %12232  ;;  %v6383_v51 = vadd.f32 1.0, %v12231_v3 }
 0xe63   :  { %11167 = vmatprep.mubr.msk.f32.mxu0 %vm384_vm0, %v15236_v57  ;;  %v15251_v12 = vmul.f32 %v12233_v54, %v15175_v50  ;;  %v15302_v54 = vrot.slane %v14953_v56, %v16664_v19 }
 0xe64   :  { %11168 = vmatmul.mubr.msk.f32.gmra.mrb[96].mxu0 %vm384_vm0, %v15240_v32  ;;  %v12235_v48 = vpop.eup %12234  ;;  %12242 = vrcp.f32 %v6383_v51 }
 0xe65   :  { %v15248_v6 = vmul.f32 %v12235_v48, %v15178_v16  ;;  %12244 = vpow2.f32 %v10180_v10  ;;  %v12237_v34 = vpop.eup %12236 }
 0xe66   :  { %12246 = vpow2.f32 %v10125_v37  ;;  %v12239_v59 = vpop.eup %12238  ;;  %v7199_v17 = vadd.f32 1.0, %v12237_v34 }
 0xe67   :  { %11170 = vmatprep.mubr.msk.f32.mxu0 %vm384_vm0, %v15248_v6  ;;  %v6386_v16 = vadd.f32 1.0, %v12239_v59 }
 0xe68   :  { %11171 = vmatmul.mubr.msk.f32.gmra.mrb[98].mxu0 %vm384_vm0, %v15251_v12  ;;  %12248 = vrcp.f32 %v7199_v17 }
 0xe69   :  { %12250 = vrcp.f32 %v6386_v16 }
 0xe6a   :  { %v12241_v8 = vpop.eup %12240 }
 0xe6b   :  { %v15261_v46 = vmul.f32 %v12241_v8, %v15183_v26 }
 0xe6e   :  { %v12243_v60 = vpop.eup %12242 }
 0xe6f   :  { %v12245_v22 = vpop.eup %12244  ;;  %v15258_v49 = vmul.f32 %v12243_v60, %v15193_v14 }
 0xe70   :  { %v12247_v50 = vpop.eup %12246  ;;  %v7200_v38 = vadd.f32 1.0, %v12245_v22 }
 0xe71   :  { %v6385_v61 = vadd.f32 1.0, %v12247_v50  ;;  %11173 = vmatprep.mubr.msk.f32.mxu0 %vm384_vm0, %v15258_v49 }
 0xe72   :  { %11174 = vmatmul.mubr.msk.f32.gmra.mrb[100].mxu0 %vm384_vm0, %v15261_v46  ;;  %v12249_v2 = vpop.eup %12248 }
 0xe73   :  { %12252 = vrcp.f32 %v6385_v61  ;;  %v12251_v62 = vpop.eup %12250  ;;  %v7205_v63 = vmul.f32 %v12249_v2, %v15080_v23  ;;  %v10161_v23 = vld [vmem:[%s16364_s10 + $0x50] sm:$0xff] }
 0xe74   :  { %12254 = vrcp.f32 %v7200_v38  ;;  %v15269_v40 = vmul.f32 %v12251_v62, %v6320_v39  ;;  %v10159_v39 = vld [vmem:[%s16364_s10 + $0x40] sm:$0xff] }
 0xe75   :  { %v11537_v9 = vpack.c.bf16 %v10160_v41, %v10159_v39 }
 0xe77   :  { %11538 = vmatprep.subr.bf16.mxu1 %v11537_v9 }
 0xe78   :  { %11540 = vmatpush3.bf16.msra.mxu1 %v11537_v9 }
 0xe7d   :  { %v12253_v14 = vpop.eup %12252 }
 0xe7e   :  { %v15267_v55 = vmul.f32 %v12253_v14, %v6315_v47  ;;  %v12255_v26 = vpop.eup %12254  ;;  %v10186_v47 = vld [vmem:[%s16361_s7 + $0x88] sm:$0xff] }
 0xe7f   :  { %v7206_v44 = vmul.f32 %v12255_v26, %v15083_v21  ;;  %v10162_v21 = vld [vmem:[%s16364_s10 + $0x58] sm:$0xff]  ;;  %v15297_v3 = vpack.c.bf16 %v10186_v47, %v10185_v58 }
 0xe80   :  { %11176 = vmatprep.mubr.msk.f32.mxu0 %vm384_vm0, %v15267_v55  ;;  %v11541_v53 = vpack.c.bf16 %v10162_v21, %v10161_v23 }
 0xe81   :  { %11177 = vmatmul.mubr.msk.f32.gmra.mrb[102].mxu0 %vm384_vm0, %v15269_v40 }
 0xe82   :  { %11219 = vmatprep.mubr.msk.f32.mxu0 %vm384_vm0, %v7205_v63  ;;  %11542 = vmatprep.subr.bf16.mxu1 %v11541_v53 }
 0xe83   :  { %11544 = vmatpush3.bf16.msra.mxu1 %v11541_v53 }
 0xe84   :  { %11554 = vmatprep.subr.bf16.mxu1 %v15297_v3 }
 0xe85   :  { %11220 = vmatmul.mubr.msk.f32.vlgmr.msra.gmra.mrb[104].mxu0 %vm384_vm0, %v7206_v44 }
 0xf25   :  { %v11157_v10 = vpop.f32.mrb[88].mxu0 }
 0xf26   :  { %v15305_v48 = vadd.f32 %v11157_v10, %v15302_v54  ;;  %v6558_v51 = vpop.f32.mrb[89].mxu0 }
 0xf27   :  { %v15308_v37 = vadd.f32 %v6558_v51, %v15302_v54 }
 0xf28   :  { %v10144_v34 = vmul.f32 -1.442695, %v15305_v48 }
 0xf29   :  { %v10143_v59 = vmul.f32 -1.442695, %v15308_v37  ;;  %v11160_v8 = vpop.f32.mrb[90].mxu0 }
 0xf2a   :  { %12256 = vpow2.f32 %v10144_v34  ;;  %v15313_v17 = vadd.f32 %v11160_v8, %v15302_v54  ;;  %v6568_v60 = vpop.f32.mrb[91].mxu0 }
 0xf2b   :  { %12258 = vpow2.f32 %v10143_v59  ;;  %v15316_v56 = vadd.f32 %v6568_v60, %v15302_v54 }
 0xf2c   :  { %v10146_v16 = vmul.f32 -1.442695, %v15313_v17 }
 0xf2d   :  { %v10145_v22 = vmul.f32 -1.442695, %v15316_v56  ;;  %v11163_v50 = vpop.f32.mrb[92].mxu0 }
 0xf2e   :  { %12260 = vpow2.f32 %v10146_v16  ;;  %v15321_v61 = vadd.f32 %v11163_v50, %v15302_v54  ;;  %v6578_v38 = vpop.f32.mrb[93].mxu0 }
 0xf2f   :  { %12262 = vpow2.f32 %v10145_v22  ;;  %v15324_v2 = vadd.f32 %v6578_v38, %v15302_v54 }
 0xf30   :  { %v10148_v62 = vmul.f32 -1.442695, %v15321_v61 }
 0xf31   :  { %v10147_v14 = vmul.f32 -1.442695, %v15324_v2 }
 0xf32   :  { %12264 = vpow2.f32 %v10148_v62 }
 0xf33   :  { %12266 = vpow2.f32 %v10147_v14  ;;  %v11166_v26 = vpop.f32.mrb[94].mxu0 }
 0xf34   :  { %v12257_v63 = vpop.eup %12256  ;;  %v15329_v44 = vadd.f32 %v11166_v26, %v15302_v54  ;;  %v6588_v39 = vpop.f32.mrb[95].mxu0 }
 0xf35   :  { %v12259_v41 = vpop.eup %12258  ;;  %v6686_v9 = vadd.f32 1.0, %v12257_v63  ;;  %v15332_v23 = vadd.f32 %v6588_v39, %v15302_v54 }
 0xf36   :  { %v6685_v21 = vadd.f32 1.0, %v12259_v41  ;;  %v10150_v53 = vmul.f32 -1.442695, %v15329_v44 }
 0xf37   :  { %12268 = vrcp.f32 %v6686_v9  ;;  %v10149_v58 = vmul.f32 -1.442695, %v15332_v23  ;;  %v11169_v47 = vpop.f32.mrb[96].mxu0 }
 0xf38   :  { %v12261_v10 = vpop.eup %12260  ;;  %12270 = vrcp.f32 %v6685_v21  ;;  %v15337_v51 = vadd.f32 %v11169_v47, %v15302_v54  ;;  %v6598_v34 = vpop.f32.mrb[97].mxu0  ;;  %v10187_v47 = vld [vmem:[%s16361_s7 + $0x90] sm:$0xff] }
 0xf39   :  { %v12263_v59 = vpop.eup %12262  ;;  %v6688_v8 = vadd.f32 1.0, %v12261_v10  ;;  %12272 = vpow2.f32 %v10150_v53  ;;  %v15340_v60 = vadd.f32 %v6598_v34, %v15302_v54  ;;  %v10188_v10 = vld [vmem:[%s16361_s7 + $0x98] sm:$0xff] }
 0xf3a   :  { %v6687_v16 = vadd.f32 1.0, %v12263_v59  ;;  %12274 = vpow2.f32 %v10149_v58  ;;  %v10152_v22 = vmul.f32 -1.442695, %v15337_v51 }
 0xf3b   :  { %12276 = vrcp.f32 %v6688_v8  ;;  %v10151_v50 = vmul.f32 -1.442695, %v15340_v60  ;;  %v11172_v62 = vpop.f32.mrb[98].mxu0 }
 0xf3c   :  { %v12265_v38 = vpop.eup %12264  ;;  %12278 = vrcp.f32 %v6687_v16  ;;  %v15345_v63 = vadd.f32 %v11172_v62, %v15302_v54  ;;  %v6608_v39 = vpop.f32.mrb[99].mxu0 }
 0xf3d   :  { %v12267_v14 = vpop.eup %12266  ;;  %v6690_v26 = vadd.f32 1.0, %v12265_v38  ;;  %12280 = vpow2.f32 %v10152_v22  ;;  %v15348_v9 = vadd.f32 %v6608_v39, %v15302_v54  ;;  %v11557_v38 = vpack.c.bf16 %v10188_v10, %v10187_v47  ;;  %v10190_v39 = vld [vmem:[%s16361_s7 + $0xa8] sm:$0xff] }
 0xf3e   :  { %v6689_v41 = vadd.f32 1.0, %v12267_v14  ;;  %12282 = vpow2.f32 %v10151_v50  ;;  %v10154_v21 = vmul.f32 -1.442695, %v15345_v63 }
 0xf3f   :  { %12284 = vrcp.f32 %v6690_v26  ;;  %v10153_v53 = vmul.f32 -1.442695, %v15348_v9  ;;  %v10189_v26 = vld [vmem:[%s16361_s7 + $0xa0] sm:$0xff] }
 0xf40   :  { %12286 = vrcp.f32 %v6689_v41  ;;  %v11561_v10 = vpack.c.bf16 %v10190_v39, %v10189_v26 }
 0xf41   :  { %v12269_v58 = vpop.eup %12268  ;;  %12288 = vpow2.f32 %v10154_v21 }
 0xf42   :  { %v12271_v34 = vpop.eup %12270  ;;  %12290 = vpow2.f32 %v10153_v53  ;;  %v6734_v22 = vmul.f32 %v12269_v58, %v15305_v48 }
 0xf43   :  { %v12273_v59 = vpop.eup %12272  ;;  %v6733_v8 = vmul.f32 %v12271_v34, %v15308_v37 }
 0xf44   :  { %v12275_v16 = vpop.eup %12274  ;;  %v6692_v50 = vadd.f32 1.0, %v12273_v59 }
 0xf45   :  { %v12277_v62 = vpop.eup %12276  ;;  %v6691_v14 = vadd.f32 1.0, %v12275_v16  ;;  %11187 = vmatprep.mubr.msk.f32.mxu1 %vm384_vm0, %v6733_v8  ;;  %v11175_v47 = vpop.f32.mrb[100].mxu0 }
 0xf46   :  { %v12279_v41 = vpop.eup %12278  ;;  %12292 = vrcp.f32 %v6692_v50  ;;  %11188 = vmatmul.mubr.msk.f32.vlgmr.msra.gmra.mrb[90].mxu1 %vm384_vm0, %v6734_v22  ;;  %v6736_v53 = vmul.f32 %v12277_v62, %v15313_v17  ;;  %v15372_v8 = vadd.f32 %v11175_v47, %v15302_v54  ;;  %v6618_v16 = vpop.f32.mrb[101].mxu0 }
 0xf47   :  { %v12281_v37 = vpop.eup %12280  ;;  %v6735_v48 = vmul.f32 %v12279_v41, %v15316_v56  ;;  %12294 = vrcp.f32 %v6691_v14  ;;  %11556 = vmatpush3.bf16.msra.mxu1 %v15297_v3  ;;  %v10191_v56 = vld [vmem:[%s16361_s7 + $0xb0] sm:$0xff]  ;;  %v10192_v3 = vld [vmem:[%s16361_s7 + $0xb8] sm:$0xff]  ;;  %v15382_v22 = vadd.f32 %v6618_v16, %v15302_v54 }
 0xf48   :  { %v12283_v21 = vpop.eup %12282  ;;  %v6694_v58 = vadd.f32 1.0, %v12281_v37  ;;  %11558 = vmatprep.subr.bf16.mxu1 %v11557_v38  ;;  %v10156_v14 = vmul.f32 -1.442695, %v15372_v8 }
 0xf49   :  { %v12285_v34 = vpop.eup %12284  ;;  %v6693_v59 = vadd.f32 1.0, %v12283_v21  ;;  %11190 = vmatprep.mubr.msk.f32.mxu1 %vm384_vm0, %v6735_v48  ;;  %v10155_v37 = vmul.f32 -1.442695, %v15382_v22  ;;  %v11565_v48 = vpack.c.bf16 %v10192_v3, %v10191_v56 }
 0xf4a   :  { %v12287_v17 = vpop.eup %12286  ;;  %12296 = vrcp.f32 %v6694_v58  ;;  %11191 = vmatmul.mubr.msk.f32.gmra.mrb[92].mxu1 %vm384_vm0, %v6736_v53  ;;  %v6738_v39 = vmul.f32 %v12285_v34, %v15321_v61  ;;  %v7309_v53 = vsel %vm384_vm0, %v15189_v36, 0.0  ;;  %v7302_v58 = vsel %vm384_vm0, %v15186_v1, 0.0 }
 0xf4b   :  { %v12289_v50 = vpop.eup %12288  ;;  %v6737_v62 = vmul.f32 %v12287_v17, %v15324_v2  ;;  %12298 = vrcp.f32 %v6693_v59  ;;  %11560 = vmatpush3.bf16.msra.mxu1 %v11557_v38  ;;  %v7310_v38 = vrot.slane %v7309_v53, 4  ;;  %v7323_v34 = vsel %vm384_vm0, %v15204_v7, 0.0 }
 0xf4c   :  { %v12291_v26 = vpop.eup %12290  ;;  %v6696_v41 = vadd.f32 1.0, %v12289_v50  ;;  %11562 = vmatprep.subr.bf16.mxu1 %v11561_v10  ;;  %12300 = vpow2.f32 %v10156_v14  ;;  %v7316_v36 = vsel %vm384_vm0, %v15200_v52, 0.0  ;;  %v7303_v3 = vrot.slane %v7302_v58, 4 }
 0xf4d   :  { %v6695_v21 = vadd.f32 1.0, %v12291_v26  ;;  %11193 = vmatprep.mubr.msk.f32.mxu1 %vm384_vm0, %v6737_v62  ;;  %v7311_v56 = vadd.f32 %v7310_v38, %v7309_v53  ;;  %v7324_v1 = vrot.slane %v7323_v34, 4  ;;  %v7317_v17 = vrot.slane %v7316_v36, 4 }
 0xf4e   :  { %12302 = vrcp.f32 %v6696_v41  ;;  %11194 = vmatmul.mubr.msk.f32.gmra.mrb[94].mxu1 %vm384_vm0, %v6738_v39 }
 0xf4f   :  { %12304 = vrcp.f32 %v6695_v21  ;;  %11564 = vmatpush3.bf16.msra.mxu1 %v11561_v10  ;;  %v7312_v41 = vrot.slane %v7311_v56, 2  ;;  %v7325_v21 = vadd.f32 %v7324_v1, %v7323_v34  ;;  %v7318_v53 = vadd.f32 %v7317_v17, %v7316_v36 }
 0xf50   :  { %v12293_v2 = vpop.eup %12292  ;;  %12306 = vpow2.f32 %v10155_v37  ;;  %11566 = vmatprep.subr.bf16.mxu1 %v11565_v48  ;;  %v7304_v37 = vadd.f32 %v7303_v3, %v7302_v58  ;;  %v7351_v17 = vsel %vm384_vm0, %v15228_v27, 0.0  ;;  %v7372_v27 = vsel %vm384_vm0, %v15248_v6, 0.0 }
 0xf51   :  { %v12295_v61 = vpop.eup %12294  ;;  %v6740_v59 = vmul.f32 %v12293_v2, %v15329_v44  ;;  %v7319_v3 = vrot.slane %v7318_v53, 2  ;;  %v7373_v6 = vrot.slane %v7372_v27, 4 }
 0xf52   :  { %v6739_v47 = vmul.f32 %v12295_v61, %v15332_v23  ;;  %v7305_v36 = vrot.slane %v7304_v37, 2 }
 0xf53   :  { %11568 = vmatpush3.bf16.msra.mxu1 %v11565_v48  ;;  %v7337_v48 = vsel %vm384_vm0, %v15217_v15, 0.0 }
 0xf54   :  { %v12297_v10 = vpop.eup %12296  ;;  %11196 = vmatprep.mubr.msk.f32.mxu1 %vm384_vm0, %v6739_v47  ;;  %v11178_v62 = vpop.f32.mrb[102].mxu0  ;;  %v7338_v15 = vrot.slane %v7337_v48, 4 }
 0xf55   :  { %v12299_v16 = vpop.eup %12298  ;;  %11197 = vmatmul.mubr.msk.f32.gmra.mrb[96].mxu1 %vm384_vm0, %v6740_v59  ;;  %v6742_v7 = vmul.f32 %v12297_v10, %v15337_v51  ;;  %v15406_v44 = vadd.f32 %v11178_v62, %v15302_v54  ;;  %v6628_v26 = vpop.f32.mrb[103].mxu0  ;;  %v7379_v62 = vsel %vm384_vm0, %v15251_v12, 0.0 }
 0xf56   :  { %v6741_v23 = vmul.f32 %v12299_v16, %v15340_v60  ;;  %v12301_v50 = vpop.eup %12300  ;;  %v15412_v60 = vadd.f32 %v6628_v26, %v15302_v54  ;;  %v7330_v54 = vsel %vm384_vm0, %v15213_v30, 0.0  ;;  %v7326_v16 = vrot.slane %v7325_v21, 2 }
 0xf57   :  { %v6698_v14 = vadd.f32 1.0, %v12301_v50  ;;  %v10158_v61 = vmul.f32 -1.442695, %v15406_v44  ;;  %v7331_v1 = vrot.slane %v7330_v54, 4  ;;  %v15437_v50 = vadd.f32 %v7338_v15, %v7337_v48 }
 0xf58   :  { %v12303_v52 = vpop.eup %12302  ;;  %11199 = vmatprep.mubr.msk.f32.mxu1 %vm384_vm0, %v6741_v23  ;;  %v10157_v58 = vmul.f32 -1.442695, %v15412_v60  ;;  %v11221_v59 = vpop.f32.mrb[104].mxu0  ;;  %v7386_v26 = vsel %vm384_vm0, %v15258_v49, 0.0  ;;  %v7380_v48 = vrot.slane %v7379_v62, 4 }
 0xf59   :  { %v12305_v39 = vpop.eup %12304  ;;  %11200 = vmatmul.mubr.msk.f32.gmra.mrb[98].mxu1 %vm384_vm0, %v6742_v7  ;;  %v6744_v38 = vmul.f32 %v12303_v52, %v15345_v63  ;;  %12308 = vrcp.f32 %v6698_v14  ;;  %v15422_v10 = vadd.f32 %v11221_v59, %v15132_v35  ;;  %v7279_v34 = vpop.f32.mrb[105].mxu0  ;;  %v7358_v7 = vsel %vm384_vm0, %v15236_v57, 0.0 }
 0xf5a   :  { %v12307_v51 = vpop.eup %12306  ;;  %v6743_v2 = vmul.f32 %v12305_v39, %v15348_v9  ;;  %12310 = vpow2.f32 %v10158_v61  ;;  %v15425_v9 = vadd.f32 %v7312_v41, %v7311_v56  ;;  %v15428_v63 = vadd.f32 %v7279_v34, %v15132_v35 }
 0xf5b   :  { %v6697_v47 = vadd.f32 1.0, %v12307_v51  ;;  %v10184_v30 = vmul.f32 -1.442695, %v15422_v10  ;;  %v7344_v56 = vsel %vm384_vm0, %v15225_v13, 0.0  ;;  %v7365_v35 = vsel %vm384_vm0, %v15240_v32, 0.0 }
 0xf5c   :  { %11202 = vmatprep.mubr.msk.f32.mxu1 %vm384_vm0, %v6743_v2  ;;  %v10183_v23 = vmul.f32 -1.442695, %v15428_v63  ;;  %v7393_v13 = vsel %vm384_vm0, %v15261_v46, 0.0  ;;  %v7352_v52 = vrot.slane %v7351_v17, 4  ;;  %v7345_v14 = vrot.slane %v7344_v56, 4 }
 0xf5d   :  { %12312 = vrcp.f32 %v6697_v47  ;;  %11203 = vmatmul.mubr.msk.f32.gmra.mrb[100].mxu1 %vm384_vm0, %v6744_v38  ;;  %v7407_v32 = vsel %vm384_vm0, %v15269_v40, 0.0  ;;  %v15453_v57 = vadd.f32 %v7305_v36, %v7304_v37  ;;  %v7366_v39 = vrot.slane %v7365_v35, 4 }
 0xf5e   :  { %12314 = vpow2.f32 %v10157_v58  ;;  %v7359_v41 = vrot.slane %v7358_v7, 4  ;;  %v7394_v51 = vrot.slane %v7393_v13, 4  ;;  %v15456_v46 = vadd.f32 %v7326_v16, %v7325_v21 }
 0xf5f   :  { %12316 = vpow2.f32 %v10184_v30  ;;  %v15458_v61 = vadd.f32 %v7319_v3, %v7318_v53  ;;  %v7387_v38 = vrot.slane %v7386_v26, 4  ;;  %v7408_v47 = vrot.slane %v7407_v32, 4 }
 0xf60   :  { %12318 = vpow2.f32 %v10183_v23  ;;  %v7340_v58 = vrot.slane %v15437_v50, 2  ;;  %v7332_v40 = vadd.f32 %v7331_v1, %v7330_v54  ;;  %v7353_v37 = vadd.f32 %v7352_v52, %v7351_v17 }
 0xf61   :  { %v7346_v59 = vadd.f32 %v7345_v14, %v7344_v56  ;;  %v7367_v34 = vadd.f32 %v7366_v39, %v7365_v35  ;;  %v7360_v36 = vadd.f32 %v7359_v41, %v7358_v7  ;;  %v7400_v30 = vsel %vm384_vm0, %v15267_v55, 0.0 }
 0xf62   :  { %v7381_v21 = vadd.f32 %v7380_v48, %v7379_v62  ;;  %v7374_v16 = vadd.f32 %v7373_v6, %v7372_v27  ;;  %v7395_v53 = vadd.f32 %v7394_v51, %v7393_v13  ;;  %v7388_v19 = vadd.f32 %v7387_v38, %v7386_v26 }
 0xf63   :  { %v12309_v2 = vpop.eup %12308  ;;  %v7409_v24 = vadd.f32 %v7408_v47, %v7407_v32  ;;  %v7333_v17 = vrot.slane %v7332_v40, 2  ;;  %v7354_v56 = vrot.slane %v7353_v37, 2  ;;  %v7401_v35 = vrot.slane %v7400_v30, 4 }
 0xf64   :  { %v12311_v49 = vpop.eup %12310  ;;  %v6746_v42 = vmul.f32 %v12309_v2, %v15372_v8  ;;  %v7347_v7 = vrot.slane %v7346_v59, 2  ;;  %v7368_v52 = vrot.slane %v7367_v34, 2  ;;  %v7382_v27 = vrot.slane %v7381_v21, 2 }
 0xf65   :  { %v6700_v23 = vadd.f32 1.0, %v12311_v49  ;;  %v7375_v13 = vrot.slane %v7374_v16, 2  ;;  %v7396_v8 = vrot.slane %v7395_v53, 2  ;;  %v7389_v26 = vrot.slane %v7388_v19, 2 }
 0xf66   :  { %v7410_v32 = vrot.slane %v7409_v24, 2  ;;  %v7341_v39 = vadd.f32 %v7340_v58, %v15437_v50  ;;  %v7334_v41 = vadd.f32 %v7333_v17, %v7332_v40  ;;  %v7307_v48 = vrot.slane %v15453_v57, 1 }
 0xf67   :  { %v12313_v15 = vpop.eup %12312  ;;  %12320 = vrcp.f32 %v6700_v23  ;;  %v7355_v6 = vadd.f32 %v7354_v56, %v7353_v37  ;;  %v7348_v51 = vadd.f32 %v7347_v7, %v7346_v59  ;;  %v7369_v2 = vadd.f32 %v7368_v52, %v7367_v34 }
 0xf68   :  { %v12315_v12 = vpop.eup %12314  ;;  %v6745_v3 = vmul.f32 %v12313_v15, %v15382_v22  ;;  %v7361_v22 = vrot.slane %v7360_v36, 2  ;;  %v7383_v47 = vadd.f32 %v7382_v27, %v7381_v21  ;;  %v7376_v49 = vadd.f32 %v7375_v13, %v7374_v16 }
 0xf69   :  { %v6699_v54 = vadd.f32 1.0, %v12315_v12  ;;  %v12317_v1 = vpop.eup %12316  ;;  %v7402_v12 = vadd.f32 %v7401_v35, %v7400_v30  ;;  %v7321_v15 = vrot.slane %v15458_v61, 1  ;;  %v7397_v23 = vadd.f32 %v7396_v8, %v7395_v53 }
 0xf6a   :  { %11205 = vmatprep.mubr.msk.f32.mxu1 %vm384_vm0, %v6745_v3  ;;  %v12319_v55 = vpop.eup %12318  ;;  %v7295_v62 = vadd.f32 1.0, %v12317_v1  ;;  %v7362_v38 = vadd.f32 %v7361_v22, %v7360_v36  ;;  %v7390_v3 = vadd.f32 %v7389_v26, %v7388_v19  ;;  %v16665_v50 = vrot.slane %v15425_v9, 1 }
 0xf6b   :  { %12322 = vrcp.f32 %v6699_v54  ;;  %11206 = vmatmul.mubr.msk.f32.gmra.mrb[102].mxu1 %vm384_vm0, %v6746_v42  ;;  %v7294_v14 = vadd.f32 1.0, %v12319_v55  ;;  %v7328_v42 = vrot.slane %v15456_v46, 1  ;;  %v7411_v54 = vadd.f32 %v7410_v32, %v7409_v24 }
 0xf6c   :  { %12324 = vrcp.f32 %v7295_v62  ;;  %v7315_v58 = vadd.f32 %v16665_v50, %v15425_v9  ;;  %v7342_v40 = vrot.slane %v7341_v39, 1  ;;  %v7335_v30 = vrot.slane %v7334_v41, 1 }
 0xf6d   :  { %12326 = vrcp.f32 %v7294_v14  ;;  %v7403_v1 = vrot.slane %v7402_v12, 2  ;;  %v15475_v37 = vadd.f32 %v7307_v48, %v15453_v57  ;;  %v7356_v59 = vrot.slane %v7355_v6, 1 }
 0xf6e   :  { %v7349_v34 = vrot.slane %v7348_v51, 1  ;;  %v7370_v36 = vrot.slane %v7369_v2, 1  ;;  %v7329_v16 = vadd.f32 %v7328_v42, %v15456_v46  ;;  %v7363_v17 = vrot.slane %v7362_v38, 1 }
 0xf6f   :  { %v7384_v53 = vrot.slane %v7383_v47, 1  ;;  %v7377_v19 = vrot.slane %v7376_v49, 1  ;;  %v7322_v56 = vadd.f32 %v7321_v15, %v15458_v61  ;;  %v7398_v35 = vrot.slane %v7397_v23, 1 }
 0xf70   :  { %v7391_v9 = vrot.slane %v7390_v3, 1  ;;  %v7412_v55 = vrot.slane %v7411_v54, 1  ;;  %v7343_v7 = vadd.f32 %v7342_v40, %v7341_v39  ;;  %v7336_v52 = vadd.f32 %v7335_v30, %v7334_v41 }
 0xf71   :  { %v12321_v21 = vpop.eup %12320  ;;  %v7404_v62 = vadd.f32 %v7403_v1, %v7402_v12  ;;  %v7350_v27 = vadd.f32 %v7349_v34, %v7348_v51  ;;  %v7371_v13 = vadd.f32 %v7370_v36, %v7369_v2  ;;  %v7357_v46 = vadd.f32 %v7356_v59, %v7355_v6 }
 0xf72   :  { %v6748_v14 = vmul.f32 %v12321_v21, %v15406_v44  ;;  %v7364_v26 = vadd.f32 %v7363_v17, %v7362_v38  ;;  %v7385_v32 = vadd.f32 %v7384_v53, %v7383_v47  ;;  %v7378_v48 = vadd.f32 %v7377_v19, %v7376_v49 }
 0xf73   :  { %v7399_v42 = vadd.f32 %v7398_v35, %v7397_v23  ;;  %v7392_v39 = vadd.f32 %v7391_v9, %v7390_v3  ;;  %v7405_v12 = vrot.slane %v7404_v62, 1 }
 0xf75   :  { %v12323_v24 = vpop.eup %12322  ;;  %v7406_v36 = vadd.f32 %v7405_v12, %v7404_v62 }
 0xf76   :  { %v6747_v57 = vmul.f32 %v12323_v24, %v15412_v60  ;;  %v12325_v22 = vpop.eup %12324  ;;  %v7413_v60 = vadd.f32 %v7412_v55, %v7411_v54 }
 0xf77   :  { %v12327_v8 = vpop.eup %12326  ;;  %v7301_v61 = vmul.f32 %v12325_v22, %v15422_v10 }
 0xf78   :  { %11208 = vmatprep.mubr.msk.f32.mxu1 %vm384_vm0, %v6747_v57  ;;  %v7300_v41 = vmul.f32 %v12327_v8, %v15428_v63 }
 0xf79   :  { %11209 = vmatmul.mubr.msk.f32.gmra.mrb[104].mxu1 %vm384_vm0, %v6748_v14  ;;  %v7423_v51 = vrot.slane %v7301_v61, 1  ;;  %v7424_v2 = vrot.slane %v7301_v61, 2  ;;  %v7425_v44 = vrot.slane %v7301_v61, 3  ;;  %v7426_v34 = vrot.slane %v7301_v61, 4 }
 0xf7a   :  { %v7416_v6 = vrot.slane %v7300_v41, 1  ;;  %v7417_v15 = vrot.slane %v7300_v41, 2  ;;  %v7418_v38 = vrot.slane %v7300_v41, 3  ;;  %v7419_v47 = vrot.slane %v7300_v41, 4 }
 0xf7b   :  { %v7420_v49 = vrot.slane %v7300_v41, 5  ;;  %v7421_v50 = vrot.slane %v7300_v41, 6  ;;  %v7422_v10 = vrot.slane %v7300_v41, 7  ;;  %v7446_v40 = vsub.f32 %v15475_v37, %v7300_v41 }
 0xf7c   :  { %v7447_v23 = vsub.f32 %v7315_v58, %v7416_v6  ;;  %v7448_v3 = vsub.f32 %v7322_v56, %v7417_v15  ;;  %v7449_v30 = vsub.f32 %v7329_v16, %v7418_v38  ;;  %v7450_v63 = vsub.f32 %v7336_v52, %v7419_v47 }
 0xf7d   :  { %v7451_v1 = vsub.f32 %v7343_v7, %v7420_v49  ;;  %v7452_v59 = vsub.f32 %v7350_v27, %v7421_v50  ;;  %v7453_v54 = vsub.f32 %v7357_v46, %v7422_v10  ;;  %v7427_v53 = vrot.slane %v7301_v61, 5 }
 0xf7e   :  { %v7478_v21 = vrot.slane %v7447_v23, 7  ;;  %v7480_v17 = vrot.slane %v7448_v3, 6  ;;  %v7482_v19 = vrot.slane %v7449_v30, 5  ;;  %v7484_v24 = vrot.slane %v7450_v63, 4 }
 0xf7f   :  { %v7486_v35 = vrot.slane %v7451_v1, 3  ;;  %v7428_v9 = vrot.slane %v7301_v61, 6  ;;  %v7429_v57 = vrot.slane %v7301_v61, 7  ;;  %v7454_v37 = vsub.f32 %v7364_v26, %v7301_v61 }
 0xf80   :  { %v7479_v55 = vsel %vm2058_vm4, %v7478_v21, %v7446_v40  ;;  %v7455_v58 = vsub.f32 %v7371_v13, %v7423_v51  ;;  %v7456_v56 = vsub.f32 %v7378_v48, %v7424_v2  ;;  %v7457_v7 = vsub.f32 %v7385_v32, %v7425_v44 }
 0xf81   :  { %v7481_v16 = vsel %vm2060_vm5, %v7480_v17, %v7479_v55  ;;  %v7458_v52 = vsub.f32 %v7392_v39, %v7426_v34  ;;  %v7459_v62 = vsub.f32 %v7399_v42, %v7427_v53  ;;  %v7460_v27 = vsub.f32 %v7406_v36, %v7428_v9 }
 0xf82   :  { %v7483_v22 = vsel %vm2062_vm6, %v7482_v19, %v7481_v16  ;;  %v7461_v14 = vsub.f32 %v7413_v60, %v7429_v57  ;;  %v7488_v8 = vrot.slane %v7452_v59, 2  ;;  %v7492_v41 = vrot.slane %v7455_v58, 7  ;;  %v10197_v57 = vld [vmem:[%s16362_s8 + $0x40] sm:$0xff]  ;;  %v10199_v58 = vld [vmem:[%s16362_s8 + $0x50] sm:$0xff] }
 0xf83   :  { %v7485_v46 = vsel %vm2064_vm7, %v7484_v24, %v7483_v22  ;;  %v7494_v12 = vrot.slane %v7456_v56, 6  ;;  %v7490_v15 = vrot.slane %v7453_v54, 1  ;;  %v7496_v48 = vrot.slane %v7457_v7, 5  ;;  %v10200_v56 = vld [vmem:[%s16362_s8 + $0x58] sm:$0xff] }
 0xf84   :  { %v7487_v6 = vsel %vm2066_vm8, %v7486_v35, %v7485_v46  ;;  %v7493_v26 = vsel %vm2058_vm4, %v7492_v41, %v7454_v37  ;;  %v7498_v42 = vrot.slane %v7458_v52, 4  ;;  %v7500_v60 = vrot.slane %v7459_v62, 3  ;;  %v10198_v37 = vld [vmem:[%s16362_s8 + $0x48] sm:$0xff] }
 0xf85   :  { %v7489_v13 = vsel %vm2068_vm9, %v7488_v8, %v7487_v6  ;;  %v7495_v61 = vsel %vm2060_vm5, %v7494_v12, %v7493_v26  ;;  %v7502_v2 = vrot.slane %v7460_v27, 2  ;;  %v7504_v38 = vrot.slane %v7461_v14, 1 }
 0xf86   :  { %v7491_v32 = vsel %vm2070_vm10, %v7490_v15, %v7489_v13  ;;  %v7497_v39 = vsel %vm2062_vm6, %v7496_v48, %v7495_v61  ;;  %v11569_v16 = vpack.c.bf16 %v10198_v37, %v10197_v57  ;;  %v11573_v7 = vpack.c.bf16 %v10200_v56, %v10199_v58  ;;  %v16674_v58 = vld [vmem:[#allocation23_spill] sm:$0xff] }
 0xf87   :  { %7506 = vrot.lane.b32.xlu1 %v7491_v32, %s12628_s27  ;;  %v7499_v51 = vsel %vm2064_vm7, %v7498_v42, %v7497_v39  ;;  %v5424_v52 = vadd.f32 1e-08, %v14768_v28  ;;  %v5423_v22 = vadd.f32 1e-08, %v14763_v11  ;;  %v5426_v62 = vadd.f32 1e-08, %v14783_v43 }
 0xf88   :  { %v7501_v44 = vsel %vm2066_vm8, %v7500_v60, %v7499_v51  ;;  %11570 = vmatprep.subr.bf16.mxu0 %v11569_v16  ;;  %v5425_v27 = vadd.f32 1e-08, %v14775_v29  ;;  %v5427_v14 = vadd.f32 1e-08, %v14777_v31  ;;  %v5428_v46 = vadd.f32 1e-08, %v14795_v4 }
 0xf89   :  { %v7503_v47 = vsel %vm2068_vm9, %v7502_v2, %v7501_v44  ;;  %11572 = vmatpush3.bf16.msra.mxu0 %v11569_v16  ;;  %12328 = vrsqrt.f32 %v5424_v52  ;;  %v5429_v8 = vadd.f32 1e-08, %v14792_v45  ;;  %v5430_v11 = vadd.f32 1e-08, %v14805_v5  ;;  %v16666_v4 = vld [vmem:[#allocation44_spill] sm:$0xff]  ;;  %v16667_v45 = vld [vmem:[#allocation9_spill] sm:$0xff] }
 0xf8a   :  { %v7505_v49 = vsel %vm2070_vm10, %v7504_v38, %v7503_v47  ;;  %11574 = vmatprep.subr.bf16.mxu0 %v11573_v7  ;;  %12330 = vrsqrt.f32 %v5423_v22  ;;  %v5431_v43 = vadd.f32 1e-08, %v14811_v25  ;;  %v5432_v31 = vadd.f32 1e-08, %v14817_v18  ;;  %v16668_v25 = vld [vmem:[#allocation16_spill] sm:$0xff]  ;;  %v16669_v2 = vld [vmem:[#allocation15_spill] sm:$0xff] }
 0xf8b   :  { %7508 = vrot.lane.b32.xlu1 %v7505_v49, %s12628_s27  ;;  %12332 = vrsqrt.f32 %v5426_v62  ;;  %v5433_v26 = vadd.f32 1e-08, %v16667_v45  ;;  %v16670_v47 = vld [vmem:[#allocation6_spill] sm:$0xff]  ;;  %v5435_v16 = vadd.f32 1e-08, %v16674_v58  ;;  %v16675_v22 = vld [vmem:[#allocation43_spill] sm:$0xff] }
 0xf8c   :  { %12334 = vrsqrt.f32 %v5425_v27  ;;  %v5434_v49 = vadd.f32 1e-08, %v16670_v47  ;;  %v5436_v62 = vadd.f32 1e-08, %v16675_v22 }
 0xf8d   :  { %11576 = vmatpush3.bf16.msra.mxu0 %v11573_v7  ;;  %12336 = vrsqrt.f32 %v5427_v14 }
 0xf8e   :  { %12338 = vrsqrt.f32 %v5428_v46 }
 0xf8f   :  { %12340 = vrsqrt.f32 %v5429_v8 }
 0xf90   :  { %12342 = vrsqrt.f32 %v5430_v11 }
 0xf91   :  { %12344 = vrsqrt.f32 %v5431_v43 }
 0xf92   :  { %12346 = vrsqrt.f32 %v5432_v31 }
 0xf93   :  { %v12329_v28 = vpop.eup %12328  ;;  %12348 = vrsqrt.f32 %v5433_v26 }
 0xf94   :  { %v12331_v41 = vpop.eup %12330  ;;  %v5456_v12 = vmul.f32 %v12329_v28, %v14601_v33  ;;  %12350 = vrsqrt.f32 %v5434_v49 }
 0xf95   :  { %v12333_v29 = vpop.eup %12332  ;;  %v5455_v15 = vmul.f32 %v12331_v41, %v16666_v4  ;;  %12352 = vrsqrt.f32 %v5435_v16  ;;  %v16680_v16 = vld [vmem:[#allocation22_spill] sm:$0xff] }
 0xf96   :  { %v12335_v13 = vpop.eup %12334  ;;  %v5458_v39 = vmul.f32 %v12333_v29, %v16668_v25  ;;  %12354 = vrsqrt.f32 %v5436_v62 }
 0xf97   :  { %v12337_v42 = vpop.eup %12336  ;;  %v5457_v44 = vmul.f32 %v12335_v13, %v16669_v2 }
 0xf98   :  { %v12339_v33 = vpop.eup %12338 }
 0xf99   :  { %v12341_v38 = vpop.eup %12340 }
 0xf9a   :  { %v12343_v37 = vpop.eup %12342 }
 0xf9b   :  { %v12345_v43 = vpop.eup %12344 }
 0xff9   :  { %v7507_v50 = vpop.permute.xlu1 %7506 }
 0xffa   :  { %v7512_v10 = vsel %vm384_vm0, %v14862_v0, %v7507_v50 }
 0xffb   :  { %11238 = vmatprep.mubr.msk.f32.mxu1 %vm2420_vm11, %v7512_v10 }
 0xffd   :  { %v7509_v40 = vpop.permute.xlu1 %7508 }
 0xffe   :  { %v7513_v23 = vsel %vm384_vm0, %v14865_v20, %v7509_v40 }
 0xfff   :  { %11239 = vmatmul.mubr.msk.f32.vlgmr.msra.gmra.mrb[106].mxu1 %vm2420_vm11, %v7513_v23 }
0x1019   :  { %v11189_v3 = vpop.f32.mrb[90].mxu1 }
0x101a   :  { %6954 = vperm.xlu0 %11621, %v11189_v3   ;;  %v6868_v30 = vpop.f32.mrb[91].mxu1 }
0x101b   :  { %6949 = vperm.xlu1 %11620, %v6868_v30  }
0x101d   :  { %v11192_v63 = vpop.f32.mrb[92].mxu1 }
0x101e   :  { %6964 = vperm.xlu0 %11621, %v11192_v63   ;;  %v6878_v1 = vpop.f32.mrb[93].mxu1 }
0x101f   :  { %6959 = vperm.xlu1 %11620, %v6878_v1   ;;  %v16671_v1 = vld [vmem:[#allocation11_spill] sm:$0xff] }
0x1021   :  { %v11195_v59 = vpop.f32.mrb[94].mxu1 }
0x1022   :  { %6974 = vperm.xlu0 %11621, %v11195_v59   ;;  %v6888_v54 = vpop.f32.mrb[95].mxu1  ;;  %v5460_v59 = vmul.f32 %v12339_v33, %v16671_v1 }
0x1023   :  { %6969 = vperm.xlu1 %11620, %v6888_v54   ;;  %v16672_v54 = vld [vmem:[#allocation45_spill] sm:$0xff] }
0x1028   :  { %v11198_v34 = vpop.f32.mrb[96].mxu1 }
0x1029   :  { %6984 = vperm.xlu0 %11621, %v11198_v34   ;;  %v6898_v36 = vpop.f32.mrb[97].mxu1  ;;  %v5459_v34 = vmul.f32 %v12337_v42, %v16672_v54 }
0x102a   :  { %6979 = vperm.xlu1 %11620, %v6898_v36  }
0x102c   :  { %v11201_v21 = vpop.f32.mrb[98].mxu1 }
0x102d   :  { %6994 = vperm.xlu0 %11621, %v11201_v21   ;;  %v6908_v17 = vpop.f32.mrb[99].mxu1 }
0x102e   :  { %6989 = vperm.xlu1 %11620, %v6908_v17  }
0x1030   :  { %v11204_v53 = vpop.f32.mrb[100].mxu1 }
0x1031   :  { %7004 = vperm.xlu0 %11621, %v11204_v53   ;;  %v6918_v19 = vpop.f32.mrb[101].mxu1 }
0x1032   :  { %6999 = vperm.xlu1 %11620, %v6918_v19   ;;  %v16673_v19 = vld [vmem:[#allocation13_spill] sm:$0xff] }
0x103e   :  { %v11207_v24 = vpop.f32.mrb[102].mxu1 }
0x103f   :  { %7014 = vperm.xlu0 %11621, %v11207_v24   ;;  %v6928_v35 = vpop.f32.mrb[103].mxu1  ;;  %v5461_v24 = vmul.f32 %v12341_v38, %v16673_v19 }
0x1040   :  { %7009 = vperm.xlu1 %11620, %v6928_v35  }
0x104c   :  { %v11210_v9 = vpop.f32.mrb[104].mxu1 }
0x104d   :  { %7024 = vperm.xlu0 %11621, %v11210_v9   ;;  %v6938_v55 = vpop.f32.mrb[105].mxu1 }
0x104e   :  { %7019 = vperm.xlu1 %11620, %v6938_v55  }
0x1099   :  { %v6955_v6 = vpop.permute.xlu0 %6954 }
0x109a   :  { %v7028_v48 = vmul.f32 %v6955_v6, %v5456_v12  ;;  %v6950_v32 = vpop.permute.xlu1 %6949  ;;  %v16676_v6 = vld [vmem:[#allocation46_spill] sm:$0xff] }
0x109b   :  { %v7027_v61 = vmul.f32 %v6950_v32, %v5455_v15  ;;  %v5462_v4 = vmul.f32 %v12343_v37, %v16676_v6  ;;  %v12347_v15 = vpop.eup %12346 }
0x109c   :  { %v7050_v5 = vsel %vm282_vm1, %v7028_v48, 0.0  ;;  %v12349_v48 = vpop.eup %12348 }
0x109d   :  { %v7051_v60 = vrot.slane %v7050_v5, 4  ;;  %v7043_v18 = vsel %vm282_vm1, %v7027_v61, 0.0  ;;  %v6965_v51 = vpop.permute.xlu0 %6964 }
0x109e   :  { %v7044_v50 = vrot.slane %v7043_v18, 4  ;;  %v7030_v10 = vmul.f32 %v6965_v51, %v5458_v39  ;;  %v6960_v40 = vpop.permute.xlu1 %6959 }
0x109f   :  { %v7052_v23 = vadd.f32 %v7051_v60, %v7050_v5  ;;  %v7029_v3 = vmul.f32 %v6960_v40, %v5457_v44 }
0x10a0   :  { %v7045_v30 = vadd.f32 %v7044_v50, %v7043_v18  ;;  %v7064_v63 = vsel %vm282_vm1, %v7030_v10, 0.0  ;;  %v16677_v18 = vld [vmem:[#allocation17_spill] sm:$0xff] }
0x10a1   :  { %v7053_v36 = vrot.slane %v7052_v23, 2  ;;  %v7065_v21 = vrot.slane %v7064_v63, 4  ;;  %v7057_v17 = vsel %vm282_vm1, %v7029_v3, 0.0  ;;  %v6975_v53 = vpop.permute.xlu0 %6974  ;;  %v5463_v51 = vmul.f32 %v12345_v43, %v16677_v18  ;;  %v16678_v10 = vld [vmem:[#allocation21_spill] sm:$0xff] }
0x10a2   :  { %v7046_v35 = vrot.slane %v7045_v30, 2  ;;  %v7058_v9 = vrot.slane %v7057_v17, 4  ;;  %v7032_v55 = vmul.f32 %v6975_v53, %v5460_v59  ;;  %v6970_v57 = vpop.permute.xlu1 %6969  ;;  %v5464_v40 = vmul.f32 %v12347_v15, %v16678_v10 }
0x10a3   :  { %v7054_v56 = vadd.f32 %v7053_v36, %v7052_v23  ;;  %v7066_v7 = vadd.f32 %v7065_v21, %v7064_v63  ;;  %v7031_v52 = vmul.f32 %v6970_v57, %v5459_v34  ;;  %v16679_v23 = vld [vmem:[#allocation14_spill] sm:$0xff] }
0x10a4   :  { %v7047_v27 = vadd.f32 %v7046_v35, %v7045_v30  ;;  %v7059_v14 = vadd.f32 %v7058_v9, %v7057_v17  ;;  %v7078_v46 = vsel %vm282_vm1, %v7032_v55, 0.0  ;;  %v5465_v3 = vmul.f32 %v12349_v48, %v16679_v23  ;;  %v12351_v30 = vpop.eup %12350  ;;  %v16682_v23 = vld [vmem:[#allocation19_spill] sm:$0xff] }
0x10a5   :  { %v7055_v8 = vrot.slane %v7054_v56, 1  ;;  %v7067_v28 = vrot.slane %v7066_v7, 2  ;;  %v7079_v11 = vrot.slane %v7078_v46, 4  ;;  %v7071_v41 = vsel %vm282_vm1, %v7031_v52, 0.0 }
0x10a6   :  { %v7048_v12 = vrot.slane %v7047_v27, 1  ;;  %v7060_v29 = vrot.slane %v7059_v14, 2  ;;  %v7072_v31 = vrot.slane %v7071_v41, 4 }
0x10a7   :  { %v7056_v13 = vadd.f32 %v7055_v8, %v7054_v56  ;;  %v7068_v45 = vadd.f32 %v7067_v28, %v7066_v7  ;;  %v7080_v26 = vadd.f32 %v7079_v11, %v7078_v46  ;;  %v5466_v56 = vmul.f32 %v12351_v30, %v16680_v16 }
0x10a8   :  { %v7049_v32 = vadd.f32 %v7048_v12, %v7047_v27  ;;  %v7061_v61 = vadd.f32 %v7060_v29, %v7059_v14  ;;  %v7073_v42 = vadd.f32 %v7072_v31, %v7071_v41  ;;  %v6985_v5 = vpop.permute.xlu0 %6984  ;;  %v12353_v14 = vpop.eup %12352 }
0x10a9   :  { %v7069_v25 = vrot.slane %v7068_v45, 1  ;;  %v7081_v39 = vrot.slane %v7080_v26, 2  ;;  %v7034_v33 = vmul.f32 %v6985_v5, %v5462_v4  ;;  %v6980_v60 = vpop.permute.xlu1 %6979  ;;  %v12355_v43 = vpop.eup %12354 }
0x10aa   :  { %v7171_v2 = vsel %vm2058_vm4, %v7056_v13, %v7049_v32  ;;  %v7062_v44 = vrot.slane %v7061_v61, 1  ;;  %v7074_v38 = vrot.slane %v7073_v42, 2  ;;  %v7033_v47 = vmul.f32 %v6980_v60, %v5461_v24 }
0x10ab   :  { %v7082_v49 = vadd.f32 %v7081_v39, %v7080_v26  ;;  %v7092_v50 = vsel %vm282_vm1, %v7034_v33, 0.0  ;;  %v7070_v36 = vadd.f32 %v7069_v25, %v7068_v45 }
0x10ac   :  { %v7063_v63 = vadd.f32 %v7062_v44, %v7061_v61  ;;  %v7075_v1 = vadd.f32 %v7074_v38, %v7073_v42  ;;  %v7093_v59 = vrot.slane %v7092_v50, 4  ;;  %v7085_v54 = vsel %vm282_vm1, %v7033_v47, 0.0  ;;  %v6995_v34 = vpop.permute.xlu0 %6994 }
0x10ad   :  { %v7083_v21 = vrot.slane %v7082_v49, 1  ;;  %v7086_v17 = vrot.slane %v7085_v54, 4  ;;  %v7036_v53 = vmul.f32 %v6995_v34, %v5464_v40  ;;  %v6990_v19 = vpop.permute.xlu1 %6989 }
0x10ae   :  { %v7172_v24 = vsel %vm2060_vm5, %v7063_v63, %v7171_v2  ;;  %v7076_v35 = vrot.slane %v7075_v1, 1  ;;  %v7094_v9 = vadd.f32 %v7093_v59, %v7092_v50  ;;  %v7035_v55 = vmul.f32 %v6990_v19, %v5463_v51  ;;  %v16681_v2 = vld [vmem:[#allocation42_spill] sm:$0xff] }
0x10af   :  { %v7173_v57 = vsel %vm2062_vm6, %v7070_v36, %v7172_v24  ;;  %v7087_v37 = vadd.f32 %v7086_v17, %v7085_v54  ;;  %v7106_v58 = vsel %vm282_vm1, %v7036_v53, 0.0  ;;  %v7084_v46 = vadd.f32 %v7083_v21, %v7082_v49  ;;  %v16683_v59 = vld [vmem:[#allocation10_spill] sm:$0xff]  ;;  %v16685_v17 = vld [vmem:[#allocation20_spill] sm:$0xff] }
0x10b0   :  { %v7077_v7 = vadd.f32 %v7076_v35, %v7075_v1  ;;  %v7095_v52 = vrot.slane %v7094_v9, 2  ;;  %v7107_v22 = vrot.slane %v7106_v58, 4  ;;  %v7099_v62 = vsel %vm282_vm1, %v7035_v55, 0.0  ;;  %v7005_v27 = vpop.permute.xlu0 %7004  ;;  %v16686_v35 = vld [vmem:[#allocation7_spill] sm:$0xff] }
0x10b1   :  { %v7088_v8 = vrot.slane %v7087_v37, 2  ;;  %v7100_v28 = vrot.slane %v7099_v62, 4  ;;  %v7038_v11 = vmul.f32 %v7005_v27, %v5466_v56  ;;  %v7000_v41 = vpop.permute.xlu1 %6999  ;;  %v5437_v44 = vadd.f32 1e-08, %v16681_v2 }
0x10b2   :  { %v7174_v12 = vsel %vm2064_vm7, %v7077_v7, %v7173_v57  ;;  %v7096_v29 = vadd.f32 %v7095_v52, %v7094_v9  ;;  %v7108_v31 = vadd.f32 %v7107_v22, %v7106_v58  ;;  %v7037_v6 = vmul.f32 %v7000_v41, %v5465_v3 }
0x10b3   :  { %v7175_v4 = vsel %vm2066_vm8, %v7084_v46, %v7174_v12  ;;  %v7089_v15 = vadd.f32 %v7088_v8, %v7087_v37  ;;  %v7101_v13 = vadd.f32 %v7100_v28, %v7099_v62  ;;  %v7120_v45 = vsel %vm282_vm1, %v7038_v11, 0.0  ;;  %v16687_v37 = vld [vmem:[#allocation18_spill] sm:$0xff]  ;;  %v16688_v11 = vld [vmem:[#allocation8_spill] sm:$0xff] }
0x10b4   :  { %v7097_v26 = vrot.slane %v7096_v29, 1  ;;  %v7109_v48 = vrot.slane %v7108_v31, 2  ;;  %v7121_v32 = vrot.slane %v7120_v45, 4  ;;  %v7113_v61 = vsel %vm282_vm1, %v7037_v6, 0.0 }
0x10b5   :  { %v7090_v42 = vrot.slane %v7089_v15, 1  ;;  %v7102_v5 = vrot.slane %v7101_v13, 2  ;;  %v7114_v25 = vrot.slane %v7113_v61, 4  ;;  %v5438_v3 = vadd.f32 1e-08, %v16682_v23 }
0x10b6   :  { %v7110_v39 = vadd.f32 %v7109_v48, %v7108_v31  ;;  %v7122_v33 = vadd.f32 %v7121_v32, %v7120_v45  ;;  %v7098_v38 = vadd.f32 %v7097_v26, %v7096_v29  ;;  %12356 = vrsqrt.f32 %v5437_v44 }
0x10b7   :  { %v7091_v60 = vadd.f32 %v7090_v42, %v7089_v15  ;;  %v7103_v18 = vadd.f32 %v7102_v5, %v7101_v13  ;;  %v7115_v51 = vadd.f32 %v7114_v25, %v7113_v61  ;;  %v5468_v53 = vmul.f32 %v12355_v43, %v16685_v17 }
0x10b8   :  { %v7111_v47 = vrot.slane %v7110_v39, 1  ;;  %v7123_v49 = vrot.slane %v7122_v33, 2  ;;  %12358 = vrsqrt.f32 %v5438_v3  ;;  %v5467_v58 = vmul.f32 %v12353_v14, %v16687_v37 }
0x10b9   :  { %v7176_v50 = vsel %vm2068_vm9, %v7091_v60, %v7175_v4  ;;  %v7104_v10 = vrot.slane %v7103_v18, 1  ;;  %v7116_v40 = vrot.slane %v7115_v51, 2 }
0x10ba   :  { %v7177_v30 = vsel %vm2070_vm10, %v7098_v38, %v7176_v50  ;;  %v7112_v63 = vadd.f32 %v7111_v47, %v7110_v39  ;;  %v7124_v1 = vadd.f32 %v7123_v49, %v7122_v33 }
0x10bb   :  { %v15568_v54 = vadd.f32 %v7177_v30, %v16683_v59  ;;  %v7105_v34 = vadd.f32 %v7104_v10, %v7103_v18  ;;  %v7117_v36 = vadd.f32 %v7116_v40, %v7115_v51 }
0x10bc   :  { %v7125_v21 = vrot.slane %v7124_v1, 1 }
0x10bd   :  { %16684 = vst [vmem:[#allocation44_spill] sm:$0xff] %v15568_v54  ;;  %v7178_v19 = vsel %vm2058_vm4, %v7112_v63, %v7105_v34  ;;  %v7118_v24 = vrot.slane %v7117_v36, 1  ;;  %v7725_v9 = vrot.slane %v15568_v54, %v16686_v35  ;;  %v7718_v55 = vcombine.high %v15568_v54, %v15568_v54 }
0x10be   :  { %v7015_v57 = vpop.permute.xlu0 %7014  ;;  %v7126_v62 = vadd.f32 %v7125_v21, %v7124_v1  ;;  %v16693_v21 = vld [vmem:[#allocation49_spill] sm:$0xff] }
0x10bf   :  { %v7119_v16 = vadd.f32 %v7118_v24, %v7117_v36  ;;  %v7040_v56 = vmul.f32 %v7015_v57, %v5468_v53  ;;  %v7010_v7 = vpop.permute.xlu1 %7009  ;;  %v7741_v52 = vrot.slane %v7725_v9, %v16686_v35  ;;  %v7733_v22 = vcombine.high %v7725_v9, %v7725_v9  ;;  %v16694_v9 = vld [vmem:[#allocation48_spill] sm:$0xff] }
0x10c0   :  { %v7039_v27 = vmul.f32 %v7010_v7, %v5467_v58  ;;  %v7732_v46 = vrot.slane %v7718_v55, %v16686_v35  ;;  %v12357_v39 = vpop.eup %12356 }
0x10c1   :  { %v7179_v8 = vsel %vm2060_vm5, %v7119_v16, %v7178_v19  ;;  %v7134_v28 = vsel %vm282_vm1, %v7040_v56, 0.0  ;;  %v7819_v41 = vrot.slane %v7741_v52, %v16688_v11  ;;  %v7755_v43 = vrot.slane %v7733_v22, %v16686_v35 }
0x10c2   :  { %v7135_v12 = vrot.slane %v7134_v28, 4  ;;  %v7180_v14 = vsel %vm2062_vm6, %v7126_v62, %v7179_v8  ;;  %v7127_v29 = vsel %vm282_vm1, %v7039_v27, 0.0  ;;  %v7748_v31 = vrot.slane %v7732_v46, %v16686_v35  ;;  %v12359_v49 = vpop.eup %12358 }
0x10c3   :  { %v7128_v6 = vrot.slane %v7127_v29, 4  ;;  %v15587_v4 = vsub.f32 %v7819_v41, %v15568_v54  ;;  %v7823_v15 = vrot.slane %v7755_v43, %v16688_v11  ;;  %v7763_v13 = vcombine.high %v7741_v52, %v7741_v52 }
0x10c4   :  { %v7136_v45 = vadd.f32 %v7135_v12, %v7134_v28  ;;  %v7835_v26 = vrot.slane %v7748_v31, %v16688_v11  ;;  %v7764_v48 = vcombine.high %v7748_v31, %v7748_v31  ;;  %v7765_v32 = vcombine.high %v7755_v43, %v7755_v43  ;;  %v15641_v31 = vld [vmem:[%s16365_s11 + $0x10] sm:$0xff] }
0x10c5   :  { %v7129_v61 = vadd.f32 %v7128_v6, %v7127_v29  ;;  %v7912_v42 = vmul.f32 %v15587_v4, %v15587_v4  ;;  %v15594_v5 = vsub.f32 %v7823_v15, %v15568_v54  ;;  %v7827_v25 = vrot.slane %v7763_v13, %v16688_v11  ;;  %v16696_v6 = vld [vmem:[#allocation12_spill] sm:$0xff] }
0x10c6   :  { %v7137_v33 = vrot.slane %v7136_v45, 2  ;;  %v15598_v60 = vsub.f32 %v7835_v26, %v15568_v54  ;;  %v7843_v18 = vrot.slane %v7764_v48, %v16688_v11  ;;  %v7831_v51 = vrot.slane %v7765_v32, %v16688_v11 }
0x10c7   :  { %v7130_v2 = vrot.slane %v7129_v61, 2  ;;  %v7928_v44 = vsel %vm282_vm1, %v7912_v42, 0.0  ;;  %v7913_v38 = vmul.f32 %v15594_v5, %v15594_v5  ;;  %v15606_v47 = vsub.f32 %v7827_v25, %v15568_v54 }
0x10c8   :  { %16689 = vst [vmem:[#allocation9_spill] sm:$0xff] %v15598_v60  ;;  %v7138_v50 = vadd.f32 %v7137_v33, %v7136_v45  ;;  %7929 = vadd.xlane.f32.xlu1 %v7928_v44  ;;  %v7916_v10 = vmul.f32 %v15598_v60, %v15598_v60  ;;  %v15611_v40 = vsub.f32 %v7843_v18, %v15568_v54 }
0x10c9   :  { %16690 = vst [vmem:[#allocation16_spill] sm:$0xff] %v15606_v47  ;;  %v15614_v23 = vsub.f32 %v7831_v51, %v15568_v54  ;;  %v7131_v3 = vadd.f32 %v7130_v2, %v7129_v61  ;;  %v7931_v30 = vsel %vm282_vm1, %v7913_v38, 0.0  ;;  %v7914_v63 = vmul.f32 %v15606_v47, %v15606_v47 }
0x10ca   :  { %16691 = vst [vmem:[#allocation15_spill] sm:$0xff] %v15611_v40  ;;  %v7734_v1 = vcombine.high %v7732_v46, %v7732_v46  ;;  %v7139_v59 = vrot.slane %v7138_v50, 1  ;;  %7932 = vadd.xlane.f32.xlu0 %v7931_v30  ;;  %v7918_v34 = vmul.f32 %v15611_v40, %v15611_v40  ;;  %v5470_v17 = vmul.f32 %v12359_v49, %v16693_v21  ;;  %v16698_v21 = vld [vmem:[#allocation47_spill] sm:$0xff] }
0x10cb   :  { %16692 = vst [vmem:[#allocation6_spill] sm:$0xff] %v15614_v23  ;;  %v7132_v36 = vrot.slane %v7131_v3, 1  ;;  %v7940_v53 = vsel %vm282_vm1, %v7916_v10, 0.0  ;;  %v5469_v55 = vmul.f32 %v12357_v39, %v16694_v9  ;;  %v7934_v57 = vsel %vm282_vm1, %v7914_v63, 0.0 }
0x10cc   :  { %v7762_v19 = vrot.slane %v7734_v1, %v16686_v35  ;;  %v7025_v24 = vpop.permute.xlu0 %7024  ;;  %7941 = vadd.xlane.f32.xlu1 %v7940_v53  ;;  %v7915_v37 = vmul.f32 %v15614_v23, %v15614_v23  ;;  %v7140_v22 = vadd.f32 %v7139_v59, %v7138_v50  ;;  %v7946_v27 = vsel %vm282_vm1, %v7918_v34, 0.0 }
0x10cd   :  { %v7133_v58 = vadd.f32 %v7132_v36, %v7131_v3  ;;  %v7042_v16 = vmul.f32 %v7025_v24, %v5470_v17  ;;  %v7020_v56 = vpop.permute.xlu1 %7019  ;;  %v10210_v3 = vld [vmem:[%s16359_s5 + $0x6] sm:$0x3] }
0x10ce   :  { %v7839_v7 = vrot.slane %v7762_v19, %v16688_v11  ;;  %v7766_v52 = vcombine.high %v7762_v19, %v7762_v19  ;;  %v7041_v62 = vmul.f32 %v7020_v56, %v5469_v55  ;;  %7935 = vadd.xlane.f32.xlu0 %v7934_v57  ;;  %v7937_v13 = vsel %vm282_vm1, %v7915_v37, 0.0  ;;  %11263 = vmatprep.subr.msk.mxu1 %vm512_vm2, %v10210_v3 }
0x10cf   :  { %v7181_v46 = vsel %vm2064_vm7, %v7133_v58, %v7180_v14  ;;  %v7148_v8 = vsel %vm282_vm1, %v7042_v16, 0.0  ;;  %v7526_v14 = vrot.slane %v15641_v31, %v16696_v6  ;;  %11264 = vmatpush3.msk.msra.mxu1 %vm512_vm2, %v10210_v3 }
0x10d0   :  { %v15633_v28 = vsub.f32 %v7839_v7, %v15568_v54  ;;  %v7847_v41 = vrot.slane %v7766_v52, %v16688_v11  ;;  %v7149_v43 = vrot.slane %v7148_v8, 4  ;;  %v7182_v12 = vsel %vm2066_vm8, %v7140_v22, %v7181_v46  ;;  %7947 = vadd.xlane.f32.xlu1 %v7946_v27 }
0x10d1   :  { %v7141_v29 = vsel %vm282_vm1, %v7041_v62, 0.0 }
0x10d2   :  { %16695 = vst [vmem:[#allocation11_spill] sm:$0xff] %v15633_v28  ;;  %v7142_v15 = vrot.slane %v7141_v29, 4  ;;  %v7917_v45 = vmul.f32 %v15633_v28, %v15633_v28  ;;  %v15649_v26 = vsub.f32 %v7847_v41, %v15568_v54  ;;  %v7150_v48 = vadd.f32 %v7149_v43, %v7148_v8  ;;  %7938 = vadd.xlane.f32.xlu0 %v7937_v13  ;;  %v11240_v42 = vpop.f32.mrb[106].mxu1 }
0x10d3   :  { %v15651_v39 = vadd.f32 %v11240_v42, %v7526_v14  ;;  %v7599_v33 = vpop.f32.mrb[107].mxu1 }
0x10d4   :  { %16697 = vst [vmem:[#allocation45_spill] sm:$0xff] %v15649_v26  ;;  %v7143_v32 = vadd.f32 %v7142_v15, %v7141_v29  ;;  %v7151_v61 = vrot.slane %v7150_v48, 2  ;;  %v7943_v18 = vsel %vm282_vm1, %v7917_v45, 0.0  ;;  %v7919_v51 = vmul.f32 %v15649_v26, %v15649_v26 }
0x10d5   :  { %v15656_v44 = vadd.f32 %v7599_v33, %v7526_v14  ;;  %v10196_v49 = vmul.f32 -1.442695, %v15651_v39 }
0x10d6   :  { %v7144_v25 = vrot.slane %v7143_v32, 2  ;;  %v7152_v2 = vadd.f32 %v7151_v61, %v7150_v48  ;;  %7944 = vadd.xlane.f32.xlu0 %v7943_v18  ;;  %v7949_v63 = vsel %vm282_vm1, %v7919_v51, 0.0 }
0x10d7   :  { %v10195_v10 = vmul.f32 -1.442695, %v15656_v44  ;;  %12360 = vpow2.f32 %v10196_v49 }
0x10d8   :  { %v7145_v38 = vadd.f32 %v7144_v25, %v7143_v32  ;;  %v7153_v50 = vrot.slane %v7152_v2, 1 }
0x10d9   :  { %12362 = vpow2.f32 %v10195_v10 }
0x10da   :  { %v7146_v30 = vrot.slane %v7145_v38, 1  ;;  %7950 = vadd.xlane.f32.xlu0 %v7949_v63  ;;  %v7154_v59 = vadd.f32 %v7153_v50, %v7152_v2 }
0x10dc   :  { %v7147_v1 = vadd.f32 %v7146_v30, %v7145_v38 }
0x10de   :  { %v7183_v34 = vsel %vm2068_vm9, %v7147_v1, %v7182_v12 }
0x10df   :  { %v7184_v36 = vsel %vm2070_vm10, %v7154_v59, %v7183_v34 }
0x10e0   :  { %v15669_v17 = vadd.f32 %v7184_v36, %v16698_v21 }
0x10e1   :  { %v12361_v24 = vpop.eup %12360 }
0x10e2   :  { %16699 = vst [vmem:[#allocation13_spill] sm:$0xff] %v15669_v17  ;;  %v7774_v53 = vrot.slane %v15669_v17, %v16686_v35  ;;  %v7767_v19 = vcombine.high %v15669_v17, %v15669_v17  ;;  %v7615_v58 = vadd.f32 1.0, %v12361_v24 }
0x10e3   :  { %v12363_v37 = vpop.eup %12362 }
0x10e4   :  { %v7790_v9 = vrot.slane %v7774_v53, %v16686_v35  ;;  %v7782_v55 = vcombine.high %v7774_v53, %v7774_v53  ;;  %v7781_v57 = vrot.slane %v7767_v19, %v16686_v35  ;;  %v7614_v16 = vadd.f32 1.0, %v12363_v37 }
0x10e5   :  { %12364 = vrcp.f32 %v7615_v58  ;;  %v10206_v58 = vld [vmem:[%s16358_s4 + $0x70] sm:$0xff] }
0x10e6   :  { %v7851_v56 = vrot.slane %v7790_v9, %v16688_v11  ;;  %v7812_v7 = vcombine.high %v7790_v9, %v7790_v9  ;;  %v7804_v52 = vrot.slane %v7782_v55, %v16686_v35  ;;  %v7797_v22 = vrot.slane %v7781_v57, %v16686_v35  ;;  %v10204_v55 = vld [vmem:[%s16358_s4 + $0x60] sm:$0xff] }
0x10e7   :  { %v7783_v62 = vcombine.high %v7781_v57, %v7781_v57  ;;  %12366 = vrcp.f32 %v7614_v16  ;;  %v10205_v57 = vld [vmem:[%s16358_s4 + $0x68] sm:$0xff]  ;;  %v10207_v16 = vld [vmem:[%s16358_s4 + $0x78] sm:$0xff] }
0x10e8   :  { %v15681_v27 = vsub.f32 %v7851_v56, %v15669_v17  ;;  %v7859_v46 = vrot.slane %v7812_v7, %v16688_v11  ;;  %v7855_v8 = vrot.slane %v7804_v52, %v16688_v11  ;;  %v7867_v41 = vrot.slane %v7797_v22, %v16688_v11 }
0x10e9   :  { %v7814_v43 = vcombine.high %v7804_v52, %v7804_v52  ;;  %v7813_v12 = vcombine.high %v7797_v22, %v7797_v22  ;;  %v7811_v29 = vrot.slane %v7783_v62, %v16686_v35  ;;  %v11577_v37 = vpack.c.bf16 %v10205_v57, %v10204_v55  ;;  %v16708_v52 = vld [vmem:[#allocation24_spill] sm:$0xff] }
0x10ea   :  { %16700 = vst [vmem:[#allocation23_spill] sm:$0xff] %v15681_v27  ;;  %v7920_v6 = vmul.f32 %v15681_v27, %v15681_v27  ;;  %v15690_v14 = vsub.f32 %v7859_v46, %v15669_v17  ;;  %v15693_v15 = vsub.f32 %v7855_v8, %v15669_v17  ;;  %v15696_v13 = vsub.f32 %v7867_v41, %v15669_v17  ;;  %v16709_v46 = vld [vmem:[#allocation26_spill] sm:$0xff] }
0x10eb   :  { %v7863_v45 = vrot.slane %v7814_v43, %v16688_v11  ;;  %v7875_v48 = vrot.slane %v7813_v12, %v16688_v11  ;;  %v7871_v32 = vrot.slane %v7811_v29, %v16688_v11  ;;  %v7815_v33 = vcombine.high %v7811_v29, %v7811_v29  ;;  %11578 = vmatprep.subr.bf16.mxu0 %v11577_v37  ;;  %v16710_v12 = vld [vmem:[#allocation25_spill] sm:$0xff] }
0x10ec   :  { %16701 = vst [vmem:[#allocation43_spill] sm:$0xff] %v15690_v14  ;;  %16702 = vst [vmem:[#allocation46_spill] sm:$0xff] %v15693_v15  ;;  %v7952_v61 = vsel %vm282_vm1, %v7920_v6, 0.0  ;;  %v7922_v42 = vmul.f32 %v15690_v14, %v15690_v14  ;;  %v7921_v25 = vmul.f32 %v15693_v15, %v15693_v15  ;;  %v7924_v10 = vmul.f32 %v15696_v13, %v15696_v13 }
0x10ed   :  { %16703 = vst [vmem:[#allocation17_spill] sm:$0xff] %v15696_v13  ;;  %7953 = vadd.xlane.f32.xlu1 %v7952_v61  ;;  %v15707_v18 = vsub.f32 %v7863_v45, %v15669_v17  ;;  %v15711_v2 = vsub.f32 %v7871_v32, %v15669_v17  ;;  %v7879_v38 = vrot.slane %v7815_v33, %v16688_v11  ;;  %v16711_v45 = vld [vmem:[#allocation27_spill] sm:$0xff]  ;;  %v16712_v32 = vld [vmem:[#allocation28_spill] sm:$0xff]  ;;  %v16713_v33 = vld [vmem:[#allocation29_spill] sm:$0xff] }
0x10ee   :  { %v7955_v51 = vsel %vm282_vm1, %v7921_v25, 0.0  ;;  %v7958_v50 = vsel %vm282_vm1, %v7922_v42, 0.0  ;;  %v15720_v3 = vsub.f32 %v7875_v48, %v15669_v17  ;;  %v7964_v53 = vsel %vm282_vm1, %v7924_v10, 0.0  ;;  %v16716_v10 = vld [vmem:[#allocation31_spill] sm:$0xff] }
0x10ef   :  { %16704 = vst [vmem:[#allocation21_spill] sm:$0xff] %v15707_v18  ;;  %16705 = vst [vmem:[#allocation14_spill] sm:$0xff] %v15711_v2  ;;  %7956 = vadd.xlane.f32.xlu0 %v7955_v51  ;;  %v7923_v49 = vmul.f32 %v15707_v18, %v15707_v18  ;;  %v12365_v30 = vpop.eup %12364  ;;  %v7925_v59 = vmul.f32 %v15711_v2, %v15711_v2  ;;  %v15726_v34 = vsub.f32 %v7879_v38, %v15669_v17  ;;  %v16714_v38 = vld [vmem:[#allocation30_spill] sm:$0xff]  ;;  %v15916_v2 = vld [vmem:[%s16365_s11 + $0x18] sm:$0xff] }
0x10f0   :  { %16706 = vst [vmem:[#allocation22_spill] sm:$0xff] %v15720_v3  ;;  %v7621_v21 = vmul.f32 %v12365_v30, %v15651_v39  ;;  %v7926_v19 = vmul.f32 %v15720_v3, %v15720_v3  ;;  %v11581_v56 = vpack.c.bf16 %v10207_v16, %v10206_v58 }
0x10f1   :  { %7959 = vadd.xlane.f32.xlu1 %v7958_v50  ;;  %v12367_v63 = vpop.eup %12366  ;;  %v7961_v1 = vsel %vm282_vm1, %v7923_v49, 0.0  ;;  %16707 = vst [vmem:[#allocation42_spill] sm:$0xff] %v15726_v34  ;;  %v7967_v24 = vsel %vm282_vm1, %v7925_v59, 0.0  ;;  %v7927_v9 = vmul.f32 %v15726_v34, %v15726_v34 }
0x10f2   :  { %v7620_v36 = vmul.f32 %v12367_v63, %v15656_v44  ;;  %v7970_v44 = vsel %vm282_vm1, %v7926_v19, 0.0 }
0x10f3   :  { %7962 = vadd.xlane.f32.xlu0 %v7961_v1  ;;  %v7973_v39 = vsel %vm282_vm1, %v7927_v9, 0.0  ;;  %v16717_v1 = vld [vmem:[#allocation32_spill] sm:$0xff] }
0x10f4   :  { %11249 = vmatprep.mubr.msk.f32.mxu0 %vm384_vm0, %v7620_v36 }
0x10f5   :  { %7965 = vadd.xlane.f32.xlu1 %v7964_v53  ;;  %11250 = vmatmul.mubr.msk.f32.vlgmr.msra.gmra.mrb[106].mxu0 %vm384_vm0, %v7621_v21  ;;  %v16718_v21 = vld [vmem:[#allocation33_spill] sm:$0xff] }
0x10f6   :  { %11580 = vmatpush3.bf16.msra.mxu0 %v11577_v37  ;;  %v16724_v37 = vld [vmem:[#allocation36_spill] sm:$0xff] }
0x10f7   :  { %7968 = vadd.xlane.f32.xlu0 %v7967_v24  ;;  %11582 = vmatprep.subr.bf16.mxu0 %v11581_v56  ;;  %v16720_v24 = vld [vmem:[#allocation34_spill] sm:$0xff] }
0x10f9   :  { %7971 = vadd.xlane.f32.xlu1 %v7970_v44 }
0x10fa   :  { %11584 = vmatpush3.bf16.msra.mxu0 %v11581_v56  ;;  %v16726_v56 = vld [vmem:[#allocation37_spill] sm:$0xff] }
0x10fb   :  { %7974 = vadd.xlane.f32.xlu0 %v7973_v39  ;;  %v16722_v39 = vld [vmem:[#allocation35_spill] sm:$0xff] }
0x1155   :  { %v15752_v7 = vpop.xlane.xlu1 %7929 }
0x1156   :  { %v8110_v22 = vsel %vm3003_vm12, %v15752_v7, %v16708_v52 }
0x1157   :  { %v15757_v62 = vpop.xlane.xlu0 %7932  ;;  %11265 = vmatprep.mubr.msk.f32.mxu1 %vm463_vm3, %v8110_v22 }
0x1158   :  { %v8111_v8 = vsel %vm3003_vm12, %v15757_v62, %v16709_v46  ;;  %v16728_v46 = vld [vmem:[#allocation38_spill] sm:$0xff] }
0x1159   :  { %11266 = vmatmul.mubr.msk.f32.vlgmr.msra.gmra.mrb[108].mxu1 %vm463_vm3, %v8111_v8  ;;  %v15766_v43 = vpop.xlane.xlu1 %7941 }
0x115a   :  { %v8114_v61 = vsel %vm3003_vm12, %v15766_v43, %v16712_v32 }
0x115b   :  { %v15764_v41 = vpop.xlane.xlu0 %7935 }
0x115c   :  { %v8112_v29 = vsel %vm3003_vm12, %v15764_v41, %v16710_v12 }
0x115d   :  { %11268 = vmatprep.mubr.msk.f32.mxu1 %vm463_vm3, %v8112_v29  ;;  %v15781_v42 = vpop.xlane.xlu1 %7947  ;;  %v16730_v29 = vld [vmem:[#allocation39_spill] sm:$0xff] }
0x115e   :  { %v8116_v49 = vsel %vm3003_vm12, %v15781_v42, %v16714_v38 }
0x115f   :  { %v15772_v6 = vpop.xlane.xlu0 %7938 }
0x1160   :  { %v8113_v48 = vsel %vm3003_vm12, %v15772_v6, %v16711_v45 }
0x1161   :  { %11269 = vmatmul.mubr.msk.f32.gmra.mrb[110].mxu1 %vm463_vm3, %v8113_v48  ;;  %v16731_v48 = vld [vmem:[#allocation50_spill] sm:$0xff] }
0x1162   :  { %11271 = vmatprep.mubr.msk.f32.mxu1 %vm463_vm3, %v8114_v61  ;;  %v7630_v32 = vrot.slane %v15641_v31, %v16731_v48  ;;  %v10247_v48 = vld [vmem:[%s16360_s6 + $0x78] sm:$0xff] }
0x1163   :  { %v15784_v25 = vpop.xlane.xlu0 %7944 }
0x1164   :  { %v8115_v51 = vsel %vm3003_vm12, %v15784_v25, %v16713_v33 }
0x1165   :  { %11272 = vmatmul.mubr.msk.f32.gmra.mrb[112].mxu1 %vm463_vm3, %v8115_v51 }
0x1166   :  { %11274 = vmatprep.mubr.msk.f32.mxu1 %vm463_vm3, %v8116_v49 }
0x1167   :  { %v15794_v50 = vpop.xlane.xlu0 %7950 }
0x1168   :  { %16715 = vst [vmem:[#allocation19_spill] sm:$0xff] %v15794_v50  ;;  %v8117_v30 = vsel %vm3003_vm12, %v15794_v50, %v16716_v10 }
0x1169   :  { %11275 = vmatmul.mubr.msk.f32.gmra.mrb[114].mxu1 %vm463_vm3, %v8117_v30 }
0x117a   :  { %v15800_v63 = vpop.xlane.xlu1 %7953 }
0x117b   :  { %v8118_v59 = vsel %vm3003_vm12, %v15800_v63, %v16717_v1 }
0x117c   :  { %11277 = vmatprep.mubr.msk.f32.mxu1 %vm463_vm3, %v8118_v59  ;;  %v15806_v36 = vpop.xlane.xlu0 %7956 }
0x117d   :  { %v8119_v53 = vsel %vm3003_vm12, %v15806_v36, %v16718_v21 }
0x117e   :  { %v15811_v19 = vpop.xlane.xlu1 %7959  ;;  %11278 = vmatmul.mubr.msk.f32.gmra.mrb[116].mxu1 %vm463_vm3, %v8119_v53 }
0x117f   :  { %16719 = vst [vmem:[#allocation10_spill] sm:$0xff] %v15811_v19  ;;  %v8120_v9 = vsel %vm3003_vm12, %v15811_v19, %v16720_v24 }
0x1180   :  { %11280 = vmatprep.mubr.msk.f32.mxu1 %vm463_vm3, %v8120_v9  ;;  %v15818_v44 = vpop.xlane.xlu0 %7962 }
0x1181   :  { %16721 = vst [vmem:[#allocation20_spill] sm:$0xff] %v15818_v44  ;;  %v8121_v55 = vsel %vm3003_vm12, %v15818_v44, %v16722_v39 }
0x1182   :  { %v15823_v57 = vpop.xlane.xlu1 %7965  ;;  %11281 = vmatmul.mubr.msk.f32.gmra.mrb[118].mxu1 %vm463_vm3, %v8121_v55 }
0x1183   :  { %16723 = vst [vmem:[#allocation7_spill] sm:$0xff] %v15823_v57  ;;  %v8122_v58 = vsel %vm3003_vm12, %v15823_v57, %v16724_v37 }
0x1184   :  { %11283 = vmatprep.mubr.msk.f32.mxu1 %vm463_vm3, %v8122_v58  ;;  %v15830_v16 = vpop.xlane.xlu0 %7968 }
0x1185   :  { %16725 = vst [vmem:[#allocation18_spill] sm:$0xff] %v15830_v16  ;;  %v8123_v52 = vsel %vm3003_vm12, %v15830_v16, %v16726_v56 }
0x1186   :  { %v15835_v22 = vpop.xlane.xlu1 %7971  ;;  %11284 = vmatmul.mubr.msk.f32.gmra.mrb[120].mxu1 %vm463_vm3, %v8123_v52 }
0x1187   :  { %16727 = vst [vmem:[#allocation8_spill] sm:$0xff] %v15835_v22  ;;  %v8124_v8 = vsel %vm3003_vm12, %v15835_v22, %v16728_v46  ;;  %v10244_v46 = vld [vmem:[%s16360_s6 + $0x60] sm:$0xff] }
0x1188   :  { %11286 = vmatprep.mubr.msk.f32.mxu1 %vm463_vm3, %v8124_v8  ;;  %v15842_v12 = vpop.xlane.xlu0 %7974  ;;  %v10245_v8 = vld [vmem:[%s16360_s6 + $0x68] sm:$0xff] }
0x1189   :  { %16729 = vst [vmem:[#allocation49_spill] sm:$0xff] %v15842_v12  ;;  %v8125_v45 = vsel %vm3003_vm12, %v15842_v12, %v16730_v29  ;;  %v10246_v29 = vld [vmem:[%s16360_s6 + $0x70] sm:$0xff] }
0x118a   :  { %11287 = vmatmul.mubr.msk.f32.gmra.mrb[122].mxu1 %vm463_vm3, %v8125_v45  ;;  %v11585_v45 = vpack.c.bf16 %v10245_v8, %v10244_v46 }
0x118c   :  { %11586 = vmatprep.subr.bf16.mxu0 %v11585_v45 }
0x11c8   :  { %v11251_v61 = vpop.f32.mrb[106].mxu0 }
0x11c9   :  { %v7709_v33 = vadd.f32 %v11251_v61, %v7630_v32  ;;  %v7703_v51 = vpop.f32.mrb[107].mxu0 }
0x11ca   :  { %v7704_v38 = vadd.f32 %v7703_v51, %v7630_v32  ;;  %v11589_v32 = vpack.c.bf16 %v10247_v48, %v10246_v29 }
0x11cb   :  { %v7713_v10 = vadd.f32 %v7709_v33, %v14865_v20 }
0x11cc   :  { %v7712_v49 = vadd.f32 %v7704_v38, %v14862_v0 }
0x11ce   :  { %11260 = vmatprep.mubr.msk.f32.mxu0 %vm384_vm0, %v7712_v49 }
0x11cf   :  { %11261 = vmatmul.mubr.msk.f32.vlgmr.msra.gmra.mrb[108].mxu0 %vm384_vm0, %v7713_v10 }
0x11d0   :  { %11588 = vmatpush3.bf16.msra.mxu0 %v11585_v45 }
0x11d1   :  { %11590 = vmatprep.subr.bf16.mxu0 %v11589_v32 }
0x11d4   :  { %11592 = vmatpush3.bf16.msra.mxu0 %v11589_v32 }
0x122c   :  { %v15854_v30 = vpop.f32.mrb[108].mxu1 }
0x122d   :  { %v15856_v1 = vpop.f32.mrb[109].mxu1 }
0x1234   :  { %v15858_v59 = vpop.f32.mrb[110].mxu1 }
0x1235   :  { %v15860_v21 = vpop.f32.mrb[111].mxu1 }
0x1238   :  { %v15862_v31 = vpop.f32.mrb[112].mxu1 }
0x1239   :  { %v15864_v53 = vpop.f32.mrb[113].mxu1 }
0x123c   :  { %v15866_v24 = vpop.f32.mrb[114].mxu1 }
0x123d   :  { %v15868_v0 = vpop.f32.mrb[115].mxu1 }
0x1251   :  { %v15870_v20 = vpop.f32.mrb[116].mxu1 }
0x1252   :  { %v15872_v9 = vpop.f32.mrb[117].mxu1 }
0x1255   :  { %v15874_v39 = vpop.f32.mrb[118].mxu1 }
0x1256   :  { %v15876_v55 = vpop.f32.mrb[119].mxu1 }
0x1259   :  { %v15878_v37 = vpop.f32.mrb[120].mxu1 }
0x125a   :  { %v15880_v58 = vpop.f32.mrb[121].mxu1 }
0x125d   :  { %v15882_v56 = vpop.f32.mrb[122].mxu1 }
0x125e   :  { %v15884_v52 = vpop.f32.mrb[123].mxu1 }
0x12a2   :  { %v11262_v61 = vpop.f32.mrb[108].mxu0 }
0x12a3   :  { %8506 = vrot.lane.b32.xlu0 %v11262_v61, %s12627_s15  ;;  %v8101_v33 = vpop.f32.mrb[109].mxu0  ;;  %v8375_v38 = vcombine.high %v11262_v61, %v11262_v61  ;;  %v8382_v49 = vrot.slane %v11262_v61, %v16686_v35 }
0x12a4   :  { %8504 = vrot.lane.b32.xlu1 %v8101_v33, %s12627_s15  ;;  %v8326_v51 = vcombine.high %v8101_v33, %v8101_v33  ;;  %v8333_v10 = vrot.slane %v8101_v33, %v16686_v35 }
0x12a5   :  { %v8389_v8 = vrot.slane %v8375_v38, %v16686_v35  ;;  %v8390_v29 = vcombine.high %v8382_v49, %v8382_v49  ;;  %v8398_v32 = vrot.slane %v8382_v49, %v16686_v35 }
0x12a6   :  { %v8340_v46 = vrot.slane %v8326_v51, %v16686_v35  ;;  %v8341_v45 = vcombine.high %v8333_v10, %v8333_v10  ;;  %v8349_v3 = vrot.slane %v8333_v10, %v16686_v35 }
0x12a7   :  { %v8391_v17 = vcombine.high %v8389_v8, %v8389_v8  ;;  %v15906_v54 = vrot.slane %v8389_v8, %v16686_v35  ;;  %v8412_v34 = vrot.slane %v8390_v29, %v16686_v35  ;;  %v8420_v38 = vcombine.high %v8398_v32, %v8398_v32 }
0x12a8   :  { %v8342_v48 = vcombine.high %v8340_v46, %v8340_v46  ;;  %v8356_v61 = vrot.slane %v8340_v46, %v16686_v35  ;;  %v8363_v33 = vrot.slane %v8341_v45, %v16686_v35  ;;  %v8371_v10 = vcombine.high %v8349_v3, %v8349_v3 }
0x12a9   :  { %v15919_v49 = vrot.slane %v8391_v17, %v16686_v35  ;;  %v8421_v8 = vcombine.high %v15906_v54, %v15906_v54  ;;  %v8422_v29 = vcombine.high %v8412_v34, %v8412_v34  ;;  %v15925_v45 = vrot.slane %v15916_v2, %v16688_v11 }
0x12aa   :  { %v8370_v51 = vrot.slane %v8342_v48, %v16686_v35  ;;  %v8372_v13 = vcombine.high %v8356_v61, %v8356_v61  ;;  %v8373_v46 = vcombine.high %v8363_v33, %v8363_v33  ;;  %v8459_v48 = vrot.slane %v8398_v32, %v16688_v11 }
0x12ab   :  { %v8463_v26 = vrot.slane %v8412_v34, %v16688_v11  ;;  %v8467_v18 = vrot.slane %v8420_v38, %v16688_v11  ;;  %v8475_v35 = vrot.slane %v15906_v54, %v16688_v11  ;;  %v8423_v17 = vcombine.high %v15919_v49, %v15919_v49 }
0x12ac   :  { %v8374_v14 = vcombine.high %v8370_v51, %v8370_v51  ;;  %v8471_v27 = vrot.slane %v8422_v29, %v16688_v11  ;;  %v8479_v40 = vrot.slane %v15919_v49, %v16688_v11  ;;  %v15938_v12 = vrot.slane %v8421_v8, %v16688_v11 }
0x12ad   :  { %v8427_v32 = vrot.slane %v8349_v3, %v16688_v11  ;;  %v8431_v34 = vrot.slane %v8363_v33, %v16688_v11  ;;  %v8435_v38 = vrot.slane %v8371_v10, %v16688_v11  ;;  %v8443_v60 = vrot.slane %v8356_v61, %v16688_v11 }
0x12ae   :  { %v8439_v54 = vrot.slane %v8373_v46, %v16688_v11  ;;  %v8447_v15 = vrot.slane %v8370_v51, %v16688_v11  ;;  %v8451_v29 = vrot.slane %v8372_v13, %v16688_v11  ;;  %v8455_v22 = vrot.slane %v8374_v14, %v16688_v11 }
0x1315   :  { %v8507_v49 = vpop.permute.xlu0 %8506 }
0x1316   :  { %v8505_v28 = vpop.permute.xlu1 %8504  ;;  %v8518_v8 = vadd.f32 %v8507_v49, %v8459_v48  ;;  %v8519_v16 = vadd.f32 %v8507_v49, %v8463_v26  ;;  %v8520_v57 = vadd.f32 %v8507_v49, %v8467_v18  ;;  %v8521_v3 = vadd.f32 %v8507_v49, %v8471_v27 }
0x1317   :  { %v8510_v47 = vadd.f32 %v8505_v28, %v8427_v32  ;;  %v8511_v33 = vadd.f32 %v8505_v28, %v8431_v34  ;;  %v8512_v19 = vadd.f32 %v8505_v28, %v8435_v38  ;;  %v8513_v10 = vadd.f32 %v8505_v28, %v8439_v54 }
0x1318   :  { %v8514_v50 = vadd.f32 %v8505_v28, %v8443_v60  ;;  %v8515_v61 = vadd.f32 %v8505_v28, %v8447_v15  ;;  %v8516_v23 = vadd.f32 %v8505_v28, %v8451_v29  ;;  %v8517_v46 = vadd.f32 %v8505_v28, %v8455_v22 }
0x1319   :  { %v8526_v51 = vadd.f32 %v8510_v47, %v15856_v1  ;;  %v8527_v13 = vadd.f32 %v15854_v30, %v8511_v33  ;;  %v8528_v14 = vadd.f32 %v8512_v19, %v15860_v21  ;;  %v8529_v44 = vadd.f32 %v15858_v59, %v8513_v10 }
0x131a   :  { %v8530_v26 = vadd.f32 %v8514_v50, %v15864_v53  ;;  %v8531_v27 = vadd.f32 %v15862_v31, %v8515_v61  ;;  %v8532_v18 = vadd.f32 %v8516_v23, %v15868_v0  ;;  %v8533_v48 = vadd.f32 %v15866_v24, %v8517_v46 }
0x131b   :  { %v15957_v60 = vadd.f32 %v15925_v45, %v8526_v51  ;;  %v15960_v28 = vadd.f32 %v15925_v45, %v8527_v13  ;;  %v15963_v47 = vadd.f32 %v15925_v45, %v8528_v14  ;;  %v15966_v15 = vadd.f32 %v15925_v45, %v8529_v44 }
0x131c   :  { %v15969_v50 = vadd.f32 %v15925_v45, %v8530_v26  ;;  %v15972_v19 = vadd.f32 %v15925_v45, %v8531_v27  ;;  %v15975_v23 = vadd.f32 %v15925_v45, %v8532_v18  ;;  %v15978_v22 = vadd.f32 %v15925_v45, %v8533_v48 }
0x131d   :  { %v10228_v30 = vmul.f32 -1.442695, %v15957_v60  ;;  %v10229_v1 = vmul.f32 -1.442695, %v15960_v28  ;;  %v10230_v59 = vmul.f32 -1.442695, %v15963_v47  ;;  %v8534_v44 = vadd.f32 %v8518_v8, %v15872_v9 }
0x131e   :  { %v8487_v21 = vrot.slane %v8423_v17, %v16688_v11  ;;  %v10231_v31 = vmul.f32 -1.442695, %v15966_v15  ;;  %v10232_v53 = vmul.f32 -1.442695, %v15969_v50  ;;  %v8535_v24 = vadd.f32 %v15870_v20, %v8519_v16 }
0x131f   :  { %12368 = vpow2.f32 %v10228_v30  ;;  %v10233_v0 = vmul.f32 -1.442695, %v15972_v19  ;;  %v10234_v32 = vmul.f32 -1.442695, %v15975_v23  ;;  %v15991_v34 = vadd.f32 %v15925_v45, %v8534_v44 }
0x1320   :  { %12370 = vpow2.f32 %v10229_v1  ;;  %v15994_v38 = vadd.f32 %v15925_v45, %v8535_v24  ;;  %v8536_v11 = vadd.f32 %v8520_v57, %v15876_v55  ;;  %v8537_v9 = vadd.f32 %v15874_v39, %v8521_v3 }
0x1321   :  { %12372 = vpow2.f32 %v10230_v59  ;;  %v10235_v17 = vmul.f32 -1.442695, %v15978_v22  ;;  %v8522_v16 = vadd.f32 %v8507_v49, %v8475_v35  ;;  %v8523_v20 = vadd.f32 %v8507_v49, %v8479_v40 }
0x1322   :  { %12374 = vpow2.f32 %v10231_v31  ;;  %v10236_v54 = vmul.f32 -1.442695, %v15991_v34  ;;  %v16001_v29 = vadd.f32 %v15925_v45, %v8536_v11  ;;  %v16004_v8 = vadd.f32 %v15925_v45, %v8537_v9 }
0x1323   :  { %12376 = vpow2.f32 %v10232_v53  ;;  %v8538_v33 = vadd.f32 %v8522_v16, %v15880_v58  ;;  %v8539_v57 = vadd.f32 %v15878_v37, %v8523_v20  ;;  %v8524_v39 = vadd.f32 %v8507_v49, %v15938_v12 }
0x1324   :  { %12378 = vpow2.f32 %v10233_v0  ;;  %v10237_v55 = vmul.f32 -1.442695, %v15994_v38  ;;  %v8525_v40 = vadd.f32 %v8507_v49, %v8487_v21  ;;  %v10238_v35 = vmul.f32 -1.442695, %v16001_v29 }
0x1325   :  { %12380 = vpow2.f32 %v10234_v32  ;;  %v16012_v3 = vadd.f32 %v15925_v45, %v8538_v33  ;;  %v8540_v10 = vadd.f32 %v8524_v39, %v15884_v52  ;;  %v10239_v61 = vmul.f32 -1.442695, %v16004_v8 }
0x1326   :  { %12382 = vpow2.f32 %v10235_v17  ;;  %v8541_v58 = vadd.f32 %v15882_v56, %v8525_v40  ;;  %v16019_v21 = vadd.f32 %v15925_v45, %v8539_v57 }
0x1327   :  { %12384 = vpow2.f32 %v10236_v54  ;;  %v10240_v12 = vmul.f32 -1.442695, %v16012_v3  ;;  %v16022_v24 = vadd.f32 %v15925_v45, %v8540_v10 }
0x1328   :  { %12386 = vpow2.f32 %v10237_v55  ;;  %v16025_v11 = vadd.f32 %v15925_v45, %v8541_v58  ;;  %v10241_v20 = vmul.f32 -1.442695, %v16019_v21 }
0x1329   :  { %v12369_v37 = vpop.eup %12368  ;;  %12388 = vpow2.f32 %v10238_v35  ;;  %v10242_v33 = vmul.f32 -1.442695, %v16022_v24 }
0x132a   :  { %v12371_v49 = vpop.eup %12370  ;;  %v8610_v46 = vadd.f32 1.0, %v12369_v37  ;;  %12390 = vpow2.f32 %v10239_v61  ;;  %v10243_v55 = vmul.f32 -1.442695, %v16025_v11 }
0x132b   :  { %v12373_v51 = vpop.eup %12372  ;;  %v8611_v13 = vadd.f32 1.0, %v12371_v49  ;;  %12392 = vpow2.f32 %v10240_v12 }
0x132c   :  { %v12375_v14 = vpop.eup %12374  ;;  %12394 = vrcp.f32 %v8610_v46  ;;  %v8612_v52 = vadd.f32 1.0, %v12373_v51 }
0x132d   :  { %v12377_v26 = vpop.eup %12376  ;;  %12396 = vrcp.f32 %v8611_v13  ;;  %v8613_v27 = vadd.f32 1.0, %v12375_v14 }
0x132e   :  { %v12379_v18 = vpop.eup %12378  ;;  %12398 = vrcp.f32 %v8612_v52  ;;  %v8614_v56 = vadd.f32 1.0, %v12377_v26 }
0x132f   :  { %v12381_v48 = vpop.eup %12380  ;;  %12400 = vrcp.f32 %v8613_v27  ;;  %v8615_v30 = vadd.f32 1.0, %v12379_v18 }
0x1330   :  { %v12383_v1 = vpop.eup %12382  ;;  %12402 = vrcp.f32 %v8614_v56  ;;  %v8616_v59 = vadd.f32 1.0, %v12381_v48 }
0x1331   :  { %v12385_v44 = vpop.eup %12384  ;;  %v8617_v53 = vadd.f32 1.0, %v12383_v1  ;;  %12404 = vrcp.f32 %v8615_v30 }
0x1332   :  { %v12387_v31 = vpop.eup %12386  ;;  %v8618_v32 = vadd.f32 1.0, %v12385_v44  ;;  %12406 = vrcp.f32 %v8616_v59 }
0x1333   :  { %v12389_v0 = vpop.eup %12388  ;;  %v8619_v17 = vadd.f32 1.0, %v12387_v31  ;;  %12408 = vrcp.f32 %v8617_v53 }
0x1334   :  { %v12391_v9 = vpop.eup %12390  ;;  %12410 = vrcp.f32 %v8618_v32  ;;  %v8620_v35 = vadd.f32 1.0, %v12389_v0 }
0x1335   :  { %v12393_v16 = vpop.eup %12392  ;;  %12412 = vrcp.f32 %v8619_v17  ;;  %v8991_v17 = vld [vmem:[#allocation3 + $0x70] sm:$0xff] }
0x1336   :  { %v12395_v54 = vpop.eup %12394  ;;  %12414 = vpow2.f32 %v10241_v20 }
0x1337   :  { %v12397_v57 = vpop.eup %12396  ;;  %v8658_v39 = vmul.f32 %v12395_v54, %v15957_v60  ;;  %12416 = vpow2.f32 %v10242_v33  ;;  %v8621_v60 = vadd.f32 1.0, %v12391_v9 }
0x1338   :  { %v12399_v40 = vpop.eup %12398  ;;  %v8659_v45 = vmul.f32 %v12397_v57, %v15960_v28  ;;  %12418 = vpow2.f32 %v10243_v55  ;;  %v8622_v28 = vadd.f32 1.0, %v12393_v16  ;;  %v8992_v16 = vld [vmem:[#allocation3 + $0x78] sm:$0xff] }
0x1339   :  { %v12401_v10 = vpop.eup %12400  ;;  %11297 = vmatprep.mubr.msk.f32.mxu0 %vm384_vm0, %v8658_v39  ;;  %v8660_v61 = vmul.f32 %v12399_v40, %v15963_v47  ;;  %12420 = vrcp.f32 %v8620_v35  ;;  %v11597_v20 = vpack.c.bf16 %v8992_v16, %v8991_v17 }
0x133a   :  { %v12403_v58 = vpop.eup %12402  ;;  %11298 = vmatmul.mubr.msk.f32.vlgmr.msra.gmra.mrb[110].mxu0 %vm384_vm0, %v8659_v45  ;;  %v8661_v12 = vmul.f32 %v12401_v10, %v15966_v15  ;;  %12422 = vrcp.f32 %v8621_v60 }
0x133b   :  { %11300 = vmatprep.mubr.msk.f32.mxu0 %vm384_vm0, %v8660_v61  ;;  %v12405_v37 = vpop.eup %12404  ;;  %v8662_v49 = vmul.f32 %v12403_v58, %v15969_v50  ;;  %12424 = vrcp.f32 %v8622_v28 }
0x133c   :  { %v12407_v46 = vpop.eup %12406  ;;  %v8663_v51 = vmul.f32 %v12405_v37, %v15972_v19 }
0x133d   :  { %v12409_v47 = vpop.eup %12408  ;;  %v8664_v14 = vmul.f32 %v12407_v46, %v15975_v23 }
0x133e   :  { %11301 = vmatmul.mubr.msk.f32.gmra.mrb[112].mxu0 %vm384_vm0, %v8661_v12  ;;  %v12411_v13 = vpop.eup %12410  ;;  %v8665_v26 = vmul.f32 %v12409_v47, %v15978_v22 }
0x133f   :  { %11303 = vmatprep.mubr.msk.f32.mxu0 %vm384_vm0, %v8662_v49  ;;  %v12413_v52 = vpop.eup %12412  ;;  %v8666_v56 = vmul.f32 %v12411_v13, %v15991_v34 }
0x1340   :  { %v12415_v15 = vpop.eup %12414  ;;  %v8667_v23 = vmul.f32 %v12413_v52, %v15994_v38 }
0x1341   :  { %v12417_v50 = vpop.eup %12416  ;;  %v8623_v27 = vadd.f32 1.0, %v12415_v15 }
0x1342   :  { %11304 = vmatmul.mubr.msk.f32.gmra.mrb[114].mxu0 %vm384_vm0, %v8663_v51  ;;  %v12419_v18 = vpop.eup %12418  ;;  %v8624_v48 = vadd.f32 1.0, %v12417_v50 }
0x1343   :  { %11306 = vmatprep.mubr.msk.f32.mxu0 %vm384_vm0, %v8664_v14  ;;  %v12421_v30 = vpop.eup %12420  ;;  %12426 = vrcp.f32 %v8623_v27  ;;  %v8625_v19 = vadd.f32 1.0, %v12419_v18 }
0x1344   :  { %12428 = vrcp.f32 %v8624_v48  ;;  %v12423_v1 = vpop.eup %12422  ;;  %v8668_v59 = vmul.f32 %v12421_v30, %v16001_v29 }
0x1345   :  { %12430 = vrcp.f32 %v8625_v19  ;;  %v12425_v22 = vpop.eup %12424  ;;  %v8669_v34 = vmul.f32 %v12423_v1, %v16004_v8  ;;  %v8989_v8 = vld [vmem:[#allocation3 + $0x60] sm:$0xff] }
0x1346   :  { %11307 = vmatmul.mubr.msk.f32.gmra.mrb[116].mxu0 %vm384_vm0, %v8665_v26  ;;  %v8670_v44 = vmul.f32 %v12425_v22, %v16012_v3  ;;  %v8990_v3 = vld [vmem:[#allocation3 + $0x68] sm:$0xff] }
0x1347   :  { %11309 = vmatprep.mubr.msk.f32.mxu0 %vm384_vm0, %v8666_v56  ;;  %v11593_v9 = vpack.c.bf16 %v8990_v3, %v8989_v8 }
0x1349   :  { %11594 = vmatprep.subr.bf16.mxu1 %v11593_v9 }
0x134a   :  { %11310 = vmatmul.mubr.msk.f32.gmra.mrb[118].mxu0 %vm384_vm0, %v8667_v23  ;;  %11596 = vmatpush3.bf16.msra.mxu1 %v11593_v9 }
0x134b   :  { %11312 = vmatprep.mubr.msk.f32.mxu0 %vm384_vm0, %v8668_v59  ;;  %11598 = vmatprep.subr.bf16.mxu1 %v11597_v20 }
0x134d   :  { %v12427_v31 = vpop.eup %12426 }
0x134e   :  { %11313 = vmatmul.mubr.msk.f32.gmra.mrb[120].mxu0 %vm384_vm0, %v8669_v34  ;;  %v12429_v53 = vpop.eup %12428  ;;  %v8671_v38 = vmul.f32 %v12427_v31, %v16019_v21  ;;  %11600 = vmatpush3.bf16.msra.mxu1 %v11597_v20  ;;  %v16732_v21 = vld [vmem:[#allocation40_spill] sm:$0xff] }
0x134f   :  { %11315 = vmatprep.mubr.msk.f32.mxu0 %vm384_vm0, %v8670_v44  ;;  %v12431_v0 = vpop.eup %12430  ;;  %v8672_v29 = vmul.f32 %v12429_v53, %v16022_v24  ;;  %v16064_v24 = vrot.slane %v15916_v2, %v16732_v21 }
0x1350   :  { %v8673_v32 = vmul.f32 %v12431_v0, %v16025_v11 }
0x1352   :  { %11316 = vmatmul.mubr.msk.f32.gmra.mrb[122].mxu0 %vm384_vm0, %v8671_v38 }
0x1353   :  { %11318 = vmatprep.mubr.msk.f32.mxu0 %vm384_vm0, %v8672_v29 }
0x1356   :  { %11319 = vmatmul.mubr.msk.f32.gmra.mrb[124].mxu0 %vm384_vm0, %v8673_v32 }
0x140d   :  { %v11299_v54 = vpop.f32.mrb[110].mxu0 }
0x140e   :  { %v16067_v33 = vadd.f32 %v11299_v54, %v16064_v24  ;;  %v8797_v11 = vpop.f32.mrb[111].mxu0 }
0x140f   :  { %v16070_v57 = vadd.f32 %v8797_v11, %v16064_v24 }
0x1410   :  { %v10265_v39 = vmul.f32 -1.442695, %v16067_v33 }
0x1411   :  { %v10264_v55 = vmul.f32 -1.442695, %v16070_v57  ;;  %v11302_v40 = vpop.f32.mrb[112].mxu0 }
0x1412   :  { %12432 = vpow2.f32 %v10265_v39  ;;  %v16075_v45 = vadd.f32 %v11302_v40, %v16064_v24  ;;  %v8807_v35 = vpop.f32.mrb[113].mxu0 }
0x1413   :  { %12434 = vpow2.f32 %v10264_v55  ;;  %v16078_v10 = vadd.f32 %v8807_v35, %v16064_v24 }
0x1414   :  { %v10267_v61 = vmul.f32 -1.442695, %v16075_v45 }
0x1415   :  { %v10266_v58 = vmul.f32 -1.442695, %v16078_v10  ;;  %v11305_v60 = vpop.f32.mrb[114].mxu0 }
0x1416   :  { %12436 = vpow2.f32 %v10267_v61  ;;  %v16083_v12 = vadd.f32 %v11305_v60, %v16064_v24  ;;  %v8817_v28 = vpop.f32.mrb[115].mxu0 }
0x1417   :  { %12438 = vpow2.f32 %v10266_v58  ;;  %v16086_v37 = vadd.f32 %v8817_v28, %v16064_v24 }
0x1418   :  { %v10269_v49 = vmul.f32 -1.442695, %v16083_v12 }
0x1419   :  { %v10268_v46 = vmul.f32 -1.442695, %v16086_v37  ;;  %v11308_v47 = vpop.f32.mrb[116].mxu0 }
0x141a   :  { %12440 = vpow2.f32 %v10269_v49  ;;  %v16091_v51 = vadd.f32 %v11308_v47, %v16064_v24  ;;  %v8827_v13 = vpop.f32.mrb[117].mxu0 }
0x141b   :  { %12442 = vpow2.f32 %v10268_v46  ;;  %v16094_v14 = vadd.f32 %v8827_v13, %v16064_v24 }
0x141c   :  { %v12433_v52 = vpop.eup %12432  ;;  %v10271_v15 = vmul.f32 -1.442695, %v16091_v51 }
0x141d   :  { %v12435_v50 = vpop.eup %12434  ;;  %v8925_v26 = vadd.f32 1.0, %v12433_v52  ;;  %v10270_v27 = vmul.f32 -1.442695, %v16094_v14  ;;  %v11311_v18 = vpop.f32.mrb[118].mxu0 }
0x141e   :  { %v8924_v56 = vadd.f32 1.0, %v12435_v50  ;;  %12444 = vpow2.f32 %v10271_v15  ;;  %v16099_v48 = vadd.f32 %v11311_v18, %v16064_v24  ;;  %v8837_v30 = vpop.f32.mrb[119].mxu0 }
0x141f   :  { %12446 = vrcp.f32 %v8925_v26  ;;  %v16102_v19 = vadd.f32 %v8837_v30, %v16064_v24 }
0x1420   :  { %v12437_v23 = vpop.eup %12436  ;;  %12448 = vrcp.f32 %v8924_v56  ;;  %v10273_v1 = vmul.f32 -1.442695, %v16099_v48 }
0x1421   :  { %v12439_v59 = vpop.eup %12438  ;;  %v8927_v22 = vadd.f32 1.0, %v12437_v23  ;;  %12450 = vpow2.f32 %v10270_v27  ;;  %v10272_v34 = vmul.f32 -1.442695, %v16102_v19  ;;  %v11314_v44 = vpop.f32.mrb[120].mxu0 }
0x1422   :  { %v8926_v31 = vadd.f32 1.0, %v12439_v59  ;;  %12452 = vpow2.f32 %v10273_v1  ;;  %v16107_v53 = vadd.f32 %v11314_v44, %v16064_v24  ;;  %v8847_v38 = vpop.f32.mrb[121].mxu0 }
0x1423   :  { %12454 = vrcp.f32 %v8927_v22  ;;  %v16110_v0 = vadd.f32 %v8847_v38, %v16064_v24 }
0x1424   :  { %v12441_v29 = vpop.eup %12440  ;;  %12456 = vrcp.f32 %v8926_v31  ;;  %v10275_v32 = vmul.f32 -1.442695, %v16107_v53 }
0x1425   :  { %v12443_v8 = vpop.eup %12442  ;;  %v8929_v3 = vadd.f32 1.0, %v12441_v29  ;;  %12458 = vpow2.f32 %v10272_v34  ;;  %v10274_v9 = vmul.f32 -1.442695, %v16110_v0  ;;  %v11317_v16 = vpop.f32.mrb[122].mxu0 }
0x1426   :  { %v8928_v17 = vadd.f32 1.0, %v12443_v8  ;;  %12460 = vpow2.f32 %v10275_v32  ;;  %v16115_v20 = vadd.f32 %v11317_v16, %v16064_v24  ;;  %v8857_v21 = vpop.f32.mrb[123].mxu0 }
0x1427   :  { %12462 = vrcp.f32 %v8929_v3  ;;  %v16118_v11 = vadd.f32 %v8857_v21, %v16064_v24 }
0x1428   :  { %v12445_v54 = vpop.eup %12444  ;;  %12464 = vrcp.f32 %v8928_v17  ;;  %v10277_v40 = vmul.f32 -1.442695, %v16115_v20 }
0x1429   :  { %v12447_v39 = vpop.eup %12446  ;;  %v8931_v55 = vadd.f32 1.0, %v12445_v54  ;;  %12466 = vpow2.f32 %v10274_v9  ;;  %v10276_v61 = vmul.f32 -1.442695, %v16118_v11  ;;  %v11320_v58 = vpop.f32.mrb[124].mxu0 }
0x142a   :  { %v12449_v35 = vpop.eup %12448  ;;  %v16124_v49 = vadd.f32 %v11320_v58, %v16064_v24  ;;  %v8867_v46 = vpop.f32.mrb[125].mxu0  ;;  %v8973_v13 = vmul.f32 %v12447_v39, %v16067_v33 }
0x142b   :  { %v12451_v60 = vpop.eup %12450  ;;  %v8972_v28 = vmul.f32 %v12449_v35, %v16070_v57  ;;  %12468 = vrcp.f32 %v8931_v55  ;;  %v16128_v15 = vadd.f32 %v8867_v46, %v16064_v24 }
0x142c   :  { %v12453_v47 = vpop.eup %12452  ;;  %v8930_v52 = vadd.f32 1.0, %v12451_v60  ;;  %12470 = vpow2.f32 %v10277_v40  ;;  %v10279_v27 = vmul.f32 -1.442695, %v16124_v49 }
0x142d   :  { %v12455_v50 = vpop.eup %12454  ;;  %v8933_v26 = vadd.f32 1.0, %v12453_v47  ;;  %12472 = vpow2.f32 %v10276_v61  ;;  %11329 = vmatprep.mubr.msk.f32.mxu1 %vm384_vm0, %v8972_v28  ;;  %v10278_v18 = vmul.f32 -1.442695, %v16128_v15 }
0x142e   :  { %v12457_v57 = vpop.eup %12456  ;;  %12474 = vrcp.f32 %v8930_v52  ;;  %11330 = vmatmul.mubr.msk.f32.vlgmr.msra.gmra.mrb[124].mxu1 %vm384_vm0, %v8973_v13  ;;  %v8975_v24 = vmul.f32 %v12455_v50, %v16075_v45  ;;  %v10315_v13 = vld [vmem:[%s16364_s10 + $0x78] sm:$0xff] }
0x142f   :  { %v12459_v56 = vpop.eup %12458  ;;  %v8974_v33 = vmul.f32 %v12457_v57, %v16078_v10  ;;  %12476 = vrcp.f32 %v8933_v26 }
0x1430   :  { %v12461_v30 = vpop.eup %12460  ;;  %v8932_v23 = vadd.f32 1.0, %v12459_v56  ;;  %12478 = vpow2.f32 %v10279_v27 }
0x1431   :  { %v12463_v1 = vpop.eup %12462  ;;  %v8935_v59 = vadd.f32 1.0, %v12461_v30  ;;  %12480 = vpow2.f32 %v10278_v18  ;;  %11332 = vmatprep.mubr.msk.f32.mxu1 %vm384_vm0, %v8974_v33 }
0x1432   :  { %v12465_v22 = vpop.eup %12464  ;;  %12482 = vrcp.f32 %v8932_v23  ;;  %11333 = vmatmul.mubr.msk.f32.gmra.mrb[126].mxu1 %vm384_vm0, %v8975_v24  ;;  %v8977_v10 = vmul.f32 %v12463_v1, %v16083_v12 }
0x1433   :  { %v12467_v34 = vpop.eup %12466  ;;  %v8976_v44 = vmul.f32 %v12465_v22, %v16086_v37  ;;  %12484 = vrcp.f32 %v8935_v59 }
0x1434   :  { %v8934_v31 = vadd.f32 1.0, %v12467_v34 }
0x1435   :  { %v12469_v38 = vpop.eup %12468  ;;  %11335 = vmatprep.mubr.msk.f32.mxu1 %vm384_vm0, %v8976_v44 }
0x1436   :  { %v12471_v45 = vpop.eup %12470  ;;  %12486 = vrcp.f32 %v8934_v31  ;;  %11336 = vmatmul.mubr.msk.f32.gmra.mrb[128].mxu1 %vm384_vm0, %v8977_v10  ;;  %v8979_v12 = vmul.f32 %v12469_v38, %v16091_v51 }
0x1437   :  { %v12473_v29 = vpop.eup %12472  ;;  %v8937_v32 = vadd.f32 1.0, %v12471_v45 }
0x1438   :  { %v12475_v8 = vpop.eup %12474  ;;  %v8936_v3 = vadd.f32 1.0, %v12473_v29 }
0x1439   :  { %v12477_v9 = vpop.eup %12476  ;;  %v8978_v17 = vmul.f32 %v12475_v8, %v16094_v14  ;;  %12488 = vrcp.f32 %v8937_v32 }
0x143a   :  { %v12479_v37 = vpop.eup %12478  ;;  %12490 = vrcp.f32 %v8936_v3  ;;  %v8981_v40 = vmul.f32 %v12477_v9, %v16099_v48 }
0x143b   :  { %v12481_v16 = vpop.eup %12480  ;;  %v8939_v21 = vadd.f32 1.0, %v12479_v37  ;;  %11338 = vmatprep.mubr.msk.f32.mxu1 %vm384_vm0, %v8978_v17 }
0x143c   :  { %v12483_v54 = vpop.eup %12482  ;;  %v8938_v39 = vadd.f32 1.0, %v12481_v16  ;;  %11339 = vmatmul.mubr.msk.f32.gmra.mrb[130].mxu1 %vm384_vm0, %v8979_v12 }
0x143d   :  { %v8980_v55 = vmul.f32 %v12483_v54, %v16102_v19  ;;  %12492 = vrcp.f32 %v8939_v21  ;;  %v12485_v14 = vpop.eup %12484 }
0x143e   :  { %12494 = vrcp.f32 %v8938_v39  ;;  %v8983_v61 = vmul.f32 %v12485_v14, %v16107_v53 }
0x143f   :  { %11341 = vmatprep.mubr.msk.f32.mxu1 %vm384_vm0, %v8980_v55 }
0x1440   :  { %v12487_v35 = vpop.eup %12486  ;;  %11342 = vmatmul.mubr.msk.f32.gmra.mrb[132].mxu1 %vm384_vm0, %v8981_v40 }
0x1441   :  { %v8982_v51 = vmul.f32 %v12487_v35, %v16110_v0 }
0x1443   :  { %v12489_v58 = vpop.eup %12488  ;;  %11344 = vmatprep.mubr.msk.f32.mxu1 %vm384_vm0, %v8982_v51 }
0x1444   :  { %v12491_v60 = vpop.eup %12490  ;;  %11345 = vmatmul.mubr.msk.f32.gmra.mrb[134].mxu1 %vm384_vm0, %v8983_v61  ;;  %v8985_v48 = vmul.f32 %v12489_v58, %v16115_v20  ;;  %v10313_v20 = vld [vmem:[%s16364_s10 + $0x68] sm:$0xff] }
0x1445   :  { %v8984_v19 = vmul.f32 %v12491_v60, %v16118_v11  ;;  %v10312_v11 = vld [vmem:[%s16364_s10 + $0x60] sm:$0xff] }
0x1446   :  { %v11601_v47 = vpack.c.bf16 %v10313_v20, %v10312_v11 }
0x1447   :  { %v12493_v28 = vpop.eup %12492  ;;  %11347 = vmatprep.mubr.msk.f32.mxu1 %vm384_vm0, %v8984_v19 }
0x1448   :  { %v12495_v46 = vpop.eup %12494  ;;  %11348 = vmatmul.mubr.msk.f32.gmra.mrb[136].mxu1 %vm384_vm0, %v8985_v48  ;;  %v8987_v53 = vmul.f32 %v12493_v28, %v16124_v49  ;;  %11602 = vmatprep.subr.bf16.mxu0 %v11601_v47  ;;  %v10314_v49 = vld [vmem:[%s16364_s10 + $0x70] sm:$0xff] }
0x1449   :  { %v8986_v0 = vmul.f32 %v12495_v46, %v16128_v15  ;;  %11609 = vmatprep.subr.bf16.mxu1 %v11601_v47  ;;  %11604 = vmatpush3.bf16.msra.mxu0 %v11601_v47  ;;  %v11605_v52 = vpack.c.bf16 %v10315_v13, %v10314_v49  ;;  %v16733_v15 = vld [vmem:[#allocation41_spill] sm:$0xff] }
0x144a   :  { %11611 = vmatpush3.bf16.msra.mxu1 %v11601_v47  ;;  %v16176_v50 = vrot.slane %v15916_v2, %v16733_v15 }
0x144b   :  { %11350 = vmatprep.mubr.msk.f32.mxu1 %vm384_vm0, %v8986_v0  ;;  %11606 = vmatprep.subr.bf16.mxu0 %v11605_v52 }
0x144c   :  { %11351 = vmatmul.mubr.msk.f32.gmra.mrb[138].mxu1 %vm384_vm0, %v8987_v53  ;;  %11610 = vmatprep.subr.bf16.mxu1 %v11605_v52 }
0x144d   :  { %11608 = vmatpush3.bf16.msra.mxu0 %v11605_v52 }
0x144e   :  { %11612 = vmatpush3.bf16.msra.mxu1 %v11605_v52 }
0x1501   :  { %v11331_v26 = vpop.f32.mrb[124].mxu1 }
0x1502   :  { %v16179_v27 = vadd.f32 %v11331_v26, %v16176_v50  ;;  %v9111_v57 = vpop.f32.mrb[125].mxu1 }
0x1503   :  { %v16182_v18 = vadd.f32 %v9111_v57, %v16176_v50 }
0x1504   :  { %v10297_v56 = vmul.f32 -1.442695, %v16179_v27 }
0x1505   :  { %v10296_v33 = vmul.f32 -1.442695, %v16182_v18  ;;  %v11334_v30 = vpop.f32.mrb[126].mxu1 }
0x1506   :  { %12496 = vpow2.f32 %v10297_v56  ;;  %v16187_v24 = vadd.f32 %v11334_v30, %v16176_v50  ;;  %v9121_v23 = vpop.f32.mrb[127].mxu1 }
0x1507   :  { %12498 = vpow2.f32 %v10296_v33  ;;  %v16190_v2 = vadd.f32 %v9121_v23, %v16176_v50 }
0x1508   :  { %v10299_v1 = vmul.f32 -1.442695, %v16187_v24 }
0x1509   :  { %v10298_v59 = vmul.f32 -1.442695, %v16190_v2  ;;  %v11337_v22 = vpop.f32.mrb[128].mxu1 }
0x150a   :  { %12500 = vpow2.f32 %v10299_v1  ;;  %v16195_v34 = vadd.f32 %v11337_v22, %v16176_v50  ;;  %v9131_v44 = vpop.f32.mrb[129].mxu1 }
0x150b   :  { %12502 = vpow2.f32 %v10298_v59  ;;  %v16198_v10 = vadd.f32 %v9131_v44, %v16176_v50 }
0x150c   :  { %v10301_v31 = vmul.f32 -1.442695, %v16195_v34 }
0x150d   :  { %v10300_v38 = vmul.f32 -1.442695, %v16198_v10 }
0x150e   :  { %12504 = vpow2.f32 %v10301_v31 }
0x150f   :  { %12506 = vpow2.f32 %v10300_v38  ;;  %v11340_v45 = vpop.f32.mrb[130].mxu1 }
0x1510   :  { %v12497_v29 = vpop.eup %12496  ;;  %v16203_v32 = vadd.f32 %v11340_v45, %v16176_v50  ;;  %v9141_v8 = vpop.f32.mrb[131].mxu1 }
0x1511   :  { %v12499_v3 = vpop.eup %12498  ;;  %v9239_v9 = vadd.f32 1.0, %v12497_v29  ;;  %v16206_v17 = vadd.f32 %v9141_v8, %v16176_v50 }
0x1512   :  { %v9238_v37 = vadd.f32 1.0, %v12499_v3  ;;  %v10303_v12 = vmul.f32 -1.442695, %v16203_v32 }
0x1513   :  { %12508 = vrcp.f32 %v9239_v9  ;;  %v10302_v16 = vmul.f32 -1.442695, %v16206_v17  ;;  %v11343_v21 = vpop.f32.mrb[132].mxu1 }
0x1514   :  { %v12501_v54 = vpop.eup %12500  ;;  %12510 = vrcp.f32 %v9238_v37  ;;  %v16211_v39 = vadd.f32 %v11343_v21, %v16176_v50  ;;  %v9151_v55 = vpop.f32.mrb[133].mxu1 }
0x1515   :  { %v12503_v40 = vpop.eup %12502  ;;  %v9241_v14 = vadd.f32 1.0, %v12501_v54  ;;  %12512 = vpow2.f32 %v10303_v12  ;;  %v16214_v35 = vadd.f32 %v9151_v55, %v16176_v50 }
0x1516   :  { %v9240_v51 = vadd.f32 1.0, %v12503_v40  ;;  %12514 = vpow2.f32 %v10302_v16  ;;  %v10305_v61 = vmul.f32 -1.442695, %v16211_v39 }
0x1517   :  { %12516 = vrcp.f32 %v9241_v14  ;;  %v10304_v58 = vmul.f32 -1.442695, %v16214_v35  ;;  %v11346_v60 = vpop.f32.mrb[134].mxu1 }
0x1518   :  { %v12505_v19 = vpop.eup %12504  ;;  %12518 = vrcp.f32 %v9240_v51  ;;  %v16219_v48 = vadd.f32 %v11346_v60, %v16176_v50  ;;  %v9161_v28 = vpop.f32.mrb[135].mxu1 }
0x1519   :  { %v12507_v46 = vpop.eup %12506  ;;  %v9243_v0 = vadd.f32 1.0, %v12505_v19  ;;  %12520 = vpow2.f32 %v10305_v61  ;;  %v16222_v53 = vadd.f32 %v9161_v28, %v16176_v50 }
0x151a   :  { %v9242_v11 = vadd.f32 1.0, %v12507_v46  ;;  %12522 = vpow2.f32 %v10304_v58  ;;  %v10307_v20 = vmul.f32 -1.442695, %v16219_v48 }
0x151b   :  { %12524 = vrcp.f32 %v9243_v0  ;;  %v10306_v47 = vmul.f32 -1.442695, %v16222_v53  ;;  %v11349_v49 = vpop.f32.mrb[136].mxu1 }
0x151c   :  { %12526 = vrcp.f32 %v9242_v11  ;;  %v16227_v13 = vadd.f32 %v11349_v49, %v16176_v50  ;;  %v9171_v52 = vpop.f32.mrb[137].mxu1 }
0x151d   :  { %v12509_v15 = vpop.eup %12508  ;;  %12528 = vpow2.f32 %v10307_v20  ;;  %v16230_v26 = vadd.f32 %v9171_v52, %v16176_v50 }
0x151e   :  { %v12511_v57 = vpop.eup %12510  ;;  %12530 = vpow2.f32 %v10306_v47  ;;  %v10309_v56 = vmul.f32 -1.442695, %v16227_v13  ;;  %v9287_v22 = vmul.f32 %v12509_v15, %v16179_v27 }
0x151f   :  { %v12513_v33 = vpop.eup %12512  ;;  %v9286_v30 = vmul.f32 %v12511_v57, %v16182_v18  ;;  %v10308_v23 = vmul.f32 -1.442695, %v16230_v26  ;;  %v11352_v1 = vpop.f32.mrb[138].mxu1 }
0x1520   :  { %v12515_v59 = vpop.eup %12514  ;;  %v9245_v44 = vadd.f32 1.0, %v12513_v33  ;;  %12532 = vpow2.f32 %v10309_v56  ;;  %v16237_v31 = vadd.f32 %v11352_v1, %v16176_v50  ;;  %v9181_v38 = vpop.f32.mrb[139].mxu1 }
0x1521   :  { %v12517_v45 = vpop.eup %12516  ;;  %v9244_v29 = vadd.f32 1.0, %v12515_v59  ;;  %12534 = vpow2.f32 %v10308_v23  ;;  %v16240_v8 = vadd.f32 %v9181_v38, %v16176_v50  ;;  %11361 = vmatprep.mubr.msk.f32.mxu0 %vm384_vm0, %v9286_v30 }
0x1522   :  { %v12519_v18 = vpop.eup %12518  ;;  %12536 = vrcp.f32 %v9245_v44  ;;  %v10311_v3 = vmul.f32 -1.442695, %v16237_v31  ;;  %11362 = vmatmul.mubr.msk.f32.vlgmr.msra.gmra.mrb[126].mxu0 %vm384_vm0, %v9287_v22  ;;  %v9289_v16 = vmul.f32 %v12517_v45, %v16187_v24 }
0x1523   :  { %v12521_v27 = vpop.eup %12520  ;;  %v9288_v9 = vmul.f32 %v12519_v18, %v16190_v2  ;;  %12538 = vrcp.f32 %v9244_v29  ;;  %v10310_v37 = vmul.f32 -1.442695, %v16240_v8 }
0x1524   :  { %v12523_v12 = vpop.eup %12522  ;;  %v9247_v21 = vadd.f32 1.0, %v12521_v27  ;;  %12540 = vpow2.f32 %v10311_v3 }
0x1525   :  { %v12525_v50 = vpop.eup %12524  ;;  %v9246_v54 = vadd.f32 1.0, %v12523_v12  ;;  %12542 = vpow2.f32 %v10310_v37  ;;  %11364 = vmatprep.mubr.msk.f32.mxu0 %vm384_vm0, %v9288_v9 }
0x1526   :  { %v12527_v55 = vpop.eup %12526  ;;  %12544 = vrcp.f32 %v9247_v21  ;;  %11365 = vmatmul.mubr.msk.f32.gmra.mrb[128].mxu0 %vm384_vm0, %v9289_v16  ;;  %v9291_v51 = vmul.f32 %v12525_v50, %v16195_v34  ;;  %v7977_v50 = vadd.f32 1e-08, %v15757_v62 }
0x1527   :  { %v12529_v40 = vpop.eup %12528  ;;  %v9290_v2 = vmul.f32 %v12527_v55, %v16198_v10  ;;  %12546 = vrcp.f32 %v9246_v54  ;;  %v7976_v54 = vadd.f32 1e-08, %v15752_v7  ;;  %v7979_v55 = vadd.f32 1e-08, %v15772_v6 }
0x1528   :  { %v12531_v14 = vpop.eup %12530  ;;  %v9249_v61 = vadd.f32 1.0, %v12529_v40  ;;  %v7978_v40 = vadd.f32 1e-08, %v15764_v41  ;;  %v7985_v7 = vadd.f32 1e-08, %v15806_v36  ;;  %v16735_v36 = vld [vmem:[#allocation6_spill] sm:$0xff] }
0x1529   :  { %v9248_v24 = vadd.f32 1.0, %v12531_v14  ;;  %11367 = vmatprep.mubr.msk.f32.mxu0 %vm384_vm0, %v9290_v2  ;;  %v7981_v14 = vadd.f32 1e-08, %v15784_v25 }
0x152a   :  { %v12533_v58 = vpop.eup %12532  ;;  %12548 = vrcp.f32 %v9249_v61  ;;  %11368 = vmatmul.mubr.msk.f32.gmra.mrb[130].mxu0 %vm384_vm0, %v9291_v51 }
0x152b   :  { %v12535_v60 = vpop.eup %12534  ;;  %12550 = vrcp.f32 %v9248_v24  ;;  %v9251_v19 = vadd.f32 1.0, %v12533_v58  ;;  %v7980_v58 = vadd.f32 1e-08, %v15766_v43 }
0x152c   :  { %v12537_v28 = vpop.eup %12536  ;;  %v9250_v46 = vadd.f32 1.0, %v12535_v60 }
0x152d   :  { %v12539_v0 = vpop.eup %12538  ;;  %12552 = vrcp.f32 %v9251_v19  ;;  %v9293_v20 = vmul.f32 %v12537_v28, %v16203_v32  ;;  %v7982_v19 = vadd.f32 1e-08, %v15781_v42 }
0x152e   :  { %v12541_v10 = vpop.eup %12540  ;;  %v9292_v11 = vmul.f32 %v12539_v0, %v16206_v17  ;;  %12554 = vrcp.f32 %v9250_v46  ;;  %v16734_v0 = vld [vmem:[#allocation20_spill] sm:$0xff] }
0x152f   :  { %v12543_v34 = vpop.eup %12542  ;;  %v9253_v47 = vadd.f32 1.0, %v12541_v10  ;;  %v7987_v43 = vadd.f32 1e-08, %v16734_v0 }
0x1530   :  { %v12545_v49 = vpop.eup %12544  ;;  %v9252_v52 = vadd.f32 1.0, %v12543_v34  ;;  %11370 = vmatprep.mubr.msk.f32.mxu0 %vm384_vm0, %v9292_v11 }
0x1531   :  { %v12547_v15 = vpop.eup %12546  ;;  %12556 = vrcp.f32 %v9253_v47  ;;  %11371 = vmatmul.mubr.msk.f32.gmra.mrb[132].mxu0 %vm384_vm0, %v9293_v20  ;;  %v9295_v56 = vmul.f32 %v12545_v49, %v16211_v39 }
0x1532   :  { %v9294_v57 = vmul.f32 %v12547_v15, %v16214_v35  ;;  %12558 = vrcp.f32 %v9252_v52  ;;  %v16737_v15 = vld [vmem:[#allocation10_spill] sm:$0xff] }
0x1533   :  { %12560 = vrsqrt.f32 %v7977_v50 }
0x1534   :  { %v12549_v33 = vpop.eup %12548  ;;  %11373 = vmatprep.mubr.msk.f32.mxu0 %vm384_vm0, %v9294_v57  ;;  %12562 = vrsqrt.f32 %v7976_v54  ;;  %v7986_v57 = vadd.f32 1e-08, %v16737_v15  ;;  %v16748_v15 = vld [vmem:[#allocation21_spill] sm:$0xff] }
0x1535   :  { %v12551_v17 = vpop.eup %12550  ;;  %11374 = vmatmul.mubr.msk.f32.gmra.mrb[134].mxu0 %vm384_vm0, %v9295_v56  ;;  %v9297_v23 = vmul.f32 %v12549_v33, %v16219_v48  ;;  %12564 = vrsqrt.f32 %v7979_v55 }
0x1536   :  { %v9296_v32 = vmul.f32 %v12551_v17, %v16222_v53  ;;  %12566 = vrsqrt.f32 %v7978_v40 }
0x1537   :  { %v12553_v30 = vpop.eup %12552  ;;  %12568 = vrsqrt.f32 %v7981_v14 }
0x1538   :  { %v12555_v1 = vpop.eup %12554  ;;  %11376 = vmatprep.mubr.msk.f32.mxu0 %vm384_vm0, %v9296_v32  ;;  %v9299_v39 = vmul.f32 %v12553_v30, %v16227_v13  ;;  %12570 = vrsqrt.f32 %v7980_v58  ;;  %v16738_v32 = vld [vmem:[#allocation16_spill] sm:$0xff] }
0x1539   :  { %v9298_v59 = vmul.f32 %v12555_v1, %v16230_v26  ;;  %11377 = vmatmul.mubr.msk.f32.gmra.mrb[136].mxu0 %vm384_vm0, %v9297_v23  ;;  %12572 = vrsqrt.f32 %v7985_v7 }
0x153a   :  { %12574 = vrsqrt.f32 %v7982_v19 }
0x153b   :  { %v12557_v35 = vpop.eup %12556  ;;  %11379 = vmatprep.mubr.msk.f32.mxu0 %vm384_vm0, %v9298_v59 }
0x153c   :  { %v12559_v22 = vpop.eup %12558  ;;  %v9301_v53 = vmul.f32 %v12557_v35, %v16237_v31 }
0x153d   :  { %v9300_v44 = vmul.f32 %v12559_v22, %v16240_v8  ;;  %11380 = vmatmul.mubr.msk.f32.gmra.mrb[138].mxu0 %vm384_vm0, %v9299_v39  ;;  %v12561_v2 = vpop.eup %12560  ;;  %v16739_v39 = vld [vmem:[#allocation7_spill] sm:$0xff] }
0x153e   :  { %v8009_v51 = vmul.f32 %v12561_v2, %v15594_v5  ;;  %v12563_v61 = vpop.eup %12562  ;;  %v7984_v5 = vadd.f32 1e-08, %v15800_v63  ;;  %v7988_v22 = vadd.f32 1e-08, %v16739_v39 }
0x153f   :  { %11382 = vmatprep.mubr.msk.f32.mxu1 %vm384_vm0, %v9300_v44  ;;  %v8008_v6 = vmul.f32 %v12563_v61, %v15587_v4  ;;  %v12565_v41 = vpop.eup %12564  ;;  %v16736_v4 = vld [vmem:[#allocation19_spill] sm:$0xff]  ;;  %v16743_v61 = vld [vmem:[#allocation46_spill] sm:$0xff] }
0x1540   :  { %11383 = vmatmul.mubr.msk.f32.vlgmr.msra.gmra.mrb[140].mxu1 %vm384_vm0, %v9301_v53  ;;  %v8011_v34 = vmul.f32 %v12565_v41, %v16735_v36  ;;  %v12567_v20 = vpop.eup %12566  ;;  %v7983_v47 = vadd.f32 1e-08, %v16736_v4  ;;  %12576 = vrsqrt.f32 %v7984_v5  ;;  %v16740_v53 = vld [vmem:[#allocation18_spill] sm:$0xff] }
0x1541   :  { %12578 = vrsqrt.f32 %v7987_v43  ;;  %v8010_v30 = vmul.f32 %v12567_v20, %v16738_v32  ;;  %v12569_v23 = vpop.eup %12568  ;;  %v16746_v43 = vld [vmem:[#allocation15_spill] sm:$0xff] }
0x1542   :  { %12580 = vrsqrt.f32 %v7983_v47  ;;  %v16747_v20 = vld [vmem:[#allocation23_spill] sm:$0xff] }
0x1543   :  { %12582 = vrsqrt.f32 %v7986_v57 }
0x1544   :  { %12584 = vrsqrt.f32 %v7988_v22 }
0x15f5   :  { %v11363_v48 = vpop.f32.mrb[126].mxu0 }
0x15f6   :  { %9507 = vperm.xlu1 %11620, %v11363_v48   ;;  %v9421_v26 = vpop.f32.mrb[127].mxu0  ;;  %v7989_v48 = vadd.f32 1e-08, %v16740_v53 }
0x15f8   :  { %12586 = vrsqrt.f32 %v7989_v48 }
0x15f9   :  { %v11366_v38 = vpop.f32.mrb[128].mxu0 }
0x15fa   :  { %9502 = vperm.xlu1 %11620, %v9421_v26   ;;  %v9431_v45 = vpop.f32.mrb[129].mxu0 }
0x15fd   :  { %v11369_v13 = vpop.f32.mrb[130].mxu0 }
0x15fe   :  { %9517 = vperm.xlu1 %11620, %v11366_v38   ;;  %v9441_v29 = vpop.f32.mrb[131].mxu0 }
0x1602   :  { %9512 = vperm.xlu1 %11620, %v9431_v45  }
0x1604   :  { %v11372_v18 = vpop.f32.mrb[132].mxu0 }
0x1605   :  { %v9451_v8 = vpop.f32.mrb[133].mxu0 }
0x1606   :  { %9527 = vperm.xlu1 %11620, %v11369_v13   ;;  %v12571_v13 = vpop.eup %12570 }
0x1608   :  { %v11375_v3 = vpop.f32.mrb[134].mxu0 }
0x1609   :  { %9547 = vperm.xlu0 %11621, %v11375_v3   ;;  %v9461_v31 = vpop.f32.mrb[135].mxu0  ;;  %v12573_v3 = vpop.eup %12572 }
0x160a   :  { %9522 = vperm.xlu1 %11620, %v9441_v29   ;;  %v12575_v50 = vpop.eup %12574 }
0x160b   :  { %v12577_v2 = vpop.eup %12576 }
0x160c   :  { %v11378_v27 = vpop.f32.mrb[136].mxu0  ;;  %v8016_v4 = vmul.f32 %v12577_v2, %v16747_v20  ;;  %v16751_v2 = vld [vmem:[#allocation17_spill] sm:$0xff] }
0x160d   :  { %9557 = vperm.xlu0 %11621, %v11378_v27   ;;  %v9471_v9 = vpop.f32.mrb[137].mxu0 }
0x160e   :  { %9542 = vperm.xlu1 %11620, %v9461_v31  }
0x1610   :  { %v11381_v37 = vpop.f32.mrb[138].mxu0 }
0x1611   :  { %9552 = vperm.xlu0 %11621, %v9471_v9   ;;  %v9481_v12 = vpop.f32.mrb[139].mxu0 }
0x1612   :  { %9532 = vperm.xlu1 %11620, %v9451_v8  }
0x1613   :  { %v11384_v16 = vpop.f32.mrb[140].mxu1 }
0x1614   :  { %v9491_v21 = vpop.f32.mrb[141].mxu1 }
0x1615   :  { %9567 = vperm.xlu0 %11621, %v11381_v37  }
0x1616   :  { %9537 = vperm.xlu1 %11620, %v11372_v18   ;;  %v16741_v18 = vld [vmem:[#allocation11_spill] sm:$0xff] }
0x1617   :  { %v8013_v8 = vmul.f32 %v12569_v23, %v16741_v18 }
0x1619   :  { %9562 = vperm.xlu0 %11621, %v9481_v12   ;;  %v16742_v12 = vld [vmem:[#allocation8_spill] sm:$0xff] }
0x161d   :  { %9572 = vperm.xlu0 %11621, %v9491_v21  }
0x1621   :  { %9577 = vperm.xlu0 %11621, %v11384_v16   ;;  %v7990_v16 = vadd.f32 1e-08, %v16742_v12 }
0x1623   :  { %12588 = vrsqrt.f32 %v7990_v16 }
0x1675   :  { %v9508_v24 = vpop.permute.xlu1 %9507 }
0x1676   :  { %v9581_v62 = vmul.f32 %v9508_v24, %v8009_v51  ;;  %v8017_v24 = vmul.f32 %v12573_v3, %v16743_v61 }
0x1678   :  { %v9603_v60 = vsel %vm282_vm1, %v9581_v62, 0.0  ;;  %v16744_v62 = vld [vmem:[#allocation9_spill] sm:$0xff] }
0x1679   :  { %v9604_v28 = vrot.slane %v9603_v60, 4  ;;  %v9503_v46 = vpop.permute.xlu1 %9502  ;;  %v8012_v7 = vmul.f32 %v12571_v13, %v16744_v62  ;;  %v16750_v13 = vld [vmem:[#allocation43_spill] sm:$0xff] }
0x167a   :  { %v9580_v25 = vmul.f32 %v9503_v46, %v8008_v6  ;;  %v16745_v46 = vld [vmem:[#allocation49_spill] sm:$0xff] }
0x167b   :  { %v9605_v10 = vadd.f32 %v9604_v28, %v9603_v60  ;;  %v12579_v60 = vpop.eup %12578  ;;  %v7991_v5 = vadd.f32 1e-08, %v16745_v46 }
0x167c   :  { %v9596_v11 = vsel %vm282_vm1, %v9580_v25, 0.0  ;;  %v8019_v57 = vmul.f32 %v12579_v60, %v16748_v15 }
0x167d   :  { %v9606_v49 = vrot.slane %v9605_v10, 2  ;;  %v9597_v42 = vrot.slane %v9596_v11, 4  ;;  %v9518_v52 = vpop.permute.xlu1 %9517  ;;  %12590 = vrsqrt.f32 %v7991_v5 }
0x167e   :  { %v9583_v63 = vmul.f32 %v9518_v52, %v8011_v34 }
0x167f   :  { %v9607_v56 = vadd.f32 %v9606_v49, %v9605_v10  ;;  %v9598_v33 = vadd.f32 %v9597_v42, %v9596_v11  ;;  %v8014_v10 = vmul.f32 %v12575_v50, %v16746_v43  ;;  %v12581_v11 = vpop.eup %12580 }
0x1680   :  { %v9617_v17 = vsel %vm282_vm1, %v9583_v63, 0.0  ;;  %v12583_v47 = vpop.eup %12582 }
0x1681   :  { %v9599_v1 = vrot.slane %v9598_v33, 2  ;;  %v9618_v59 = vrot.slane %v9617_v17, 4  ;;  %v9513_v35 = vpop.permute.xlu1 %9512  ;;  %v9608_v26 = vrot.slane %v9607_v56, 1  ;;  %v12585_v48 = vpop.eup %12584 }
0x1682   :  { %v9582_v44 = vmul.f32 %v9513_v35, %v8010_v30 }
0x1683   :  { %v9600_v38 = vadd.f32 %v9599_v1, %v9598_v33  ;;  %v9619_v45 = vadd.f32 %v9618_v59, %v9617_v17  ;;  %v9609_v54 = vadd.f32 %v9608_v26, %v9607_v56  ;;  %v16749_v59 = vld [vmem:[#allocation45_spill] sm:$0xff] }
0x1684   :  { %v9610_v29 = vsel %vm282_vm1, %v9582_v44, 0.0  ;;  %v8015_v35 = vmul.f32 %v12581_v11, %v16749_v59 }
0x1685   :  { %v9601_v31 = vrot.slane %v9600_v38, 1  ;;  %v9620_v27 = vrot.slane %v9619_v45, 2  ;;  %v9611_v9 = vrot.slane %v9610_v29, 4  ;;  %v9528_v37 = vpop.permute.xlu1 %9527 }
0x1686   :  { %v9585_v21 = vmul.f32 %v9528_v37, %v8013_v8  ;;  %v12587_v8 = vpop.eup %12586 }
0x1687   :  { %v9602_v55 = vadd.f32 %v9601_v31, %v9600_v38  ;;  %v9612_v40 = vadd.f32 %v9611_v9, %v9610_v29  ;;  %v9621_v14 = vadd.f32 %v9620_v27, %v9619_v45  ;;  %v8018_v29 = vmul.f32 %v12583_v47, %v16750_v13  ;;  %v12589_v60 = vpop.eup %12588 }
0x1688   :  { %v9631_v51 = vsel %vm282_vm1, %v9585_v21, 0.0  ;;  %v9548_v58 = vpop.permute.xlu0 %9547  ;;  %v12591_v20 = vpop.eup %12590 }
0x1689   :  { %v9724_v6 = vsel %vm2058_vm4, %v9609_v54, %v9602_v55  ;;  %v9613_v41 = vrot.slane %v9612_v40, 2  ;;  %v9632_v19 = vrot.slane %v9631_v51, 4  ;;  %v9523_v28 = vpop.permute.xlu1 %9522  ;;  %v9589_v25 = vmul.f32 %v9548_v58, %v8017_v24  ;;  %v16752_v58 = vld [vmem:[#allocation14_spill] sm:$0xff] }
0x168a   :  { %v9584_v0 = vmul.f32 %v9523_v28, %v8012_v7  ;;  %v9622_v49 = vrot.slane %v9621_v14, 1  ;;  %v8021_v62 = vmul.f32 %v12587_v8, %v16752_v58 }
0x168b   :  { %v9614_v36 = vadd.f32 %v9613_v41, %v9612_v40  ;;  %v9633_v34 = vadd.f32 %v9632_v19, %v9631_v51  ;;  %v9659_v42 = vsel %vm282_vm1, %v9589_v25, 0.0 }
0x168c   :  { %v9624_v52 = vsel %vm282_vm1, %v9584_v0, 0.0  ;;  %v9558_v63 = vpop.permute.xlu0 %9557  ;;  %v9660_v17 = vrot.slane %v9659_v42, 4  ;;  %v9623_v26 = vadd.f32 %v9622_v49, %v9621_v14  ;;  %v8020_v14 = vmul.f32 %v12585_v48, %v16751_v2 }
0x168d   :  { %v9615_v56 = vrot.slane %v9614_v36, 1  ;;  %v9634_v33 = vrot.slane %v9633_v34, 2  ;;  %v9625_v32 = vrot.slane %v9624_v52, 4  ;;  %v9543_v30 = vpop.permute.xlu1 %9542  ;;  %v9591_v23 = vmul.f32 %v9558_v63, %v8019_v57 }
0x168e   :  { %v9588_v1 = vmul.f32 %v9543_v30, %v8016_v4  ;;  %v9661_v44 = vadd.f32 %v9660_v17, %v9659_v42  ;;  %v16753_v30 = vld [vmem:[#allocation22_spill] sm:$0xff] }
0x168f   :  { %v9616_v39 = vadd.f32 %v9615_v56, %v9614_v36  ;;  %v9635_v22 = vadd.f32 %v9634_v33, %v9633_v34  ;;  %v9626_v53 = vadd.f32 %v9625_v32, %v9624_v52  ;;  %v9673_v38 = vsel %vm282_vm1, %v9591_v23, 0.0 }
0x1690   :  { %v9652_v45 = vsel %vm282_vm1, %v9588_v1, 0.0  ;;  %v9553_v18 = vpop.permute.xlu0 %9552  ;;  %v9662_v27 = vrot.slane %v9661_v44, 2  ;;  %v9674_v16 = vrot.slane %v9673_v38, 4  ;;  %v8022_v23 = vmul.f32 %v12589_v60, %v16753_v30 }
0x1691   :  { %v9725_v3 = vsel %vm2060_vm5, %v9616_v39, %v9724_v6  ;;  %v9636_v31 = vrot.slane %v9635_v22, 1  ;;  %v9627_v9 = vrot.slane %v9626_v53, 2  ;;  %v9533_v37 = vpop.permute.xlu1 %9532  ;;  %v9653_v21 = vrot.slane %v9652_v45, 4 }
0x1692   :  { %v9726_v12 = vsel %vm2062_vm6, %v9623_v26, %v9725_v3  ;;  %v9590_v50 = vmul.f32 %v9553_v18, %v8018_v29  ;;  %v9663_v54 = vadd.f32 %v9662_v27, %v9661_v44  ;;  %v9586_v40 = vmul.f32 %v9533_v37, %v8014_v10  ;;  %v16754_v37 = vld [vmem:[#allocation42_spill] sm:$0xff] }
0x1693   :  { %v9628_v55 = vadd.f32 %v9627_v9, %v9626_v53  ;;  %v9675_v51 = vadd.f32 %v9674_v16, %v9673_v38  ;;  %v9654_v61 = vadd.f32 %v9653_v21, %v9652_v45  ;;  %v9637_v6 = vadd.f32 %v9636_v31, %v9635_v22 }
0x1694   :  { %v9666_v24 = vsel %vm282_vm1, %v9590_v50, 0.0  ;;  %v9568_v7 = vpop.permute.xlu0 %9567  ;;  %v9638_v28 = vsel %vm282_vm1, %v9586_v40, 0.0  ;;  %v9664_v10 = vrot.slane %v9663_v54, 1 }
0x1695   :  { %v9629_v41 = vrot.slane %v9628_v55, 1  ;;  %v9667_v19 = vrot.slane %v9666_v24, 4  ;;  %v9538_v46 = vpop.permute.xlu1 %9537  ;;  %v9676_v5 = vrot.slane %v9675_v51, 2  ;;  %v9655_v25 = vrot.slane %v9654_v61, 2 }
0x1696   :  { %v9639_v0 = vrot.slane %v9638_v28, 4  ;;  %v9593_v43 = vmul.f32 %v9568_v7, %v8021_v62  ;;  %v9587_v34 = vmul.f32 %v9538_v46, %v8015_v35  ;;  %v9665_v22 = vadd.f32 %v9664_v10, %v9663_v54 }
0x1697   :  { %v9630_v11 = vadd.f32 %v9629_v41, %v9628_v55  ;;  %v9668_v36 = vadd.f32 %v9667_v19, %v9666_v24  ;;  %v9677_v4 = vadd.f32 %v9676_v5, %v9675_v51  ;;  %v9656_v47 = vadd.f32 %v9655_v25, %v9654_v61 }
0x1698   :  { %v9640_v49 = vadd.f32 %v9639_v0, %v9638_v28  ;;  %v9687_v42 = vsel %vm282_vm1, %v9593_v43, 0.0  ;;  %v9563_v52 = vpop.permute.xlu0 %9562  ;;  %v9645_v56 = vsel %vm282_vm1, %v9587_v34, 0.0 }
0x1699   :  { %v9727_v15 = vsel %vm2064_vm7, %v9630_v11, %v9726_v12  ;;  %v9669_v57 = vrot.slane %v9668_v36, 2  ;;  %v9688_v63 = vrot.slane %v9687_v42, 4  ;;  %v9657_v33 = vrot.slane %v9656_v47, 1  ;;  %v16755_v11 = vld [vmem:[#allocation44_spill] sm:$0xff] }
0x169a   :  { %v9728_v17 = vsel %vm2066_vm8, %v9637_v6, %v9727_v15  ;;  %v9641_v32 = vrot.slane %v9640_v49, 2  ;;  %v9646_v35 = vrot.slane %v9645_v56, 4  ;;  %v9592_v39 = vmul.f32 %v9563_v52, %v8020_v14 }
0x169b   :  { %v9670_v1 = vadd.f32 %v9669_v57, %v9668_v36  ;;  %v9689_v59 = vadd.f32 %v9688_v63, %v9687_v42  ;;  %v9678_v44 = vrot.slane %v9677_v4, 1  ;;  %v9658_v53 = vadd.f32 %v9657_v33, %v9656_v47 }
0x169c   :  { %v9642_v48 = vadd.f32 %v9641_v32, %v9640_v49  ;;  %v9573_v26 = vpop.permute.xlu0 %9572  ;;  %v9647_v13 = vadd.f32 %v9646_v35, %v9645_v56  ;;  %v9680_v29 = vsel %vm282_vm1, %v9592_v39, 0.0  ;;  %v8023_v12 = vmul.f32 %v12591_v20, %v16754_v37  ;;  %v12597_v49 = vld [vmem:[%s16355_s1] sm:$0xff]  ;;  %v16756_v35 = vld [vmem:[#allocation13_spill] sm:$0xff] }
0x169d   :  { %v9671_v38 = vrot.slane %v9670_v1, 1  ;;  %v9690_v45 = vrot.slane %v9689_v59, 2  ;;  %v9731_v18 = vsel %vm2058_vm4, %v9665_v22, %v9658_v53  ;;  %v9681_v3 = vrot.slane %v9680_v29, 4 }
0x169e   :  { %v9643_v8 = vrot.slane %v9642_v48, 1  ;;  %v9594_v31 = vmul.f32 %v9573_v26, %v8022_v23  ;;  %v9648_v9 = vrot.slane %v9647_v13, 2  ;;  %v9679_v16 = vadd.f32 %v9678_v44, %v9677_v4  ;;  %v12598_v44 = vld [vmem:[%s16355_s1 + $0x8] sm:$0xff] }
0x169f   :  { %v9672_v27 = vadd.f32 %v9671_v38, %v9670_v1  ;;  %v9682_v50 = vadd.f32 %v9681_v3, %v9680_v29  ;;  %v9691_v2 = vadd.f32 %v9690_v45, %v9689_v59 }
0x16a0   :  { %v9644_v21 = vadd.f32 %v9643_v8, %v9642_v48  ;;  %v9694_v54 = vsel %vm282_vm1, %v9594_v31, 0.0  ;;  %v9578_v55 = vpop.permute.xlu0 %9577  ;;  %v9649_v14 = vadd.f32 %v9648_v9, %v9647_v13 }
0x16a1   :  { %v9732_v40 = vsel %vm2060_vm5, %v9672_v27, %v9731_v18  ;;  %v9695_v51 = vrot.slane %v9694_v54, 4  ;;  %v9683_v58 = vrot.slane %v9682_v50, 2  ;;  %v9595_v62 = vmul.f32 %v9578_v55, %v8023_v12 }
0x16a2   :  { %v9729_v61 = vsel %vm2068_vm9, %v9644_v21, %v9728_v17  ;;  %v9733_v24 = vsel %vm2062_vm6, %v9679_v16, %v9732_v40  ;;  %v9650_v7 = vrot.slane %v9649_v14, 1  ;;  %v9692_v19 = vrot.slane %v9691_v2, 1 }
0x16a3   :  { %v9696_v60 = vadd.f32 %v9695_v51, %v9694_v54  ;;  %v9684_v6 = vadd.f32 %v9683_v58, %v9682_v50  ;;  %v9701_v41 = vsel %vm282_vm1, %v9595_v62, 0.0 }
0x16a4   :  { %v9651_v28 = vadd.f32 %v9650_v7, %v9649_v14  ;;  %v9702_v5 = vrot.slane %v9701_v41, 4  ;;  %v9693_v20 = vadd.f32 %v9692_v19, %v9691_v2 }
0x16a5   :  { %v9697_v46 = vrot.slane %v9696_v60, 2  ;;  %v9685_v25 = vrot.slane %v9684_v6, 1 }
0x16a6   :  { %v9730_v0 = vsel %vm2070_vm10, %v9651_v28, %v9729_v61  ;;  %v9703_v10 = vadd.f32 %v9702_v5, %v9701_v41 }
0x16a7   :  { %v9698_v43 = vadd.f32 %v9697_v46, %v9696_v60  ;;  %v9740_v36 = vadd.f32 %v9730_v0, %v16755_v11  ;;  %v9686_v34 = vadd.f32 %v9685_v25, %v9684_v6 }
0x16a8   :  { %v9704_v47 = vrot.slane %v9703_v10, 2 }
0x16a9   :  { %v9699_v4 = vrot.slane %v9698_v43, 1  ;;  %v9742_v42 = vsub.f32 %v9740_v36, %v12597_v49  ;;  %v9734_v52 = vsel %vm2064_vm7, %v9686_v34, %v9733_v24 }
0x16aa   :  { %v9735_v15 = vsel %vm2066_vm8, %v9693_v20, %v9734_v52  ;;  %v9705_v57 = vadd.f32 %v9704_v47, %v9703_v10 }
0x16ab   :  { %v9744_v63 = vsel %vm282_vm1, %v9742_v42, 0.0  ;;  %v9700_v56 = vadd.f32 %v9699_v4, %v9698_v43 }
0x16ac   :  { %v9745_v33 = vrot.slane %v9744_v63, 4  ;;  %v9706_v17 = vrot.slane %v9705_v57, 1 }
0x16ad   :  { %v9736_v23 = vsel %vm2068_vm9, %v9700_v56, %v9735_v15 }
0x16ae   :  { %v9746_v32 = vadd.f32 %v9745_v33, %v9744_v63  ;;  %v9707_v30 = vadd.f32 %v9706_v17, %v9705_v57 }
0x16b0   :  { %v9747_v1 = vrot.slane %v9746_v32, 2  ;;  %v9737_v59 = vsel %vm2070_vm10, %v9707_v30, %v9736_v23 }
0x16b1   :  { %v9741_v39 = vadd.f32 %v9737_v59, %v16756_v35 }
0x16b2   :  { %v9748_v22 = vadd.f32 %v9747_v1, %v9746_v32 }
0x16b3   :  { %v9743_v53 = vsub.f32 %v9741_v39, %v12598_v44 }
0x16b4   :  { %v9749_v48 = vrot.slane %v9748_v22, 1 }
0x16b5   :  { %v9751_v26 = vsel %vm282_vm1, %v9743_v53, 0.0 }
0x16b6   :  { %v9750_v38 = vadd.f32 %v9749_v48, %v9748_v22  ;;  %v9752_v45 = vrot.slane %v9751_v26, 4 }
0x16b8   :  { %v9759_v13 = vmul.f32 0.125, %v9750_v38  ;;  %v9753_v29 = vadd.f32 %v9752_v45, %v9751_v26 }
0x16ba   :  { %v9761_v18 = vsub.f32 %v9742_v42, %v9759_v13  ;;  %v9754_v8 = vrot.slane %v9753_v29, 2 }
0x16bc   :  { %9763 = vst.msk [vmem:[%s16366_s12] sm:$0xff] %vm282_vm1, %v9761_v18  ;;  %v9755_v3 = vadd.f32 %v9754_v8, %v9753_v29 }
0x16be   :  { %v9756_v31 = vrot.slane %v9755_v3, 1 }
0x16c0   :  { %v9757_v27 = vadd.f32 %v9756_v31, %v9755_v3 }
0x16c2   :  { %v9760_v9 = vmul.f32 0.125, %v9757_v27 }
0x16c4   :  { %v9762_v37 = vsub.f32 %v9743_v53, %v9760_v9 }
0x16c6   :  { %9764 = vst.msk [vmem:[%s16366_s12 + $0x8] sm:$0xff] %vm282_vm1, %v9762_v37 }
0x16c7   :  { %9769 = vsyncpa [#allocation4], 1 }

</bundles_post_ra>
